<compile_context>
chip_gen: v7x
topology: tpu7x:2x2x1
jax: 0.10.0
libtpu: 0.0.40
codegen_flags: <defaults>
</compile_context>

<pallas_src>
import jax
import jax.numpy as jnp
from jax.experimental import pallas as pl
from jax.experimental.pallas import tpu as pltpu


_DEBUG_CHECK = False  # set True (and run un-jitted) to verify each layer vs XLA conv


# ----------------------------- glue (plain JAX) ------------------------------

def _dilate_and_pad(x, stride, pad, out_pad, k=3):
    """Zero-dilate by `stride` and pad so that a VALID stride-1 conv with a
    flipped kernel reproduces ConvTranspose3d(stride, pad, out_pad)."""
    N, D, H, W, C = x.shape
    Dd = (D - 1) * stride[0] + 1
    Hd = (H - 1) * stride[1] + 1
    Wd = (W - 1) * stride[2] + 1
    xd = jnp.zeros((N, Dd, Hd, Wd, C), x.dtype)
    xd = xd.at[:, ::stride[0], ::stride[1], ::stride[2], :].set(x)
    pads = (
        (0, 0),
        (k - 1 - pad[0], k - 1 - pad[0] + out_pad[0]),
        (k - 1 - pad[1], k - 1 - pad[1] + out_pad[1]),
        (k - 1 - pad[2], k - 1 - pad[2] + out_pad[2]),
        (0, 0),
    )
    return jnp.pad(xd, pads)


def _fold_weight_convT(w_t):
    """PyTorch ConvTranspose3d weight (Cin, Cout, 3,3,3) -> regular-conv weight
    with the W taps folded into K: shape (3, 3, 3*Cin, Cout), indexed
    [a, b, c*Cin + ci, co] = w_t[ci, co, 2-a, 2-b, 2-c]."""
    cin, cout = w_t.shape[0], w_t.shape[1]
    w = jnp.flip(w_t, axis=(2, 3, 4))          # spatial flip
    w = jnp.transpose(w, (2, 3, 4, 0, 1))      # (a, b, c, Cin, Cout)
    return w.reshape(3, 3, 3 * cin, cout)


def _layer_reference(xp, w_t, scale, shift, act, slope):
    """XLA reference (debug only): conv on the same dilated/padded input."""
    cout = w_t.shape[1]
    w5 = jnp.transpose(jnp.flip(w_t, axis=(2, 3, 4)), (2, 3, 4, 0, 1))
    ref = jax.lax.conv_general_dilated(
        xp.astype(jnp.float32), w5.astype(jnp.float32), (1, 1, 1), "VALID",
        dimension_numbers=("NDHWC", "DHWIO", "NDHWC"),
        precision=jax.lax.Precision.HIGHEST)
    ref = ref * scale.reshape(1, 1, 1, 1, cout) + shift.reshape(1, 1, 1, 1, cout)
    if act == "leaky":
        ref = jnp.where(ref >= 0, ref, slope * ref)
    else:
        ref = jnp.tanh(ref) * 10.0
    return ref


# ------------------------------ Pallas kernel --------------------------------

def _make_kernel(M, Wo, act, slope):
    """One grid step = one output depth plane (M = Ho*Wo rows) x one depth tap.

    out[m, co] = act( sum_{a,b} dot(patch_ab, W[a,b])[m, co] * scale[co]
                      + shift[co] )
    where the W-direction taps are already folded into K (K = 3*Cin), the
    H-direction taps b are a short unrolled loop, and the D-direction taps a
    form the last (reduction) grid axis accumulated in an f32 VMEM scratch."""
    def kernel(x_ref, w_ref, sc_ref, sh_ref, out_ref, acc_ref):
        a = pl.program_id(2)

        @pl.when(a == 0)
        def _init():
            acc_ref[...] = jnp.zeros_like(acc_ref)

        acc = acc_ref[...]
        for b in range(3):                                  # H taps, unrolled
            patch = x_ref[pl.ds(b * Wo, M), :]              # (M, 3*Cin)
            acc = acc + jnp.dot(patch, w_ref[a, b],
                                preferred_element_type=jnp.float32)
        acc_ref[...] = acc

        @pl.when(a == pl.num_programs(2) - 1)
        def _finalize():
            y = acc_ref[...] * sc_ref[...] + sh_ref[...]    # fused BN / bias (f32)
            if act == "leaky":
                y = jnp.where(y >= 0.0, y, slope * y)
            elif act == "tanh10":
                y = jnp.tanh(y) * 10.0
            out_ref[...] = y.astype(out_ref.dtype)
    return kernel


def convt3d_pallas(x, w_t, scale, shift, *, stride, pad, out_pad, act,
                   slope=0.2, compute_dtype=jnp.bfloat16, out_dtype=None):
    """ConvTranspose3d + per-channel affine (eval-mode BN / bias) + activation.
    x: (N, D, H, W, Cin), w_t: (Cin, Cout, 3, 3, 3)."""
    N, D, H, W, Cin = x.shape
    Cout = w_t.shape[1]
    if out_dtype is None:
        out_dtype = compute_dtype

    xp = _dilate_and_pad(x, stride, pad, out_pad)           # (N, Dp, Hp, Wp, Cin)
    _, Dp, Hp, Wp, _ = xp.shape
    Do, Ho, Wo = Dp - 2, Hp - 2, Wp - 2
    M = Ho * Wo

    # Fold the 3 W-direction taps into the channel/K dimension (plain JAX) so
    # the kernel contracts over K = 3*Cin, then flatten (Hp, Wo) so every
    # in-kernel load/dot/store is a plain 2-D tile.
    xcat = jnp.concatenate([xp[:, :, :, c:c + Wo, :] for c in range(3)], axis=-1)
    xcat = xcat.reshape(N, Dp, Hp * Wo, 3 * Cin).astype(compute_dtype)

    wf = _fold_weight_convT(w_t).astype(compute_dtype)      # (3, 3, 3*Cin, Cout)
    sc = scale.reshape(1, Cout).astype(jnp.float32)
    sh = shift.reshape(1, Cout).astype(jnp.float32)

    kernel = _make_kernel(M, Wo, act, slope)
    out = pl.pallas_call(
        kernel,
        out_shape=jax.ShapeDtypeStruct((N, Do, M, Cout), out_dtype),
        grid=(N, Do, 3),                       # depth-tap reduction axis last
        in_specs=[
            # one padded depth plane (d + a) per step: VMEM stays bounded,
            # no full-volume residency.
            pl.BlockSpec((None, None, Hp * Wo, 3 * Cin),
                         lambda n, d, a: (n, d + a, 0, 0)),
            pl.BlockSpec((3, 3, 3 * Cin, Cout), lambda n, d, a: (0, 0, 0, 0)),
            pl.BlockSpec((1, Cout), lambda n, d, a: (0, 0)),
            pl.BlockSpec((1, Cout), lambda n, d, a: (0, 0)),
        ],
        out_specs=pl.BlockSpec((None, None, M, Cout),
                               lambda n, d, a: (n, d, 0, 0)),
        scratch_shapes=[pltpu.VMEM((M, Cout), jnp.float32)],
        compiler_params=pltpu.CompilerParams(
            dimension_semantics=("parallel", "parallel", "arbitrary"),
            vmem_limit_bytes=64 * 1024 * 1024),
    )(xcat, wf, sc, sh)

    out5 = out.reshape(N, Do, Ho, Wo, Cout)                 # free reshape

    if _DEBUG_CHECK:  # debug only; requires running un-jitted
        ref = _layer_reference(xp, w_t, scale, shift, act, slope)
        assert bool(jnp.allclose(out5.astype(jnp.float32), ref,
                                 atol=1e-1, rtol=1e-1)), "mismatch vs reference"
    return out5


# ------------------------------- decoder model -------------------------------

def reconstruction3d_decoder(x_ndhwc, params, compute_dtype=jnp.bfloat16):
    """Full decoder forward. x_ndhwc: (N, D, H, W, embed_dim[0])."""
    (w1, s1, h1), (w2, s2, h2), (w3, s3, h3), (w4, b4) = params
    y = convt3d_pallas(x_ndhwc, w1, s1, h1, stride=(2, 1, 1), pad=(1, 1, 1),
                       out_pad=(1, 0, 0), act="leaky", compute_dtype=compute_dtype)
    y = convt3d_pallas(y, w2, s2, h2, stride=(2, 2, 2), pad=(1, 1, 1),
                       out_pad=(1, 1, 1), act="leaky", compute_dtype=compute_dtype)
    y = convt3d_pallas(y, w3, s3, h3, stride=(2, 2, 2), pad=(1, 1, 1),
                       out_pad=(1, 1, 1), act="leaky", compute_dtype=compute_dtype)
    ones = jnp.ones((w4.shape[1],), jnp.float32)
    y = convt3d_pallas(y, w4, ones, b4, stride=(1, 2, 2), pad=(1, 1, 1),
                       out_pad=(0, 1, 1), act="tanh10",
                       compute_dtype=compute_dtype, out_dtype=jnp.float32)
    return y


def _bn_fused(key, c, eps=1e-5):
    # TODO(synk): BatchNorm3d is fused in eval (running-stats) mode only;
    # training-mode batch statistics are not reproduced.
    kg, kb, km, kv = jax.random.split(key, 4)
    gamma = 1.0 + 0.1 * jax.random.normal(kg, (c,), jnp.float32)
    beta = 0.1 * jax.random.normal(kb, (c,), jnp.float32)
    mean = 0.1 * jax.random.normal(km, (c,), jnp.float32)
    var = 1.0 + 0.1 * jax.random.uniform(kv, (c,), jnp.float32)
    scale = gamma / jnp.sqrt(var + eps)
    shift = beta - mean * scale
    return scale, shift


if __name__ == "__main__":
    key = jax.random.PRNGKey(0)
    chnum_in = 6
    embed_dim = [32, 16, 8]            # small analogue of [256, 128, 96]
    N, D, H, W = 1, 2, 4, 4

    keys = jax.random.split(key, 9)
    # PyTorch-style NCDHW input, converted to NDHWC for the kernels.
    x_ncdhw = jax.random.normal(keys[0], (N, embed_dim[0], D, H, W), jnp.float32)
    x = jnp.transpose(x_ncdhw, (0, 2, 3, 4, 1))

    def wt(k, cin, cout):  # ConvTranspose3d weight: (Cin, Cout, 3, 3, 3)
        return 0.1 * jax.random.normal(k, (cin, cout, 3, 3, 3), jnp.float32)

    w1 = wt(keys[1], embed_dim[0], embed_dim[0])
    w2 = wt(keys[2], embed_dim[0], embed_dim[1])
    w3 = wt(keys[3], embed_dim[1], embed_dim[2])
    w4 = wt(keys[4], embed_dim[2], chnum_in)
    b4 = 0.05 * jax.random.normal(keys[5], (chnum_in,), jnp.float32)

    s1, h1 = _bn_fused(keys[6], embed_dim[0])
    s2, h2 = _bn_fused(keys[7], embed_dim[1])
    s3, h3 = _bn_fused(keys[8], embed_dim[2])

    params = ((w1, s1, h1), (w2, s2, h2), (w3, s3, h3), (w4, b4))

    fwd = jax.jit(reconstruction3d_decoder)
    y = fwd(x, params)
    y = jax.block_until_ready(y)

    out_ncdhw = jnp.transpose(y, (0, 4, 1, 2, 3))           # back to PyTorch NCDHW
    assert out_ncdhw.shape == (N, chnum_in, 16, 32, 32), out_ncdhw.shape
    assert bool(jnp.all(jnp.isfinite(out_ncdhw)))
    print("KERNEL_OK")
</pallas_src>

<mosaic_0001>
module attributes {stable_mosaic.version = 11 : i64} {
  func.func @kernel(%arg0: i32, %arg1: i32, %arg2: i32, %arg3: memref<1x1x24x96xbf16, #tpu.memory_space<vmem>>, %arg4: memref<3x3x96x32xbf16, #tpu.memory_space<vmem>>, %arg5: memref<1x32xf32, #tpu.memory_space<vmem>>, %arg6: memref<1x32xf32, #tpu.memory_space<vmem>>, %arg7: memref<1x1x16x32xbf16, #tpu.memory_space<vmem>>, %arg8: memref<16x32xf32, #tpu.memory_space<vmem>>) attributes {dimension_semantics = [#tpu.dimension_semantics<parallel>, #tpu.dimension_semantics<parallel>, #tpu.dimension_semantics<arbitrary>], iteration_bounds = array<i64: 1, 4, 3>, scalar_prefetch = 0 : i64, scratch_operands = 1 : i64, tpu.core_type = #tpu.core_type<tc>, window_params = [{transform_indices = @transform_0, window_bounds = array<i64: 1, 1, 24, 96>}, {pipeline_mode = #tpu.pipeline_mode<synchronous>, transform_indices = @transform_1, window_bounds = array<i64: 3, 3, 96, 32>}, {pipeline_mode = #tpu.pipeline_mode<synchronous>, transform_indices = @transform_2, window_bounds = array<i64: 1, 32>}, {pipeline_mode = #tpu.pipeline_mode<synchronous>, transform_indices = @transform_3, window_bounds = array<i64: 1, 32>}, {transform_indices = @transform_4, window_bounds = array<i64: 1, 1, 16, 32>}]} {
    %c0_i32 = arith.constant 0 : i32
    %0 = arith.cmpi eq, %arg2, %c0_i32 : i32
    %1 = arith.extui %0 : i1 to i32
    %c0_i32_0 = arith.constant 0 : i32
    %2 = arith.cmpi ne, %1, %c0_i32_0 : i32
    scf.if %2 {
      %cst_24 = arith.constant 0.000000e+00 : f32
      %29 = vector.broadcast %cst_24 : f32 to vector<16x32xf32>
      %c0_25 = arith.constant 0 : index
      %c0_26 = arith.constant 0 : index
      %30 = vector.load %arg8[%c0_25, %c0_26] : memref<16x32xf32, #tpu.memory_space<vmem>>, vector<16x32xf32>
      tpu.vector_store %arg8[%c0_25, %c0_26], %29 {strides = array<i32>} : memref<16x32xf32, #tpu.memory_space<vmem>>, vector<16x32xf32>,
    } else {
    }
    %c0 = arith.constant 0 : index
    %c0_1 = arith.constant 0 : index
    %3 = vector.load %arg8[%c0, %c0_1] : memref<16x32xf32, #tpu.memory_space<vmem>>, vector<16x32xf32>
    %c0_2 = arith.constant 0 : index
    %c0_3 = arith.constant 0 : index
    %c0_4 = arith.constant 0 : index
    %c0_5 = arith.constant 0 : index
    %4 = vector.load %arg3[%c0_2, %c0_3, %c0_4, %c0_5] : memref<1x1x24x96xbf16, #tpu.memory_space<vmem>>, vector<1x1x16x96xbf16>
    %5 = vector.shape_cast %4 : vector<1x1x16x96xbf16> to vector<16x96xbf16>
    %6 = arith.index_cast %arg2 : i32 to index
    %c0_6 = arith.constant 0 : index
    %c0_7 = arith.constant 0 : index
    %c0_8 = arith.constant 0 : index
    %7 = vector.load %arg4[%6, %c0_6, %c0_7, %c0_8] : memref<3x3x96x32xbf16, #tpu.memory_space<vmem>>, vector<1x1x96x32xbf16>
    %8 = vector.shape_cast %7 : vector<1x1x96x32xbf16> to vector<96x32xbf16>
    %cst = arith.constant dense<0.000000e+00> : vector<16x32xf32>
    %9 = tpu.matmul %5, %8, %cst {dimension_numbers = #tpu.dot_dimension_numbers<[1], [0], [0], [1], [0, 0, 1, 1], [], []>} : vector<16x96xbf16>, vector<96x32xbf16>, vector<16x32xf32> -> vector<16x32xf32>
    %10 = arith.addf %3, %9 : vector<16x32xf32>
    %c0_9 = arith.constant 0 : index
    %c0_10 = arith.constant 0 : index
    %c4 = arith.constant 4 : index
    %c0_11 = arith.constant 0 : index
    %11 = vector.load %arg3[%c0_9, %c0_10, %c4, %c0_11] : memref<1x1x24x96xbf16, #tpu.memory_space<vmem>>, vector<1x1x16x96xbf16>
    %12 = vector.shape_cast %11 : vector<1x1x16x96xbf16> to vector<16x96xbf16>
    %13 = arith.index_cast %arg2 : i32 to index
    %c1 = arith.constant 1 : index
    %c0_12 = arith.constant 0 : index
    %c0_13 = arith.constant 0 : index
    %14 = vector.load %arg4[%13, %c1, %c0_12, %c0_13] : memref<3x3x96x32xbf16, #tpu.memory_space<vmem>>, vector<1x1x96x32xbf16>
    %15 = vector.shape_cast %14 : vector<1x1x96x32xbf16> to vector<96x32xbf16>
    %cst_14 = arith.constant dense<0.000000e+00> : vector<16x32xf32>
    %16 = tpu.matmul %12, %15, %cst_14 {dimension_numbers = #tpu.dot_dimension_numbers<[1], [0], [0], [1], [0, 0, 1, 1], [], []>} : vector<16x96xbf16>, vector<96x32xbf16>, vector<16x32xf32> -> vector<16x32xf32>
    %17 = arith.addf %10, %16 : vector<16x32xf32>
    %c0_15 = arith.constant 0 : index
    %c0_16 = arith.constant 0 : index
    %c8 = arith.constant 8 : index
    %c0_17 = arith.constant 0 : index
    %18 = vector.load %arg3[%c0_15, %c0_16, %c8, %c0_17] : memref<1x1x24x96xbf16, #tpu.memory_space<vmem>>, vector<1x1x16x96xbf16>
    %19 = vector.shape_cast %18 : vector<1x1x16x96xbf16> to vector<16x96xbf16>
    %20 = arith.index_cast %arg2 : i32 to index
    %c2 = arith.constant 2 : index
    %c0_18 = arith.constant 0 : index
    %c0_19 = arith.constant 0 : index
    %21 = vector.load %arg4[%20, %c2, %c0_18, %c0_19] : memref<3x3x96x32xbf16, #tpu.memory_space<vmem>>, vector<1x1x96x32xbf16>
    %22 = vector.shape_cast %21 : vector<1x1x96x32xbf16> to vector<96x32xbf16>
    %cst_20 = arith.constant dense<0.000000e+00> : vector<16x32xf32>
    %23 = tpu.matmul %19, %22, %cst_20 {dimension_numbers = #tpu.dot_dimension_numbers<[1], [0], [0], [1], [0, 0, 1, 1], [], []>} : vector<16x96xbf16>, vector<96x32xbf16>, vector<16x32xf32> -> vector<16x32xf32>
    %24 = arith.addf %17, %23 : vector<16x32xf32>
    %c0_21 = arith.constant 0 : index
    %c0_22 = arith.constant 0 : index
    %25 = vector.load %arg8[%c0_21, %c0_22] : memref<16x32xf32, #tpu.memory_space<vmem>>, vector<16x32xf32>
    tpu.vector_store %arg8[%c0_21, %c0_22], %24 {strides = array<i32>} : memref<16x32xf32, #tpu.memory_space<vmem>>, vector<16x32xf32>,
    %c2_i32 = arith.constant 2 : i32
    %26 = arith.cmpi eq, %arg2, %c2_i32 : i32
    %27 = arith.extui %26 : i1 to i32
    %c0_i32_23 = arith.constant 0 : i32
    %28 = arith.cmpi ne, %27, %c0_i32_23 : i32
    scf.if %28 {
      %c0_24 = arith.constant 0 : index
      %c0_25 = arith.constant 0 : index
      %29 = vector.load %arg8[%c0_24, %c0_25] : memref<16x32xf32, #tpu.memory_space<vmem>>, vector<16x32xf32>
      %c0_26 = arith.constant 0 : index
      %c0_27 = arith.constant 0 : index
      %30 = vector.load %arg5[%c0_26, %c0_27] : memref<1x32xf32, #tpu.memory_space<vmem>>, vector<1x32xf32>
      %31 = vector.broadcast %30 : vector<1x32xf32> to vector<16x32xf32>
      %32 = arith.mulf %29, %31 : vector<16x32xf32>
      %c0_28 = arith.constant 0 : index
      %c0_29 = arith.constant 0 : index
      %33 = vector.load %arg6[%c0_28, %c0_29] : memref<1x32xf32, #tpu.memory_space<vmem>>, vector<1x32xf32>
      %34 = vector.broadcast %33 : vector<1x32xf32> to vector<16x32xf32>
      %35 = arith.addf %32, %34 : vector<16x32xf32>
      %cst_30 = arith.constant 0.000000e+00 : f32
      %36 = vector.broadcast %cst_30 : f32 to vector<16x32xf32>
      %37 = arith.cmpf oge, %35, %36 : vector<16x32xf32>
      %cst_31 = arith.constant 2.000000e-01 : f32
      %38 = vector.broadcast %cst_31 : f32 to vector<16x32xf32>
      %39 = arith.mulf %38, %35 : vector<16x32xf32>
      %40 = arith.select %37, %35, %39 : vector<16x32xi1>, vector<16x32xf32>
      %41 = arith.truncf %40 : vector<16x32xf32> to vector<16x32xbf16>
      %c0_32 = arith.constant 0 : index
      %c0_33 = arith.constant 0 : index
      %c0_34 = arith.constant 0 : index
      %c0_35 = arith.constant 0 : index
      %42 = vector.load %arg7[%c0_32, %c0_33, %c0_34, %c0_35] : memref<1x1x16x32xbf16, #tpu.memory_space<vmem>>, vector<1x1x16x32xbf16>
      %43 = vector.shape_cast %42 : vector<1x1x16x32xbf16> to vector<16x32xbf16>
      %44 = vector.shape_cast %41 : vector<16x32xbf16> to vector<1x1x16x32xbf16>
      tpu.vector_store %arg7[%c0_32, %c0_33, %c0_34, %c0_35], %44 {strides = array<i32>} : memref<1x1x16x32xbf16, #tpu.memory_space<vmem>>, vector<1x1x16x32xbf16>,
    } else {
    }
    return
  }
  func.func @transform_0(%arg0: i32, %arg1: i32, %arg2: i32) -> (i32, i32, i32, i32) {
    %0 = arith.addi %arg1, %arg2 : i32
    %c0_i32 = arith.constant 0 : i32
    %c0_i32_0 = arith.constant 0 : i32
    %c0_i32_1 = arith.constant 0 : i32
    return %arg0, %0, %c0_i32, %c0_i32_0 : i32, i32, i32, i32
  }
  func.func @transform_1(%arg0: i32, %arg1: i32, %arg2: i32) -> (i32, i32, i32, i32) {
    %c0_i32 = arith.constant 0 : i32
    %c0_i32_0 = arith.constant 0 : i32
    %c0_i32_1 = arith.constant 0 : i32
    %c0_i32_2 = arith.constant 0 : i32
    %c0_i32_3 = arith.constant 0 : i32
    return %c0_i32, %c0_i32_0, %c0_i32_1, %c0_i32_2 : i32, i32, i32, i32
  }
  func.func @transform_2(%arg0: i32, %arg1: i32, %arg2: i32) -> (i32, i32) {
    %c0_i32 = arith.constant 0 : i32
    %c0_i32_0 = arith.constant 0 : i32
    %c0_i32_1 = arith.constant 0 : i32
    return %c0_i32, %c0_i32_0 : i32, i32
  }
  func.func @transform_3(%arg0: i32, %arg1: i32, %arg2: i32) -> (i32, i32) {
    %c0_i32 = arith.constant 0 : i32
    %c0_i32_0 = arith.constant 0 : i32
    %c0_i32_1 = arith.constant 0 : i32
    return %c0_i32, %c0_i32_0 : i32, i32
  }
  func.func @transform_4(%arg0: i32, %arg1: i32, %arg2: i32) -> (i32, i32, i32, i32) {
    %c0_i32 = arith.constant 0 : i32
    %c0_i32_0 = arith.constant 0 : i32
    %c0_i32_1 = arith.constant 0 : i32
    return %arg0, %arg1, %c0_i32, %c0_i32_0 : i32, i32, i32, i32
  }
}

module attributes {stable_mosaic.version = 11 : i64} {
  func.func @kernel(%arg0: i32, %arg1: i32, %arg2: i32, %arg3: memref<1x1x80x96xbf16, #tpu.memory_space<vmem>>, %arg4: memref<3x3x96x16xbf16, #tpu.memory_space<vmem>>, %arg5: memref<1x16xf32, #tpu.memory_space<vmem>>, %arg6: memref<1x16xf32, #tpu.memory_space<vmem>>, %arg7: memref<1x1x64x16xbf16, #tpu.memory_space<vmem>>, %arg8: memref<64x16xf32, #tpu.memory_space<vmem>>) attributes {dimension_semantics = [#tpu.dimension_semantics<parallel>, #tpu.dimension_semantics<parallel>, #tpu.dimension_semantics<arbitrary>], iteration_bounds = array<i64: 1, 8, 3>, scalar_prefetch = 0 : i64, scratch_operands = 1 : i64, tpu.core_type = #tpu.core_type<tc>, window_params = [{transform_indices = @transform_0, window_bounds = array<i64: 1, 1, 80, 96>}, {pipeline_mode = #tpu.pipeline_mode<synchronous>, transform_indices = @transform_1, window_bounds = array<i64: 3, 3, 96, 16>}, {pipeline_mode = #tpu.pipeline_mode<synchronous>, transform_indices = @transform_2, window_bounds = array<i64: 1, 16>}, {pipeline_mode = #tpu.pipeline_mode<synchronous>, transform_indices = @transform_3, window_bounds = array<i64: 1, 16>}, {transform_indices = @transform_4, window_bounds = array<i64: 1, 1, 64, 16>}]} {
    %c0_i32 = arith.constant 0 : i32
    %0 = arith.cmpi eq, %arg2, %c0_i32 : i32
    %1 = arith.extui %0 : i1 to i32
    %c0_i32_0 = arith.constant 0 : i32
    %2 = arith.cmpi ne, %1, %c0_i32_0 : i32
    scf.if %2 {
      %cst_24 = arith.constant 0.000000e+00 : f32
      %29 = vector.broadcast %cst_24 : f32 to vector<64x16xf32>
      %c0_25 = arith.constant 0 : index
      %c0_26 = arith.constant 0 : index
      %30 = vector.load %arg8[%c0_25, %c0_26] : memref<64x16xf32, #tpu.memory_space<vmem>>, vector<64x16xf32>
      tpu.vector_store %arg8[%c0_25, %c0_26], %29 {strides = array<i32>} : memref<64x16xf32, #tpu.memory_space<vmem>>, vector<64x16xf32>,
    } else {
    }
    %c0 = arith.constant 0 : index
    %c0_1 = arith.constant 0 : index
    %3 = vector.load %arg8[%c0, %c0_1] : memref<64x16xf32, #tpu.memory_space<vmem>>, vector<64x16xf32>
    %c0_2 = arith.constant 0 : index
    %c0_3 = arith.constant 0 : index
    %c0_4 = arith.constant 0 : index
    %c0_5 = arith.constant 0 : index
    %4 = vector.load %arg3[%c0_2, %c0_3, %c0_4, %c0_5] : memref<1x1x80x96xbf16, #tpu.memory_space<vmem>>, vector<1x1x64x96xbf16>
    %5 = vector.shape_cast %4 : vector<1x1x64x96xbf16> to vector<64x96xbf16>
    %6 = arith.index_cast %arg2 : i32 to index
    %c0_6 = arith.constant 0 : index
    %c0_7 = arith.constant 0 : index
    %c0_8 = arith.constant 0 : index
    %7 = vector.load %arg4[%6, %c0_6, %c0_7, %c0_8] : memref<3x3x96x16xbf16, #tpu.memory_space<vmem>>, vector<1x1x96x16xbf16>
    %8 = vector.shape_cast %7 : vector<1x1x96x16xbf16> to vector<96x16xbf16>
    %cst = arith.constant dense<0.000000e+00> : vector<64x16xf32>
    %9 = tpu.matmul %5, %8, %cst {dimension_numbers = #tpu.dot_dimension_numbers<[1], [0], [0], [1], [0, 0, 1, 1], [], []>} : vector<64x96xbf16>, vector<96x16xbf16>, vector<64x16xf32> -> vector<64x16xf32>
    %10 = arith.addf %3, %9 : vector<64x16xf32>
    %c0_9 = arith.constant 0 : index
    %c0_10 = arith.constant 0 : index
    %c8 = arith.constant 8 : index
    %c0_11 = arith.constant 0 : index
    %11 = vector.load %arg3[%c0_9, %c0_10, %c8, %c0_11] : memref<1x1x80x96xbf16, #tpu.memory_space<vmem>>, vector<1x1x64x96xbf16>
    %12 = vector.shape_cast %11 : vector<1x1x64x96xbf16> to vector<64x96xbf16>
    %13 = arith.index_cast %arg2 : i32 to index
    %c1 = arith.constant 1 : index
    %c0_12 = arith.constant 0 : index
    %c0_13 = arith.constant 0 : index
    %14 = vector.load %arg4[%13, %c1, %c0_12, %c0_13] : memref<3x3x96x16xbf16, #tpu.memory_space<vmem>>, vector<1x1x96x16xbf16>
    %15 = vector.shape_cast %14 : vector<1x1x96x16xbf16> to vector<96x16xbf16>
    %cst_14 = arith.constant dense<0.000000e+00> : vector<64x16xf32>
    %16 = tpu.matmul %12, %15, %cst_14 {dimension_numbers = #tpu.dot_dimension_numbers<[1], [0], [0], [1], [0, 0, 1, 1], [], []>} : vector<64x96xbf16>, vector<96x16xbf16>, vector<64x16xf32> -> vector<64x16xf32>
    %17 = arith.addf %10, %16 : vector<64x16xf32>
    %c0_15 = arith.constant 0 : index
    %c0_16 = arith.constant 0 : index
    %c16 = arith.constant 16 : index
    %c0_17 = arith.constant 0 : index
    %18 = vector.load %arg3[%c0_15, %c0_16, %c16, %c0_17] : memref<1x1x80x96xbf16, #tpu.memory_space<vmem>>, vector<1x1x64x96xbf16>
    %19 = vector.shape_cast %18 : vector<1x1x64x96xbf16> to vector<64x96xbf16>
    %20 = arith.index_cast %arg2 : i32 to index
    %c2 = arith.constant 2 : index
    %c0_18 = arith.constant 0 : index
    %c0_19 = arith.constant 0 : index
    %21 = vector.load %arg4[%20, %c2, %c0_18, %c0_19] : memref<3x3x96x16xbf16, #tpu.memory_space<vmem>>, vector<1x1x96x16xbf16>
    %22 = vector.shape_cast %21 : vector<1x1x96x16xbf16> to vector<96x16xbf16>
    %cst_20 = arith.constant dense<0.000000e+00> : vector<64x16xf32>
    %23 = tpu.matmul %19, %22, %cst_20 {dimension_numbers = #tpu.dot_dimension_numbers<[1], [0], [0], [1], [0, 0, 1, 1], [], []>} : vector<64x96xbf16>, vector<96x16xbf16>, vector<64x16xf32> -> vector<64x16xf32>
    %24 = arith.addf %17, %23 : vector<64x16xf32>
    %c0_21 = arith.constant 0 : index
    %c0_22 = arith.constant 0 : index
    %25 = vector.load %arg8[%c0_21, %c0_22] : memref<64x16xf32, #tpu.memory_space<vmem>>, vector<64x16xf32>
    tpu.vector_store %arg8[%c0_21, %c0_22], %24 {strides = array<i32>} : memref<64x16xf32, #tpu.memory_space<vmem>>, vector<64x16xf32>,
    %c2_i32 = arith.constant 2 : i32
    %26 = arith.cmpi eq, %arg2, %c2_i32 : i32
    %27 = arith.extui %26 : i1 to i32
    %c0_i32_23 = arith.constant 0 : i32
    %28 = arith.cmpi ne, %27, %c0_i32_23 : i32
    scf.if %28 {
      %c0_24 = arith.constant 0 : index
      %c0_25 = arith.constant 0 : index
      %29 = vector.load %arg8[%c0_24, %c0_25] : memref<64x16xf32, #tpu.memory_space<vmem>>, vector<64x16xf32>
      %c0_26 = arith.constant 0 : index
      %c0_27 = arith.constant 0 : index
      %30 = vector.load %arg5[%c0_26, %c0_27] : memref<1x16xf32, #tpu.memory_space<vmem>>, vector<1x16xf32>
      %31 = vector.broadcast %30 : vector<1x16xf32> to vector<64x16xf32>
      %32 = arith.mulf %29, %31 : vector<64x16xf32>
      %c0_28 = arith.constant 0 : index
      %c0_29 = arith.constant 0 : index
      %33 = vector.load %arg6[%c0_28, %c0_29] : memref<1x16xf32, #tpu.memory_space<vmem>>, vector<1x16xf32>
      %34 = vector.broadcast %33 : vector<1x16xf32> to vector<64x16xf32>
      %35 = arith.addf %32, %34 : vector<64x16xf32>
      %cst_30 = arith.constant 0.000000e+00 : f32
      %36 = vector.broadcast %cst_30 : f32 to vector<64x16xf32>
      %37 = arith.cmpf oge, %35, %36 : vector<64x16xf32>
      %cst_31 = arith.constant 2.000000e-01 : f32
      %38 = vector.broadcast %cst_31 : f32 to vector<64x16xf32>
      %39 = arith.mulf %38, %35 : vector<64x16xf32>
      %40 = arith.select %37, %35, %39 : vector<64x16xi1>, vector<64x16xf32>
      %41 = arith.truncf %40 : vector<64x16xf32> to vector<64x16xbf16>
      %c0_32 = arith.constant 0 : index
      %c0_33 = arith.constant 0 : index
      %c0_34 = arith.constant 0 : index
      %c0_35 = arith.constant 0 : index
      %42 = vector.load %arg7[%c0_32, %c0_33, %c0_34, %c0_35] : memref<1x1x64x16xbf16, #tpu.memory_space<vmem>>, vector<1x1x64x16xbf16>
      %43 = vector.shape_cast %42 : vector<1x1x64x16xbf16> to vector<64x16xbf16>
      %44 = vector.shape_cast %41 : vector<64x16xbf16> to vector<1x1x64x16xbf16>
      tpu.vector_store %arg7[%c0_32, %c0_33, %c0_34, %c0_35], %44 {strides = array<i32>} : memref<1x1x64x16xbf16, #tpu.memory_space<vmem>>, vector<1x1x64x16xbf16>,
    } else {
    }
    return
  }
  func.func @transform_0(%arg0: i32, %arg1: i32, %arg2: i32) -> (i32, i32, i32, i32) {
    %0 = arith.addi %arg1, %arg2 : i32
    %c0_i32 = arith.constant 0 : i32
    %c0_i32_0 = arith.constant 0 : i32
    %c0_i32_1 = arith.constant 0 : i32
    return %arg0, %0, %c0_i32, %c0_i32_0 : i32, i32, i32, i32
  }
  func.func @transform_1(%arg0: i32, %arg1: i32, %arg2: i32) -> (i32, i32, i32, i32) {
    %c0_i32 = arith.constant 0 : i32
    %c0_i32_0 = arith.constant 0 : i32
    %c0_i32_1 = arith.constant 0 : i32
    %c0_i32_2 = arith.constant 0 : i32
    %c0_i32_3 = arith.constant 0 : i32
    return %c0_i32, %c0_i32_0, %c0_i32_1, %c0_i32_2 : i32, i32, i32, i32
  }
  func.func @transform_2(%arg0: i32, %arg1: i32, %arg2: i32) -> (i32, i32) {
    %c0_i32 = arith.constant 0 : i32
    %c0_i32_0 = arith.constant 0 : i32
    %c0_i32_1 = arith.constant 0 : i32
    return %c0_i32, %c0_i32_0 : i32, i32
  }
  func.func @transform_3(%arg0: i32, %arg1: i32, %arg2: i32) -> (i32, i32) {
    %c0_i32 = arith.constant 0 : i32
    %c0_i32_0 = arith.constant 0 : i32
    %c0_i32_1 = arith.constant 0 : i32
    return %c0_i32, %c0_i32_0 : i32, i32
  }
  func.func @transform_4(%arg0: i32, %arg1: i32, %arg2: i32) -> (i32, i32, i32, i32) {
    %c0_i32 = arith.constant 0 : i32
    %c0_i32_0 = arith.constant 0 : i32
    %c0_i32_1 = arith.constant 0 : i32
    return %arg0, %arg1, %c0_i32, %c0_i32_0 : i32, i32, i32, i32
  }
}

module attributes {stable_mosaic.version = 11 : i64} {
  func.func @kernel(%arg0: i32, %arg1: i32, %arg2: i32, %arg3: memref<1x1x288x48xbf16, #tpu.memory_space<vmem>>, %arg4: memref<3x3x48x8xbf16, #tpu.memory_space<vmem>>, %arg5: memref<1x8xf32, #tpu.memory_space<vmem>>, %arg6: memref<1x8xf32, #tpu.memory_space<vmem>>, %arg7: memref<1x1x256x8xbf16, #tpu.memory_space<vmem>>, %arg8: memref<256x8xf32, #tpu.memory_space<vmem>>) attributes {dimension_semantics = [#tpu.dimension_semantics<parallel>, #tpu.dimension_semantics<parallel>, #tpu.dimension_semantics<arbitrary>], iteration_bounds = array<i64: 1, 16, 3>, scalar_prefetch = 0 : i64, scratch_operands = 1 : i64, tpu.core_type = #tpu.core_type<tc>, window_params = [{transform_indices = @transform_0, window_bounds = array<i64: 1, 1, 288, 48>}, {pipeline_mode = #tpu.pipeline_mode<synchronous>, transform_indices = @transform_1, window_bounds = array<i64: 3, 3, 48, 8>}, {pipeline_mode = #tpu.pipeline_mode<synchronous>, transform_indices = @transform_2, window_bounds = array<i64: 1, 8>}, {pipeline_mode = #tpu.pipeline_mode<synchronous>, transform_indices = @transform_3, window_bounds = array<i64: 1, 8>}, {transform_indices = @transform_4, window_bounds = array<i64: 1, 1, 256, 8>}]} {
    %c0_i32 = arith.constant 0 : i32
    %0 = arith.cmpi eq, %arg2, %c0_i32 : i32
    %1 = arith.extui %0 : i1 to i32
    %c0_i32_0 = arith.constant 0 : i32
    %2 = arith.cmpi ne, %1, %c0_i32_0 : i32
    scf.if %2 {
      %cst_24 = arith.constant 0.000000e+00 : f32
      %29 = vector.broadcast %cst_24 : f32 to vector<256x8xf32>
      %c0_25 = arith.constant 0 : index
      %c0_26 = arith.constant 0 : index
      %30 = vector.load %arg8[%c0_25, %c0_26] : memref<256x8xf32, #tpu.memory_space<vmem>>, vector<256x8xf32>
      tpu.vector_store %arg8[%c0_25, %c0_26], %29 {strides = array<i32>} : memref<256x8xf32, #tpu.memory_space<vmem>>, vector<256x8xf32>,
    } else {
    }
    %c0 = arith.constant 0 : index
    %c0_1 = arith.constant 0 : index
    %3 = vector.load %arg8[%c0, %c0_1] : memref<256x8xf32, #tpu.memory_space<vmem>>, vector<256x8xf32>
    %c0_2 = arith.constant 0 : index
    %c0_3 = arith.constant 0 : index
    %c0_4 = arith.constant 0 : index
    %c0_5 = arith.constant 0 : index
    %4 = vector.load %arg3[%c0_2, %c0_3, %c0_4, %c0_5] : memref<1x1x288x48xbf16, #tpu.memory_space<vmem>>, vector<1x1x256x48xbf16>
    %5 = vector.shape_cast %4 : vector<1x1x256x48xbf16> to vector<256x48xbf16>
    %6 = arith.index_cast %arg2 : i32 to index
    %c0_6 = arith.constant 0 : index
    %c0_7 = arith.constant 0 : index
    %c0_8 = arith.constant 0 : index
    %7 = vector.load %arg4[%6, %c0_6, %c0_7, %c0_8] : memref<3x3x48x8xbf16, #tpu.memory_space<vmem>>, vector<1x1x48x8xbf16>
    %8 = vector.shape_cast %7 : vector<1x1x48x8xbf16> to vector<48x8xbf16>
    %cst = arith.constant dense<0.000000e+00> : vector<256x8xf32>
    %9 = tpu.matmul %5, %8, %cst {dimension_numbers = #tpu.dot_dimension_numbers<[1], [0], [0], [1], [0, 0, 1, 1], [], []>} : vector<256x48xbf16>, vector<48x8xbf16>, vector<256x8xf32> -> vector<256x8xf32>
    %10 = arith.addf %3, %9 : vector<256x8xf32>
    %c0_9 = arith.constant 0 : index
    %c0_10 = arith.constant 0 : index
    %c16 = arith.constant 16 : index
    %c0_11 = arith.constant 0 : index
    %11 = vector.load %arg3[%c0_9, %c0_10, %c16, %c0_11] : memref<1x1x288x48xbf16, #tpu.memory_space<vmem>>, vector<1x1x256x48xbf16>
    %12 = vector.shape_cast %11 : vector<1x1x256x48xbf16> to vector<256x48xbf16>
    %13 = arith.index_cast %arg2 : i32 to index
    %c1 = arith.constant 1 : index
    %c0_12 = arith.constant 0 : index
    %c0_13 = arith.constant 0 : index
    %14 = vector.load %arg4[%13, %c1, %c0_12, %c0_13] : memref<3x3x48x8xbf16, #tpu.memory_space<vmem>>, vector<1x1x48x8xbf16>
    %15 = vector.shape_cast %14 : vector<1x1x48x8xbf16> to vector<48x8xbf16>
    %cst_14 = arith.constant dense<0.000000e+00> : vector<256x8xf32>
    %16 = tpu.matmul %12, %15, %cst_14 {dimension_numbers = #tpu.dot_dimension_numbers<[1], [0], [0], [1], [0, 0, 1, 1], [], []>} : vector<256x48xbf16>, vector<48x8xbf16>, vector<256x8xf32> -> vector<256x8xf32>
    %17 = arith.addf %10, %16 : vector<256x8xf32>
    %c0_15 = arith.constant 0 : index
    %c0_16 = arith.constant 0 : index
    %c32 = arith.constant 32 : index
    %c0_17 = arith.constant 0 : index
    %18 = vector.load %arg3[%c0_15, %c0_16, %c32, %c0_17] : memref<1x1x288x48xbf16, #tpu.memory_space<vmem>>, vector<1x1x256x48xbf16>
    %19 = vector.shape_cast %18 : vector<1x1x256x48xbf16> to vector<256x48xbf16>
    %20 = arith.index_cast %arg2 : i32 to index
    %c2 = arith.constant 2 : index
    %c0_18 = arith.constant 0 : index
    %c0_19 = arith.constant 0 : index
    %21 = vector.load %arg4[%20, %c2, %c0_18, %c0_19] : memref<3x3x48x8xbf16, #tpu.memory_space<vmem>>, vector<1x1x48x8xbf16>
    %22 = vector.shape_cast %21 : vector<1x1x48x8xbf16> to vector<48x8xbf16>
    %cst_20 = arith.constant dense<0.000000e+00> : vector<256x8xf32>
    %23 = tpu.matmul %19, %22, %cst_20 {dimension_numbers = #tpu.dot_dimension_numbers<[1], [0], [0], [1], [0, 0, 1, 1], [], []>} : vector<256x48xbf16>, vector<48x8xbf16>, vector<256x8xf32> -> vector<256x8xf32>
    %24 = arith.addf %17, %23 : vector<256x8xf32>
    %c0_21 = arith.constant 0 : index
    %c0_22 = arith.constant 0 : index
    %25 = vector.load %arg8[%c0_21, %c0_22] : memref<256x8xf32, #tpu.memory_space<vmem>>, vector<256x8xf32>
    tpu.vector_store %arg8[%c0_21, %c0_22], %24 {strides = array<i32>} : memref<256x8xf32, #tpu.memory_space<vmem>>, vector<256x8xf32>,
    %c2_i32 = arith.constant 2 : i32
    %26 = arith.cmpi eq, %arg2, %c2_i32 : i32
    %27 = arith.extui %26 : i1 to i32
    %c0_i32_23 = arith.constant 0 : i32
    %28 = arith.cmpi ne, %27, %c0_i32_23 : i32
    scf.if %28 {
      %c0_24 = arith.constant 0 : index
      %c0_25 = arith.constant 0 : index
      %29 = vector.load %arg8[%c0_24, %c0_25] : memref<256x8xf32, #tpu.memory_space<vmem>>, vector<256x8xf32>
      %c0_26 = arith.constant 0 : index
      %c0_27 = arith.constant 0 : index
      %30 = vector.load %arg5[%c0_26, %c0_27] : memref<1x8xf32, #tpu.memory_space<vmem>>, vector<1x8xf32>
      %31 = vector.broadcast %30 : vector<1x8xf32> to vector<256x8xf32>
      %32 = arith.mulf %29, %31 : vector<256x8xf32>
      %c0_28 = arith.constant 0 : index
      %c0_29 = arith.constant 0 : index
      %33 = vector.load %arg6[%c0_28, %c0_29] : memref<1x8xf32, #tpu.memory_space<vmem>>, vector<1x8xf32>
      %34 = vector.broadcast %33 : vector<1x8xf32> to vector<256x8xf32>
      %35 = arith.addf %32, %34 : vector<256x8xf32>
      %cst_30 = arith.constant 0.000000e+00 : f32
      %36 = vector.broadcast %cst_30 : f32 to vector<256x8xf32>
      %37 = arith.cmpf oge, %35, %36 : vector<256x8xf32>
      %cst_31 = arith.constant 2.000000e-01 : f32
      %38 = vector.broadcast %cst_31 : f32 to vector<256x8xf32>
      %39 = arith.mulf %38, %35 : vector<256x8xf32>
      %40 = arith.select %37, %35, %39 : vector<256x8xi1>, vector<256x8xf32>
      %41 = arith.truncf %40 : vector<256x8xf32> to vector<256x8xbf16>
      %c0_32 = arith.constant 0 : index
      %c0_33 = arith.constant 0 : index
      %c0_34 = arith.constant 0 : index
      %c0_35 = arith.constant 0 : index
      %42 = vector.load %arg7[%c0_32, %c0_33, %c0_34, %c0_35] : memref<1x1x256x8xbf16, #tpu.memory_space<vmem>>, vector<1x1x256x8xbf16>
      %43 = vector.shape_cast %42 : vector<1x1x256x8xbf16> to vector<256x8xbf16>
      %44 = vector.shape_cast %41 : vector<256x8xbf16> to vector<1x1x256x8xbf16>
      tpu.vector_store %arg7[%c0_32, %c0_33, %c0_34, %c0_35], %44 {strides = array<i32>} : memref<1x1x256x8xbf16, #tpu.memory_space<vmem>>, vector<1x1x256x8xbf16>,
    } else {
    }
    return
  }
  func.func @transform_0(%arg0: i32, %arg1: i32, %arg2: i32) -> (i32, i32, i32, i32) {
    %0 = arith.addi %arg1, %arg2 : i32
    %c0_i32 = arith.constant 0 : i32
    %c0_i32_0 = arith.constant 0 : i32
    %c0_i32_1 = arith.constant 0 : i32
    return %arg0, %0, %c0_i32, %c0_i32_0 : i32, i32, i32, i32
  }
  func.func @transform_1(%arg0: i32, %arg1: i32, %arg2: i32) -> (i32, i32, i32, i32) {
    %c0_i32 = arith.constant 0 : i32
    %c0_i32_0 = arith.constant 0 : i32
    %c0_i32_1 = arith.constant 0 : i32
    %c0_i32_2 = arith.constant 0 : i32
    %c0_i32_3 = arith.constant 0 : i32
    return %c0_i32, %c0_i32_0, %c0_i32_1, %c0_i32_2 : i32, i32, i32, i32
  }
  func.func @transform_2(%arg0: i32, %arg1: i32, %arg2: i32) -> (i32, i32) {
    %c0_i32 = arith.constant 0 : i32
    %c0_i32_0 = arith.constant 0 : i32
    %c0_i32_1 = arith.constant 0 : i32
    return %c0_i32, %c0_i32_0 : i32, i32
  }
  func.func @transform_3(%arg0: i32, %arg1: i32, %arg2: i32) -> (i32, i32) {
    %c0_i32 = arith.constant 0 : i32
    %c0_i32_0 = arith.constant 0 : i32
    %c0_i32_1 = arith.constant 0 : i32
    return %c0_i32, %c0_i32_0 : i32, i32
  }
  func.func @transform_4(%arg0: i32, %arg1: i32, %arg2: i32) -> (i32, i32, i32, i32) {
    %c0_i32 = arith.constant 0 : i32
    %c0_i32_0 = arith.constant 0 : i32
    %c0_i32_1 = arith.constant 0 : i32
    return %arg0, %arg1, %c0_i32, %c0_i32_0 : i32, i32, i32, i32
  }
}

module attributes {stable_mosaic.version = 11 : i64} {
  func.func @kernel(%arg0: i32, %arg1: i32, %arg2: i32, %arg3: memref<1x1x1088x24xbf16, #tpu.memory_space<vmem>>, %arg4: memref<3x3x24x6xbf16, #tpu.memory_space<vmem>>, %arg5: memref<1x6xf32, #tpu.memory_space<vmem>>, %arg6: memref<1x6xf32, #tpu.memory_space<vmem>>, %arg7: memref<1x1x1024x6xf32, #tpu.memory_space<vmem>>, %arg8: memref<1024x6xf32, #tpu.memory_space<vmem>>) attributes {dimension_semantics = [#tpu.dimension_semantics<parallel>, #tpu.dimension_semantics<parallel>, #tpu.dimension_semantics<arbitrary>], iteration_bounds = array<i64: 1, 16, 3>, scalar_prefetch = 0 : i64, scratch_operands = 1 : i64, tpu.core_type = #tpu.core_type<tc>, window_params = [{transform_indices = @transform_0, window_bounds = array<i64: 1, 1, 1088, 24>}, {pipeline_mode = #tpu.pipeline_mode<synchronous>, transform_indices = @transform_1, window_bounds = array<i64: 3, 3, 24, 6>}, {pipeline_mode = #tpu.pipeline_mode<synchronous>, transform_indices = @transform_2, window_bounds = array<i64: 1, 6>}, {pipeline_mode = #tpu.pipeline_mode<synchronous>, transform_indices = @transform_3, window_bounds = array<i64: 1, 6>}, {transform_indices = @transform_4, window_bounds = array<i64: 1, 1, 1024, 6>}]} {
    %c0_i32 = arith.constant 0 : i32
    %0 = arith.cmpi eq, %arg2, %c0_i32 : i32
    %1 = arith.extui %0 : i1 to i32
    %c0_i32_0 = arith.constant 0 : i32
    %2 = arith.cmpi ne, %1, %c0_i32_0 : i32
    scf.if %2 {
      %cst_24 = arith.constant 0.000000e+00 : f32
      %29 = vector.broadcast %cst_24 : f32 to vector<1024x6xf32>
      %c0_25 = arith.constant 0 : index
      %c0_26 = arith.constant 0 : index
      %30 = vector.load %arg8[%c0_25, %c0_26] : memref<1024x6xf32, #tpu.memory_space<vmem>>, vector<1024x6xf32>
      tpu.vector_store %arg8[%c0_25, %c0_26], %29 {strides = array<i32>} : memref<1024x6xf32, #tpu.memory_space<vmem>>, vector<1024x6xf32>,
    } else {
    }
    %c0 = arith.constant 0 : index
    %c0_1 = arith.constant 0 : index
    %3 = vector.load %arg8[%c0, %c0_1] : memref<1024x6xf32, #tpu.memory_space<vmem>>, vector<1024x6xf32>
    %c0_2 = arith.constant 0 : index
    %c0_3 = arith.constant 0 : index
    %c0_4 = arith.constant 0 : index
    %c0_5 = arith.constant 0 : index
    %4 = vector.load %arg3[%c0_2, %c0_3, %c0_4, %c0_5] : memref<1x1x1088x24xbf16, #tpu.memory_space<vmem>>, vector<1x1x1024x24xbf16>
    %5 = vector.shape_cast %4 : vector<1x1x1024x24xbf16> to vector<1024x24xbf16>
    %6 = arith.index_cast %arg2 : i32 to index
    %c0_6 = arith.constant 0 : index
    %c0_7 = arith.constant 0 : index
    %c0_8 = arith.constant 0 : index
    %7 = vector.load %arg4[%6, %c0_6, %c0_7, %c0_8] : memref<3x3x24x6xbf16, #tpu.memory_space<vmem>>, vector<1x1x24x6xbf16>
    %8 = vector.shape_cast %7 : vector<1x1x24x6xbf16> to vector<24x6xbf16>
    %cst = arith.constant dense<0.000000e+00> : vector<1024x6xf32>
    %9 = tpu.matmul %5, %8, %cst {dimension_numbers = #tpu.dot_dimension_numbers<[1], [0], [0], [1], [0, 0, 1, 1], [], []>} : vector<1024x24xbf16>, vector<24x6xbf16>, vector<1024x6xf32> -> vector<1024x6xf32>
    %10 = arith.addf %3, %9 : vector<1024x6xf32>
    %c0_9 = arith.constant 0 : index
    %c0_10 = arith.constant 0 : index
    %c32 = arith.constant 32 : index
    %c0_11 = arith.constant 0 : index
    %11 = vector.load %arg3[%c0_9, %c0_10, %c32, %c0_11] : memref<1x1x1088x24xbf16, #tpu.memory_space<vmem>>, vector<1x1x1024x24xbf16>
    %12 = vector.shape_cast %11 : vector<1x1x1024x24xbf16> to vector<1024x24xbf16>
    %13 = arith.index_cast %arg2 : i32 to index
    %c1 = arith.constant 1 : index
    %c0_12 = arith.constant 0 : index
    %c0_13 = arith.constant 0 : index
    %14 = vector.load %arg4[%13, %c1, %c0_12, %c0_13] : memref<3x3x24x6xbf16, #tpu.memory_space<vmem>>, vector<1x1x24x6xbf16>
    %15 = vector.shape_cast %14 : vector<1x1x24x6xbf16> to vector<24x6xbf16>
    %cst_14 = arith.constant dense<0.000000e+00> : vector<1024x6xf32>
    %16 = tpu.matmul %12, %15, %cst_14 {dimension_numbers = #tpu.dot_dimension_numbers<[1], [0], [0], [1], [0, 0, 1, 1], [], []>} : vector<1024x24xbf16>, vector<24x6xbf16>, vector<1024x6xf32> -> vector<1024x6xf32>
    %17 = arith.addf %10, %16 : vector<1024x6xf32>
    %c0_15 = arith.constant 0 : index
    %c0_16 = arith.constant 0 : index
    %c64 = arith.constant 64 : index
    %c0_17 = arith.constant 0 : index
    %18 = vector.load %arg3[%c0_15, %c0_16, %c64, %c0_17] : memref<1x1x1088x24xbf16, #tpu.memory_space<vmem>>, vector<1x1x1024x24xbf16>
    %19 = vector.shape_cast %18 : vector<1x1x1024x24xbf16> to vector<1024x24xbf16>
    %20 = arith.index_cast %arg2 : i32 to index
    %c2 = arith.constant 2 : index
    %c0_18 = arith.constant 0 : index
    %c0_19 = arith.constant 0 : index
    %21 = vector.load %arg4[%20, %c2, %c0_18, %c0_19] : memref<3x3x24x6xbf16, #tpu.memory_space<vmem>>, vector<1x1x24x6xbf16>
    %22 = vector.shape_cast %21 : vector<1x1x24x6xbf16> to vector<24x6xbf16>
    %cst_20 = arith.constant dense<0.000000e+00> : vector<1024x6xf32>
    %23 = tpu.matmul %19, %22, %cst_20 {dimension_numbers = #tpu.dot_dimension_numbers<[1], [0], [0], [1], [0, 0, 1, 1], [], []>} : vector<1024x24xbf16>, vector<24x6xbf16>, vector<1024x6xf32> -> vector<1024x6xf32>
    %24 = arith.addf %17, %23 : vector<1024x6xf32>
    %c0_21 = arith.constant 0 : index
    %c0_22 = arith.constant 0 : index
    %25 = vector.load %arg8[%c0_21, %c0_22] : memref<1024x6xf32, #tpu.memory_space<vmem>>, vector<1024x6xf32>
    tpu.vector_store %arg8[%c0_21, %c0_22], %24 {strides = array<i32>} : memref<1024x6xf32, #tpu.memory_space<vmem>>, vector<1024x6xf32>,
    %c2_i32 = arith.constant 2 : i32
    %26 = arith.cmpi eq, %arg2, %c2_i32 : i32
    %27 = arith.extui %26 : i1 to i32
    %c0_i32_23 = arith.constant 0 : i32
    %28 = arith.cmpi ne, %27, %c0_i32_23 : i32
    scf.if %28 {
      %c0_24 = arith.constant 0 : index
      %c0_25 = arith.constant 0 : index
      %29 = vector.load %arg8[%c0_24, %c0_25] : memref<1024x6xf32, #tpu.memory_space<vmem>>, vector<1024x6xf32>
      %c0_26 = arith.constant 0 : index
      %c0_27 = arith.constant 0 : index
      %30 = vector.load %arg5[%c0_26, %c0_27] : memref<1x6xf32, #tpu.memory_space<vmem>>, vector<1x6xf32>
      %31 = vector.broadcast %30 : vector<1x6xf32> to vector<1024x6xf32>
      %32 = arith.mulf %29, %31 : vector<1024x6xf32>
      %c0_28 = arith.constant 0 : index
      %c0_29 = arith.constant 0 : index
      %33 = vector.load %arg6[%c0_28, %c0_29] : memref<1x6xf32, #tpu.memory_space<vmem>>, vector<1x6xf32>
      %34 = vector.broadcast %33 : vector<1x6xf32> to vector<1024x6xf32>
      %35 = arith.addf %32, %34 : vector<1024x6xf32>
      %36 = math.tanh %35 : vector<1024x6xf32>
      %cst_30 = arith.constant 1.000000e+01 : f32
      %37 = vector.broadcast %cst_30 : f32 to vector<1024x6xf32>
      %38 = arith.mulf %36, %37 : vector<1024x6xf32>
      %c0_31 = arith.constant 0 : index
      %c0_32 = arith.constant 0 : index
      %c0_33 = arith.constant 0 : index
      %c0_34 = arith.constant 0 : index
      %39 = vector.load %arg7[%c0_31, %c0_32, %c0_33, %c0_34] : memref<1x1x1024x6xf32, #tpu.memory_space<vmem>>, vector<1x1x1024x6xf32>
      %40 = vector.shape_cast %39 : vector<1x1x1024x6xf32> to vector<1024x6xf32>
      %41 = vector.shape_cast %38 : vector<1024x6xf32> to vector<1x1x1024x6xf32>
      tpu.vector_store %arg7[%c0_31, %c0_32, %c0_33, %c0_34], %41 {strides = array<i32>} : memref<1x1x1024x6xf32, #tpu.memory_space<vmem>>, vector<1x1x1024x6xf32>,
    } else {
    }
    return
  }
  func.func @transform_0(%arg0: i32, %arg1: i32, %arg2: i32) -> (i32, i32, i32, i32) {
    %0 = arith.addi %arg1, %arg2 : i32
    %c0_i32 = arith.constant 0 : i32
    %c0_i32_0 = arith.constant 0 : i32
    %c0_i32_1 = arith.constant 0 : i32
    return %arg0, %0, %c0_i32, %c0_i32_0 : i32, i32, i32, i32
  }
  func.func @transform_1(%arg0: i32, %arg1: i32, %arg2: i32) -> (i32, i32, i32, i32) {
    %c0_i32 = arith.constant 0 : i32
    %c0_i32_0 = arith.constant 0 : i32
    %c0_i32_1 = arith.constant 0 : i32
    %c0_i32_2 = arith.constant 0 : i32
    %c0_i32_3 = arith.constant 0 : i32
    return %c0_i32, %c0_i32_0, %c0_i32_1, %c0_i32_2 : i32, i32, i32, i32
  }
  func.func @transform_2(%arg0: i32, %arg1: i32, %arg2: i32) -> (i32, i32) {
    %c0_i32 = arith.constant 0 : i32
    %c0_i32_0 = arith.constant 0 : i32
    %c0_i32_1 = arith.constant 0 : i32
    return %c0_i32, %c0_i32_0 : i32, i32
  }
  func.func @transform_3(%arg0: i32, %arg1: i32, %arg2: i32) -> (i32, i32) {
    %c0_i32 = arith.constant 0 : i32
    %c0_i32_0 = arith.constant 0 : i32
    %c0_i32_1 = arith.constant 0 : i32
    return %c0_i32, %c0_i32_0 : i32, i32
  }
  func.func @transform_4(%arg0: i32, %arg1: i32, %arg2: i32) -> (i32, i32, i32, i32) {
    %c0_i32 = arith.constant 0 : i32
    %c0_i32_0 = arith.constant 0 : i32
    %c0_i32_1 = arith.constant 0 : i32
    return %arg0, %arg1, %c0_i32, %c0_i32_0 : i32, i32, i32, i32
  }
}

</mosaic_0001>

<bundles_post_ra>
// kernel: reconstruction3d_decoder.4
= control target key start
LH: loop header
LB: loop body
LE: loop exit
PB: predicated region body
PF: predicated region fallthrough
CT: control target
= control target key end

     0   :  { %s1813_s0 = inlined_call_operand.hbm [shape: bf16[1,6,24,96], index: 0, kind: input, shape index: {}]   ;;  %s1814_s1 = inlined_call_operand.hbm [shape: bf16[3,3,96,32], index: 1, kind: input, shape index: {}]   ;;  %s1815_s2 = inlined_call_operand.hbm [shape: f32[1,32], index: 2, kind: input, shape index: {}]   ;;  %s1816_s3 = inlined_call_operand.hbm [shape: f32[1,32], index: 3, kind: input, shape index: {}]   ;;  %s1817_s4 = inlined_call_operand.hbm [shape: bf16[1,4,16,32], index: 4, kind: output, shape index: {}]  }
   0x1   :  { %1830 = sst [smem:[#allocation20_spill]] %s1814_s1 }
   0x2   :  { %1831 = sst [smem:[#allocation21_spill]] %s1815_s2 }
   0x3   :  { %1832 = sst [smem:[#allocation22_spill]] %s1817_s4 }
   0x4   :  { %9 = vsyncpa [#allocation4], 0 }
   0x5   :  { %11 = vsyncpa [#allocation4 + $0x1], 0 }
   0x6   :  { %12 = vsyncpa [#allocation7], 0 }
   0x7   :  { %13 = vsyncpa [#allocation10], 0 }
   0x8   :  { %14 = vsyncpa [#allocation5], 0 }
   0x9   :  { %16 = vsyncpa [#allocation5 + $0x1], 0  ;;  %s1411_s15 = smov 0   ;;  %s1413_s16 = smov 0  }
   0xa   :  { %s1415_s17 = smov 0   ;;  %s1417_s18 = smov 0  }
   0xb   :  { %s1419_s19 = smov 0   ;;  %s1421_s20 = smov 0  }
   0xc   :  { %s1423_s21 = smov 0   ;;  %s1425_s22 = smov 0  }
   0xd   :  { %s1427_s23 = smov 0   ;;  %s1429_s24 = smov 0  }
   0xe   :  { %s1431_s25 = smov 0  }
   0xf LB: > { %1833 = sst [smem:[#allocation16_spill]] %s1332_s15  ;;  %s806_s26 = sadd.s32 4294967295, %s1372_s25   ;;  %s1372_s25 = sphi %s1431_s25, %s22_s25   ;;  %s1368_s24 = sphi %s1429_s24, %s1872_s24   ;;  %s1364_s23 = sphi %s1427_s23, %s1871_s23   ;;  %s1360_s22 = sphi %s1425_s22, %s1870_s22   ;;  %s1356_s21 = sphi %s1423_s21, %s1869_s21   ;;  %s1352_s20 = sphi %s1421_s20, %s1868_s20   ;;  %s1348_s19 = sphi %s1419_s19, %s1867_s19   ;;  %s1344_s18 = sphi %s1417_s18, %s1866_s18   ;;  %s1340_s17 = sphi %s1415_s17, %s1865_s17   ;;  %s1336_s16 = sphi %s1413_s16, %s1864_s16   ;;  %s1332_s15 = sphi %s1411_s15, %s1863_s15  }
  0x10   : > { %1834 = sst [smem:[#allocation17_spill]] %s1360_s22  ;;  %s807_s27 = sadd.s32 4294967294, %s1372_s25  }
  0x11   : > { %p65_p0 = scmp.ne.s32.totalorder %s1348_s19, %s1344_s18  ;;  %p1467_p1 = scmp.eq.s32.totalorder %s806_s26, 0 }
  0x12   : > { %p153_p2 = scmp.ne.s32.totalorder %s1340_s17, %s1336_s16  ;;  %p154_p4 = scmp.eq.s32.totalorder %s806_s26, 11 }
  0x13   : > { %s1835_s28 = scalar_select %p1467_p1, 1, 0 }
  0x14   : > { %p1476_p3 = por %p1467_p1, %p65_p0  ;;  %p159_p5 = scmp.ne.s32.totalorder %s1336_s16, %s1332_s15 }
  0x15   : > { %p160_p6 = scmp.eq.s32.totalorder %s807_s27, 11  ;;  %p1482_p7 = por %p154_p4, %p153_p2 }
  0x16   : > { %s1836_s30 = scalar_select %p1476_p3, 1, 0 }
  0x17   : > { %s1837_s5 = scalar_select %p1482_p7, 1, 0 }
  0x18   : > { %p808_p8 = scmp.ge.s32.totalorder %s1372_s25, 1  ;;  %p1487_p9 = por %p160_p6, %p159_p5 }
  0x19   : > { %1838 = sst [smem:[#allocation18_spill]] %s1837_s5  ;;  %p167_p10 = scmp.lt.s32.totalorder %s1372_s25, 13 }
  0x1a   : > { %s1839_s6 = scalar_select %p1487_p9, 1, 0 }
  0x1b   : > { %p1492_p11 = pnand %p808_p8, %p167_p10  ;;  %s1374_s8 = smov [#allocation6]  }
  0x1c   : > { %1840 = sst [smem:[#allocation19_spill]] %s1839_s6  ;;  %s179_s9 = sshll.u32 %s1374_s8, 4  ;;  %s1496_s9 = int_to_ptr.vmem [resolvable:$true] %s179_s9 }
  0x1d   : > { %s1841_s7 = scalar_select %p1492_p11, 1, 0 }
  0x1e   : > { %p982_p12 = pneg %p1492_p11  ;;  %s1375_s11 = smov [#allocation8]  }
  0x1f   : > { %s193_s12 = sshll.u32 %s1375_s11, 4  ;;  %s1376_s13 = smov [#allocation9]   ;;  %s1506_s12 = int_to_ptr.vmem [resolvable:$true] %s193_s12 }
  0x20   : > { %p1502_p13 = pnand %p982_p12, %p1467_p1  ;;  %s1508_s14 = sshll.u32 %s1376_s13, 4  ;;  %s205_s14 = int_to_ptr.vmem [resolvable:$true] %s1508_s14 }
  0x21   : > { %s1843_s1 = sld [smem:[#allocation20_spill]] }
  0x22   : > { %p1518_p2 = pneg %p1502_p13 }
  0x27   : > { %s1128_s27 = scalar_lea.hbm %s1843_s1, 6912 }
  0x28   : > { %p1129_p0 = scmp.ne.s32.totalorder %s1843_s1, %s1128_s27  ;;  %p1135_p6 = scmp.lt.u32.totalorder %s1128_s27, %s1843_s1 }
  0x2a   : > { %p1131_p4 = pnand %p1518_p2, %p1129_p0 }
  0x2c   : > { %p1132_p5 = pneg %p1131_p4 }
  0x2e   : > { %p1137_p8 = pnand %p1135_p6, %p1132_p5 }
  0x30   : > { %1140 = shalt.err (!%p1137_p8)
}
  0x31   : > { %s1141_s29 = scalar_lea.vmem %s1496_s9, 6912  ;;  %p1149_p7 = scmp.lt.s32.totalorder %s1496_s9, %s1496_s9 }
  0x32   : > { %p1142_p10 = scmp.ne.s32.totalorder %s1496_s9, %s1141_s29  ;;  %p1150_p1 = scmp.lt.s32.totalorder %s1141_s29, %s1141_s29 }
  0x34   : > { %p1144_p12 = pnand %p1142_p10, %p1518_p2  ;;  %p1151_p0 = por %p1150_p1, %p1149_p7 }
  0x36   : > { %p1145_p9 = pneg %p1144_p12 }
  0x38   : > { %p1152_p4 = pnand %p1151_p0, %p1145_p9 }
  0x3a   : > { %1155 = shalt.err (!%p1152_p4)
}
  0x3b   : > { %s1828_s18 = smov 64   ;;  %s1829_s26 = smov 4  }
  0x3c   : > { %985 = dma.hbm_to_vmem [thread:$0]  (!%p1502_p13), %s1843_s1, 6912, %s1496_s9, [#allocation7], %s1828_s18, %s1828_s18, %s1829_s26  }
  0x3d   : > { %s1845_s2 = sld [smem:[#allocation21_spill]] }
  0x43   : > { %s1156_s29 = scalar_lea.hbm %s1845_s2, 16 }
  0x44   : > { %p1157_p1 = scmp.ne.s32.totalorder %s1845_s2, %s1156_s29  ;;  %p1163_p5 = scmp.lt.u32.totalorder %s1156_s29, %s1845_s2 }
  0x46   : > { %p1159_p7 = pnand %p1157_p1, %p1518_p2 }
  0x48   : > { %p1160_p9 = pneg %p1159_p7 }
  0x4a   : > { %p1165_p6 = pnand %p1163_p5, %p1160_p9 }
  0x4c   : > { %1168 = shalt.err (!%p1165_p6)
}
  0x4d   : > { %s1169_s9 = scalar_lea.vmem %s1506_s12, 16  ;;  %s1176_s4 = scalar_lea.vmem %s1506_s12, 32 }
  0x4e   : > { %p1170_p8 = scmp.ne.s32.totalorder %s1506_s12, %s1169_s9  ;;  %p1177_p0 = scmp.lt.s32.totalorder %s1506_s12, %s1506_s12 }
  0x4f   : > { %p1178_p4 = scmp.lt.s32.totalorder %s1176_s4, %s1169_s9 }
  0x50   : > { %p1172_p10 = pnand %p1170_p8, %p1518_p2 }
  0x51   : > { %p1179_p1 = por %p1178_p4, %p1177_p0 }
  0x52   : > { %p1173_p12 = pneg %p1172_p10 }
  0x54   : > { %p1180_p7 = pnand %p1179_p1, %p1173_p12 }
  0x56   : > { %1183 = shalt.err (!%p1180_p7)
}
  0x57   : > { %988 = dma.hbm_to_vmem [thread:$0]  (!%p1502_p13), %s1845_s2, 16, %s1506_s12, [#allocation7]  }
  0x58   : > { %s1184_s8 = scalar_lea.hbm %s1816_s3, 16 }
  0x59   : > { %p1185_p9 = scmp.ne.s32.totalorder %s1816_s3, %s1184_s8  ;;  %p1191_p8 = scmp.lt.u32.totalorder %s1184_s8, %s1816_s3 }
  0x5b   : > { %p1187_p5 = pnand %p1185_p9, %p1518_p2 }
  0x5d   : > { %p1188_p6 = pneg %p1187_p5 }
  0x5f   : > { %p1193_p10 = pnand %p1191_p8, %p1188_p6 }
  0x61   : > { %1196 = shalt.err (!%p1193_p10)
}
  0x62   : > { %s1197_s4 = scalar_lea.vmem %s205_s14, 16  ;;  %s1204_s12 = scalar_lea.vmem %s205_s14, 32 }
  0x63   : > { %p1198_p12 = scmp.ne.s32.totalorder %s205_s14, %s1197_s4  ;;  %p1205_p1 = scmp.lt.s32.totalorder %s205_s14, %s205_s14 }
  0x64   : > { %p1206_p7 = scmp.lt.s32.totalorder %s1204_s12, %s1197_s4 }
  0x65   : > { %p1200_p0 = pnand %p1198_p12, %p1518_p2 }
  0x66   : > { %p1207_p3 = por %p1206_p7, %p1205_p1 }
  0x67   : > { %p1201_p4 = pneg %p1200_p0 }
  0x69   : > { %p1208_p11 = pnand %p1207_p3, %p1201_p4 }
  0x6b   : > { %1211 = shalt.err (!%p1208_p11)
}
  0x6c   : > { %991 = dma.hbm_to_vmem [thread:$0]  (!%p1502_p13), %s1816_s3, 16, %s205_s14, [#allocation10]  }
  0x6d   : > { %s34_s6 = sadd.s32 1, %s1364_s23  ;;  %s37_s5 = sadd.s32 1, %s1368_s24 }
  0x6e   : > { %p35_p3 = scmp.ge.s32.totalorder %s34_s6, 3  ;;  %s45_s10 = sadd.s32 %s1364_s23, %s1368_s24 }
  0x6f   : > { %s52_s27 = sadd.s32 1, %s1352_s20  ;;  %p59_p11 = scmp.ne.s32.totalorder %s1352_s20, %s1348_s19 }
  0x70   : > { %s1874_s6 = smov (%p35_p3, %s34_s6), 0  ;;  %s1876_s5 = smov (!%p35_p3, %s37_s5), %s1368_s24 }
  0x71   : > { %p60_p2 = scmp.eq.s32.totalorder %s1372_s25, 0  ;;  %p39_p9 = scmp.ge.s32.totalorder %s1876_s5, 4 }
  0x72   : > { %p1003_p5 = scmp.lt.s32.totalorder %s1372_s25, 12  ;;  %s215_s8 = sand.u32 1, %s1352_s20  }
  0x73   : > { %p1597_p6 = por %p60_p2, %p59_p11  ;;  %s1878_s5 = smov (%p39_p9, %s1876_s5), 0 }
  0x74   : > { %s963_s11 = smul.u32 12, %s215_s8  ;;  %s46_s13 = sadd.s32 %s1878_s5, %s1874_s6 }
  0x75   : > { %s139_s29 = ssub.s32 %s1368_s24, %s1878_s5  ;;  %s48_s9 = ssub.s32 %s45_s10, %s46_s13 }
  0x76   : > { %p141_p13 = scmp.eq.s32.totalorder %s139_s29, 0  ;;  %p50_p8 = scmp.eq.s32.totalorder %s48_s9, 0 }
  0x77   : > { %s1847_s4 = sadd.s32 1, %s1340_s17  ;;  %s964_s22 = smul.u32 192, %s45_s10 }
  0x78   : > { %s1611_s12 = scalar_select %p141_p13, %s1340_s17, %s1847_s4  }
  0x79   : > { %s1614_s15 = scalar_select %p50_p8, %s1352_s20, %s52_s27  }
  0x7a   : > { %s219_s18 = scalar_lea.vmem [#allocation3], %s963_s11  ;;  %p1622_p10 = pnand %p1003_p5, %p1597_p6 }
  0x7b   : > { %s229_s26 = sshll.u32 %s219_s18, 4  ;;  %s1629_s29 = scalar_lea.hbm %s1813_s0, %s964_s22  ;;  %s1616_s26 = int_to_ptr.vmem [resolvable:$true] %s229_s26 }
  0x7c   : > { %s1631_s18 = scalar_lea.sflag [#allocation4], %s215_s8  ;;  %s1212_s10 = scalar_lea.hbm %s1629_s29, 192 }
  0x7d   : > { %p1213_p12 = scmp.ne.s32.totalorder %s1629_s29, %s1212_s10  ;;  %p1214_p0 = pneg %p1622_p10 }
  0x7e   : > { %s1217_s14 = scalar_lea.hbm %s1813_s0, 1152  ;;  %p1218_p7 = scmp.lt.u32.totalorder %s1629_s29, %s1813_s0 }
  0x7f   : > { %p1215_p4 = pnand %p1214_p0, %p1213_p12  ;;  %p1219_p3 = scmp.lt.u32.totalorder %s1217_s14, %s1212_s10 }
  0x80   : > { %p1221_p2 = scmp.lt.u32.totalorder %s1212_s10, %s1629_s29 }
  0x81   : > { %p1216_p1 = pneg %p1215_p4  ;;  %p1220_p11 = por %p1219_p3, %p1218_p7 }
  0x83   : > { %p1222_p9 = por %p1221_p2, %p1220_p11 }
  0x85   : > { %p1223_p5 = pnand %p1222_p9, %p1216_p1 }
  0x87   : > { %1226 = shalt.err (!%p1223_p5)
}
  0x88   : > { %s1227_s8 = scalar_lea.vmem %s1616_s26, 192  ;;  %s1379_s4 = smov [#allocation3]  }
  0x89   : > { %p1228_p6 = scmp.ne.s32.totalorder %s1616_s26, %s1227_s8  ;;  %s1232_s22 = sshll.u32 %s1379_s4, 4  ;;  %s1233_s22 = int_to_ptr.vmem [resolvable:$false] %s1232_s22 }
  0x8a   : > { %s1234_s13 = scalar_lea.vmem %s1233_s22, 384  ;;  %p1235_p12 = scmp.lt.s32.totalorder %s1616_s26, %s1233_s22 }
  0x8b   : > { %p1230_p13 = pnand %p1228_p6, %p1214_p0  ;;  %p1236_p4 = scmp.lt.s32.totalorder %s1234_s13, %s1227_s8 }
  0x8d   : > { %p1231_p8 = pneg %p1230_p13  ;;  %p1237_p7 = por %p1236_p4, %p1235_p12 }
  0x8f   : > { %p1238_p3 = pnand %p1237_p7, %p1231_p8 }
  0x91   : > { %1241 = shalt.err (!%p1238_p3)
}
  0x92   : > { %s1849_s10 = smov 4   ;;  %s1850_s27 = smov 64  }
  0x93   : > { %995 = dma.hbm_to_vmem [thread:$0]  (!%p1622_p10), %s1629_s29, 192, %s1616_s26, %s1631_s18, %s1850_s27, %s1850_s27, %s1849_s10  }
  0x94   : > { %p1851_p0 = scmp.ne.s32.totalorder %s1841_s7, 0 }
  0x95   : > { %s243_s2 = sand.u32 (!%p1851_p0), 1, %s1348_s19   ;;  %p1852_p1 = scmp.ne.s32.totalorder (!%p1851_p0), %s1836_s30, 0 }
  0x96   : > { %241 = sbr.rel (%p1851_p0) target bundleno = 485 (0x1e5), region = 36  ;;  %s244_s11 = scalar_lea.sflag (!%p1851_p0), [#allocation4], %s243_s2 }
  0x97   : > { %s965_s14 = smul.u32 (!%p1851_p0), 12, %s243_s2 }
  0x99   : > { %s1665_s9 = scalar_lea.vmem (!%p1851_p0), [#allocation3], %s965_s14 }
  0x9d   : > { %1315 = dma.done.wait (%p1852_p1), %s244_s11, 192  }
  0x9e   : > { %1317 = vsyncadd (%p1852_p1), %s244_s11, 4294967104  ;;  %p1853_p11 = scmp.ne.s32.totalorder %s1835_s28, 0 }
  0xa0   : > { %1319 = dma.done.wait (%p1853_p11), [#allocation7], 6928  }
  0xa1   : > { %1321 = vsyncadd (%p1853_p11), [#allocation7], 4294960368 }
  0xa2   : > { %1323 = dma.done.wait (%p1853_p11), [#allocation10], 16  }
  0xa3   : > { %1325 = vsyncadd (%p1853_p11), [#allocation10], 4294967280  ;;  %s281_s1 = sand.u32 1, %s1336_s16   ;;  %p819_p10 = scmp.ne.s32.totalorder %s1356_s21, 0 }
  0xa4   : > { %s818_s7 = sshll.u32 %s281_s1, 3  ;;  %vm290_vm0 = vcmask (!%p819_p10), 261120   ;;  %v1380_v0 = vmov (!%p819_p10), 0.0  }
  0xa5   : > { %s1682_s26 = scalar_lea.vmem [#allocation11], %s818_s7  ;;  %289 = sbr.rel (%p819_p10) target bundleno = 172 (0xac), region = 56  ;;  %291 = vst.msk [vmem:[#allocation2] sm:$0xff] (!%p819_p10), %vm290_vm0, %v1380_v0  ;;  %292 = vst.msk [vmem:[#allocation2 + $0x8] sm:$0xff] (!%p819_p10), %vm290_vm0, %v1380_v0 }
  0xac PF: > { %s882_s30 = smul.u32 144, %s1356_s21  ;;  %v1381_v1 = vmov 0.0   ;;  %vm1382_vm1 = vmmov 0   ;;  %v400_v7 = vld [vmem:[%s1665_s9] sm:$0xc]  ;;  %vm426_vm2 = vcmask 1045504  }
  0xad   : > { %923 = vmatprep.subr.bf16.mxu0 %v1381_v1  ;;  %907 = vmatprep.subr.bf16.mxu1 %v1381_v1  ;;  %v401_v8 = vld [vmem:[%s1665_s9 + $0x4] sm:$0xf]  ;;  %v1115_v11 = vld [vmem:[%s1665_s9 + $0x8] ss:$0 sps:$4 sm:$0x33]   ;;  %vm353_vm3 = vcmask 785408  }
  0xae   : > { %935 = vmatprep.mubr.msk.bf16.mxu0 %vm1382_vm1, %v1381_v1  ;;  %919 = vmatprep.mubr.msk.bf16.mxu1 %vm1382_vm1, %v1381_v1  ;;  %s1692_s28 = scalar_lea.vmem [#allocation6], %s882_s30  ;;  %v842_v13 = vcombine.low %v400_v7, %v401_v8  ;;  %v428_v17 = vrot.slane %v1115_v11, 2  ;;  %v1126_v23 = vld [vmem:[%s1665_s9] sm:$0xff]   ;;  %v512_v27 = vld [vmem:[%s1665_s9 + $0x8] sm:$0xf]  ;;  %v294_v36 = vld [vmem:[#allocation2 + $0x8] sm:$0xff] }
  0xaf   : > { %v1106_v2 = vld [vmem:[%s1692_s28 + $0x30] sm:$0xff]   ;;  %v1107_v3 = vld [vmem:[%s1692_s28 + $0x38] sm:$0xff]   ;;  %v1111_v4 = vld [vmem:[%s1692_s28] sm:$0xff]   ;;  %v864_v29 = vcombine.low %v401_v8, %v512_v27  ;;  %vm613_vm4 = vcmask 261120   ;;  %p872_p2 = scmp.ne.s32.totalorder %s1356_s21, 2 }
  0xb0   : > { %924 = vmatpush3.bf16.msra.mxu0 %v1106_v2  ;;  %v1108_v5 = vld [vmem:[%s1692_s28 + $0x40] sm:$0xff]   ;;  %908 = vmatpush3.bf16.msra.mxu1 %v1111_v4  ;;  %v1113_v6 = vld [vmem:[%s1692_s28 + $0x8] sm:$0xff]   ;;  %v1118_v10 = vld [vmem:[%s1692_s28 + $0x10] sm:$0xff]   ;;  %v427_v16 = vrot.slane %v842_v13, 2  ;;  %vm654_vm7 = vcmask (!%p872_p2), 257024  }
  0xb1   : > { %925 = vmatprep.subr.bf16.mxu0 %v1381_v1  ;;  %909 = vmatprep.subr.bf16.mxu1 %v1381_v1  ;;  %v1109_v9 = vld [vmem:[%s1692_s28 + $0x48] sm:$0xff]   ;;  %v1110_v12 = vld [vmem:[%s1692_s28 + $0x50] sm:$0xff]   ;;  %v1120_v14 = vld [vmem:[%s1692_s28 + $0x18] sm:$0xff]  }
  0xb2   : > { %v1112_v15 = vld [vmem:[%s1692_s28 + $0x58] sm:$0xff]   ;;  %v1122_v18 = vld [vmem:[%s1692_s28 + $0x20] sm:$0xff]   ;;  %v429_v19 = vsel %vm426_vm2, %v427_v16, %v428_v17  ;;  %v1124_v21 = vld [vmem:[%s1692_s28 + $0x28] sm:$0xff]  }
  0xb3   : > { %v1117_v20 = vld [vmem:[%s1692_s28 + $0x60] sm:$0xff]   ;;  %v1119_v22 = vld [vmem:[%s1692_s28 + $0x68] sm:$0xff]   ;;  %v1121_v24 = vld [vmem:[%s1692_s28 + $0x70] sm:$0xff]  }
  0xb4   : > { %926 = vmatpush3.bf16.msra.mxu0 %v1107_v3  ;;  %910 = vmatpush3.bf16.msra.mxu1 %v1113_v6  ;;  %v1123_v25 = vld [vmem:[%s1692_s28 + $0x78] sm:$0xff]   ;;  %v1125_v26 = vld [vmem:[%s1692_s28 + $0x80] sm:$0xff]   ;;  %v1127_v28 = vld [vmem:[%s1692_s28 + $0x88] sm:$0xff]  }
  0xb5   : > { %927 = vmatprep.subr.bf16.mxu0 %v1381_v1  ;;  %911 = vmatprep.subr.bf16.mxu1 %v1381_v1  ;;  %v293_v34 = vld [vmem:[#allocation2] sm:$0xff]  ;;  %v873_v45 = vld [vmem:[#allocation8] ss:$0 sm:$0xff] (!%p872_p2)  ;;  %v874_v46 = vld [vmem:[#allocation9] ss:$0 sm:$0xff] (!%p872_p2) }
  0xb8   : > { %928 = vmatpush3.bf16.msra.mxu0 %v1108_v5  ;;  %912 = vmatpush3.bf16.msra.mxu1 %v1118_v10 }
  0xb9   : > { %929 = vmatprep.subr.bf16.mxu0 %v1381_v1  ;;  %913 = vmatprep.subr.bf16.mxu1 %v1381_v1 }
  0xbc   : > { %930 = vmatpush3.bf16.msra.mxu0 %v1109_v9  ;;  %914 = vmatpush3.bf16.msra.mxu1 %v1120_v14 }
  0xbd   : > { %931 = vmatprep.subr.bf16.mxu0 %v1381_v1  ;;  %915 = vmatprep.subr.bf16.mxu1 %v1381_v1 }
  0xc0   : > { %932 = vmatpush3.bf16.msra.mxu0 %v1110_v12  ;;  %916 = vmatpush3.bf16.msra.mxu1 %v1122_v18 }
  0xc1   : > { %933 = vmatprep.subr.bf16.mxu0 %v1381_v1  ;;  %917 = vmatprep.subr.bf16.mxu1 %v1381_v1 }
  0xc4   : > { %934 = vmatpush3.bf16.msra.mxu0 %v1112_v15  ;;  %918 = vmatpush3.bf16.msra.mxu1 %v1124_v21 }
  0xc5   : > { %939 = vmatprep.subr.bf16.mxu0 %v1381_v1 }
  0xc7   : > { %936 = vmatmul.mubr.msk.bf16.vlgmr.msra.gmra.mrb[0].mxu0 %vm353_vm3, %v429_v19  ;;  %920 = vmatmul.mubr.msk.bf16.vlgmr.msra.gmra.mrb[0].mxu1 %vm353_vm3, %v1126_v23 }
  0xc8   : > { %940 = vmatpush3.bf16.msra.mxu0 %v1117_v20  ;;  %951 = vmatprep.mubr.msk.bf16.mxu0 %vm1382_vm1, %v1381_v1 }
  0xc9   : > { %941 = vmatprep.subr.bf16.mxu0 %v1381_v1 }
  0xcc   : > { %942 = vmatpush3.bf16.msra.mxu0 %v1119_v22 }
  0xcd   : > { %943 = vmatprep.subr.bf16.mxu0 %v1381_v1 }
  0xd0   : > { %944 = vmatpush3.bf16.msra.mxu0 %v1121_v24 }
  0xd1   : > { %945 = vmatprep.subr.bf16.mxu0 %v1381_v1 }
  0xd4   : > { %946 = vmatpush3.bf16.msra.mxu0 %v1123_v25 }
  0xd5   : > { %947 = vmatprep.subr.bf16.mxu0 %v1381_v1 }
  0xd8   : > { %948 = vmatpush3.bf16.msra.mxu0 %v1125_v26 }
  0xd9   : > { %949 = vmatprep.subr.bf16.mxu0 %v1381_v1 }
  0xdc   : > { %950 = vmatpush3.bf16.msra.mxu0 %v1127_v28 }
  0xdf   : > { %952 = vmatmul.mubr.msk.bf16.vlgmr.msra.gmra.mrb[0].mxu0 %vm353_vm3, %v864_v29 }
 0x19a   : > { %v391_v30 = vpop.f32.mrb[0].mxu1 }
 0x19b   : > { %v921_v31 = vpop.f32.mrb[1].mxu1  ;;  %v398_v35 = vadd.f32 %v391_v30, %v293_v34 }
 0x19c   : > { %v394_v32 = vpop.f32.mrb[2].mxu1 }
 0x19d   : > { %v922_v33 = vpop.f32.mrb[3].mxu1  ;;  %v399_v38 = vadd.f32 %v394_v32, %v294_v36 }
 0x1b1   : > { %619 = sbr.rel (%p872_p2) target bundleno = 457 (0x1c9), region = 60 }
 0x1b2   : > { %v604_v37 = vpop.f32.mrb[0].mxu0 }
 0x1b3   : > { %v956_v39 = vadd.f32 %v604_v37, %v398_v35  ;;  %v953_v40 = vpop.f32.mrb[1].mxu0 }
 0x1b4   : > { %v607_v41 = vpop.f32.mrb[2].mxu0 }
 0x1b5   : > { %614 = vst.msk [vmem:[#allocation2] sm:$0xff] %vm613_vm4, %v956_v39  ;;  %v958_v42 = vadd.f32 %v607_v41, %v399_v38  ;;  %v954_v43 = vpop.f32.mrb[3].mxu0 }
 0x1b7   : > { %615 = vst.msk [vmem:[#allocation2 + $0x8] sm:$0xff] %vm613_vm4, %v958_v42 }
 0x1bc   : > { %v620_v44 = vld [vmem:[#allocation2] sm:$0xff] }
 0x1bd   : > { %v629_v47 = vmul.f32 %v873_v45, %v620_v44 }
 0x1be   : > { %v621_v48 = vld [vmem:[#allocation2 + $0x8] sm:$0xff] }
 0x1bf   : > { %v630_v49 = vmul.f32 %v873_v45, %v621_v48  ;;  %v638_v50 = vadd.f32 %v874_v46, %v629_v47 }
 0x1c1   : > { %v639_v51 = vadd.f32 %v874_v46, %v630_v49  ;;  %vm640_vm5 = vcmp.ge.f32.partialorder %v638_v50, 0.0  ;;  %v642_v52 = vmul.f32 0.2, %v638_v50 }
 0x1c3   : > { %vm641_vm6 = vcmp.ge.f32.partialorder %v639_v51, 0.0  ;;  %v643_v53 = vmul.f32 0.2, %v639_v51  ;;  %v644_v54 = vsel %vm640_vm5, %v638_v50, %v642_v52 }
 0x1c4   : > { %v883_v55 = vpack.c.bf16 %v644_v54, %v644_v54 }
 0x1c5   : > { %v645_v56 = vsel %vm641_vm6, %v639_v51, %v643_v53 }
 0x1c6   : > { %v884_v57 = vpack.c.bf16 %v645_v56, %v645_v56  ;;  %655 = vst.msk [vmem:[%s1682_s26] sm:$0xf] %vm654_vm7, %v883_v55 }
 0x1c8   : > { %656 = vst.msk [vmem:[%s1682_s26 + $0x4] sm:$0xf] %vm654_vm7, %v884_v57 }
 0x1c9 PF: > { %s1854_s21 = sld [smem:[#allocation17_spill]]  ;;  %s1855_s29 = sld [smem:[#allocation18_spill]] }
 0x1ca   : > { %s1856_s22 = sld [smem:[#allocation22_spill]]  ;;  %s673_s27 = sshll.u32 %s1682_s26, 4  ;;  %s1748_s27 = int_to_ptr.vmem [resolvable:$true] %s673_s27 }
 0x1cb   : > { %s1752_s2 = scalar_lea.sflag [#allocation5], %s281_s1  ;;  %s1242_s14 = scalar_lea.vmem %s1748_s27, 128 }
 0x1cc   : > { %p1243_p9 = scmp.ne.s32.totalorder %s1748_s27, %s1242_s14  ;;  %s1383_s11 = smov [#allocation11]  }
 0x1cd   : > { %s1246_s9 = sshll.u32 %s1383_s11, 4  ;;  %s1247_s9 = int_to_ptr.vmem [resolvable:$false] %s1246_s9 }
 0x1ce   : > { %s1248_s7 = scalar_lea.vmem %s1247_s9, 256  ;;  %p1249_p8 = scmp.lt.s32.totalorder %s1748_s27, %s1247_s9 }
 0x1cf   : > { %s885_s18 = sshll.u32 %s1854_s21, 7  ;;  %p1858_p5 = scmp.ne.s32.totalorder %s1855_s29, 0 }
 0x1d0   : > { %s1857_s13 = smov %s1856_s22  ;;  %s1745_s10 = scalar_lea.hbm %s1856_s22, %s885_s18 }
 0x1d1   : > { %p1244_p6 = pnand %p1243_p9, %p1858_p5  ;;  %p1250_p12 = scmp.lt.s32.totalorder %s1248_s7, %s1242_s14 }
 0x1d3   : > { %p1245_p13 = pneg %p1244_p6  ;;  %p1251_p4 = por %p1250_p12, %p1249_p8 }
 0x1d5   : > { %p1252_p7 = pnand %p1251_p4, %p1245_p13 }
 0x1d7   : > { %1255 = shalt.err (!%p1252_p7)
}
 0x1d8   : > { %s1256_s1 = scalar_lea.hbm %s1745_s10, 128  ;;  %s1260_s28 = scalar_lea.hbm %s1857_s13, 512 }
 0x1d9   : > { %p1257_p3 = scmp.ne.s32.totalorder %s1745_s10, %s1256_s1  ;;  %p1261_p11 = scmp.lt.u32.totalorder %s1745_s10, %s1857_s13 }
 0x1da   : > { %p1262_p10 = scmp.lt.u32.totalorder %s1260_s28, %s1256_s1  ;;  %p1264_p9 = scmp.lt.u32.totalorder %s1256_s1, %s1745_s10 }
 0x1db   : > { %p1258_p0 = pnand %p1257_p3, %p1858_p5 }
 0x1dc   : > { %p1263_p2 = por %p1262_p10, %p1261_p11 }
 0x1dd   : > { %p1259_p1 = pneg %p1258_p0 }
 0x1de   : > { %p1265_p6 = por %p1264_p9, %p1263_p2 }
 0x1e0   : > { %p1266_p13 = pnand %p1265_p6, %p1259_p1 }
 0x1e2   : > { %1269 = shalt.err (!%p1266_p13)
}
 0x1e3   : > { %s1384_s8 = smov 64   ;;  %s1385_s4 = smov 4  }
 0x1e4   : > { %980 = dma.vmem_to_hbm [thread:$0]  (%p1858_p5), %s1748_s27, 128, %s1745_s10, %s1752_s2, %s1384_s8, %s1384_s8, %s1385_s4  }
 0x1e5 PF: > { %s1859_s22 = sld [smem:[#allocation16_spill]]  ;;  %s1860_s14 = sld [smem:[#allocation19_spill]] }
 0x1e6   : > { %p1007_p8 = scmp.ge.s32.totalorder %s1372_s25, 2 }
 0x1eb   : > { %s688_s11 = sand.u32 1, %s1859_s22   ;;  %p1861_p12 = scmp.ne.s32.totalorder %s1860_s14, 0 }
 0x1ec   : > { %s689_s9 = scalar_lea.sflag [#allocation5], %s688_s11 }
 0x1ed   : > { %p997_p4 = pnand %p1007_p8, %p1861_p12 }
 0x1ef   : > { %1327 = dma.done.wait (!%p997_p4), %s689_s9, 128  }
 0x1f0   : > { %1329 = vsyncadd (!%p997_p4), %s689_s9, 4294967168  ;;  %s22_s25 = sadd.s32 1, %s1372_s25   ;;  %s1862_s29 = smov %s1614_s15 }
 0x1f1   : > { %p19_p7 = scmp.ge.s32.totalorder %s22_s25, 14   ;;  %s1863_s15 = smov %s1336_s16 }
 0x1f2   : > { %s1864_s16 = smov %s1340_s17  ;;  %s1865_s17 = smov %s1611_s12 }
 0x1f3   : > { %s1866_s18 = smov %s1348_s19  ;;  %s1867_s19 = smov %s1352_s20 }
 0x1f4   : > { %s1868_s20 = smov %s1862_s29  ;;  %s1869_s21 = smov %s1364_s23 }
 0x1f5   : > { %s1870_s22 = smov %s1368_s24  ;;  %s1871_s23 = smov %s1874_s6 }
 0x1f6   : > { %s1872_s24 = smov %s1878_s5  ;;  %21 = sbr.rel (!%p19_p7) target bundleno = 15 (0xf), region = 104 }
 0x1fd   :  { %694 = vsyncpa [#allocation4], 1 }
 0x1fe   :  { %696 = vsyncpa [#allocation4 + $0x1], 1 }
 0x1ff   :  { %697 = vsyncpa [#allocation7], 1 }
 0x200   :  { %698 = vsyncpa [#allocation10], 1 }
 0x201   :  { %699 = vsyncpa [#allocation5], 1 }
 0x202   :  { %701 = vsyncpa [#allocation5 + $0x1], 1 }

// kernel: reconstruction3d_decoder.5
= control target key start
LH: loop header
LB: loop body
LE: loop exit
PB: predicated region body
PF: predicated region fallthrough
CT: control target
= control target key end

     0   :  { %s2168_s0 = inlined_call_operand.hbm [shape: bf16[1,10,80,96], index: 0, kind: input, shape index: {}]   ;;  %s2169_s1 = inlined_call_operand.hbm [shape: bf16[3,3,96,16], index: 1, kind: input, shape index: {}]   ;;  %s2170_s2 = inlined_call_operand.hbm [shape: f32[1,16], index: 2, kind: input, shape index: {}]   ;;  %s2171_s3 = inlined_call_operand.hbm [shape: f32[1,16], index: 3, kind: input, shape index: {}]   ;;  %s2172_s4 = inlined_call_operand.hbm [shape: bf16[1,8,64,16], index: 4, kind: output, shape index: {}]  }
   0x1   :  { %2185 = sst [smem:[#allocation20_spill]] %s2169_s1 }
   0x2   :  { %2186 = sst [smem:[#allocation21_spill]] %s2170_s2 }
   0x3   :  { %2187 = sst [smem:[#allocation22_spill]] %s2172_s4 }
   0x4   :  { %9 = vsyncpa [#allocation4], 0 }
   0x5   :  { %11 = vsyncpa [#allocation4 + $0x1], 0 }
   0x6   :  { %12 = vsyncpa [#allocation7], 0 }
   0x7   :  { %13 = vsyncpa [#allocation10], 0 }
   0x8   :  { %14 = vsyncpa [#allocation5], 0 }
   0x9   :  { %16 = vsyncpa [#allocation5 + $0x1], 0  ;;  %s1752_s15 = smov 0   ;;  %s1754_s16 = smov 0  }
   0xa   :  { %s1756_s17 = smov 0   ;;  %s1758_s18 = smov 0  }
   0xb   :  { %s1760_s19 = smov 0   ;;  %s1762_s20 = smov 0  }
   0xc   :  { %s1764_s21 = smov 0   ;;  %s1766_s22 = smov 0  }
   0xd   :  { %s1768_s23 = smov 0   ;;  %s1770_s24 = smov 0  }
   0xe   :  { %s1772_s25 = smov 0  }
   0xf LB: > { %2188 = sst [smem:[#allocation16_spill]] %s1675_s15  ;;  %s1065_s26 = sadd.s32 4294967295, %s1715_s25   ;;  %s1715_s25 = sphi %s1772_s25, %s22_s25   ;;  %s1711_s24 = sphi %s1770_s24, %s2227_s24   ;;  %s1707_s23 = sphi %s1768_s23, %s2226_s23   ;;  %s1703_s22 = sphi %s1766_s22, %s2225_s22   ;;  %s1699_s21 = sphi %s1764_s21, %s2224_s21   ;;  %s1695_s20 = sphi %s1762_s20, %s2223_s20   ;;  %s1691_s19 = sphi %s1760_s19, %s2222_s19   ;;  %s1687_s18 = sphi %s1758_s18, %s2221_s18   ;;  %s1683_s17 = sphi %s1756_s17, %s2220_s17   ;;  %s1679_s16 = sphi %s1754_s16, %s2219_s16   ;;  %s1675_s15 = sphi %s1752_s15, %s2218_s15  }
  0x10   : > { %2189 = sst [smem:[#allocation17_spill]] %s1703_s22  ;;  %s1066_s27 = sadd.s32 4294967294, %s1715_s25  }
  0x11   : > { %p65_p0 = scmp.ne.s32.totalorder %s1691_s19, %s1687_s18  ;;  %p1808_p1 = scmp.eq.s32.totalorder %s1065_s26, 0 }
  0x12   : > { %p153_p2 = scmp.ne.s32.totalorder %s1683_s17, %s1679_s16  ;;  %p154_p4 = scmp.eq.s32.totalorder %s1065_s26, 23 }
  0x13   : > { %s2190_s28 = scalar_select %p1808_p1, 1, 0 }
  0x14   : > { %p1817_p3 = por %p1808_p1, %p65_p0  ;;  %p159_p5 = scmp.ne.s32.totalorder %s1679_s16, %s1675_s15 }
  0x15   : > { %p160_p6 = scmp.eq.s32.totalorder %s1066_s27, 23  ;;  %p1823_p7 = por %p154_p4, %p153_p2 }
  0x16   : > { %s2191_s30 = scalar_select %p1817_p3, 1, 0 }
  0x17   : > { %s2192_s5 = scalar_select %p1823_p7, 1, 0 }
  0x18   : > { %p1067_p8 = scmp.ge.s32.totalorder %s1715_s25, 1  ;;  %p1828_p9 = por %p160_p6, %p159_p5 }
  0x19   : > { %2193 = sst [smem:[#allocation18_spill]] %s2192_s5  ;;  %p167_p10 = scmp.lt.s32.totalorder %s1715_s25, 25 }
  0x1a   : > { %s2194_s6 = scalar_select %p1828_p9, 1, 0 }
  0x1b   : > { %p1833_p11 = pnand %p1067_p8, %p167_p10  ;;  %s1717_s8 = smov [#allocation6]  }
  0x1c   : > { %2195 = sst [smem:[#allocation19_spill]] %s2194_s6  ;;  %s179_s9 = sshll.u32 %s1717_s8, 4  ;;  %s1837_s9 = int_to_ptr.vmem [resolvable:$true] %s179_s9 }
  0x1d   : > { %s2196_s7 = scalar_select %p1833_p11, 1, 0 }
  0x1e   : > { %p1319_p12 = pneg %p1833_p11  ;;  %s1718_s11 = smov [#allocation8]  }
  0x1f   : > { %s193_s12 = sshll.u32 %s1718_s11, 4  ;;  %s1719_s13 = smov [#allocation9]   ;;  %s1847_s12 = int_to_ptr.vmem [resolvable:$true] %s193_s12 }
  0x20   : > { %p1843_p13 = pnand %p1319_p12, %p1808_p1  ;;  %s1849_s14 = sshll.u32 %s1719_s13, 4  ;;  %s205_s14 = int_to_ptr.vmem [resolvable:$true] %s1849_s14 }
  0x21   : > { %s2198_s1 = sld [smem:[#allocation20_spill]] }
  0x22   : > { %p1859_p2 = pneg %p1843_p13 }
  0x27   : > { %s1471_s27 = scalar_lea.hbm %s2198_s1, 6912 }
  0x28   : > { %p1472_p0 = scmp.ne.s32.totalorder %s2198_s1, %s1471_s27  ;;  %p1478_p6 = scmp.lt.u32.totalorder %s1471_s27, %s2198_s1 }
  0x2a   : > { %p1474_p4 = pnand %p1859_p2, %p1472_p0 }
  0x2c   : > { %p1475_p5 = pneg %p1474_p4 }
  0x2e   : > { %p1480_p8 = pnand %p1478_p6, %p1475_p5 }
  0x30   : > { %1483 = shalt.err (!%p1480_p8)
}
  0x31   : > { %s1484_s29 = scalar_lea.vmem %s1837_s9, 6912  ;;  %p1492_p7 = scmp.lt.s32.totalorder %s1837_s9, %s1837_s9 }
  0x32   : > { %p1485_p10 = scmp.ne.s32.totalorder %s1837_s9, %s1484_s29  ;;  %p1493_p1 = scmp.lt.s32.totalorder %s1484_s29, %s1484_s29 }
  0x34   : > { %p1487_p12 = pnand %p1485_p10, %p1859_p2  ;;  %p1494_p0 = por %p1493_p1, %p1492_p7 }
  0x36   : > { %p1488_p9 = pneg %p1487_p12 }
  0x38   : > { %p1495_p4 = pnand %p1494_p0, %p1488_p9 }
  0x3a   : > { %1498 = shalt.err (!%p1495_p4)
}
  0x3b   : > { %s2183_s18 = smov 64   ;;  %s2184_s26 = smov 4  }
  0x3c   : > { %1322 = dma.hbm_to_vmem [thread:$0]  (!%p1843_p13), %s2198_s1, 6912, %s1837_s9, [#allocation7], %s2183_s18, %s2183_s18, %s2184_s26  }
  0x3d   : > { %s2200_s2 = sld [smem:[#allocation21_spill]] }
  0x43   : > { %s1499_s29 = scalar_lea.hbm %s2200_s2, 16 }
  0x44   : > { %p1500_p1 = scmp.ne.s32.totalorder %s2200_s2, %s1499_s29  ;;  %p1506_p5 = scmp.lt.u32.totalorder %s1499_s29, %s2200_s2 }
  0x46   : > { %p1502_p7 = pnand %p1500_p1, %p1859_p2 }
  0x48   : > { %p1503_p9 = pneg %p1502_p7 }
  0x4a   : > { %p1508_p6 = pnand %p1506_p5, %p1503_p9 }
  0x4c   : > { %1511 = shalt.err (!%p1508_p6)
}
  0x4d   : > { %s1512_s9 = scalar_lea.vmem %s1847_s12, 16  ;;  %s1519_s4 = scalar_lea.vmem %s1847_s12, 32 }
  0x4e   : > { %p1513_p8 = scmp.ne.s32.totalorder %s1847_s12, %s1512_s9  ;;  %p1520_p0 = scmp.lt.s32.totalorder %s1847_s12, %s1847_s12 }
  0x4f   : > { %p1521_p4 = scmp.lt.s32.totalorder %s1519_s4, %s1512_s9 }
  0x50   : > { %p1515_p10 = pnand %p1513_p8, %p1859_p2 }
  0x51   : > { %p1522_p1 = por %p1521_p4, %p1520_p0 }
  0x52   : > { %p1516_p12 = pneg %p1515_p10 }
  0x54   : > { %p1523_p7 = pnand %p1522_p1, %p1516_p12 }
  0x56   : > { %1526 = shalt.err (!%p1523_p7)
}
  0x57   : > { %1325 = dma.hbm_to_vmem [thread:$0]  (!%p1843_p13), %s2200_s2, 16, %s1847_s12, [#allocation7]  }
  0x58   : > { %s1527_s8 = scalar_lea.hbm %s2171_s3, 16 }
  0x59   : > { %p1528_p9 = scmp.ne.s32.totalorder %s2171_s3, %s1527_s8  ;;  %p1534_p8 = scmp.lt.u32.totalorder %s1527_s8, %s2171_s3 }
  0x5b   : > { %p1530_p5 = pnand %p1528_p9, %p1859_p2 }
  0x5d   : > { %p1531_p6 = pneg %p1530_p5 }
  0x5f   : > { %p1536_p10 = pnand %p1534_p8, %p1531_p6 }
  0x61   : > { %1539 = shalt.err (!%p1536_p10)
}
  0x62   : > { %s1540_s4 = scalar_lea.vmem %s205_s14, 16  ;;  %s1547_s12 = scalar_lea.vmem %s205_s14, 32 }
  0x63   : > { %p1541_p12 = scmp.ne.s32.totalorder %s205_s14, %s1540_s4  ;;  %p1548_p1 = scmp.lt.s32.totalorder %s205_s14, %s205_s14 }
  0x64   : > { %p1549_p7 = scmp.lt.s32.totalorder %s1547_s12, %s1540_s4 }
  0x65   : > { %p1543_p0 = pnand %p1541_p12, %p1859_p2 }
  0x66   : > { %p1550_p3 = por %p1549_p7, %p1548_p1 }
  0x67   : > { %p1544_p4 = pneg %p1543_p0 }
  0x69   : > { %p1551_p11 = pnand %p1550_p3, %p1544_p4 }
  0x6b   : > { %1554 = shalt.err (!%p1551_p11)
}
  0x6c   : > { %1328 = dma.hbm_to_vmem [thread:$0]  (!%p1843_p13), %s2171_s3, 16, %s205_s14, [#allocation10]  }
  0x6d   : > { %s34_s6 = sadd.s32 1, %s1707_s23  ;;  %s37_s5 = sadd.s32 1, %s1711_s24 }
  0x6e   : > { %p35_p3 = scmp.ge.s32.totalorder %s34_s6, 3  ;;  %s45_s10 = sadd.s32 %s1707_s23, %s1711_s24 }
  0x6f   : > { %s52_s27 = sadd.s32 1, %s1695_s20  ;;  %p59_p11 = scmp.ne.s32.totalorder %s1695_s20, %s1691_s19 }
  0x70   : > { %s2229_s6 = smov (%p35_p3, %s34_s6), 0  ;;  %s2231_s5 = smov (!%p35_p3, %s37_s5), %s1711_s24 }
  0x71   : > { %p60_p2 = scmp.eq.s32.totalorder %s1715_s25, 0  ;;  %p39_p9 = scmp.ge.s32.totalorder %s2231_s5, 8 }
  0x72   : > { %p1340_p5 = scmp.lt.s32.totalorder %s1715_s25, 24  ;;  %s215_s8 = sand.u32 1, %s1695_s20  }
  0x73   : > { %p1938_p6 = por %p60_p2, %p59_p11  ;;  %s2233_s5 = smov (%p39_p9, %s2231_s5), 0 }
  0x74   : > { %s1300_s11 = smul.u32 40, %s215_s8  ;;  %s46_s13 = sadd.s32 %s2233_s5, %s2229_s6 }
  0x75   : > { %s139_s29 = ssub.s32 %s1711_s24, %s2233_s5  ;;  %s48_s9 = ssub.s32 %s45_s10, %s46_s13 }
  0x76   : > { %p141_p13 = scmp.eq.s32.totalorder %s139_s29, 0  ;;  %p50_p8 = scmp.eq.s32.totalorder %s48_s9, 0 }
  0x77   : > { %s2202_s4 = sadd.s32 1, %s1683_s17  ;;  %s1301_s22 = smul.u32 640, %s45_s10 }
  0x78   : > { %s1952_s12 = scalar_select %p141_p13, %s1683_s17, %s2202_s4  }
  0x79   : > { %s1955_s15 = scalar_select %p50_p8, %s1695_s20, %s52_s27  }
  0x7a   : > { %s219_s18 = scalar_lea.vmem [#allocation3], %s1300_s11  ;;  %p1963_p10 = pnand %p1340_p5, %p1938_p6 }
  0x7b   : > { %s229_s26 = sshll.u32 %s219_s18, 4  ;;  %s1970_s29 = scalar_lea.hbm %s2168_s0, %s1301_s22  ;;  %s1957_s26 = int_to_ptr.vmem [resolvable:$true] %s229_s26 }
  0x7c   : > { %s1972_s18 = scalar_lea.sflag [#allocation4], %s215_s8  ;;  %s1555_s10 = scalar_lea.hbm %s1970_s29, 640 }
  0x7d   : > { %p1556_p12 = scmp.ne.s32.totalorder %s1970_s29, %s1555_s10  ;;  %p1557_p0 = pneg %p1963_p10 }
  0x7e   : > { %s1560_s14 = scalar_lea.hbm %s2168_s0, 6400  ;;  %p1561_p7 = scmp.lt.u32.totalorder %s1970_s29, %s2168_s0 }
  0x7f   : > { %p1558_p4 = pnand %p1557_p0, %p1556_p12  ;;  %p1562_p3 = scmp.lt.u32.totalorder %s1560_s14, %s1555_s10 }
  0x80   : > { %p1564_p2 = scmp.lt.u32.totalorder %s1555_s10, %s1970_s29 }
  0x81   : > { %p1559_p1 = pneg %p1558_p4  ;;  %p1563_p11 = por %p1562_p3, %p1561_p7 }
  0x83   : > { %p1565_p9 = por %p1564_p2, %p1563_p11 }
  0x85   : > { %p1566_p5 = pnand %p1565_p9, %p1559_p1 }
  0x87   : > { %1569 = shalt.err (!%p1566_p5)
}
  0x88   : > { %s1570_s8 = scalar_lea.vmem %s1957_s26, 640  ;;  %s1722_s4 = smov [#allocation3]  }
  0x89   : > { %p1571_p6 = scmp.ne.s32.totalorder %s1957_s26, %s1570_s8  ;;  %s1575_s22 = sshll.u32 %s1722_s4, 4  ;;  %s1576_s22 = int_to_ptr.vmem [resolvable:$false] %s1575_s22 }
  0x8a   : > { %s1577_s13 = scalar_lea.vmem %s1576_s22, 1280  ;;  %p1578_p12 = scmp.lt.s32.totalorder %s1957_s26, %s1576_s22 }
  0x8b   : > { %p1573_p13 = pnand %p1571_p6, %p1557_p0  ;;  %p1579_p4 = scmp.lt.s32.totalorder %s1577_s13, %s1570_s8 }
  0x8d   : > { %p1574_p8 = pneg %p1573_p13  ;;  %p1580_p7 = por %p1579_p4, %p1578_p12 }
  0x8f   : > { %p1581_p3 = pnand %p1580_p7, %p1574_p8 }
  0x91   : > { %1584 = shalt.err (!%p1581_p3)
}
  0x92   : > { %s2204_s10 = smov 4   ;;  %s2205_s27 = smov 64  }
  0x93   : > { %1332 = dma.hbm_to_vmem [thread:$0]  (!%p1963_p10), %s1970_s29, 640, %s1957_s26, %s1972_s18, %s2205_s27, %s2205_s27, %s2204_s10  }
  0x94   : > { %p2206_p0 = scmp.ne.s32.totalorder %s2196_s7, 0 }
  0x95   : > { %s243_s2 = sand.u32 (!%p2206_p0), 1, %s1691_s19   ;;  %p2207_p1 = scmp.ne.s32.totalorder (!%p2206_p0), %s2191_s30, 0 }
  0x96   : > { %241 = sbr.rel (%p2206_p0) target bundleno = 492 (0x1ec), region = 36  ;;  %s244_s11 = scalar_lea.sflag (!%p2206_p0), [#allocation4], %s243_s2 }
  0x97   : > { %s1302_s14 = smul.u32 (!%p2206_p0), 40, %s243_s2 }
  0x99   : > { %s2006_s9 = scalar_lea.vmem (!%p2206_p0), [#allocation3], %s1302_s14 }
  0x9d   : > { %1658 = dma.done.wait (%p2207_p1), %s244_s11, 640  }
  0x9e   : > { %1660 = vsyncadd (%p2207_p1), %s244_s11, 4294966656  ;;  %p2208_p11 = scmp.ne.s32.totalorder %s2190_s28, 0 }
  0xa0   : > { %1662 = dma.done.wait (%p2208_p11), [#allocation7], 6928  }
  0xa1   : > { %1664 = vsyncadd (%p2208_p11), [#allocation7], 4294960368 }
  0xa2   : > { %1666 = dma.done.wait (%p2208_p11), [#allocation10], 16  }
  0xa3   : > { %1668 = vsyncadd (%p2208_p11), [#allocation10], 4294967280  ;;  %s281_s1 = sand.u32 1, %s1679_s16   ;;  %p1078_p10 = scmp.ne.s32.totalorder %s1699_s21, 0 }
  0xa4   : > { %s1077_s7 = sshll.u32 %s281_s1, 5  ;;  %vm290_vm0 = vcmask (!%p1078_p10), 130048   ;;  %v1723_v0 = vmov (!%p1078_p10), 0.0  }
  0xa5   : > { %s2023_s26 = scalar_lea.vmem [#allocation11], %s1077_s7  ;;  %289 = sbr.rel (%p1078_p10) target bundleno = 172 (0xac), region = 56  ;;  %291 = vst.msk [vmem:[#allocation2] sm:$0xff] (!%p1078_p10), %vm290_vm0, %v1723_v0  ;;  %292 = vst.msk [vmem:[#allocation2 + $0x8] sm:$0xff] (!%p1078_p10), %vm290_vm0, %v1723_v0 }
  0xa6   : > { %293 = vst.msk [vmem:[#allocation2 + $0x10] sm:$0xff] (!%p1078_p10), %vm290_vm0, %v1723_v0  ;;  %294 = vst.msk [vmem:[#allocation2 + $0x18] sm:$0xff] (!%p1078_p10), %vm290_vm0, %v1723_v0 }
  0xa7   : > { %295 = vst.msk [vmem:[#allocation2 + $0x20] sm:$0xff] (!%p1078_p10), %vm290_vm0, %v1723_v0  ;;  %296 = vst.msk [vmem:[#allocation2 + $0x28] sm:$0xff] (!%p1078_p10), %vm290_vm0, %v1723_v0 }
  0xa8   : > { %297 = vst.msk [vmem:[#allocation2 + $0x30] sm:$0xff] (!%p1078_p10), %vm290_vm0, %v1723_v0  ;;  %298 = vst.msk [vmem:[#allocation2 + $0x38] sm:$0xff] (!%p1078_p10), %vm290_vm0, %v1723_v0 }
  0xac PF: > { %s1164_s28 = smul.u32 144, %s1699_s21  ;;  %v1453_v1 = vld [vmem:[%s2006_s9] sm:$0xff]   ;;  %vm386_vm1 = vcmask 785408   ;;  %v1454_v16 = vld [vmem:[%s2006_s9 + $0x8] sm:$0xff]   ;;  %v1460_v19 = vld [vmem:[%s2006_s9 + $0x10] sm:$0xff]   ;;  %vm800_vm2 = vcmask 130048  }
  0xad   : > { %1216 = vmatprep.mubr.msk.bf16.mxu1 %vm386_vm1, %v1453_v1  ;;  %v1455_v2 = vld [vmem:[%s2006_s9 + $0x4] sm:$0xff]   ;;  %v1457_v17 = vld [vmem:[%s2006_s9 + $0xc] sm:$0xff]   ;;  %v1462_v20 = vld [vmem:[%s2006_s9 + $0x14] sm:$0xff]   ;;  %p1148_p2 = scmp.ne.s32.totalorder %s1699_s21, 2 }
  0xae   : > { %s2030_s30 = scalar_lea.vmem [#allocation6], %s1164_s28  ;;  %1236 = vmatprep.mubr.msk.bf16.mxu0 %vm386_vm1, %v1455_v2  ;;  %v1461_v22 = vld [vmem:[%s2006_s9 + $0x18] sm:$0xff]   ;;  %v1467_v25 = vld [vmem:[%s2006_s9 + $0x8] sm:$0xff]   ;;  %v1470_v29 = vld [vmem:[%s2006_s9 + $0x20] sm:$0xff]   ;;  %vm907_vm3 = vcmask (!%p1148_p2), 125952  }
  0xaf   : > { %v1441_v3 = vld [vmem:[%s2030_s30] sm:$0xff]   ;;  %v1442_v4 = vld [vmem:[%s2030_s30 + $0x30] sm:$0xff]   ;;  %v1443_v5 = vld [vmem:[%s2030_s30 + $0x8] sm:$0xff]  }
  0xb0   : > { %1204 = vmatprep.subr.bf16.mxu1 %v1441_v3  ;;  %1224 = vmatprep.subr.bf16.mxu0 %v1442_v4  ;;  %v1444_v6 = vld [vmem:[%s2030_s30 + $0x38] sm:$0xff]   ;;  %v1445_v7 = vld [vmem:[%s2030_s30 + $0x10] sm:$0xff]   ;;  %v1446_v8 = vld [vmem:[%s2030_s30 + $0x40] sm:$0xff]  }
  0xb1   : > { %1205 = vmatpush3.bf16.msra.mxu1 %v1441_v3  ;;  %1225 = vmatpush3.bf16.msra.mxu0 %v1442_v4  ;;  %v1447_v9 = vld [vmem:[%s2030_s30 + $0x18] sm:$0xff]   ;;  %v1448_v10 = vld [vmem:[%s2030_s30 + $0x48] sm:$0xff]   ;;  %v1449_v11 = vld [vmem:[%s2030_s30 + $0x20] sm:$0xff]  }
  0xb2   : > { %1206 = vmatprep.subr.bf16.mxu1 %v1443_v5  ;;  %1226 = vmatprep.subr.bf16.mxu0 %v1444_v6  ;;  %v1450_v12 = vld [vmem:[%s2030_s30 + $0x50] sm:$0xff]   ;;  %v1451_v13 = vld [vmem:[%s2030_s30 + $0x28] sm:$0xff]   ;;  %v1452_v14 = vld [vmem:[%s2030_s30 + $0x58] sm:$0xff]  }
  0xb3   : > { %v1456_v15 = vld [vmem:[%s2030_s30 + $0x60] sm:$0xff]   ;;  %v1458_v18 = vld [vmem:[%s2030_s30 + $0x68] sm:$0xff]   ;;  %v1459_v21 = vld [vmem:[%s2030_s30 + $0x70] sm:$0xff]  }
  0xb4   : > { %v1464_v23 = vld [vmem:[%s2006_s9 + $0x1c] sm:$0xff]   ;;  %v1469_v30 = vld [vmem:[%s2006_s9 + $0x10] sm:$0xff]  }
  0xb5   : > { %1207 = vmatpush3.bf16.msra.mxu1 %v1443_v5  ;;  %1227 = vmatpush3.bf16.msra.mxu0 %v1444_v6  ;;  %v1463_v24 = vld [vmem:[%s2030_s30 + $0x78] sm:$0xff]   ;;  %v1465_v27 = vld [vmem:[%s2030_s30 + $0x80] sm:$0xff]   ;;  %v1466_v28 = vld [vmem:[%s2030_s30 + $0x88] sm:$0xff]  }
  0xb6   : > { %1208 = vmatprep.subr.bf16.mxu1 %v1445_v7  ;;  %1228 = vmatprep.subr.bf16.mxu0 %v1446_v8  ;;  %v1468_v26 = vld [vmem:[%s2006_s9 + $0x18] sm:$0xff]   ;;  %v305_v35 = vld [vmem:[#allocation2 + $0x30] sm:$0xff]  ;;  %v304_v42 = vld [vmem:[#allocation2 + $0x28] sm:$0xff] }
  0xb7   : > { %v303_v36 = vld [vmem:[#allocation2 + $0x20] sm:$0xff]  ;;  %v306_v38 = vld [vmem:[#allocation2 + $0x38] sm:$0xff]  ;;  %v301_v55 = vld [vmem:[#allocation2 + $0x10] sm:$0xff] }
  0xb8   : > { %v299_v56 = vld [vmem:[#allocation2] sm:$0xff]  ;;  %v302_v57 = vld [vmem:[#allocation2 + $0x18] sm:$0xff]  ;;  %v300_v59 = vld [vmem:[#allocation2 + $0x8] sm:$0xff] }
  0xb9   : > { %1209 = vmatpush3.bf16.msra.mxu1 %v1445_v7  ;;  %1229 = vmatpush3.bf16.msra.mxu0 %v1446_v8 }
  0xba   : > { %1210 = vmatprep.subr.bf16.mxu1 %v1447_v9  ;;  %1230 = vmatprep.subr.bf16.mxu0 %v1448_v10 }
  0xbd   : > { %1211 = vmatpush3.bf16.msra.mxu1 %v1447_v9  ;;  %1231 = vmatpush3.bf16.msra.mxu0 %v1448_v10 }
  0xbe   : > { %1212 = vmatprep.subr.bf16.mxu1 %v1449_v11  ;;  %1232 = vmatprep.subr.bf16.mxu0 %v1450_v12 }
  0xc1   : > { %1213 = vmatpush3.bf16.msra.mxu1 %v1449_v11  ;;  %1233 = vmatpush3.bf16.msra.mxu0 %v1450_v12 }
  0xc2   : > { %1214 = vmatprep.subr.bf16.mxu1 %v1451_v13  ;;  %1234 = vmatprep.subr.bf16.mxu0 %v1452_v14 }
  0xc5   : > { %1215 = vmatpush3.bf16.msra.mxu1 %v1451_v13  ;;  %1235 = vmatpush3.bf16.msra.mxu0 %v1452_v14 }
  0xc6   : > { %1264 = vmatprep.subr.bf16.mxu1 %v1456_v15  ;;  %1244 = vmatprep.subr.bf16.mxu0 %v1456_v15 }
  0xc8   : > { %1217 = vmatmul.mubr.msk.bf16.vlgmr.msra.gmra.mrb[0].mxu1 %vm386_vm1, %v1454_v16  ;;  %1237 = vmatmul.mubr.msk.bf16.vlgmr.msra.gmra.mrb[0].mxu0 %vm386_vm1, %v1457_v17  ;;  %v1149_v16 = vld [vmem:[#allocation8] ss:$0 sm:$0xff] (!%p1148_p2)  ;;  %v1150_v17 = vld [vmem:[#allocation9] ss:$0 sm:$0xff] (!%p1148_p2) }
  0xc9   : > { %1270 = vmatpush3.bf16.msra.mxu1 %v1456_v15  ;;  %1245 = vmatpush3.bf16.msra.mxu0 %v1456_v15 }
  0xca   : > { %1265 = vmatprep.subr.bf16.mxu1 %v1458_v18  ;;  %1246 = vmatprep.subr.bf16.mxu0 %v1458_v18 }
  0xcb   : > { %1220 = vmatprep.mubr.msk.bf16.mxu1 %vm386_vm1, %v1460_v19  ;;  %1240 = vmatprep.mubr.msk.bf16.mxu0 %vm386_vm1, %v1462_v20 }
  0xcd   : > { %1271 = vmatpush3.bf16.msra.mxu1 %v1458_v18  ;;  %1247 = vmatpush3.bf16.msra.mxu0 %v1458_v18 }
  0xce   : > { %1266 = vmatprep.subr.bf16.mxu1 %v1459_v21  ;;  %1248 = vmatprep.subr.bf16.mxu0 %v1459_v21 }
  0xd0   : > { %1221 = vmatmul.mubr.msk.bf16.gmra.mrb[4].mxu1 %vm386_vm1, %v1461_v22  ;;  %1241 = vmatmul.mubr.msk.bf16.gmra.mrb[4].mxu0 %vm386_vm1, %v1464_v23 }
  0xd1   : > { %1272 = vmatpush3.bf16.msra.mxu1 %v1459_v21  ;;  %1249 = vmatpush3.bf16.msra.mxu0 %v1459_v21 }
  0xd2   : > { %1267 = vmatprep.subr.bf16.mxu1 %v1463_v24  ;;  %1250 = vmatprep.subr.bf16.mxu0 %v1463_v24 }
  0xd3   : > { %1256 = vmatprep.mubr.msk.bf16.mxu0 %vm386_vm1, %v1467_v25  ;;  %1260 = vmatprep.mubr.msk.bf16.mxu1 %vm386_vm1, %v1468_v26 }
  0xd5   : > { %1273 = vmatpush3.bf16.msra.mxu1 %v1463_v24  ;;  %1251 = vmatpush3.bf16.msra.mxu0 %v1463_v24 }
  0xd6   : > { %1268 = vmatprep.subr.bf16.mxu1 %v1465_v27  ;;  %1252 = vmatprep.subr.bf16.mxu0 %v1465_v27 }
  0xd9   : > { %1274 = vmatpush3.bf16.msra.mxu1 %v1465_v27  ;;  %1253 = vmatpush3.bf16.msra.mxu0 %v1465_v27 }
  0xda   : > { %1269 = vmatprep.subr.bf16.mxu1 %v1466_v28  ;;  %1254 = vmatprep.subr.bf16.mxu0 %v1466_v28 }
  0xdd   : > { %1275 = vmatpush3.bf16.msra.mxu1 %v1466_v28  ;;  %1255 = vmatpush3.bf16.msra.mxu0 %v1466_v28 }
  0xe0   : > { %1261 = vmatmul.mubr.msk.bf16.vlgmr.msra.gmra.mrb[8].mxu1 %vm386_vm1, %v1470_v29  ;;  %1257 = vmatmul.mubr.msk.bf16.vlgmr.msra.gmra.mrb[0].mxu0 %vm386_vm1, %v1469_v30 }
 0x19b   : > { %v1218_v31 = vpop.f32.mrb[0].mxu1 }
 0x19c   : > { %v433_v32 = vpop.f32.mrb[1].mxu1  ;;  %v466_v58 = vadd.f32 %v1218_v31, %v301_v55 }
 0x19d   : > { %v1219_v33 = vpop.f32.mrb[2].mxu1  ;;  %v464_v61 = vadd.f32 %v433_v32, %v299_v56 }
 0x19e   : > { %v436_v34 = vpop.f32.mrb[3].mxu1  ;;  %v467_v1 = vadd.f32 %v1219_v33, %v302_v57 }
 0x19f   : > { %v465_v6 = vadd.f32 %v436_v34, %v300_v59 }
 0x1a3   : > { %v1222_v37 = vpop.f32.mrb[4].mxu1  ;;  %v1242_v41 = vpop.f32.mrb[4].mxu0 }
 0x1a4   : > { %v470_v39 = vadd.f32 %v1222_v37, %v305_v35  ;;  %v449_v40 = vpop.f32.mrb[5].mxu1  ;;  %v613_v45 = vpop.f32.mrb[5].mxu0 }
 0x1a5   : > { %v468_v43 = vadd.f32 %v449_v40, %v303_v36  ;;  %v1223_v44 = vpop.f32.mrb[6].mxu1  ;;  %v1243_v49 = vpop.f32.mrb[6].mxu0 }
 0x1a6   : > { %v471_v46 = vadd.f32 %v1223_v44, %v306_v38  ;;  %v634_v47 = vadd.f32 %v1242_v41, %v470_v39  ;;  %v452_v48 = vpop.f32.mrb[7].mxu1  ;;  %v616_v52 = vpop.f32.mrb[7].mxu0 }
 0x1a7   : > { %v469_v50 = vadd.f32 %v452_v48, %v304_v42  ;;  %v632_v51 = vadd.f32 %v613_v45, %v468_v43 }
 0x1a8   : > { %v635_v53 = vadd.f32 %v1243_v49, %v471_v46 }
 0x1a9   : > { %v633_v54 = vadd.f32 %v616_v52, %v469_v50 }
 0x1b3   : > { %v1262_v60 = vpop.f32.mrb[8].mxu1  ;;  %v1258_v62 = vpop.f32.mrb[0].mxu0  ;;  %812 = sbr.rel (%p1148_p2) target bundleno = 464 (0x1d0), region = 60 }
 0x1b4   : > { %v798_v63 = vadd.f32 %v1262_v60, %v634_v47  ;;  %v777_v0 = vpop.f32.mrb[9].mxu1  ;;  %v1277_v2 = vadd.f32 %v1258_v62, %v466_v58  ;;  %v761_v3 = vpop.f32.mrb[1].mxu0 }
 0x1b5   : > { %v796_v4 = vadd.f32 %v777_v0, %v632_v51  ;;  %v1263_v5 = vpop.f32.mrb[10].mxu1  ;;  %v1279_v7 = vadd.f32 %v761_v3, %v464_v61  ;;  %v1259_v8 = vpop.f32.mrb[2].mxu0 }
 0x1b6   : > { %807 = vst.msk [vmem:[#allocation2 + $0x30] sm:$0xff] %vm800_vm2, %v798_v63  ;;  %v799_v9 = vadd.f32 %v1263_v5, %v635_v53  ;;  %v780_v10 = vpop.f32.mrb[11].mxu1  ;;  %803 = vst.msk [vmem:[#allocation2 + $0x10] sm:$0xff] %vm800_vm2, %v1277_v2  ;;  %v1281_v11 = vadd.f32 %v1259_v8, %v467_v1  ;;  %v764_v12 = vpop.f32.mrb[3].mxu0 }
 0x1b7   : > { %805 = vst.msk [vmem:[#allocation2 + $0x20] sm:$0xff] %vm800_vm2, %v796_v4  ;;  %v797_v13 = vadd.f32 %v780_v10, %v633_v54  ;;  %801 = vst.msk [vmem:[#allocation2] sm:$0xff] %vm800_vm2, %v1279_v7  ;;  %v1283_v14 = vadd.f32 %v764_v12, %v465_v6 }
 0x1b8   : > { %808 = vst.msk [vmem:[#allocation2 + $0x38] sm:$0xff] %vm800_vm2, %v799_v9  ;;  %804 = vst.msk [vmem:[#allocation2 + $0x18] sm:$0xff] %vm800_vm2, %v1281_v11 }
 0x1b9   : > { %806 = vst.msk [vmem:[#allocation2 + $0x28] sm:$0xff] %vm800_vm2, %v797_v13  ;;  %802 = vst.msk [vmem:[#allocation2 + $0x8] sm:$0xff] %vm800_vm2, %v1283_v14 }
 0x1bd   : > { %v815_v20 = vld [vmem:[#allocation2 + $0x10] sm:$0xff] }
 0x1be   : > { %v813_v15 = vld [vmem:[#allocation2] sm:$0xff]  ;;  %v830_v23 = vmul.f32 %v1149_v16, %v815_v20  ;;  %v819_v27 = vld [vmem:[#allocation2 + $0x30] sm:$0xff] }
 0x1bf   : > { %v828_v18 = vmul.f32 %v1149_v16, %v813_v15  ;;  %v816_v21 = vld [vmem:[#allocation2 + $0x18] sm:$0xff]  ;;  %v817_v25 = vld [vmem:[#allocation2 + $0x20] sm:$0xff]  ;;  %v834_v31 = vmul.f32 %v1149_v16, %v819_v27 }
 0x1c0   : > { %v814_v19 = vld [vmem:[#allocation2 + $0x8] sm:$0xff]  ;;  %v831_v24 = vmul.f32 %v1149_v16, %v816_v21  ;;  %v832_v29 = vmul.f32 %v1149_v16, %v817_v25  ;;  %v820_v32 = vld [vmem:[#allocation2 + $0x38] sm:$0xff]  ;;  %v845_v34 = vadd.f32 %v1150_v17, %v830_v23 }
 0x1c1   : > { %v829_v22 = vmul.f32 %v1149_v16, %v814_v19  ;;  %v818_v26 = vld [vmem:[#allocation2 + $0x28] sm:$0xff]  ;;  %v843_v28 = vadd.f32 %v1150_v17, %v828_v18  ;;  %v835_v36 = vmul.f32 %v1149_v16, %v820_v32  ;;  %v849_v54 = vadd.f32 %v1150_v17, %v834_v31 }
 0x1c2   : > { %v833_v30 = vmul.f32 %v1149_v16, %v818_v26  ;;  %v846_v35 = vadd.f32 %v1150_v17, %v831_v24  ;;  %v847_v38 = vadd.f32 %v1150_v17, %v832_v29  ;;  %vm853_vm6 = vcmp.ge.f32.partialorder %v845_v34, 0.0 }
 0x1c3   : > { %v844_v33 = vadd.f32 %v1150_v17, %v829_v22  ;;  %vm851_vm4 = vcmp.ge.f32.partialorder %v843_v28, 0.0  ;;  %v859_v37 = vmul.f32 0.2, %v843_v28  ;;  %v861_v41 = vmul.f32 0.2, %v845_v34 }
 0x1c4   : > { %v848_v39 = vadd.f32 %v1150_v17, %v833_v30  ;;  %vm854_vm7 = vcmp.ge.f32.partialorder %v846_v35, 0.0  ;;  %v862_v43 = vmul.f32 0.2, %v846_v35  ;;  %vm855_vm8 = vcmp.ge.f32.partialorder %v847_v38, 0.0 }
 0x1c5   : > { %vm852_vm5 = vcmp.ge.f32.partialorder %v844_v33, 0.0  ;;  %v860_v40 = vmul.f32 0.2, %v844_v33  ;;  %v867_v42 = vsel %vm851_vm4, %v843_v28, %v859_v37  ;;  %v869_v46 = vsel %vm853_vm6, %v845_v34, %v861_v41 }
 0x1c6   : > { %v1165_v44 = vpack.c.bf16 %v867_v42, %v867_v42  ;;  %v863_v47 = vmul.f32 0.2, %v847_v38  ;;  %v1167_v49 = vpack.c.bf16 %v869_v46, %v869_v46  ;;  %v870_v50 = vsel %vm854_vm7, %v846_v35, %v862_v43 }
 0x1c7   : > { %v868_v45 = vsel %vm852_vm5, %v844_v33, %v860_v40  ;;  %vm856_vm9 = vcmp.ge.f32.partialorder %v848_v39, 0.0  ;;  %v1168_v51 = vpack.c.bf16 %v870_v50, %v870_v50  ;;  %v864_v53 = vmul.f32 0.2, %v848_v39 }
 0x1c8   : > { %v1166_v48 = vpack.c.bf16 %v868_v45, %v868_v45  ;;  %908 = vst.msk [vmem:[%s2023_s26] sm:$0xf] %vm907_vm3, %v1165_v44  ;;  %v871_v52 = vsel %vm855_vm8, %v847_v38, %v863_v47  ;;  %910 = vst.msk [vmem:[%s2023_s26 + $0x8] sm:$0xf] %vm907_vm3, %v1167_v49  ;;  %v850_v56 = vadd.f32 %v1150_v17, %v835_v36  ;;  %vm857_vm10 = vcmp.ge.f32.partialorder %v849_v54, 0.0 }
 0x1c9   : > { %v1169_v55 = vpack.c.bf16 %v871_v52, %v871_v52  ;;  %911 = vst.msk [vmem:[%s2023_s26 + $0xc] sm:$0xf] %vm907_vm3, %v1168_v51  ;;  %v872_v57 = vsel %vm856_vm9, %v848_v39, %v864_v53  ;;  %v865_v58 = vmul.f32 0.2, %v849_v54 }
 0x1ca   : > { %909 = vst.msk [vmem:[%s2023_s26 + $0x4] sm:$0xf] %vm907_vm3, %v1166_v48  ;;  %v1170_v59 = vpack.c.bf16 %v872_v57, %v872_v57  ;;  %vm858_vm11 = vcmp.ge.f32.partialorder %v850_v56, 0.0  ;;  %v866_v60 = vmul.f32 0.2, %v850_v56 }
 0x1cb   : > { %912 = vst.msk [vmem:[%s2023_s26 + $0x10] sm:$0xf] %vm907_vm3, %v1169_v55  ;;  %v873_v61 = vsel %vm857_vm10, %v849_v54, %v865_v58 }
 0x1cc   : > { %913 = vst.msk [vmem:[%s2023_s26 + $0x14] sm:$0xf] %vm907_vm3, %v1170_v59  ;;  %v1171_v62 = vpack.c.bf16 %v873_v61, %v873_v61  ;;  %v874_v63 = vsel %vm858_vm11, %v850_v56, %v866_v60 }
 0x1cd   : > { %v1172_v0 = vpack.c.bf16 %v874_v63, %v874_v63 }
 0x1ce   : > { %914 = vst.msk [vmem:[%s2023_s26 + $0x18] sm:$0xf] %vm907_vm3, %v1171_v62 }
 0x1cf   : > { %915 = vst.msk [vmem:[%s2023_s26 + $0x1c] sm:$0xf] %vm907_vm3, %v1172_v0 }
 0x1d0 PF: > { %s2209_s21 = sld [smem:[#allocation17_spill]]  ;;  %s2210_s29 = sld [smem:[#allocation18_spill]] }
 0x1d1   : > { %s2211_s22 = sld [smem:[#allocation22_spill]]  ;;  %s932_s27 = sshll.u32 %s2023_s26, 4  ;;  %s2103_s27 = int_to_ptr.vmem [resolvable:$true] %s932_s27 }
 0x1d2   : > { %s2107_s2 = scalar_lea.sflag [#allocation5], %s281_s1  ;;  %s1585_s14 = scalar_lea.vmem %s2103_s27, 512 }
 0x1d3   : > { %p1586_p9 = scmp.ne.s32.totalorder %s2103_s27, %s1585_s14  ;;  %s1724_s11 = smov [#allocation11]  }
 0x1d4   : > { %s1589_s9 = sshll.u32 %s1724_s11, 4  ;;  %s1590_s9 = int_to_ptr.vmem [resolvable:$false] %s1589_s9 }
 0x1d5   : > { %s1591_s7 = scalar_lea.vmem %s1590_s9, 1024  ;;  %p1592_p8 = scmp.lt.s32.totalorder %s2103_s27, %s1590_s9 }
 0x1d6   : > { %s1173_s18 = sshll.u32 %s2209_s21, 9  ;;  %p2213_p5 = scmp.ne.s32.totalorder %s2210_s29, 0 }
 0x1d7   : > { %s2212_s13 = smov %s2211_s22  ;;  %s2100_s10 = scalar_lea.hbm %s2211_s22, %s1173_s18 }
 0x1d8   : > { %p1587_p6 = pnand %p1586_p9, %p2213_p5  ;;  %p1593_p12 = scmp.lt.s32.totalorder %s1591_s7, %s1585_s14 }
 0x1da   : > { %p1588_p13 = pneg %p1587_p6  ;;  %p1594_p4 = por %p1593_p12, %p1592_p8 }
 0x1dc   : > { %p1595_p7 = pnand %p1594_p4, %p1588_p13 }
 0x1de   : > { %1598 = shalt.err (!%p1595_p7)
}
 0x1df   : > { %s1599_s1 = scalar_lea.hbm %s2100_s10, 512  ;;  %s1603_s30 = scalar_lea.hbm %s2212_s13, 4096 }
 0x1e0   : > { %p1600_p3 = scmp.ne.s32.totalorder %s2100_s10, %s1599_s1  ;;  %p1604_p11 = scmp.lt.u32.totalorder %s2100_s10, %s2212_s13 }
 0x1e1   : > { %p1605_p10 = scmp.lt.u32.totalorder %s1603_s30, %s1599_s1  ;;  %p1607_p9 = scmp.lt.u32.totalorder %s1599_s1, %s2100_s10 }
 0x1e2   : > { %p1601_p0 = pnand %p1600_p3, %p2213_p5 }
 0x1e3   : > { %p1606_p2 = por %p1605_p10, %p1604_p11 }
 0x1e4   : > { %p1602_p1 = pneg %p1601_p0 }
 0x1e5   : > { %p1608_p6 = por %p1607_p9, %p1606_p2 }
 0x1e7   : > { %p1609_p13 = pnand %p1608_p6, %p1602_p1 }
 0x1e9   : > { %1612 = shalt.err (!%p1609_p13)
}
 0x1ea   : > { %s1725_s8 = smov 64   ;;  %s1726_s4 = smov 4  }
 0x1eb   : > { %1317 = dma.vmem_to_hbm [thread:$0]  (%p2213_p5), %s2103_s27, 512, %s2100_s10, %s2107_s2, %s1725_s8, %s1725_s8, %s1726_s4  }
 0x1ec PF: > { %s2214_s22 = sld [smem:[#allocation16_spill]]  ;;  %s2215_s14 = sld [smem:[#allocation19_spill]] }
 0x1ed   : > { %p1344_p8 = scmp.ge.s32.totalorder %s1715_s25, 2 }
 0x1f2   : > { %s947_s11 = sand.u32 1, %s2214_s22   ;;  %p2216_p12 = scmp.ne.s32.totalorder %s2215_s14, 0 }
 0x1f3   : > { %s948_s9 = scalar_lea.sflag [#allocation5], %s947_s11 }
 0x1f4   : > { %p1334_p4 = pnand %p1344_p8, %p2216_p12 }
 0x1f6   : > { %1670 = dma.done.wait (!%p1334_p4), %s948_s9, 512  }
 0x1f7   : > { %1672 = vsyncadd (!%p1334_p4), %s948_s9, 4294966784  ;;  %s22_s25 = sadd.s32 1, %s1715_s25   ;;  %s2217_s29 = smov %s1955_s15 }
 0x1f8   : > { %p19_p7 = scmp.ge.s32.totalorder %s22_s25, 26   ;;  %s2218_s15 = smov %s1679_s16 }
 0x1f9   : > { %s2219_s16 = smov %s1683_s17  ;;  %s2220_s17 = smov %s1952_s12 }
 0x1fa   : > { %s2221_s18 = smov %s1691_s19  ;;  %s2222_s19 = smov %s1695_s20 }
 0x1fb   : > { %s2223_s20 = smov %s2217_s29  ;;  %s2224_s21 = smov %s1707_s23 }
 0x1fc   : > { %s2225_s22 = smov %s1711_s24  ;;  %s2226_s23 = smov %s2229_s6 }
 0x1fd   : > { %s2227_s24 = smov %s2233_s5  ;;  %21 = sbr.rel (!%p19_p7) target bundleno = 15 (0xf), region = 104 }
 0x204   :  { %953 = vsyncpa [#allocation4], 1 }
 0x205   :  { %955 = vsyncpa [#allocation4 + $0x1], 1 }
 0x206   :  { %956 = vsyncpa [#allocation7], 1 }
 0x207   :  { %957 = vsyncpa [#allocation10], 1 }
 0x208   :  { %958 = vsyncpa [#allocation5], 1 }
 0x209   :  { %960 = vsyncpa [#allocation5 + $0x1], 1 }

// kernel: reconstruction3d_decoder.6
= control target key start
LH: loop header
LB: loop body
LE: loop exit
PB: predicated region body
PF: predicated region fallthrough
CT: control target
= control target key end

     0   :  { %s3672_s0 = inlined_call_operand.hbm [shape: bf16[1,18,288,48], index: 0, kind: input, shape index: {}]   ;;  %s3673_s1 = inlined_call_operand.hbm [shape: bf16[3,3,48,8], index: 1, kind: input, shape index: {}]   ;;  %s3674_s2 = inlined_call_operand.hbm [shape: f32[1,8], index: 2, kind: input, shape index: {}]   ;;  %s3675_s3 = inlined_call_operand.hbm [shape: f32[1,8], index: 3, kind: input, shape index: {}]   ;;  %s3676_s4 = inlined_call_operand.hbm [shape: bf16[1,16,256,8], index: 4, kind: output, shape index: {}]  }
   0x1   :  { %3689 = sst [smem:[#allocation20_spill]] %s3673_s1 }
   0x2   :  { %3690 = sst [smem:[#allocation21_spill]] %s3674_s2 }
   0x3   :  { %3691 = sst [smem:[#allocation22_spill]] %s3676_s4 }
   0x4   :  { %9 = vsyncpa [#allocation4], 0 }
   0x5   :  { %11 = vsyncpa [#allocation4 + $0x1], 0 }
   0x6   :  { %12 = vsyncpa [#allocation7], 0 }
   0x7   :  { %13 = vsyncpa [#allocation10], 0 }
   0x8   :  { %14 = vsyncpa [#allocation5], 0 }
   0x9   :  { %16 = vsyncpa [#allocation5 + $0x1], 0  ;;  %s3009_s15 = smov 0   ;;  %s3011_s16 = smov 0  }
   0xa   :  { %s3013_s17 = smov 0   ;;  %s3015_s18 = smov 0  }
   0xb   :  { %s3017_s19 = smov 0   ;;  %s3019_s20 = smov 0  }
   0xc   :  { %s3021_s21 = smov 0   ;;  %s3023_s22 = smov 0  }
   0xd   :  { %s3025_s23 = smov 0   ;;  %s3027_s24 = smov 0  }
   0xe   :  { %s3029_s25 = smov 0  }
   0xf LB: > { %3692 = sst [smem:[#allocation16_spill]] %s2932_s15  ;;  %s2049_s26 = sadd.s32 4294967295, %s2972_s25   ;;  %s2972_s25 = sphi %s3029_s25, %s22_s25   ;;  %s2968_s24 = sphi %s3027_s24, %s3731_s24   ;;  %s2964_s23 = sphi %s3025_s23, %s3730_s23   ;;  %s2960_s22 = sphi %s3023_s22, %s3729_s22   ;;  %s2956_s21 = sphi %s3021_s21, %s3728_s21   ;;  %s2952_s20 = sphi %s3019_s20, %s3727_s20   ;;  %s2948_s19 = sphi %s3017_s19, %s3726_s19   ;;  %s2944_s18 = sphi %s3015_s18, %s3725_s18   ;;  %s2940_s17 = sphi %s3013_s17, %s3724_s17   ;;  %s2936_s16 = sphi %s3011_s16, %s3723_s16   ;;  %s2932_s15 = sphi %s3009_s15, %s3722_s15  }
  0x10   : > { %3693 = sst [smem:[#allocation17_spill]] %s2960_s22  ;;  %s2050_s27 = sadd.s32 4294967294, %s2972_s25  }
  0x11   : > { %p65_p0 = scmp.ne.s32.totalorder %s2948_s19, %s2944_s18  ;;  %p3065_p1 = scmp.eq.s32.totalorder %s2049_s26, 0 }
  0x12   : > { %p153_p2 = scmp.ne.s32.totalorder %s2940_s17, %s2936_s16  ;;  %p154_p4 = scmp.eq.s32.totalorder %s2049_s26, 47 }
  0x13   : > { %s3694_s28 = scalar_select %p3065_p1, 1, 0 }
  0x14   : > { %p3074_p3 = por %p3065_p1, %p65_p0  ;;  %p159_p5 = scmp.ne.s32.totalorder %s2936_s16, %s2932_s15 }
  0x15   : > { %p160_p6 = scmp.eq.s32.totalorder %s2050_s27, 47  ;;  %p3080_p7 = por %p154_p4, %p153_p2 }
  0x16   : > { %s3695_s30 = scalar_select %p3074_p3, 1, 0 }
  0x17   : > { %s3696_s5 = scalar_select %p3080_p7, 1, 0 }
  0x18   : > { %p2051_p8 = scmp.ge.s32.totalorder %s2972_s25, 1  ;;  %p3085_p9 = por %p160_p6, %p159_p5 }
  0x19   : > { %3697 = sst [smem:[#allocation18_spill]] %s3696_s5  ;;  %p167_p10 = scmp.lt.s32.totalorder %s2972_s25, 49 }
  0x1a   : > { %s3698_s6 = scalar_select %p3085_p9, 1, 0 }
  0x1b   : > { %p3090_p11 = pnand %p2051_p8, %p167_p10  ;;  %s2974_s8 = smov [#allocation6]  }
  0x1c   : > { %3699 = sst [smem:[#allocation19_spill]] %s3698_s6  ;;  %s179_s9 = sshll.u32 %s2974_s8, 4  ;;  %s3094_s9 = int_to_ptr.vmem [resolvable:$true] %s179_s9 }
  0x1d   : > { %s3700_s7 = scalar_select %p3090_p11, 1, 0 }
  0x1e   : > { %p2549_p12 = pneg %p3090_p11  ;;  %s2975_s11 = smov [#allocation8]  }
  0x1f   : > { %s193_s12 = sshll.u32 %s2975_s11, 4  ;;  %s2976_s13 = smov [#allocation9]   ;;  %s3104_s12 = int_to_ptr.vmem [resolvable:$true] %s193_s12 }
  0x20   : > { %p3100_p13 = pnand %p2549_p12, %p3065_p1  ;;  %s3106_s14 = sshll.u32 %s2976_s13, 4  ;;  %s205_s14 = int_to_ptr.vmem [resolvable:$true] %s3106_s14 }
  0x21   : > { %s3702_s1 = sld [smem:[#allocation20_spill]] }
  0x22   : > { %p3116_p2 = pneg %p3100_p13 }
  0x27   : > { %s2728_s27 = scalar_lea.hbm %s3702_s1, 3456 }
  0x28   : > { %p2729_p0 = scmp.ne.s32.totalorder %s3702_s1, %s2728_s27  ;;  %p2735_p6 = scmp.lt.u32.totalorder %s2728_s27, %s3702_s1 }
  0x2a   : > { %p2731_p4 = pnand %p3116_p2, %p2729_p0 }
  0x2c   : > { %p2732_p5 = pneg %p2731_p4 }
  0x2e   : > { %p2737_p8 = pnand %p2735_p6, %p2732_p5 }
  0x30   : > { %2740 = shalt.err (!%p2737_p8)
}
  0x31   : > { %s2741_s29 = scalar_lea.vmem %s3094_s9, 3456  ;;  %p2749_p7 = scmp.lt.s32.totalorder %s3094_s9, %s3094_s9 }
  0x32   : > { %p2742_p10 = scmp.ne.s32.totalorder %s3094_s9, %s2741_s29  ;;  %p2750_p1 = scmp.lt.s32.totalorder %s2741_s29, %s2741_s29 }
  0x34   : > { %p2744_p12 = pnand %p2742_p10, %p3116_p2  ;;  %p2751_p0 = por %p2750_p1, %p2749_p7 }
  0x36   : > { %p2745_p9 = pneg %p2744_p12 }
  0x38   : > { %p2752_p4 = pnand %p2751_p0, %p2745_p9 }
  0x3a   : > { %2755 = shalt.err (!%p2752_p4)
}
  0x3b   : > { %s3687_s18 = smov 64   ;;  %s3688_s26 = smov 4  }
  0x3c   : > { %2552 = dma.hbm_to_vmem [thread:$0]  (!%p3100_p13), %s3702_s1, 3456, %s3094_s9, [#allocation7], %s3687_s18, %s3687_s18, %s3688_s26  }
  0x3d   : > { %s3704_s2 = sld [smem:[#allocation21_spill]] }
  0x43   : > { %s2756_s29 = scalar_lea.hbm %s3704_s2, 16 }
  0x44   : > { %p2757_p1 = scmp.ne.s32.totalorder %s3704_s2, %s2756_s29  ;;  %p2763_p5 = scmp.lt.u32.totalorder %s2756_s29, %s3704_s2 }
  0x46   : > { %p2759_p7 = pnand %p2757_p1, %p3116_p2 }
  0x48   : > { %p2760_p9 = pneg %p2759_p7 }
  0x4a   : > { %p2765_p6 = pnand %p2763_p5, %p2760_p9 }
  0x4c   : > { %2768 = shalt.err (!%p2765_p6)
}
  0x4d   : > { %s2769_s9 = scalar_lea.vmem %s3104_s12, 16  ;;  %s2776_s4 = scalar_lea.vmem %s3104_s12, 32 }
  0x4e   : > { %p2770_p8 = scmp.ne.s32.totalorder %s3104_s12, %s2769_s9  ;;  %p2777_p0 = scmp.lt.s32.totalorder %s3104_s12, %s3104_s12 }
  0x4f   : > { %p2778_p4 = scmp.lt.s32.totalorder %s2776_s4, %s2769_s9 }
  0x50   : > { %p2772_p10 = pnand %p2770_p8, %p3116_p2 }
  0x51   : > { %p2779_p1 = por %p2778_p4, %p2777_p0 }
  0x52   : > { %p2773_p12 = pneg %p2772_p10 }
  0x54   : > { %p2780_p7 = pnand %p2779_p1, %p2773_p12 }
  0x56   : > { %2783 = shalt.err (!%p2780_p7)
}
  0x57   : > { %2555 = dma.hbm_to_vmem [thread:$0]  (!%p3100_p13), %s3704_s2, 16, %s3104_s12, [#allocation7]  }
  0x58   : > { %s2784_s8 = scalar_lea.hbm %s3675_s3, 16 }
  0x59   : > { %p2785_p9 = scmp.ne.s32.totalorder %s3675_s3, %s2784_s8  ;;  %p2791_p8 = scmp.lt.u32.totalorder %s2784_s8, %s3675_s3 }
  0x5b   : > { %p2787_p5 = pnand %p2785_p9, %p3116_p2 }
  0x5d   : > { %p2788_p6 = pneg %p2787_p5 }
  0x5f   : > { %p2793_p10 = pnand %p2791_p8, %p2788_p6 }
  0x61   : > { %2796 = shalt.err (!%p2793_p10)
}
  0x62   : > { %s2797_s4 = scalar_lea.vmem %s205_s14, 16  ;;  %s2804_s12 = scalar_lea.vmem %s205_s14, 32 }
  0x63   : > { %p2798_p12 = scmp.ne.s32.totalorder %s205_s14, %s2797_s4  ;;  %p2805_p1 = scmp.lt.s32.totalorder %s205_s14, %s205_s14 }
  0x64   : > { %p2806_p7 = scmp.lt.s32.totalorder %s2804_s12, %s2797_s4 }
  0x65   : > { %p2800_p0 = pnand %p2798_p12, %p3116_p2 }
  0x66   : > { %p2807_p3 = por %p2806_p7, %p2805_p1 }
  0x67   : > { %p2801_p4 = pneg %p2800_p0 }
  0x69   : > { %p2808_p11 = pnand %p2807_p3, %p2801_p4 }
  0x6b   : > { %2811 = shalt.err (!%p2808_p11)
}
  0x6c   : > { %2558 = dma.hbm_to_vmem [thread:$0]  (!%p3100_p13), %s3675_s3, 16, %s205_s14, [#allocation10]  }
  0x6d   : > { %s34_s6 = sadd.s32 1, %s2964_s23  ;;  %s37_s5 = sadd.s32 1, %s2968_s24 }
  0x6e   : > { %p35_p3 = scmp.ge.s32.totalorder %s34_s6, 3  ;;  %s45_s10 = sadd.s32 %s2964_s23, %s2968_s24 }
  0x6f   : > { %s52_s27 = sadd.s32 1, %s2952_s20  ;;  %p59_p11 = scmp.ne.s32.totalorder %s2952_s20, %s2948_s19 }
  0x70   : > { %s3733_s6 = smov (%p35_p3, %s34_s6), 0  ;;  %s3735_s5 = smov (!%p35_p3, %s37_s5), %s2968_s24 }
  0x71   : > { %p60_p2 = scmp.eq.s32.totalorder %s2972_s25, 0  ;;  %p39_p9 = scmp.ge.s32.totalorder %s3735_s5, 16 }
  0x72   : > { %p2570_p5 = scmp.lt.s32.totalorder %s2972_s25, 48  ;;  %s215_s8 = sand.u32 1, %s2952_s20  }
  0x73   : > { %p3195_p6 = por %p60_p2, %p59_p11  ;;  %s3737_s5 = smov (%p39_p9, %s3735_s5), 0 }
  0x74   : > { %s2530_s11 = smul.u32 144, %s215_s8  ;;  %s46_s13 = sadd.s32 %s3737_s5, %s3733_s6 }
  0x75   : > { %s139_s29 = ssub.s32 %s2968_s24, %s3737_s5  ;;  %s48_s9 = ssub.s32 %s45_s10, %s46_s13 }
  0x76   : > { %p141_p13 = scmp.eq.s32.totalorder %s139_s29, 0  ;;  %p50_p8 = scmp.eq.s32.totalorder %s48_s9, 0 }
  0x77   : > { %s3706_s4 = sadd.s32 1, %s2940_s17  ;;  %s2531_s22 = smul.u32 2304, %s45_s10 }
  0x78   : > { %s3209_s12 = scalar_select %p141_p13, %s2940_s17, %s3706_s4  }
  0x79   : > { %s3212_s15 = scalar_select %p50_p8, %s2952_s20, %s52_s27  }
  0x7a   : > { %s219_s18 = scalar_lea.vmem [#allocation3], %s2530_s11  ;;  %p3220_p10 = pnand %p2570_p5, %p3195_p6 }
  0x7b   : > { %s229_s26 = sshll.u32 %s219_s18, 4  ;;  %s3227_s29 = scalar_lea.hbm %s3672_s0, %s2531_s22  ;;  %s3214_s26 = int_to_ptr.vmem [resolvable:$true] %s229_s26 }
  0x7c   : > { %s3229_s18 = scalar_lea.sflag [#allocation4], %s215_s8  ;;  %s2812_s10 = scalar_lea.hbm %s3227_s29, 2304 }
  0x7d   : > { %p2813_p12 = scmp.ne.s32.totalorder %s3227_s29, %s2812_s10  ;;  %p2814_p0 = pneg %p3220_p10 }
  0x7e   : > { %s2817_s14 = scalar_lea.hbm %s3672_s0, 41472  ;;  %p2818_p7 = scmp.lt.u32.totalorder %s3227_s29, %s3672_s0 }
  0x7f   : > { %p2815_p4 = pnand %p2814_p0, %p2813_p12  ;;  %p2819_p3 = scmp.lt.u32.totalorder %s2817_s14, %s2812_s10 }
  0x80   : > { %p2821_p2 = scmp.lt.u32.totalorder %s2812_s10, %s3227_s29 }
  0x81   : > { %p2816_p1 = pneg %p2815_p4  ;;  %p2820_p11 = por %p2819_p3, %p2818_p7 }
  0x83   : > { %p2822_p9 = por %p2821_p2, %p2820_p11 }
  0x85   : > { %p2823_p5 = pnand %p2822_p9, %p2816_p1 }
  0x87   : > { %2826 = shalt.err (!%p2823_p5)
}
  0x88   : > { %s2827_s8 = scalar_lea.vmem %s3214_s26, 2304  ;;  %s2979_s4 = smov [#allocation3]  }
  0x89   : > { %p2828_p6 = scmp.ne.s32.totalorder %s3214_s26, %s2827_s8  ;;  %s2832_s22 = sshll.u32 %s2979_s4, 4  ;;  %s2833_s22 = int_to_ptr.vmem [resolvable:$false] %s2832_s22 }
  0x8a   : > { %s2834_s13 = scalar_lea.vmem %s2833_s22, 4608  ;;  %p2835_p12 = scmp.lt.s32.totalorder %s3214_s26, %s2833_s22 }
  0x8b   : > { %p2830_p13 = pnand %p2828_p6, %p2814_p0  ;;  %p2836_p4 = scmp.lt.s32.totalorder %s2834_s13, %s2827_s8 }
  0x8d   : > { %p2831_p8 = pneg %p2830_p13  ;;  %p2837_p7 = por %p2836_p4, %p2835_p12 }
  0x8f   : > { %p2838_p3 = pnand %p2837_p7, %p2831_p8 }
  0x91   : > { %2841 = shalt.err (!%p2838_p3)
}
  0x92   : > { %s3708_s10 = smov 4   ;;  %s3709_s27 = smov 64  }
  0x93   : > { %2562 = dma.hbm_to_vmem [thread:$0]  (!%p3220_p10), %s3227_s29, 2304, %s3214_s26, %s3229_s18, %s3709_s27, %s3709_s27, %s3708_s10  }
  0x94   : > { %p3710_p0 = scmp.ne.s32.totalorder %s3700_s7, 0 }
  0x95   : > { %s243_s2 = sand.u32 (!%p3710_p0), 1, %s2948_s19   ;;  %p3711_p1 = scmp.ne.s32.totalorder (!%p3710_p0), %s3695_s30, 0 }
  0x96   : > { %241 = sbr.rel (%p3710_p0) target bundleno = 570 (0x23a), region = 36  ;;  %s244_s11 = scalar_lea.sflag (!%p3710_p0), [#allocation4], %s243_s2 }
  0x97   : > { %s2532_s14 = smul.u32 (!%p3710_p0), 144, %s243_s2 }
  0x99   : > { %s3263_s9 = scalar_lea.vmem (!%p3710_p0), [#allocation3], %s2532_s14 }
  0x9d   : > { %2915 = dma.done.wait (%p3711_p1), %s244_s11, 2304  }
  0x9e   : > { %2917 = vsyncadd (%p3711_p1), %s244_s11, 4294964992  ;;  %p3712_p11 = scmp.ne.s32.totalorder %s3694_s28, 0 }
  0xa0   : > { %2919 = dma.done.wait (%p3712_p11), [#allocation7], 3472  }
  0xa1   : > { %2921 = vsyncadd (%p3712_p11), [#allocation7], 4294963824 }
  0xa2   : > { %2923 = dma.done.wait (%p3712_p11), [#allocation10], 16  }
  0xa3   : > { %2925 = vsyncadd (%p3712_p11), [#allocation10], 4294967280  ;;  %s281_s1 = sand.u32 1, %s2936_s16   ;;  %p2062_p10 = scmp.ne.s32.totalorder %s2956_s21, 0 }
  0xa4   : > { %s2061_s7 = sshll.u32 %s281_s1, 7  ;;  %vm290_vm0 = vcmask (!%p2062_p10), 64512   ;;  %v2980_v0 = vmov (!%p2062_p10), 0.0  }
  0xa5   : > { %s3280_s26 = scalar_lea.vmem [#allocation11], %s2061_s7  ;;  %289 = sbr.rel (%p2062_p10) target bundleno = 181 (0xb5), region = 56  ;;  %291 = vst.msk [vmem:[#allocation2] sm:$0xff] (!%p2062_p10), %vm290_vm0, %v2980_v0  ;;  %292 = vst.msk [vmem:[#allocation2 + $0x8] sm:$0xff] (!%p2062_p10), %vm290_vm0, %v2980_v0 }
  0xa6   : > { %293 = vst.msk [vmem:[#allocation2 + $0x10] sm:$0xff] (!%p2062_p10), %vm290_vm0, %v2980_v0  ;;  %294 = vst.msk [vmem:[#allocation2 + $0x18] sm:$0xff] (!%p2062_p10), %vm290_vm0, %v2980_v0 }
  0xa7   : > { %295 = vst.msk [vmem:[#allocation2 + $0x20] sm:$0xff] (!%p2062_p10), %vm290_vm0, %v2980_v0  ;;  %296 = vst.msk [vmem:[#allocation2 + $0x28] sm:$0xff] (!%p2062_p10), %vm290_vm0, %v2980_v0 }
  0xa8   : > { %297 = vst.msk [vmem:[#allocation2 + $0x30] sm:$0xff] (!%p2062_p10), %vm290_vm0, %v2980_v0  ;;  %298 = vst.msk [vmem:[#allocation2 + $0x38] sm:$0xff] (!%p2062_p10), %vm290_vm0, %v2980_v0 }
  0xa9   : > { %299 = vst.msk [vmem:[#allocation2 + $0x40] sm:$0xff] (!%p2062_p10), %vm290_vm0, %v2980_v0  ;;  %300 = vst.msk [vmem:[#allocation2 + $0x48] sm:$0xff] (!%p2062_p10), %vm290_vm0, %v2980_v0 }
  0xaa   : > { %301 = vst.msk [vmem:[#allocation2 + $0x50] sm:$0xff] (!%p2062_p10), %vm290_vm0, %v2980_v0  ;;  %302 = vst.msk [vmem:[#allocation2 + $0x58] sm:$0xff] (!%p2062_p10), %vm290_vm0, %v2980_v0 }
  0xab   : > { %303 = vst.msk [vmem:[#allocation2 + $0x60] sm:$0xff] (!%p2062_p10), %vm290_vm0, %v2980_v0  ;;  %304 = vst.msk [vmem:[#allocation2 + $0x68] sm:$0xff] (!%p2062_p10), %vm290_vm0, %v2980_v0 }
  0xac   : > { %305 = vst.msk [vmem:[#allocation2 + $0x70] sm:$0xff] %vm290_vm0, %v2980_v0  ;;  %306 = vst.msk [vmem:[#allocation2 + $0x78] sm:$0xff] %vm290_vm0, %v2980_v0 }
  0xad   : > { %307 = vst.msk [vmem:[#allocation2 + $0x80] sm:$0xff] %vm290_vm0, %v2980_v0  ;;  %308 = vst.msk [vmem:[#allocation2 + $0x88] sm:$0xff] %vm290_vm0, %v2980_v0 }
  0xae   : > { %309 = vst.msk [vmem:[#allocation2 + $0x90] sm:$0xff] %vm290_vm0, %v2980_v0  ;;  %310 = vst.msk [vmem:[#allocation2 + $0x98] sm:$0xff] %vm290_vm0, %v2980_v0 }
  0xaf   : > { %311 = vst.msk [vmem:[#allocation2 + $0xa0] sm:$0xff] %vm290_vm0, %v2980_v0  ;;  %312 = vst.msk [vmem:[#allocation2 + $0xa8] sm:$0xff] %vm290_vm0, %v2980_v0 }
  0xb0   : > { %313 = vst.msk [vmem:[#allocation2 + $0xb0] sm:$0xff] %vm290_vm0, %v2980_v0  ;;  %314 = vst.msk [vmem:[#allocation2 + $0xb8] sm:$0xff] %vm290_vm0, %v2980_v0 }
  0xb1   : > { %315 = vst.msk [vmem:[#allocation2 + $0xc0] sm:$0xff] %vm290_vm0, %v2980_v0  ;;  %316 = vst.msk [vmem:[#allocation2 + $0xc8] sm:$0xff] %vm290_vm0, %v2980_v0 }
  0xb2   : > { %317 = vst.msk [vmem:[#allocation2 + $0xd0] sm:$0xff] %vm290_vm0, %v2980_v0  ;;  %318 = vst.msk [vmem:[#allocation2 + $0xd8] sm:$0xff] %vm290_vm0, %v2980_v0 }
  0xb3   : > { %319 = vst.msk [vmem:[#allocation2 + $0xe0] sm:$0xff] %vm290_vm0, %v2980_v0  ;;  %320 = vst.msk [vmem:[#allocation2 + $0xe8] sm:$0xff] %vm290_vm0, %v2980_v0 }
  0xb4   : > { %321 = vst.msk [vmem:[#allocation2 + $0xf0] sm:$0xff] %vm290_vm0, %v2980_v0  ;;  %322 = vst.msk [vmem:[#allocation2 + $0xf8] sm:$0xff] %vm290_vm0, %v2980_v0 }
  0xb5 PF: > { %s2223_s28 = smul.u32 72, %s2956_s21  ;;  %v2677_v1 = vld [vmem:[%s3263_s9] sm:$0xff]   ;;  %vm494_vm1 = vcmask 392192   ;;  %v2678_v2 = vld [vmem:[%s3263_s9 + $0x8] sm:$0xff]   ;;  %v2680_v11 = vld [vmem:[%s3263_s9 + $0x10] sm:$0xff]   ;;  %vm1496_vm2 = vcmask 64512  }
  0xb6   : > { %2320 = vmatprep.mubr.msk.bf16.mxu1 %vm494_vm1, %v2677_v1  ;;  %2358 = vmatprep.mubr.msk.bf16.mxu0 %vm494_vm1, %v2678_v2  ;;  %v2679_v9 = vld [vmem:[%s3263_s9 + $0x8] sm:$0xff]   ;;  %v2682_v12 = vld [vmem:[%s3263_s9 + $0x10] sm:$0xff]   ;;  %v2683_v13 = vld [vmem:[%s3263_s9 + $0x18] sm:$0xff]   ;;  %p2183_p2 = scmp.ne.s32.totalorder %s2956_s21, 2 }
  0xb7   : > { %s3319_s30 = scalar_lea.vmem [#allocation6], %s2223_s28  ;;  %v2684_v15 = vld [vmem:[%s3263_s9 + $0x18] sm:$0xff]   ;;  %v2685_v16 = vld [vmem:[%s3263_s9 + $0x20] sm:$0xff]   ;;  %v2688_v18 = vld [vmem:[%s3263_s9 + $0x28] sm:$0xff]   ;;  %vm1867_vm3 = vcmask (!%p2183_p2), 60416  }
  0xb8   : > { %v2671_v3 = vld [vmem:[%s3319_s30] sm:$0xff]   ;;  %v2672_v4 = vld [vmem:[%s3319_s30 + $0x18] sm:$0xff]   ;;  %v2673_v5 = vld [vmem:[%s3319_s30 + $0x8] sm:$0xff]  }
  0xb9   : > { %2314 = vmatprep.subr.bf16.mxu1 %v2671_v3  ;;  %2352 = vmatprep.subr.bf16.mxu0 %v2672_v4  ;;  %v2674_v6 = vld [vmem:[%s3319_s30 + $0x20] sm:$0xff]   ;;  %v2675_v7 = vld [vmem:[%s3319_s30 + $0x10] sm:$0xff]   ;;  %v2676_v8 = vld [vmem:[%s3319_s30 + $0x28] sm:$0xff]  }
  0xba   : > { %2315 = vmatpush3.bf16.msra.mxu1 %v2671_v3  ;;  %2353 = vmatpush3.bf16.msra.mxu0 %v2672_v4  ;;  %v2681_v10 = vld [vmem:[%s3319_s30 + $0x30] sm:$0xff]   ;;  %v2686_v14 = vld [vmem:[%s3319_s30 + $0x38] sm:$0xff]   ;;  %v2695_v19 = vld [vmem:[%s3319_s30 + $0x40] sm:$0xff]  }
  0xbb   : > { %2316 = vmatprep.subr.bf16.mxu1 %v2673_v5  ;;  %2354 = vmatprep.subr.bf16.mxu0 %v2674_v6  ;;  %v2687_v17 = vld [vmem:[%s3263_s9 + $0x20] sm:$0xff]   ;;  %v2689_v20 = vld [vmem:[%s3263_s9 + $0x28] sm:$0xff]   ;;  %v2690_v21 = vld [vmem:[%s3263_s9 + $0x30] sm:$0xff]  }
  0xbc   : > { %v2691_v22 = vld [vmem:[%s3263_s9 + $0x30] sm:$0xff]   ;;  %v2692_v23 = vld [vmem:[%s3263_s9 + $0x38] sm:$0xff]   ;;  %v2694_v25 = vld [vmem:[%s3263_s9 + $0x40] sm:$0xff]  }
  0xbd   : > { %v2693_v24 = vld [vmem:[%s3263_s9 + $0x38] sm:$0xff]   ;;  %v2696_v26 = vld [vmem:[%s3263_s9 + $0x40] sm:$0xff]   ;;  %v2697_v27 = vld [vmem:[%s3263_s9 + $0x10] sm:$0xff]  }
  0xbe   : > { %2317 = vmatpush3.bf16.msra.mxu1 %v2673_v5  ;;  %2355 = vmatpush3.bf16.msra.mxu0 %v2674_v6  ;;  %v2698_v28 = vld [vmem:[%s3263_s9 + $0x48] sm:$0xff]   ;;  %v2699_v29 = vld [vmem:[%s3263_s9 + $0x18] sm:$0xff]   ;;  %v2700_v30 = vld [vmem:[%s3263_s9 + $0x50] sm:$0xff]  }
  0xbf   : > { %2318 = vmatprep.subr.bf16.mxu1 %v2675_v7  ;;  %2356 = vmatprep.subr.bf16.mxu0 %v2676_v8  ;;  %v2701_v31 = vld [vmem:[%s3263_s9 + $0x20] sm:$0xff]   ;;  %v2702_v32 = vld [vmem:[%s3263_s9 + $0x58] sm:$0xff]   ;;  %v2703_v33 = vld [vmem:[%s3263_s9 + $0x28] sm:$0xff]  }
  0xc0   : > { %v2704_v34 = vld [vmem:[%s3263_s9 + $0x60] sm:$0xff]   ;;  %v2705_v35 = vld [vmem:[%s3263_s9 + $0x30] sm:$0xff]   ;;  %v2706_v36 = vld [vmem:[%s3263_s9 + $0x68] sm:$0xff]  }
  0xc1   : > { %v2707_v37 = vld [vmem:[%s3263_s9 + $0x38] sm:$0xff]   ;;  %v2708_v38 = vld [vmem:[%s3263_s9 + $0x70] sm:$0xff]   ;;  %v2709_v39 = vld [vmem:[%s3263_s9 + $0x40] sm:$0xff]  }
  0xc2   : > { %2319 = vmatpush3.bf16.msra.mxu1 %v2675_v7  ;;  %2357 = vmatpush3.bf16.msra.mxu0 %v2676_v8  ;;  %v2710_v40 = vld [vmem:[%s3263_s9 + $0x78] sm:$0xff]   ;;  %v2711_v41 = vld [vmem:[%s3263_s9 + $0x48] sm:$0xff]   ;;  %v2713_v43 = vld [vmem:[%s3263_s9 + $0x50] sm:$0xff]  }
  0xc3   : > { %2428 = vmatprep.subr.bf16.mxu1 %v2672_v4  ;;  %2390 = vmatprep.subr.bf16.mxu0 %v2681_v10  ;;  %v2712_v42 = vld [vmem:[%s3263_s9 + $0x48] sm:$0xff]   ;;  %v2714_v44 = vld [vmem:[%s3263_s9 + $0x50] sm:$0xff]   ;;  %v2715_v45 = vld [vmem:[%s3263_s9 + $0x58] sm:$0xff]  }
  0xc4   : > { %v2716_v46 = vld [vmem:[%s3263_s9 + $0x58] sm:$0xff]   ;;  %v2717_v47 = vld [vmem:[%s3263_s9 + $0x60] sm:$0xff]   ;;  %v2719_v49 = vld [vmem:[%s3263_s9 + $0x68] sm:$0xff]  }
  0xc5   : > { %2321 = vmatmul.mubr.msk.bf16.vlgmr.msra.gmra.mrb[0].mxu1 %vm494_vm1, %v2679_v9  ;;  %2359 = vmatmul.mubr.msk.bf16.vlgmr.msra.gmra.mrb[0].mxu0 %vm494_vm1, %v2680_v11  ;;  %v2718_v48 = vld [vmem:[%s3263_s9 + $0x60] sm:$0xff]   ;;  %v2720_v50 = vld [vmem:[%s3263_s9 + $0x68] sm:$0xff]   ;;  %v2721_v51 = vld [vmem:[%s3263_s9 + $0x70] sm:$0xff]  }
  0xc6   : > { %2431 = vmatpush3.bf16.msra.mxu1 %v2672_v4  ;;  %2391 = vmatpush3.bf16.msra.mxu0 %v2681_v10  ;;  %v2722_v52 = vld [vmem:[%s3263_s9 + $0x70] sm:$0xff]   ;;  %v2723_v53 = vld [vmem:[%s3263_s9 + $0x78] sm:$0xff]   ;;  %v2725_v55 = vld [vmem:[%s3263_s9 + $0x80] sm:$0xff]  }
  0xc7   : > { %2324 = vmatprep.mubr.msk.bf16.mxu1 %vm494_vm1, %v2682_v12  ;;  %2362 = vmatprep.mubr.msk.bf16.mxu0 %vm494_vm1, %v2683_v13  ;;  %v2724_v54 = vld [vmem:[%s3263_s9 + $0x78] sm:$0xff]   ;;  %v2726_v56 = vld [vmem:[%s3263_s9 + $0x80] sm:$0xff]   ;;  %v2727_v57 = vld [vmem:[%s3263_s9 + $0x88] sm:$0xff]  }
  0xc8   : > { %2392 = vmatprep.subr.bf16.mxu0 %v2686_v14  ;;  %2429 = vmatprep.subr.bf16.mxu1 %v2674_v6  ;;  %v325_v10 = vld [vmem:[#allocation2 + $0x10] sm:$0xff]  ;;  %v323_v11 = vld [vmem:[#allocation2] sm:$0xff]  ;;  %v326_v12 = vld [vmem:[#allocation2 + $0x18] sm:$0xff] }
  0xca   : > { %2432 = vmatpush3.bf16.msra.mxu1 %v2674_v6  ;;  %2393 = vmatpush3.bf16.msra.mxu0 %v2686_v14  ;;  %v324_v14 = vld [vmem:[#allocation2 + $0x8] sm:$0xff] }
  0xcb   : > { %2430 = vmatprep.subr.bf16.mxu1 %v2676_v8  ;;  %2394 = vmatprep.subr.bf16.mxu0 %v2695_v19 }
  0xcd   : > { %2325 = vmatmul.mubr.msk.bf16.gmra.mrb[4].mxu1 %vm494_vm1, %v2684_v15  ;;  %2363 = vmatmul.mubr.msk.bf16.gmra.mrb[4].mxu0 %vm494_vm1, %v2685_v16 }
  0xce   : > { %2328 = vmatprep.mubr.msk.bf16.mxu1 %vm494_vm1, %v2687_v17  ;;  %2366 = vmatprep.mubr.msk.bf16.mxu0 %vm494_vm1, %v2688_v18 }
  0xcf   : > { %2395 = vmatpush3.bf16.msra.mxu0 %v2695_v19  ;;  %2433 = vmatpush3.bf16.msra.mxu1 %v2676_v8 }
  0xd5   : > { %2329 = vmatmul.mubr.msk.bf16.gmra.mrb[8].mxu1 %vm494_vm1, %v2689_v20  ;;  %2367 = vmatmul.mubr.msk.bf16.gmra.mrb[8].mxu0 %vm494_vm1, %v2690_v21 }
  0xd6   : > { %2332 = vmatprep.mubr.msk.bf16.mxu1 %vm494_vm1, %v2691_v22  ;;  %2370 = vmatprep.mubr.msk.bf16.mxu0 %vm494_vm1, %v2692_v23 }
  0xdd   : > { %2333 = vmatmul.mubr.msk.bf16.gmra.mrb[12].mxu1 %vm494_vm1, %v2693_v24  ;;  %2371 = vmatmul.mubr.msk.bf16.gmra.mrb[12].mxu0 %vm494_vm1, %v2694_v25  ;;  %v329_v25 = vld [vmem:[#allocation2 + $0x30] sm:$0xff] }
  0xde   : > { %2336 = vmatprep.mubr.msk.bf16.mxu1 %vm494_vm1, %v2696_v26  ;;  %2396 = vmatprep.mubr.msk.bf16.mxu0 %vm494_vm1, %v2697_v27  ;;  %v327_v27 = vld [vmem:[#allocation2 + $0x20] sm:$0xff] }
  0xe5   : > { %2337 = vmatmul.mubr.msk.bf16.gmra.mrb[16].mxu1 %vm494_vm1, %v2698_v28  ;;  %2397 = vmatmul.mubr.msk.bf16.vlgmr.msra.gmra.mrb[0].mxu0 %vm494_vm1, %v2699_v29  ;;  %v330_v28 = vld [vmem:[#allocation2 + $0x38] sm:$0xff] }
  0xe6   : > { %2340 = vmatprep.mubr.msk.bf16.mxu1 %vm494_vm1, %v2700_v30  ;;  %2400 = vmatprep.mubr.msk.bf16.mxu0 %vm494_vm1, %v2701_v31  ;;  %v328_v30 = vld [vmem:[#allocation2 + $0x28] sm:$0xff] }
  0xed   : > { %2341 = vmatmul.mubr.msk.bf16.gmra.mrb[20].mxu1 %vm494_vm1, %v2702_v32  ;;  %2401 = vmatmul.mubr.msk.bf16.gmra.mrb[4].mxu0 %vm494_vm1, %v2703_v33 }
  0xee   : > { %2344 = vmatprep.mubr.msk.bf16.mxu1 %vm494_vm1, %v2704_v34  ;;  %2404 = vmatprep.mubr.msk.bf16.mxu0 %vm494_vm1, %v2705_v35 }
  0xf5   : > { %2345 = vmatmul.mubr.msk.bf16.gmra.mrb[24].mxu1 %vm494_vm1, %v2706_v36  ;;  %2405 = vmatmul.mubr.msk.bf16.gmra.mrb[8].mxu0 %vm494_vm1, %v2707_v37 }
  0xf6   : > { %2348 = vmatprep.mubr.msk.bf16.mxu1 %vm494_vm1, %v2708_v38  ;;  %2408 = vmatprep.mubr.msk.bf16.mxu0 %vm494_vm1, %v2709_v39 }
  0xfd   : > { %2349 = vmatmul.mubr.msk.bf16.gmra.mrb[28].mxu1 %vm494_vm1, %v2710_v40  ;;  %2409 = vmatmul.mubr.msk.bf16.gmra.mrb[12].mxu0 %vm494_vm1, %v2711_v41  ;;  %v333_v41 = vld [vmem:[#allocation2 + $0x50] sm:$0xff] }
  0xfe   : > { %2374 = vmatprep.mubr.msk.bf16.mxu1 %vm494_vm1, %v2712_v42  ;;  %2412 = vmatprep.mubr.msk.bf16.mxu0 %vm494_vm1, %v2713_v43  ;;  %v331_v43 = vld [vmem:[#allocation2 + $0x40] sm:$0xff] }
 0x105   : > { %2375 = vmatmul.mubr.msk.bf16.vlgmr.msra.gmra.mrb[16].mxu1 %vm494_vm1, %v2714_v44  ;;  %2413 = vmatmul.mubr.msk.bf16.gmra.mrb[16].mxu0 %vm494_vm1, %v2715_v45  ;;  %v334_v44 = vld [vmem:[#allocation2 + $0x58] sm:$0xff] }
 0x106   : > { %2378 = vmatprep.mubr.msk.bf16.mxu1 %vm494_vm1, %v2716_v46  ;;  %2416 = vmatprep.mubr.msk.bf16.mxu0 %vm494_vm1, %v2717_v47  ;;  %v332_v46 = vld [vmem:[#allocation2 + $0x48] sm:$0xff] }
 0x10d   : > { %2379 = vmatmul.mubr.msk.bf16.gmra.mrb[20].mxu1 %vm494_vm1, %v2718_v48  ;;  %2417 = vmatmul.mubr.msk.bf16.gmra.mrb[20].mxu0 %vm494_vm1, %v2719_v49 }
 0x10e   : > { %2382 = vmatprep.mubr.msk.bf16.mxu1 %vm494_vm1, %v2720_v50  ;;  %2420 = vmatprep.mubr.msk.bf16.mxu0 %vm494_vm1, %v2721_v51 }
 0x115   : > { %2383 = vmatmul.mubr.msk.bf16.gmra.mrb[24].mxu1 %vm494_vm1, %v2722_v52  ;;  %2421 = vmatmul.mubr.msk.bf16.gmra.mrb[24].mxu0 %vm494_vm1, %v2723_v53 }
 0x116   : > { %2386 = vmatprep.mubr.msk.bf16.mxu1 %vm494_vm1, %v2724_v54  ;;  %2424 = vmatprep.mubr.msk.bf16.mxu0 %vm494_vm1, %v2725_v55 }
 0x11d   : > { %2387 = vmatmul.mubr.msk.bf16.gmra.mrb[28].mxu1 %vm494_vm1, %v2726_v56  ;;  %2425 = vmatmul.mubr.msk.bf16.gmra.mrb[28].mxu0 %vm494_vm1, %v2727_v57  ;;  %v337_v57 = vld [vmem:[#allocation2 + $0x70] sm:$0xff] }
 0x198   : > { %v2322_v58 = vpop.f32.mrb[0].mxu1 }
 0x199   : > { %v577_v59 = vpop.f32.mrb[1].mxu1  ;;  %v706_v13 = vadd.f32 %v2322_v58, %v325_v10 }
 0x19a   : > { %v2323_v60 = vpop.f32.mrb[2].mxu1  ;;  %v704_v15 = vadd.f32 %v577_v59, %v323_v11  ;;  %v335_v59 = vld [vmem:[#allocation2 + $0x60] sm:$0xff] }
 0x19b   : > { %v580_v61 = vpop.f32.mrb[3].mxu1  ;;  %v707_v17 = vadd.f32 %v2323_v60, %v326_v12  ;;  %v338_v60 = vld [vmem:[#allocation2 + $0x78] sm:$0xff] }
 0x19c   : > { %v705_v20 = vadd.f32 %v580_v61, %v324_v14  ;;  %v342_v14 = vld [vmem:[#allocation2 + $0x98] sm:$0xff] }
 0x1a0   : > { %v2326_v62 = vpop.f32.mrb[4].mxu1 }
 0x1a1   : > { %v593_v63 = vpop.f32.mrb[5].mxu1  ;;  %v710_v29 = vadd.f32 %v2326_v62, %v329_v25  ;;  %v336_v62 = vld [vmem:[#allocation2 + $0x68] sm:$0xff] }
 0x1a2   : > { %v2327_v0 = vpop.f32.mrb[6].mxu1  ;;  %v708_v31 = vadd.f32 %v593_v63, %v327_v27 }
 0x1a3   : > { %v596_v1 = vpop.f32.mrb[7].mxu1  ;;  %v711_v33 = vadd.f32 %v2327_v0, %v330_v28 }
 0x1a4   : > { %v709_v36 = vadd.f32 %v596_v1, %v328_v30  ;;  %v345_v30 = vld [vmem:[#allocation2 + $0xb0] sm:$0xff] }
 0x1a8   : > { %v2330_v2 = vpop.f32.mrb[8].mxu1 }
 0x1a9   : > { %v609_v3 = vpop.f32.mrb[9].mxu1  ;;  %v714_v45 = vadd.f32 %v2330_v2, %v333_v41 }
 0x1aa   : > { %v2331_v4 = vpop.f32.mrb[10].mxu1  ;;  %v712_v47 = vadd.f32 %v609_v3, %v331_v43 }
 0x1ab   : > { %v612_v5 = vpop.f32.mrb[11].mxu1  ;;  %v715_v49 = vadd.f32 %v2331_v4, %v334_v44 }
 0x1ac   : > { %v713_v52 = vadd.f32 %v612_v5, %v332_v46 }
 0x1b0   : > { %v3423_v6 = vpop.f32.mrb[12].mxu1 }
 0x1b1   : > { %v3425_v7 = vpop.f32.mrb[13].mxu1  ;;  %v718_v61 = vadd.f32 %v3423_v6, %v337_v57  ;;  %v341_v6 = vld [vmem:[#allocation2 + $0x90] sm:$0xff]  ;;  %v348_v57 = vld [vmem:[#allocation2 + $0xc8] sm:$0xff] }
 0x1b2   : > { %v3427_v8 = vpop.f32.mrb[14].mxu1  ;;  %v716_v63 = vadd.f32 %v3425_v7, %v335_v59  ;;  %v339_v7 = vld [vmem:[#allocation2 + $0x80] sm:$0xff] }
 0x1b3   : > { %v3429_v9 = vpop.f32.mrb[15].mxu1  ;;  %v719_v1 = vadd.f32 %v3427_v8, %v338_v60 }
 0x1b4   : > { %v717_v4 = vadd.f32 %v3429_v9, %v336_v62 }
 0x1b8   : > { %v2398_v16 = vpop.f32.mrb[0].mxu0 }
 0x1b9   : > { %v2435_v18 = vadd.f32 %v2398_v16, %v706_v13  ;;  %v1337_v19 = vpop.f32.mrb[1].mxu0 }
 0x1ba   : > { %v2437_v21 = vadd.f32 %v1337_v19, %v704_v15  ;;  %v2399_v22 = vpop.f32.mrb[2].mxu0 }
 0x1bb   : > { %1499 = vst.msk [vmem:[#allocation2 + $0x10] sm:$0xff] %vm1496_vm2, %v2435_v18  ;;  %v2439_v23 = vadd.f32 %v2399_v22, %v707_v17  ;;  %v1340_v24 = vpop.f32.mrb[3].mxu0  ;;  %v340_v17 = vld [vmem:[#allocation2 + $0x88] sm:$0xff] }
 0x1bc   : > { %1497 = vst.msk [vmem:[#allocation2] sm:$0xff] %vm1496_vm2, %v2437_v21  ;;  %v2441_v26 = vadd.f32 %v1340_v24, %v705_v20 }
 0x1bd   : > { %1500 = vst.msk [vmem:[#allocation2 + $0x18] sm:$0xff] %vm1496_vm2, %v2439_v23 }
 0x1be   : > { %1498 = vst.msk [vmem:[#allocation2 + $0x8] sm:$0xff] %vm1496_vm2, %v2441_v26 }
 0x1c0   : > { %v2402_v32 = vpop.f32.mrb[4].mxu0 }
 0x1c1   : > { %v2443_v34 = vadd.f32 %v2402_v32, %v710_v29  ;;  %v1353_v35 = vpop.f32.mrb[5].mxu0 }
 0x1c2   : > { %v2445_v37 = vadd.f32 %v1353_v35, %v708_v31  ;;  %v2403_v38 = vpop.f32.mrb[6].mxu0  ;;  %v343_v31 = vld [vmem:[#allocation2 + $0xa0] sm:$0xff] }
 0x1c3   : > { %1503 = vst.msk [vmem:[#allocation2 + $0x30] sm:$0xff] %vm1496_vm2, %v2443_v34  ;;  %v2447_v39 = vadd.f32 %v2403_v38, %v711_v33  ;;  %v1356_v40 = vpop.f32.mrb[7].mxu0  ;;  %v346_v33 = vld [vmem:[#allocation2 + $0xb8] sm:$0xff] }
 0x1c4   : > { %1501 = vst.msk [vmem:[#allocation2 + $0x20] sm:$0xff] %vm1496_vm2, %v2445_v37  ;;  %v2449_v42 = vadd.f32 %v1356_v40, %v709_v36  ;;  %v344_v37 = vld [vmem:[#allocation2 + $0xa8] sm:$0xff] }
 0x1c5   : > { %1504 = vst.msk [vmem:[#allocation2 + $0x38] sm:$0xff] %vm1496_vm2, %v2447_v39 }
 0x1c6   : > { %1502 = vst.msk [vmem:[#allocation2 + $0x28] sm:$0xff] %vm1496_vm2, %v2449_v42 }
 0x1c8   : > { %v2406_v48 = vpop.f32.mrb[8].mxu0 }
 0x1c9   : > { %v2451_v50 = vadd.f32 %v2406_v48, %v714_v45  ;;  %v1369_v51 = vpop.f32.mrb[9].mxu0 }
 0x1ca   : > { %v2453_v53 = vadd.f32 %v1369_v51, %v712_v47  ;;  %v2407_v54 = vpop.f32.mrb[10].mxu0  ;;  %v347_v51 = vld [vmem:[#allocation2 + $0xc0] sm:$0xff] }
 0x1cb   : > { %1507 = vst.msk [vmem:[#allocation2 + $0x50] sm:$0xff] %vm1496_vm2, %v2451_v50  ;;  %v2455_v55 = vadd.f32 %v2407_v54, %v715_v49  ;;  %v1372_v56 = vpop.f32.mrb[11].mxu0  ;;  %v349_v50 = vld [vmem:[#allocation2 + $0xd0] sm:$0xff] }
 0x1cc   : > { %1505 = vst.msk [vmem:[#allocation2 + $0x40] sm:$0xff] %vm1496_vm2, %v2453_v53  ;;  %v2457_v58 = vadd.f32 %v1372_v56, %v713_v52  ;;  %v350_v53 = vld [vmem:[#allocation2 + $0xd8] sm:$0xff] }
 0x1cd   : > { %1508 = vst.msk [vmem:[#allocation2 + $0x58] sm:$0xff] %vm1496_vm2, %v2455_v55 }
 0x1ce   : > { %1506 = vst.msk [vmem:[#allocation2 + $0x48] sm:$0xff] %vm1496_vm2, %v2457_v58 }
 0x1d0   : > { %v2410_v0 = vpop.f32.mrb[12].mxu0 }
 0x1d1   : > { %v2459_v2 = vadd.f32 %v2410_v0, %v718_v61  ;;  %v1385_v3 = vpop.f32.mrb[13].mxu0 }
 0x1d2   : > { %v2461_v5 = vadd.f32 %v1385_v3, %v716_v63  ;;  %v2411_v10 = vpop.f32.mrb[14].mxu0 }
 0x1d3   : > { %1511 = vst.msk [vmem:[#allocation2 + $0x70] sm:$0xff] %vm1496_vm2, %v2459_v2  ;;  %v2463_v11 = vadd.f32 %v2411_v10, %v719_v1  ;;  %v1388_v12 = vpop.f32.mrb[15].mxu0  ;;  %v353_v10 = vld [vmem:[#allocation2 + $0xf0] sm:$0xff] }
 0x1d4   : > { %1509 = vst.msk [vmem:[#allocation2 + $0x60] sm:$0xff] %vm1496_vm2, %v2461_v5  ;;  %v2465_v13 = vadd.f32 %v1388_v12, %v717_v4 }
 0x1d5   : > { %1512 = vst.msk [vmem:[#allocation2 + $0x78] sm:$0xff] %vm1496_vm2, %v2463_v11  ;;  %v351_v11 = vld [vmem:[#allocation2 + $0xe0] sm:$0xff] }
 0x1d6   : > { %1510 = vst.msk [vmem:[#allocation2 + $0x68] sm:$0xff] %vm1496_vm2, %v2465_v13  ;;  %v354_v13 = vld [vmem:[#allocation2 + $0xf8] sm:$0xff] }
 0x1d8   : > { %v2376_v8 = vpop.f32.mrb[16].mxu1  ;;  %v2414_v16 = vpop.f32.mrb[16].mxu0 }
 0x1d9   : > { %v2466_v15 = vadd.f32 %v2376_v8, %v341_v6  ;;  %v1021_v9 = vpop.f32.mrb[17].mxu1  ;;  %v1401_v19 = vpop.f32.mrb[17].mxu0 }
 0x1da   : > { %v2468_v18 = vadd.f32 %v1021_v9, %v339_v7  ;;  %v2377_v20 = vpop.f32.mrb[18].mxu1  ;;  %v2415_v23 = vpop.f32.mrb[18].mxu0 }
 0x1db   : > { %v2467_v21 = vadd.f32 %v2466_v15, %v2414_v16  ;;  %v2470_v22 = vadd.f32 %v2377_v20, %v342_v14  ;;  %v1024_v24 = vpop.f32.mrb[19].mxu1  ;;  %v1404_v27 = vpop.f32.mrb[19].mxu0  ;;  %v352_v14 = vld [vmem:[#allocation2 + $0xe8] sm:$0xff] }
 0x1dc   : > { %v2469_v25 = vadd.f32 %v2468_v18, %v1401_v19  ;;  %v2472_v26 = vadd.f32 %v1024_v24, %v340_v17 }
 0x1dd   : > { %1515 = vst.msk [vmem:[#allocation2 + $0x90] sm:$0xff] %vm1496_vm2, %v2467_v21  ;;  %v2471_v28 = vadd.f32 %v2470_v22, %v2415_v23 }
 0x1de   : > { %1513 = vst.msk [vmem:[#allocation2 + $0x80] sm:$0xff] %vm1496_vm2, %v2469_v25  ;;  %v2473_v29 = vadd.f32 %v2472_v26, %v1404_v27  ;;  %v1533_v26 = vld [vmem:[#allocation2] sm:$0xff] (!%p2183_p2)  ;;  %v3468_v27 = vld [vmem:[#allocation8] ss:$0 sm:$0xff] (!%p2183_p2) }
 0x1df   : > { %1516 = vst.msk [vmem:[#allocation2 + $0x98] sm:$0xff] %vm1496_vm2, %v2471_v28  ;;  %v3470_v28 = vld [vmem:[#allocation9] ss:$0 sm:$0xff] (!%p2183_p2) }
 0x1e0   : > { %1514 = vst.msk [vmem:[#allocation2 + $0x88] sm:$0xff] %vm1496_vm2, %v2473_v29  ;;  %v2380_v32 = vpop.f32.mrb[20].mxu1  ;;  %v2418_v35 = vpop.f32.mrb[20].mxu0  ;;  %v1572_v29 = vmul.f32 (!%p2183_p2), %v3468_v27, %v1533_v26 }
 0x1e1   : > { %v2474_v34 = vadd.f32 %v2380_v32, %v345_v30  ;;  %v1037_v36 = vpop.f32.mrb[21].mxu1  ;;  %v1417_v39 = vpop.f32.mrb[21].mxu0  ;;  %v1534_v30 = vld [vmem:[#allocation2 + $0x8] sm:$0xff] (!%p2183_p2)  ;;  %v1536_v32 = vld [vmem:[#allocation2 + $0x18] sm:$0xff] (!%p2183_p2) }
 0x1e2   : > { %v2476_v38 = vadd.f32 %v1037_v36, %v343_v31  ;;  %v2381_v40 = vpop.f32.mrb[22].mxu1  ;;  %v2419_v43 = vpop.f32.mrb[22].mxu0  ;;  %v1535_v31 = vld [vmem:[#allocation2 + $0x10] sm:$0xff] (!%p2183_p2)  ;;  %v1537_v36 = vld [vmem:[#allocation2 + $0x20] sm:$0xff] (!%p2183_p2) }
 0x1e3   : > { %v2475_v41 = vadd.f32 %v2474_v34, %v2418_v35  ;;  %v2478_v42 = vadd.f32 %v2381_v40, %v346_v33  ;;  %v1040_v44 = vpop.f32.mrb[23].mxu1  ;;  %v1420_v47 = vpop.f32.mrb[23].mxu0  ;;  %v1573_v33 = vmul.f32 (!%p2183_p2), %v3468_v27, %v1534_v30  ;;  %v1574_v34 = vmul.f32 (!%p2183_p2), %v3468_v27, %v1535_v31 }
 0x1e4   : > { %v2477_v45 = vadd.f32 %v2476_v38, %v1417_v39  ;;  %v2480_v46 = vadd.f32 %v1040_v44, %v344_v37  ;;  %v1575_v35 = vmul.f32 (!%p2183_p2), %v3468_v27, %v1536_v32  ;;  %v1538_v37 = vld [vmem:[#allocation2 + $0x28] sm:$0xff] (!%p2183_p2)  ;;  %v1539_v38 = vld [vmem:[#allocation2 + $0x30] sm:$0xff] (!%p2183_p2)  ;;  %v1611_v39 = vadd.f32 (!%p2183_p2), %v3470_v28, %v1572_v29 }
 0x1e5   : > { %1519 = vst.msk [vmem:[#allocation2 + $0xb0] sm:$0xff] %vm1496_vm2, %v2475_v41  ;;  %v2479_v48 = vadd.f32 %v2478_v42, %v2419_v43  ;;  %v1576_v40 = vmul.f32 (!%p2183_p2), %v3468_v27, %v1537_v36  ;;  %v1577_v41 = vmul.f32 (!%p2183_p2), %v3468_v27, %v1538_v37  ;;  %v1578_v42 = vmul.f32 (!%p2183_p2), %v3468_v27, %v1539_v38  ;;  %v1540_v43 = vld [vmem:[#allocation2 + $0x38] sm:$0xff] (!%p2183_p2) }
 0x1e6   : > { %1517 = vst.msk [vmem:[#allocation2 + $0xa0] sm:$0xff] %vm1496_vm2, %v2477_v45  ;;  %v2481_v49 = vadd.f32 %v2480_v46, %v1420_v47  ;;  %v1612_v44 = vadd.f32 (!%p2183_p2), %v3470_v28, %v1573_v33  ;;  %v1613_v45 = vadd.f32 (!%p2183_p2), %v3470_v28, %v1574_v34  ;;  %v1614_v46 = vadd.f32 (!%p2183_p2), %v3470_v28, %v1575_v35  ;;  %v1548_v38 = vld [vmem:[#allocation2 + $0x78] sm:$0xff] (!%p2183_p2) }
 0x1e7   : > { %1520 = vst.msk [vmem:[#allocation2 + $0xb8] sm:$0xff] %vm1496_vm2, %v2479_v48  ;;  %v1579_v47 = vmul.f32 (!%p2183_p2), %v3468_v27, %v1540_v43  ;;  %vm1643_vm4 = vcmp.ge.f32.partialorder (!%p2183_p2), %v1611_v39, 0.0  ;;  %v1675_v48 = vmul.f32 (!%p2183_p2), 0.2, %v1611_v39 }
 0x1e8   : > { %1518 = vst.msk [vmem:[#allocation2 + $0xa8] sm:$0xff] %vm1496_vm2, %v2481_v49  ;;  %v2384_v52 = vpop.f32.mrb[24].mxu1  ;;  %v2422_v55 = vpop.f32.mrb[24].mxu0  ;;  %v1615_v49 = vadd.f32 (!%p2183_p2), %v3470_v28, %v1576_v40  ;;  %vm1644_vm5 = vcmp.ge.f32.partialorder (!%p2183_p2), %v1612_v44, 0.0  ;;  %vm1645_vm6 = vcmp.ge.f32.partialorder (!%p2183_p2), %v1613_v45, 0.0  ;;  %vm1646_vm7 = vcmp.ge.f32.partialorder (!%p2183_p2), %v1614_v46, 0.0 }
 0x1e9   : > { %v2482_v54 = vadd.f32 %v2384_v52, %v349_v50  ;;  %v1053_v56 = vpop.f32.mrb[25].mxu1  ;;  %v1433_v59 = vpop.f32.mrb[25].mxu0  ;;  %v1616_v50 = vadd.f32 (!%p2183_p2), %v3470_v28, %v1577_v41  ;;  %v1677_v52 = vmul.f32 (!%p2183_p2), 0.2, %v1613_v45  ;;  %v1550_v40 = vld [vmem:[#allocation2 + $0x88] sm:$0xff] (!%p2183_p2) }
 0x1ea   : > { %v2484_v58 = vadd.f32 %v1053_v56, %v347_v51  ;;  %v2385_v60 = vpop.f32.mrb[26].mxu1  ;;  %v2423_v63 = vpop.f32.mrb[26].mxu0  ;;  %v1676_v51 = vmul.f32 (!%p2183_p2), 0.2, %v1612_v44  ;;  %vm1647_vm8 = vcmp.ge.f32.partialorder (!%p2183_p2), %v1615_v49, 0.0 }
 0x1eb   : > { %v2483_v61 = vadd.f32 %v2482_v54, %v2422_v55  ;;  %v2486_v62 = vadd.f32 %v2385_v60, %v350_v53  ;;  %v1056_v0 = vpop.f32.mrb[27].mxu1  ;;  %v1436_v3 = vpop.f32.mrb[27].mxu0  ;;  %v1707_v53 = vsel (!%p2183_p2), %vm1643_vm4, %v1611_v39, %v1675_v48  ;;  %v1678_v54 = vmul.f32 (!%p2183_p2), 0.2, %v1614_v46  ;;  %v1542_v60 = vld [vmem:[#allocation2 + $0x48] sm:$0xff] (!%p2183_p2)  ;;  %v1549_v39 = vld [vmem:[#allocation2 + $0x80] sm:$0xff] (!%p2183_p2) }
 0x1ec   : > { %v2485_v1 = vadd.f32 %v2484_v58, %v1433_v59  ;;  %v2488_v2 = vadd.f32 %v1056_v0, %v348_v57  ;;  %v2224_v55 = vpack.c.bf16 (!%p2183_p2), %v1707_v53, %v1707_v53  ;;  %v1708_v56 = vsel (!%p2183_p2), %vm1644_vm5, %v1612_v44, %v1676_v51  ;;  %v1541_v59 = vld [vmem:[#allocation2 + $0x40] sm:$0xff] (!%p2183_p2)  ;;  %v1543_v0 = vld [vmem:[#allocation2 + $0x50] sm:$0xff] (!%p2183_p2) }
 0x1ed   : > { %1523 = vst.msk [vmem:[#allocation2 + $0xd0] sm:$0xff] %vm1496_vm2, %v2483_v61  ;;  %v2487_v4 = vadd.f32 %v2486_v62, %v2423_v63  ;;  %v1709_v57 = vsel (!%p2183_p2), %vm1645_vm6, %v1613_v45, %v1677_v52  ;;  %v1679_v58 = vmul.f32 (!%p2183_p2), 0.2, %v1615_v49  ;;  %v2225_v61 = vpack.c.bf16 (!%p2183_p2), %v1708_v56, %v1708_v56  ;;  %v1551_v52 = vld [vmem:[#allocation2 + $0x90] sm:$0xff] (!%p2183_p2) }
 0x1ee   : > { %1521 = vst.msk [vmem:[#allocation2 + $0xc0] sm:$0xff] %vm1496_vm2, %v2485_v1  ;;  %v2489_v5 = vadd.f32 %v2488_v2, %v1436_v3  ;;  %v2226_v62 = vpack.c.bf16 (!%p2183_p2), %v1709_v57, %v1709_v57  ;;  %v1710_v63 = vsel (!%p2183_p2), %vm1646_vm7, %v1614_v46, %v1678_v54  ;;  %vm1648_vm9 = vcmp.ge.f32.partialorder (!%p2183_p2), %v1616_v50, 0.0 }
 0x1ef   : > { %1524 = vst.msk [vmem:[#allocation2 + $0xd8] sm:$0xff] %vm1496_vm2, %v2487_v4  ;;  %v2227_v1 = vpack.c.bf16 (!%p2183_p2), %v1710_v63, %v1710_v63  ;;  %v1711_v2 = vsel (!%p2183_p2), %vm1647_vm8, %v1615_v49, %v1679_v58  ;;  %v1680_v3 = vmul.f32 (!%p2183_p2), 0.2, %v1616_v50  ;;  %v1617_v4 = vadd.f32 (!%p2183_p2), %v3470_v28, %v1578_v42 }
 0x1f0   : > { %1522 = vst.msk [vmem:[#allocation2 + $0xc8] sm:$0xff] %vm1496_vm2, %v2489_v5  ;;  %v2388_v12 = vpop.f32.mrb[28].mxu1  ;;  %v2426_v7 = vpop.f32.mrb[28].mxu0  ;;  %v2228_v5 = vpack.c.bf16 (!%p2183_p2), %v1711_v2, %v1711_v2  ;;  %v1587_v49 = vmul.f32 (!%p2183_p2), %v3468_v27, %v1548_v38  ;;  %v1589_v51 = vmul.f32 (!%p2183_p2), %v3468_v27, %v1550_v40  ;;  %v1553_v2 = vld [vmem:[#allocation2 + $0xa0] sm:$0xff] (!%p2183_p2) }
 0x1f1   : > { %v2490_v6 = vadd.f32 %v2388_v12, %v353_v10  ;;  %v1069_v8 = vpop.f32.mrb[29].mxu1  ;;  %v1449_v16 = vpop.f32.mrb[29].mxu0  ;;  %1868 = vst.msk [vmem:[%s3280_s26] sm:$0xf] (!%p2183_p2), %vm1867_vm3, %v2224_v55  ;;  %1869 = vst.msk [vmem:[%s3280_s26 + $0x4] sm:$0xf] (!%p2183_p2), %vm1867_vm3, %v2225_v61  ;;  %v1618_v10 = vadd.f32 (!%p2183_p2), %v3470_v28, %v1579_v47  ;;  %v1581_v12 = vmul.f32 (!%p2183_p2), %v3468_v27, %v1542_v60 }
 0x1f2   : > { %v2492_v15 = vadd.f32 %v1069_v8, %v351_v11  ;;  %v2389_v9 = vpop.f32.mrb[30].mxu1  ;;  %v2427_v19 = vpop.f32.mrb[30].mxu0  ;;  %1532 = sbr.rel (%p2183_p2) target bundleno = 542 (0x21e), region = 60  ;;  %1870 = vst.msk [vmem:[%s3280_s26 + $0x8] sm:$0xf] (!%p2183_p2), %vm1867_vm3, %v2226_v62  ;;  %v1580_v11 = vmul.f32 (!%p2183_p2), %v3468_v27, %v1541_v59  ;;  %vm1649_vm10 = vcmp.ge.f32.partialorder (!%p2183_p2), %v1617_v4, 0.0  ;;  %v1582_v8 = vmul.f32 (!%p2183_p2), %v3468_v27, %v1543_v0 }
 0x1f3   : > { %v2491_v17 = vadd.f32 %v2490_v6, %v2426_v7  ;;  %v2494_v18 = vadd.f32 %v2389_v9, %v354_v13  ;;  %v1072_v20 = vpop.f32.mrb[31].mxu1  ;;  %v1452_v23 = vpop.f32.mrb[31].mxu0  ;;  %v1544_v13 = vld [vmem:[#allocation2 + $0x58] sm:$0xff] (!%p2183_p2)  ;;  %1871 = vst.msk [vmem:[%s3280_s26 + $0xc] sm:$0xf] (!%p2183_p2), %vm1867_vm3, %v2227_v1  ;;  %v1712_v6 = vsel (!%p2183_p2), %vm1648_vm9, %v1616_v50, %v1680_v3  ;;  %vm1650_vm11 = vcmp.ge.f32.partialorder (!%p2183_p2), %v1618_v10, 0.0 }
 0x1f4   : > { %v2493_v21 = vadd.f32 %v2492_v15, %v1449_v16  ;;  %v2496_v22 = vadd.f32 %v1072_v20, %v352_v14  ;;  %v1681_v7 = vmul.f32 (!%p2183_p2), 0.2, %v1617_v4  ;;  %1872 = vst.msk [vmem:[%s3280_s26 + $0x10] sm:$0xf] (!%p2183_p2), %vm1867_vm3, %v2228_v5  ;;  %v2229_v14 = vpack.c.bf16 (!%p2183_p2), %v1712_v6, %v1712_v6  ;;  %v1545_v20 = vld [vmem:[#allocation2 + $0x60] sm:$0xff] (!%p2183_p2)  ;;  %v1552_v1 = vld [vmem:[#allocation2 + $0x98] sm:$0xff] (!%p2183_p2) }
 0x1f5   : > { %1527 = vst.msk [vmem:[#allocation2 + $0xf0] sm:$0xff] %vm1496_vm2, %v2491_v17  ;;  %v2495_v24 = vadd.f32 %v2494_v18, %v2427_v19  ;;  %v1682_v15 = vmul.f32 (!%p2183_p2), 0.2, %v1618_v10  ;;  %v1619_v16 = vadd.f32 (!%p2183_p2), %v3470_v28, %v1580_v11  ;;  %v1620_v17 = vadd.f32 (!%p2183_p2), %v3470_v28, %v1581_v12  ;;  %v1554_v3 = vld [vmem:[#allocation2 + $0xa8] sm:$0xff] (!%p2183_p2) }
 0x1f6   : > { %1525 = vst.msk [vmem:[#allocation2 + $0xe0] sm:$0xff] %vm1496_vm2, %v2493_v21  ;;  %v2497_v25 = vadd.f32 %v2496_v22, %v1452_v23  ;;  %v1713_v9 = vsel (!%p2183_p2), %vm1649_vm10, %v1617_v4, %v1681_v7  ;;  %v1621_v18 = vadd.f32 (!%p2183_p2), %v3470_v28, %v1582_v8  ;;  %v1583_v19 = vmul.f32 (!%p2183_p2), %v3468_v27, %v1544_v13 }
 0x1f7   : > { %1528 = vst.msk [vmem:[#allocation2 + $0xf8] sm:$0xff] %vm1496_vm2, %v2495_v24  ;;  %v2230_v21 = vpack.c.bf16 (!%p2183_p2), %v1713_v9, %v1713_v9  ;;  %v1714_v22 = vsel (!%p2183_p2), %vm1650_vm11, %v1618_v10, %v1682_v15  ;;  %vm1651_vm12 = vcmp.ge.f32.partialorder (!%p2183_p2), %v1619_v16, 0.0  ;;  %v1683_v23 = vmul.f32 (!%p2183_p2), 0.2, %v1619_v16  ;;  %v1546_v24 = vld [vmem:[#allocation2 + $0x68] sm:$0xff] (!%p2183_p2)  ;;  %v1555_v15 = vld [vmem:[#allocation2 + $0xb0] sm:$0xff] (!%p2183_p2) }
 0x1f8   : > { %1526 = vst.msk [vmem:[#allocation2 + $0xe8] sm:$0xff] %vm1496_vm2, %v2497_v25  ;;  %v1547_v25 = vld [vmem:[#allocation2 + $0x70] sm:$0xff] (!%p2183_p2)  ;;  %v2231_v26 = vpack.c.bf16 (!%p2183_p2), %v1714_v22, %v1714_v22  ;;  %vm1652_vm13 = vcmp.ge.f32.partialorder (!%p2183_p2), %v1620_v17, 0.0  ;;  %v1684_v29 = vmul.f32 (!%p2183_p2), 0.2, %v1620_v17  ;;  %vm1653_vm14 = vcmp.ge.f32.partialorder (!%p2183_p2), %v1621_v18, 0.0 }
 0x1f9   : > { %1873 = vst.msk [vmem:[%s3280_s26 + $0x14] sm:$0xf] %vm1867_vm3, %v2229_v14  ;;  %1874 = vst.msk [vmem:[%s3280_s26 + $0x18] sm:$0xf] %vm1867_vm3, %v2230_v21  ;;  %v1715_v30 = vsel %vm1651_vm12, %v1619_v16, %v1683_v23  ;;  %v1685_v31 = vmul.f32 0.2, %v1621_v18  ;;  %v1622_v32 = vadd.f32 %v3470_v28, %v1583_v19  ;;  %v1584_v33 = vmul.f32 %v3468_v27, %v1545_v20 }
 0x1fa   : > { %1875 = vst.msk [vmem:[%s3280_s26 + $0x1c] sm:$0xf] %vm1867_vm3, %v2231_v26  ;;  %v2232_v34 = vpack.c.bf16 %v1715_v30, %v1715_v30  ;;  %v1716_v35 = vsel %vm1652_vm13, %v1620_v17, %v1684_v29  ;;  %v1585_v36 = vmul.f32 %v3468_v27, %v1546_v24  ;;  %v1586_v37 = vmul.f32 %v3468_v27, %v1547_v25  ;;  %v1556_v16 = vld [vmem:[#allocation2 + $0xb8] sm:$0xff]  ;;  %v1557_v19 = vld [vmem:[#allocation2 + $0xc0] sm:$0xff] }
 0x1fb   : > { %v2233_v41 = vpack.c.bf16 %v1716_v35, %v1716_v35  ;;  %v1717_v42 = vsel %vm1653_vm14, %v1621_v18, %v1685_v31  ;;  %vm1654_vm15 = vcmp.ge.f32.partialorder %v1622_v32, 0.0  ;;  %v1686_v43 = vmul.f32 0.2, %v1622_v32 }
 0x1fc   : > { %1876 = vst.msk [vmem:[%s3280_s26 + $0x20] sm:$0xf] %vm1867_vm3, %v2232_v34  ;;  %v2234_v44 = vpack.c.bf16 %v1717_v42, %v1717_v42  ;;  %v1623_v45 = vadd.f32 %v3470_v28, %v1584_v33  ;;  %v1624_v46 = vadd.f32 %v3470_v28, %v1585_v36  ;;  %v1625_v47 = vadd.f32 %v3470_v28, %v1586_v37  ;;  %v1558_v33 = vld [vmem:[#allocation2 + $0xc8] sm:$0xff] }
 0x1fd   : > { %1877 = vst.msk [vmem:[%s3280_s26 + $0x24] sm:$0xf] %vm1867_vm3, %v2233_v41  ;;  %v1718_v48 = vsel %vm1654_vm15, %v1622_v32, %v1686_v43  ;;  %v1588_v50 = vmul.f32 %v3468_v27, %v1549_v39  ;;  %v1626_v57 = vadd.f32 %v3470_v28, %v1587_v49  ;;  %v1628_v60 = vadd.f32 %v3470_v28, %v1589_v51  ;;  %v1561_v49 = vld [vmem:[#allocation2 + $0xe0] sm:$0xff] }
 0x1fe   : > { %1878 = vst.msk [vmem:[%s3280_s26 + $0x28] sm:$0xf] %vm1867_vm3, %v2234_v44  ;;  %v2235_v53 = vpack.c.bf16 %v1718_v48, %v1718_v48  ;;  %vm1655_vm0 = vcmp.ge.f32.partialorder %v1623_v45, 0.0  ;;  %v1687_v54 = vmul.f32 0.2, %v1623_v45  ;;  %vm1656_vm1 = vcmp.ge.f32.partialorder %v1624_v46, 0.0 }
 0x1ff   : > { %v1688_v55 = vmul.f32 0.2, %v1624_v46  ;;  %vm1657_vm2 = vcmp.ge.f32.partialorder %v1625_v47, 0.0  ;;  %v1689_v56 = vmul.f32 0.2, %v1625_v47  ;;  %v1627_v59 = vadd.f32 %v3470_v28, %v1588_v50  ;;  %v1559_v44 = vld [vmem:[#allocation2 + $0xd0] sm:$0xff] }
 0x200   : > { %1879 = vst.msk [vmem:[%s3280_s26 + $0x2c] sm:$0xf] %vm1867_vm3, %v2235_v53  ;;  %v1719_v58 = vsel %vm1655_vm0, %v1623_v45, %v1687_v54  ;;  %v1590_v61 = vmul.f32 %v3468_v27, %v1551_v52  ;;  %vm1658_vm4 = vcmp.ge.f32.partialorder %v1626_v57, 0.0  ;;  %v1690_v10 = vmul.f32 0.2, %v1626_v57  ;;  %v1560_v48 = vld [vmem:[#allocation2 + $0xd8] sm:$0xff] }
 0x201   : > { %v2236_v62 = vpack.c.bf16 %v1719_v58, %v1719_v58  ;;  %v1720_v63 = vsel %vm1656_vm1, %v1624_v46, %v1688_v55  ;;  %v1721_v0 = vsel %vm1657_vm2, %v1625_v47, %v1689_v56  ;;  %vm1659_vm5 = vcmp.ge.f32.partialorder %v1627_v59, 0.0 }
 0x202   : > { %v2237_v4 = vpack.c.bf16 %v1720_v63, %v1720_v63  ;;  %v2238_v5 = vpack.c.bf16 %v1721_v0, %v1721_v0  ;;  %v1691_v11 = vmul.f32 0.2, %v1627_v59  ;;  %vm1660_vm6 = vcmp.ge.f32.partialorder %v1628_v60, 0.0 }
 0x203   : > { %1880 = vst.msk [vmem:[%s3280_s26 + $0x30] sm:$0xf] %vm1867_vm3, %v2236_v62  ;;  %v1692_v12 = vmul.f32 0.2, %v1628_v60  ;;  %v1629_v13 = vadd.f32 %v3470_v28, %v1590_v61  ;;  %v1722_v6 = vsel %vm1658_vm4, %v1626_v57, %v1690_v10  ;;  %v1591_v7 = vmul.f32 %v3468_v27, %v1552_v1  ;;  %v1563_v61 = vld [vmem:[#allocation2 + $0xf0] sm:$0xff]  ;;  %v1564_v62 = vld [vmem:[#allocation2 + $0xf8] sm:$0xff] }
 0x204   : > { %1881 = vst.msk [vmem:[%s3280_s26 + $0x34] sm:$0xf] %vm1867_vm3, %v2237_v4  ;;  %1882 = vst.msk [vmem:[%s3280_s26 + $0x38] sm:$0xf] %vm1867_vm3, %v2238_v5  ;;  %v1592_v8 = vmul.f32 %v3468_v27, %v1553_v2  ;;  %v1593_v14 = vmul.f32 %v3468_v27, %v1554_v3  ;;  %v2239_v9 = vpack.c.bf16 %v1722_v6, %v1722_v6 }
 0x205   : > { %v1723_v17 = vsel %vm1659_vm5, %v1627_v59, %v1691_v11  ;;  %v1724_v18 = vsel %vm1660_vm6, %v1628_v60, %v1692_v12  ;;  %vm1661_vm7 = vcmp.ge.f32.partialorder %v1629_v13, 0.0  ;;  %v1693_v22 = vmul.f32 0.2, %v1629_v13  ;;  %v1562_v60 = vld [vmem:[#allocation2 + $0xe8] sm:$0xff] }
 0x206   : > { %v2240_v20 = vpack.c.bf16 %v1723_v17, %v1723_v17  ;;  %v2241_v21 = vpack.c.bf16 %v1724_v18, %v1724_v18  ;;  %v1630_v23 = vadd.f32 %v3470_v28, %v1591_v7  ;;  %1883 = vst.msk [vmem:[%s3280_s26 + $0x3c] sm:$0xf] %vm1867_vm3, %v2239_v9  ;;  %v1631_v24 = vadd.f32 %v3470_v28, %v1592_v8 }
 0x207   : > { %v1632_v25 = vadd.f32 %v3470_v28, %v1593_v14  ;;  %v1594_v26 = vmul.f32 %v3468_v27, %v1555_v15  ;;  %v1595_v29 = vmul.f32 %v3468_v27, %v1556_v16  ;;  %v1725_v30 = vsel %vm1661_vm7, %v1629_v13, %v1693_v22 }
 0x208   : > { %1884 = vst.msk [vmem:[%s3280_s26 + $0x40] sm:$0xf] %vm1867_vm3, %v2240_v20  ;;  %1885 = vst.msk [vmem:[%s3280_s26 + $0x44] sm:$0xf] %vm1867_vm3, %v2241_v21  ;;  %vm1662_vm8 = vcmp.ge.f32.partialorder %v1630_v23, 0.0  ;;  %v1596_v32 = vmul.f32 %v3468_v27, %v1557_v19  ;;  %v2242_v34 = vpack.c.bf16 %v1725_v30, %v1725_v30  ;;  %vm1663_vm9 = vcmp.ge.f32.partialorder %v1631_v24, 0.0 }
 0x209   : > { %v1694_v31 = vmul.f32 0.2, %v1630_v23  ;;  %v1695_v35 = vmul.f32 0.2, %v1631_v24  ;;  %vm1664_vm10 = vcmp.ge.f32.partialorder %v1632_v25, 0.0  ;;  %v1633_v38 = vadd.f32 %v3470_v28, %v1594_v26 }
 0x20a   : > { %v1696_v37 = vmul.f32 0.2, %v1632_v25  ;;  %v1634_v39 = vadd.f32 %v3470_v28, %v1595_v29  ;;  %1886 = vst.msk [vmem:[%s3280_s26 + $0x48] sm:$0xf] %vm1867_vm3, %v2242_v34  ;;  %v1635_v42 = vadd.f32 %v3470_v28, %v1596_v32  ;;  %v1597_v43 = vmul.f32 %v3468_v27, %v1558_v33 }
 0x20b   : > { %v1726_v36 = vsel %vm1662_vm8, %v1630_v23, %v1694_v31  ;;  %v1727_v41 = vsel %vm1663_vm9, %v1631_v24, %v1695_v35  ;;  %vm1665_vm11 = vcmp.ge.f32.partialorder %v1633_v38, 0.0  ;;  %v1697_v47 = vmul.f32 0.2, %v1633_v38 }
 0x20c   : > { %v2243_v40 = vpack.c.bf16 %v1726_v36, %v1726_v36  ;;  %v2244_v45 = vpack.c.bf16 %v1727_v41, %v1727_v41  ;;  %v1728_v46 = vsel %vm1664_vm10, %v1632_v25, %v1696_v37  ;;  %vm1666_vm12 = vcmp.ge.f32.partialorder %v1634_v39, 0.0 }
 0x20d   : > { %v2245_v50 = vpack.c.bf16 %v1728_v46, %v1728_v46  ;;  %v1698_v51 = vmul.f32 0.2, %v1634_v39  ;;  %vm1667_vm13 = vcmp.ge.f32.partialorder %v1635_v42, 0.0  ;;  %v1729_v52 = vsel %vm1665_vm11, %v1633_v38, %v1697_v47 }
 0x20e   : > { %1887 = vst.msk [vmem:[%s3280_s26 + $0x4c] sm:$0xf] %vm1867_vm3, %v2243_v40  ;;  %1888 = vst.msk [vmem:[%s3280_s26 + $0x50] sm:$0xf] %vm1867_vm3, %v2244_v45  ;;  %v1699_v53 = vmul.f32 0.2, %v1635_v42  ;;  %v1636_v54 = vadd.f32 %v3470_v28, %v1597_v43  ;;  %v1598_v55 = vmul.f32 %v3468_v27, %v1559_v44  ;;  %v2246_v56 = vpack.c.bf16 %v1729_v52, %v1729_v52 }
 0x20f   : > { %1889 = vst.msk [vmem:[%s3280_s26 + $0x54] sm:$0xf] %vm1867_vm3, %v2245_v50  ;;  %v1730_v57 = vsel %vm1666_vm12, %v1634_v39, %v1698_v51  ;;  %v1599_v58 = vmul.f32 %v3468_v27, %v1560_v48  ;;  %v1600_v59 = vmul.f32 %v3468_v27, %v1561_v49  ;;  %v1601_v11 = vmul.f32 %v3468_v27, %v1562_v60 }
 0x210   : > { %v2247_v63 = vpack.c.bf16 %v1730_v57, %v1730_v57  ;;  %v1731_v0 = vsel %vm1667_vm13, %v1635_v42, %v1699_v53  ;;  %vm1668_vm14 = vcmp.ge.f32.partialorder %v1636_v54, 0.0  ;;  %v1700_v1 = vmul.f32 0.2, %v1636_v54  ;;  %1890 = vst.msk [vmem:[%s3280_s26 + $0x58] sm:$0xf] %vm1867_vm3, %v2246_v56 }
 0x211   : > { %v2248_v2 = vpack.c.bf16 %v1731_v0, %v1731_v0  ;;  %v1637_v3 = vadd.f32 %v3470_v28, %v1598_v55  ;;  %v1638_v4 = vadd.f32 %v3470_v28, %v1599_v58  ;;  %v1639_v5 = vadd.f32 %v3470_v28, %v1600_v59 }
 0x212   : > { %1891 = vst.msk [vmem:[%s3280_s26 + $0x5c] sm:$0xf] %vm1867_vm3, %v2247_v63  ;;  %v1732_v10 = vsel %vm1668_vm14, %v1636_v54, %v1700_v1  ;;  %v1602_v12 = vmul.f32 %v3468_v27, %v1563_v61  ;;  %v1603_v13 = vmul.f32 %v3468_v27, %v1564_v62  ;;  %v1640_v15 = vadd.f32 %v3470_v28, %v1601_v11 }
 0x213   : > { %1892 = vst.msk [vmem:[%s3280_s26 + $0x60] sm:$0xf] %vm1867_vm3, %v2248_v2  ;;  %v2249_v6 = vpack.c.bf16 %v1732_v10, %v1732_v10  ;;  %vm1669_vm15 = vcmp.ge.f32.partialorder %v1637_v3, 0.0  ;;  %v1701_v7 = vmul.f32 0.2, %v1637_v3  ;;  %vm1670_vm0 = vcmp.ge.f32.partialorder %v1638_v4, 0.0 }
 0x214   : > { %v1702_v8 = vmul.f32 0.2, %v1638_v4  ;;  %vm1671_vm1 = vcmp.ge.f32.partialorder %v1639_v5, 0.0  ;;  %v1703_v14 = vmul.f32 0.2, %v1639_v5  ;;  %v1641_v9 = vadd.f32 %v3470_v28, %v1602_v12 }
 0x215   : > { %1893 = vst.msk [vmem:[%s3280_s26 + $0x64] sm:$0xf] %vm1867_vm3, %v2249_v6  ;;  %v1733_v16 = vsel %vm1669_vm15, %v1637_v3, %v1701_v7  ;;  %v1642_v27 = vadd.f32 %v3470_v28, %v1603_v13  ;;  %vm1672_vm2 = vcmp.ge.f32.partialorder %v1640_v15, 0.0  ;;  %v1704_v22 = vmul.f32 0.2, %v1640_v15 }
 0x216   : > { %v2250_v17 = vpack.c.bf16 %v1733_v16, %v1733_v16  ;;  %v1734_v18 = vsel %vm1670_vm0, %v1638_v4, %v1702_v8  ;;  %v1735_v19 = vsel %vm1671_vm1, %v1639_v5, %v1703_v14  ;;  %vm1673_vm4 = vcmp.ge.f32.partialorder %v1641_v9, 0.0 }
 0x217   : > { %v2251_v20 = vpack.c.bf16 %v1734_v18, %v1734_v18  ;;  %v2252_v21 = vpack.c.bf16 %v1735_v19, %v1735_v19  ;;  %v1705_v23 = vmul.f32 0.2, %v1641_v9  ;;  %vm1674_vm5 = vcmp.ge.f32.partialorder %v1642_v27, 0.0 }
 0x218   : > { %1894 = vst.msk [vmem:[%s3280_s26 + $0x68] sm:$0xf] %vm1867_vm3, %v2250_v17  ;;  %v1706_v24 = vmul.f32 0.2, %v1642_v27  ;;  %v1736_v28 = vsel %vm1672_vm2, %v1640_v15, %v1704_v22 }
 0x219   : > { %1895 = vst.msk [vmem:[%s3280_s26 + $0x6c] sm:$0xf] %vm1867_vm3, %v2251_v20  ;;  %1896 = vst.msk [vmem:[%s3280_s26 + $0x70] sm:$0xf] %vm1867_vm3, %v2252_v21  ;;  %v2253_v25 = vpack.c.bf16 %v1736_v28, %v1736_v28  ;;  %v1737_v26 = vsel %vm1673_vm4, %v1641_v9, %v1705_v23 }
 0x21a   : > { %v1738_v29 = vsel %vm1674_vm5, %v1642_v27, %v1706_v24  ;;  %v2254_v30 = vpack.c.bf16 %v1737_v26, %v1737_v26 }
 0x21b   : > { %v2255_v31 = vpack.c.bf16 %v1738_v29, %v1738_v29  ;;  %1897 = vst.msk [vmem:[%s3280_s26 + $0x74] sm:$0xf] %vm1867_vm3, %v2253_v25 }
 0x21c   : > { %1898 = vst.msk [vmem:[%s3280_s26 + $0x78] sm:$0xf] %vm1867_vm3, %v2254_v30 }
 0x21d   : > { %1899 = vst.msk [vmem:[%s3280_s26 + $0x7c] sm:$0xf] %vm1867_vm3, %v2255_v31 }
 0x21e PF: > { %s3713_s21 = sld [smem:[#allocation17_spill]]  ;;  %s3714_s29 = sld [smem:[#allocation18_spill]] }
 0x21f   : > { %s3715_s22 = sld [smem:[#allocation22_spill]]  ;;  %s1916_s27 = sshll.u32 %s3280_s26, 4  ;;  %s3607_s27 = int_to_ptr.vmem [resolvable:$true] %s1916_s27 }
 0x220   : > { %s3611_s2 = scalar_lea.sflag [#allocation5], %s281_s1  ;;  %s2842_s14 = scalar_lea.vmem %s3607_s27, 2048 }
 0x221   : > { %p2843_p9 = scmp.ne.s32.totalorder %s3607_s27, %s2842_s14  ;;  %s2981_s11 = smov [#allocation11]  }
 0x222   : > { %s2846_s9 = sshll.u32 %s2981_s11, 4  ;;  %s2847_s9 = int_to_ptr.vmem [resolvable:$false] %s2846_s9 }
 0x223   : > { %s2848_s7 = scalar_lea.vmem %s2847_s9, 4096  ;;  %p2849_p8 = scmp.lt.s32.totalorder %s3607_s27, %s2847_s9 }
 0x224   : > { %s2256_s18 = sshll.u32 %s3713_s21, 11  ;;  %p3717_p5 = scmp.ne.s32.totalorder %s3714_s29, 0 }
 0x225   : > { %s3716_s13 = smov %s3715_s22  ;;  %s3604_s10 = scalar_lea.hbm %s3715_s22, %s2256_s18 }
 0x226   : > { %p2844_p6 = pnand %p2843_p9, %p3717_p5  ;;  %p2850_p12 = scmp.lt.s32.totalorder %s2848_s7, %s2842_s14 }
 0x228   : > { %p2845_p13 = pneg %p2844_p6  ;;  %p2851_p4 = por %p2850_p12, %p2849_p8 }
 0x22a   : > { %p2852_p7 = pnand %p2851_p4, %p2845_p13 }
 0x22c   : > { %2855 = shalt.err (!%p2852_p7)
}
 0x22d   : > { %s2856_s1 = scalar_lea.hbm %s3604_s10, 2048  ;;  %s2860_s30 = scalar_lea.hbm %s3716_s13, 32768 }
 0x22e   : > { %p2857_p3 = scmp.ne.s32.totalorder %s3604_s10, %s2856_s1  ;;  %p2861_p11 = scmp.lt.u32.totalorder %s3604_s10, %s3716_s13 }
 0x22f   : > { %p2862_p10 = scmp.lt.u32.totalorder %s2860_s30, %s2856_s1  ;;  %p2864_p9 = scmp.lt.u32.totalorder %s2856_s1, %s3604_s10 }
 0x230   : > { %p2858_p0 = pnand %p2857_p3, %p3717_p5 }
 0x231   : > { %p2863_p2 = por %p2862_p10, %p2861_p11 }
 0x232   : > { %p2859_p1 = pneg %p2858_p0 }
 0x233   : > { %p2865_p6 = por %p2864_p9, %p2863_p2 }
 0x235   : > { %p2866_p13 = pnand %p2865_p6, %p2859_p1 }
 0x237   : > { %2869 = shalt.err (!%p2866_p13)
}
 0x238   : > { %s2982_s8 = smov 64   ;;  %s2983_s4 = smov 4  }
 0x239   : > { %2547 = dma.vmem_to_hbm [thread:$0]  (%p3717_p5), %s3607_s27, 2048, %s3604_s10, %s3611_s2, %s2982_s8, %s2982_s8, %s2983_s4  }
 0x23a PF: > { %s3718_s22 = sld [smem:[#allocation16_spill]]  ;;  %s3719_s14 = sld [smem:[#allocation19_spill]] }
 0x23b   : > { %p2574_p8 = scmp.ge.s32.totalorder %s2972_s25, 2 }
 0x240   : > { %s1931_s11 = sand.u32 1, %s3718_s22   ;;  %p3720_p12 = scmp.ne.s32.totalorder %s3719_s14, 0 }
 0x241   : > { %s1932_s9 = scalar_lea.sflag [#allocation5], %s1931_s11 }
 0x242   : > { %p2564_p4 = pnand %p2574_p8, %p3720_p12 }
 0x244   : > { %2927 = dma.done.wait (!%p2564_p4), %s1932_s9, 2048  }
 0x245   : > { %2929 = vsyncadd (!%p2564_p4), %s1932_s9, 4294965248  ;;  %s22_s25 = sadd.s32 1, %s2972_s25   ;;  %s3721_s29 = smov %s3212_s15 }
 0x246   : > { %p19_p7 = scmp.ge.s32.totalorder %s22_s25, 50   ;;  %s3722_s15 = smov %s2936_s16 }
 0x247   : > { %s3723_s16 = smov %s2940_s17  ;;  %s3724_s17 = smov %s3209_s12 }
 0x248   : > { %s3725_s18 = smov %s2948_s19  ;;  %s3726_s19 = smov %s2952_s20 }
 0x249   : > { %s3727_s20 = smov %s3721_s29  ;;  %s3728_s21 = smov %s2964_s23 }
 0x24a   : > { %s3729_s22 = smov %s2968_s24  ;;  %s3730_s23 = smov %s3733_s6 }
 0x24b   : > { %s3731_s24 = smov %s3737_s5  ;;  %21 = sbr.rel (!%p19_p7) target bundleno = 15 (0xf), region = 104 }
 0x252   :  { %1937 = vsyncpa [#allocation4], 1 }
 0x253   :  { %1939 = vsyncpa [#allocation4 + $0x1], 1 }
 0x254   :  { %1940 = vsyncpa [#allocation7], 1 }
 0x255   :  { %1941 = vsyncpa [#allocation10], 1 }
 0x256   :  { %1942 = vsyncpa [#allocation5], 1 }
 0x257   :  { %1944 = vsyncpa [#allocation5 + $0x1], 1 }

// kernel: reconstruction3d_decoder.7
= control target key start
LH: loop header
LB: loop body
LE: loop exit
PB: predicated region body
PF: predicated region fallthrough
CT: control target
= control target key end

     0   :  { %s9736_s0 = inlined_call_operand.hbm [shape: bf16[1,18,1088,24], index: 0, kind: input, shape index: {}]   ;;  %s9737_s1 = inlined_call_operand.hbm [shape: bf16[3,3,24,6], index: 1, kind: input, shape index: {}]   ;;  %s9738_s2 = inlined_call_operand.hbm [shape: f32[1,6], index: 2, kind: input, shape index: {}]   ;;  %s9739_s3 = inlined_call_operand.hbm [shape: f32[1,6], index: 3, kind: input, shape index: {}]   ;;  %s9740_s4 = inlined_call_operand.hbm [shape: f32[1,16,1024,6], index: 4, kind: output, shape index: {}]  }
   0x1   :  { %9753 = sst [smem:[#allocation38_spill]] %s9737_s1 }
   0x2   :  { %9754 = sst [smem:[#allocation39_spill]] %s9738_s2 }
   0x3   :  { %9755 = sst [smem:[#allocation40_spill]] %s9740_s4 }
   0x4   :  { %9 = vsyncpa [#allocation4], 0 }
   0x5   :  { %11 = vsyncpa [#allocation4 + $0x1], 0 }
   0x6   :  { %12 = vsyncpa [#allocation7], 0 }
   0x7   :  { %13 = vsyncpa [#allocation10], 0 }
   0x8   :  { %14 = vsyncpa [#allocation5], 0 }
   0x9   :  { %16 = vsyncpa [#allocation5 + $0x1], 0  ;;  %s7893_s15 = smov 0   ;;  %s7895_s16 = smov 0  }
   0xa   :  { %s7897_s17 = smov 0   ;;  %s7899_s18 = smov 0  }
   0xb   :  { %s7901_s19 = smov 0   ;;  %s7903_s20 = smov 0  }
   0xc   :  { %s7905_s21 = smov 0   ;;  %s7907_s22 = smov 0  }
   0xd   :  { %s7909_s23 = smov 0   ;;  %s7911_s24 = smov 0  }
   0xe   :  { %s7913_s25 = smov 0  }
   0xf LB: > { %9756 = sst [smem:[#allocation16_spill]] %s7816_s15  ;;  %s5606_s26 = sadd.s32 4294967295, %s7856_s25   ;;  %s7856_s25 = sphi %s7913_s25, %s22_s25   ;;  %s7852_s24 = sphi %s7911_s24, %s9831_s24   ;;  %s7848_s23 = sphi %s7909_s23, %s9830_s23   ;;  %s7844_s22 = sphi %s7907_s22, %s9829_s22   ;;  %s7840_s21 = sphi %s7905_s21, %s9828_s21   ;;  %s7836_s20 = sphi %s7903_s20, %s9827_s20   ;;  %s7832_s19 = sphi %s7901_s19, %s9826_s19   ;;  %s7828_s18 = sphi %s7899_s18, %s9825_s18   ;;  %s7824_s17 = sphi %s7897_s17, %s9824_s17   ;;  %s7820_s16 = sphi %s7895_s16, %s9823_s16   ;;  %s7816_s15 = sphi %s7893_s15, %s9822_s15  }
  0x10   : > { %9757 = sst [smem:[#allocation17_spill]] %s7844_s22  ;;  %s5607_s27 = sadd.s32 4294967294, %s7856_s25  }
  0x11   : > { %p65_p0 = scmp.ne.s32.totalorder %s7832_s19, %s7828_s18  ;;  %p7949_p1 = scmp.eq.s32.totalorder %s5606_s26, 0 }
  0x12   : > { %p153_p2 = scmp.ne.s32.totalorder %s7824_s17, %s7820_s16  ;;  %p154_p4 = scmp.eq.s32.totalorder %s5606_s26, 47 }
  0x13   : > { %s9758_s28 = scalar_select %p7949_p1, 1, 0 }
  0x14   : > { %p7958_p3 = por %p7949_p1, %p65_p0  ;;  %p159_p5 = scmp.ne.s32.totalorder %s7820_s16, %s7816_s15 }
  0x15   : > { %p160_p6 = scmp.eq.s32.totalorder %s5607_s27, 47  ;;  %p7964_p7 = por %p154_p4, %p153_p2 }
  0x16   : > { %s9759_s30 = scalar_select %p7958_p3, 1, 0 }
  0x17   : > { %s9760_s5 = scalar_select %p7964_p7, 1, 0 }
  0x18   : > { %p5608_p8 = scmp.ge.s32.totalorder %s7856_s25, 1  ;;  %p7969_p9 = por %p160_p6, %p159_p5 }
  0x19   : > { %9761 = sst [smem:[#allocation18_spill]] %s9760_s5  ;;  %p167_p10 = scmp.lt.s32.totalorder %s7856_s25, 49 }
  0x1a   : > { %s9762_s6 = scalar_select %p7969_p9, 1, 0 }
  0x1b   : > { %p7974_p11 = pnand %p5608_p8, %p167_p10  ;;  %s7858_s8 = smov [#allocation6]  }
  0x1c   : > { %9763 = sst [smem:[#allocation19_spill]] %s9762_s6  ;;  %s179_s9 = sshll.u32 %s7858_s8, 4  ;;  %s7978_s9 = int_to_ptr.vmem [resolvable:$true] %s179_s9 }
  0x1d   : > { %s9764_s7 = scalar_select %p7974_p11, 1, 0 }
  0x1e   : > { %p7034_p12 = pneg %p7974_p11  ;;  %s7859_s11 = smov [#allocation8]  }
  0x1f   : > { %s193_s12 = sshll.u32 %s7859_s11, 4  ;;  %s7860_s13 = smov [#allocation9]   ;;  %s7988_s12 = int_to_ptr.vmem [resolvable:$true] %s193_s12 }
  0x20   : > { %p7984_p13 = pnand %p7034_p12, %p7949_p1  ;;  %s7990_s14 = sshll.u32 %s7860_s13, 4  ;;  %s205_s14 = int_to_ptr.vmem [resolvable:$true] %s7990_s14 }
  0x21   : > { %s9766_s1 = sld [smem:[#allocation38_spill]] }
  0x22   : > { %p8000_p2 = pneg %p7984_p13 }
  0x27   : > { %s7612_s27 = scalar_lea.hbm %s9766_s1, 1728 }
  0x28   : > { %p7613_p0 = scmp.ne.s32.totalorder %s9766_s1, %s7612_s27  ;;  %p7619_p6 = scmp.lt.u32.totalorder %s7612_s27, %s9766_s1 }
  0x2a   : > { %p7615_p4 = pnand %p8000_p2, %p7613_p0 }
  0x2c   : > { %p7616_p5 = pneg %p7615_p4 }
  0x2e   : > { %p7621_p8 = pnand %p7619_p6, %p7616_p5 }
  0x30   : > { %7624 = shalt.err (!%p7621_p8)
}
  0x31   : > { %s7625_s29 = scalar_lea.vmem %s7978_s9, 1728  ;;  %p7633_p7 = scmp.lt.s32.totalorder %s7978_s9, %s7978_s9 }
  0x32   : > { %p7626_p10 = scmp.ne.s32.totalorder %s7978_s9, %s7625_s29  ;;  %p7634_p1 = scmp.lt.s32.totalorder %s7625_s29, %s7625_s29 }
  0x34   : > { %p7628_p12 = pnand %p7626_p10, %p8000_p2  ;;  %p7635_p0 = por %p7634_p1, %p7633_p7 }
  0x36   : > { %p7629_p9 = pneg %p7628_p12 }
  0x38   : > { %p7636_p4 = pnand %p7635_p0, %p7629_p9 }
  0x3a   : > { %7639 = shalt.err (!%p7636_p4)
}
  0x3b   : > { %s9751_s18 = smov 64   ;;  %s9752_s26 = smov 4  }
  0x3c   : > { %7037 = dma.hbm_to_vmem [thread:$0]  (!%p7984_p13), %s9766_s1, 1728, %s7978_s9, [#allocation7], %s9751_s18, %s9751_s18, %s9752_s26  }
  0x3d   : > { %s9768_s2 = sld [smem:[#allocation39_spill]] }
  0x43   : > { %s7640_s29 = scalar_lea.hbm %s9768_s2, 16 }
  0x44   : > { %p7641_p1 = scmp.ne.s32.totalorder %s9768_s2, %s7640_s29  ;;  %p7647_p5 = scmp.lt.u32.totalorder %s7640_s29, %s9768_s2 }
  0x46   : > { %p7643_p7 = pnand %p7641_p1, %p8000_p2 }
  0x48   : > { %p7644_p9 = pneg %p7643_p7 }
  0x4a   : > { %p7649_p6 = pnand %p7647_p5, %p7644_p9 }
  0x4c   : > { %7652 = shalt.err (!%p7649_p6)
}
  0x4d   : > { %s7653_s9 = scalar_lea.vmem %s7988_s12, 16  ;;  %s7660_s4 = scalar_lea.vmem %s7988_s12, 32 }
  0x4e   : > { %p7654_p8 = scmp.ne.s32.totalorder %s7988_s12, %s7653_s9  ;;  %p7661_p0 = scmp.lt.s32.totalorder %s7988_s12, %s7988_s12 }
  0x4f   : > { %p7662_p4 = scmp.lt.s32.totalorder %s7660_s4, %s7653_s9 }
  0x50   : > { %p7656_p10 = pnand %p7654_p8, %p8000_p2 }
  0x51   : > { %p7663_p1 = por %p7662_p4, %p7661_p0 }
  0x52   : > { %p7657_p12 = pneg %p7656_p10 }
  0x54   : > { %p7664_p7 = pnand %p7663_p1, %p7657_p12 }
  0x56   : > { %7667 = shalt.err (!%p7664_p7)
}
  0x57   : > { %7040 = dma.hbm_to_vmem [thread:$0]  (!%p7984_p13), %s9768_s2, 16, %s7988_s12, [#allocation7]  }
  0x58   : > { %s7668_s8 = scalar_lea.hbm %s9739_s3, 16 }
  0x59   : > { %p7669_p9 = scmp.ne.s32.totalorder %s9739_s3, %s7668_s8  ;;  %p7675_p8 = scmp.lt.u32.totalorder %s7668_s8, %s9739_s3 }
  0x5b   : > { %p7671_p5 = pnand %p7669_p9, %p8000_p2 }
  0x5d   : > { %p7672_p6 = pneg %p7671_p5 }
  0x5f   : > { %p7677_p10 = pnand %p7675_p8, %p7672_p6 }
  0x61   : > { %7680 = shalt.err (!%p7677_p10)
}
  0x62   : > { %s7681_s4 = scalar_lea.vmem %s205_s14, 16  ;;  %s7688_s12 = scalar_lea.vmem %s205_s14, 32 }
  0x63   : > { %p7682_p12 = scmp.ne.s32.totalorder %s205_s14, %s7681_s4  ;;  %p7689_p1 = scmp.lt.s32.totalorder %s205_s14, %s205_s14 }
  0x64   : > { %p7690_p7 = scmp.lt.s32.totalorder %s7688_s12, %s7681_s4 }
  0x65   : > { %p7684_p0 = pnand %p7682_p12, %p8000_p2 }
  0x66   : > { %p7691_p3 = por %p7690_p7, %p7689_p1 }
  0x67   : > { %p7685_p4 = pneg %p7684_p0 }
  0x69   : > { %p7692_p11 = pnand %p7691_p3, %p7685_p4 }
  0x6b   : > { %7695 = shalt.err (!%p7692_p11)
}
  0x6c   : > { %7043 = dma.hbm_to_vmem [thread:$0]  (!%p7984_p13), %s9739_s3, 16, %s205_s14, [#allocation10]  }
  0x6d   : > { %s34_s6 = sadd.s32 1, %s7848_s23  ;;  %s37_s5 = sadd.s32 1, %s7852_s24 }
  0x6e   : > { %p35_p3 = scmp.ge.s32.totalorder %s34_s6, 3  ;;  %s45_s10 = sadd.s32 %s7848_s23, %s7852_s24 }
  0x6f   : > { %s52_s27 = sadd.s32 1, %s7836_s20  ;;  %p59_p11 = scmp.ne.s32.totalorder %s7836_s20, %s7832_s19 }
  0x70   : > { %s9833_s6 = smov (%p35_p3, %s34_s6), 0  ;;  %s9835_s5 = smov (!%p35_p3, %s37_s5), %s7852_s24 }
  0x71   : > { %p60_p2 = scmp.eq.s32.totalorder %s7856_s25, 0  ;;  %p39_p9 = scmp.ge.s32.totalorder %s9835_s5, 16 }
  0x72   : > { %p7055_p5 = scmp.lt.s32.totalorder %s7856_s25, 48  ;;  %s215_s8 = sand.u32 1, %s7836_s20  }
  0x73   : > { %p8079_p6 = por %p60_p2, %p59_p11  ;;  %s9837_s5 = smov (%p39_p9, %s9835_s5), 0 }
  0x74   : > { %s7015_s11 = smul.u32 544, %s215_s8  ;;  %s46_s13 = sadd.s32 %s9837_s5, %s9833_s6 }
  0x75   : > { %s139_s29 = ssub.s32 %s7852_s24, %s9837_s5  ;;  %s48_s9 = ssub.s32 %s45_s10, %s46_s13 }
  0x76   : > { %p141_p13 = scmp.eq.s32.totalorder %s139_s29, 0  ;;  %p50_p8 = scmp.eq.s32.totalorder %s48_s9, 0 }
  0x77   : > { %s9770_s4 = sadd.s32 1, %s7824_s17  ;;  %s7016_s22 = smul.u32 8704, %s45_s10 }
  0x78   : > { %s8093_s12 = scalar_select %p141_p13, %s7824_s17, %s9770_s4  }
  0x79   : > { %s8096_s15 = scalar_select %p50_p8, %s7836_s20, %s52_s27  }
  0x7a   : > { %s219_s18 = scalar_lea.vmem [#allocation3], %s7015_s11  ;;  %p8104_p10 = pnand %p7055_p5, %p8079_p6 }
  0x7b   : > { %s229_s26 = sshll.u32 %s219_s18, 4  ;;  %s8111_s29 = scalar_lea.hbm %s9736_s0, %s7016_s22  ;;  %s8098_s26 = int_to_ptr.vmem [resolvable:$true] %s229_s26 }
  0x7c   : > { %s8113_s18 = scalar_lea.sflag [#allocation4], %s215_s8  ;;  %s7696_s10 = scalar_lea.hbm %s8111_s29, 8704 }
  0x7d   : > { %p7697_p12 = scmp.ne.s32.totalorder %s8111_s29, %s7696_s10  ;;  %p7698_p0 = pneg %p8104_p10 }
  0x7e   : > { %s7701_s14 = scalar_lea.hbm %s9736_s0, 156672  ;;  %p7702_p7 = scmp.lt.u32.totalorder %s8111_s29, %s9736_s0 }
  0x7f   : > { %p7699_p4 = pnand %p7698_p0, %p7697_p12  ;;  %p7703_p3 = scmp.lt.u32.totalorder %s7701_s14, %s7696_s10 }
  0x80   : > { %p7705_p2 = scmp.lt.u32.totalorder %s7696_s10, %s8111_s29 }
  0x81   : > { %p7700_p1 = pneg %p7699_p4  ;;  %p7704_p11 = por %p7703_p3, %p7702_p7 }
  0x83   : > { %p7706_p9 = por %p7705_p2, %p7704_p11 }
  0x85   : > { %p7707_p5 = pnand %p7706_p9, %p7700_p1 }
  0x87   : > { %7710 = shalt.err (!%p7707_p5)
}
  0x88   : > { %s7711_s8 = scalar_lea.vmem %s8098_s26, 8704  ;;  %s7863_s4 = smov [#allocation3]  }
  0x89   : > { %p7712_p6 = scmp.ne.s32.totalorder %s8098_s26, %s7711_s8  ;;  %s7716_s22 = sshll.u32 %s7863_s4, 4  ;;  %s7717_s22 = int_to_ptr.vmem [resolvable:$false] %s7716_s22 }
  0x8a   : > { %s7718_s13 = scalar_lea.vmem %s7717_s22, 17408  ;;  %p7719_p12 = scmp.lt.s32.totalorder %s8098_s26, %s7717_s22 }
  0x8b   : > { %p7714_p13 = pnand %p7712_p6, %p7698_p0  ;;  %p7720_p4 = scmp.lt.s32.totalorder %s7718_s13, %s7711_s8 }
  0x8d   : > { %p7715_p8 = pneg %p7714_p13  ;;  %p7721_p7 = por %p7720_p4, %p7719_p12 }
  0x8f   : > { %p7722_p3 = pnand %p7721_p7, %p7715_p8 }
  0x91   : > { %7725 = shalt.err (!%p7722_p3)
}
  0x92   : > { %s9772_s10 = smov 4   ;;  %s9773_s27 = smov 64  }
  0x93   : > { %7047 = dma.hbm_to_vmem [thread:$0]  (!%p8104_p10), %s8111_s29, 8704, %s8098_s26, %s8113_s18, %s9773_s27, %s9773_s27, %s9772_s10  }
  0x94   : > { %p9774_p0 = scmp.ne.s32.totalorder %s9764_s7, 0 }
  0x96   : > { %241 = sbr.rel (%p9774_p0) target bundleno = 996 (0x3e4), region = 36 }
  0x9d   : > { %s243_s2 = sand.u32 1, %s7832_s19   ;;  %p9775_p1 = scmp.ne.s32.totalorder %s9759_s30, 0 }
  0x9e   : > { %s7017_s14 = smul.u32 544, %s243_s2  ;;  %s244_s11 = scalar_lea.sflag [#allocation4], %s243_s2 }
  0xa0   : > { %s8147_s9 = scalar_lea.vmem [#allocation3], %s7017_s14 }
  0xa1   : > { %7799 = dma.done.wait (%p9775_p1), %s244_s11, 8704  }
  0xa2   : > { %7801 = vsyncadd (%p9775_p1), %s244_s11, 4294958592  ;;  %p9776_p11 = scmp.ne.s32.totalorder %s9758_s28, 0 }
  0xa4   : > { %7803 = dma.done.wait (%p9776_p11), [#allocation7], 1744  }
  0xa5   : > { %7805 = vsyncadd (%p9776_p11), [#allocation7], 4294965552 }
  0xa6   : > { %7807 = dma.done.wait (%p9776_p11), [#allocation10], 16  }
  0xa7   : > { %7809 = vsyncadd (%p9776_p11), [#allocation10], 4294967280  ;;  %s281_s1 = sand.u32 1, %s7820_s16   ;;  %p5619_p10 = scmp.ne.s32.totalorder %s7840_s21, 0 }
  0xa8   : > { %s5618_s7 = sshll.u32 %s281_s1, 10  ;;  %vm290_vm0 = vcmask (!%p5619_p10), 48128   ;;  %v7864_v0 = vmov (!%p5619_p10), 0.0  }
  0xa9   : > { %s8164_s26 = scalar_lea.vmem [#allocation11], %s5618_s7  ;;  %289 = sbr.rel (%p5619_p10) target bundleno = 233 (0xe9), region = 56  ;;  %291 = vst.msk [vmem:[#allocation2] sm:$0xff] (!%p5619_p10), %vm290_vm0, %v7864_v0  ;;  %292 = vst.msk [vmem:[#allocation2 + $0x8] sm:$0xff] (!%p5619_p10), %vm290_vm0, %v7864_v0 }
  0xaa   : > { %293 = vst.msk [vmem:[#allocation2 + $0x10] sm:$0xff] (!%p5619_p10), %vm290_vm0, %v7864_v0  ;;  %294 = vst.msk [vmem:[#allocation2 + $0x18] sm:$0xff] (!%p5619_p10), %vm290_vm0, %v7864_v0 }
  0xab   : > { %295 = vst.msk [vmem:[#allocation2 + $0x20] sm:$0xff] (!%p5619_p10), %vm290_vm0, %v7864_v0  ;;  %296 = vst.msk [vmem:[#allocation2 + $0x28] sm:$0xff] (!%p5619_p10), %vm290_vm0, %v7864_v0 }
  0xac   : > { %297 = vst.msk [vmem:[#allocation2 + $0x30] sm:$0xff] (!%p5619_p10), %vm290_vm0, %v7864_v0  ;;  %298 = vst.msk [vmem:[#allocation2 + $0x38] sm:$0xff] (!%p5619_p10), %vm290_vm0, %v7864_v0 }
  0xad   : > { %299 = vst.msk [vmem:[#allocation2 + $0x40] sm:$0xff] (!%p5619_p10), %vm290_vm0, %v7864_v0  ;;  %300 = vst.msk [vmem:[#allocation2 + $0x48] sm:$0xff] (!%p5619_p10), %vm290_vm0, %v7864_v0 }
  0xae   : > { %301 = vst.msk [vmem:[#allocation2 + $0x50] sm:$0xff] (!%p5619_p10), %vm290_vm0, %v7864_v0  ;;  %302 = vst.msk [vmem:[#allocation2 + $0x58] sm:$0xff] (!%p5619_p10), %vm290_vm0, %v7864_v0 }
  0xaf   : > { %303 = vst.msk [vmem:[#allocation2 + $0x60] sm:$0xff] (!%p5619_p10), %vm290_vm0, %v7864_v0  ;;  %304 = vst.msk [vmem:[#allocation2 + $0x68] sm:$0xff] (!%p5619_p10), %vm290_vm0, %v7864_v0 }
  0xb0   : > { %305 = vst.msk [vmem:[#allocation2 + $0x70] sm:$0xff] %vm290_vm0, %v7864_v0  ;;  %306 = vst.msk [vmem:[#allocation2 + $0x78] sm:$0xff] %vm290_vm0, %v7864_v0 }
  0xb1   : > { %307 = vst.msk [vmem:[#allocation2 + $0x80] sm:$0xff] %vm290_vm0, %v7864_v0  ;;  %308 = vst.msk [vmem:[#allocation2 + $0x88] sm:$0xff] %vm290_vm0, %v7864_v0 }
  0xb2   : > { %309 = vst.msk [vmem:[#allocation2 + $0x90] sm:$0xff] %vm290_vm0, %v7864_v0  ;;  %310 = vst.msk [vmem:[#allocation2 + $0x98] sm:$0xff] %vm290_vm0, %v7864_v0 }
  0xb3   : > { %311 = vst.msk [vmem:[#allocation2 + $0xa0] sm:$0xff] %vm290_vm0, %v7864_v0  ;;  %312 = vst.msk [vmem:[#allocation2 + $0xa8] sm:$0xff] %vm290_vm0, %v7864_v0 }
  0xb4   : > { %313 = vst.msk [vmem:[#allocation2 + $0xb0] sm:$0xff] %vm290_vm0, %v7864_v0  ;;  %314 = vst.msk [vmem:[#allocation2 + $0xb8] sm:$0xff] %vm290_vm0, %v7864_v0 }
  0xb5   : > { %315 = vst.msk [vmem:[#allocation2 + $0xc0] sm:$0xff] %vm290_vm0, %v7864_v0  ;;  %316 = vst.msk [vmem:[#allocation2 + $0xc8] sm:$0xff] %vm290_vm0, %v7864_v0 }
  0xb6   : > { %317 = vst.msk [vmem:[#allocation2 + $0xd0] sm:$0xff] %vm290_vm0, %v7864_v0  ;;  %318 = vst.msk [vmem:[#allocation2 + $0xd8] sm:$0xff] %vm290_vm0, %v7864_v0 }
  0xb7   : > { %319 = vst.msk [vmem:[#allocation2 + $0xe0] sm:$0xff] %vm290_vm0, %v7864_v0  ;;  %320 = vst.msk [vmem:[#allocation2 + $0xe8] sm:$0xff] %vm290_vm0, %v7864_v0 }
  0xb8   : > { %321 = vst.msk [vmem:[#allocation2 + $0xf0] sm:$0xff] %vm290_vm0, %v7864_v0  ;;  %322 = vst.msk [vmem:[#allocation2 + $0xf8] sm:$0xff] %vm290_vm0, %v7864_v0 }
  0xb9   : > { %323 = vst.msk [vmem:[#allocation2 + $0x100] sm:$0xff] %vm290_vm0, %v7864_v0  ;;  %324 = vst.msk [vmem:[#allocation2 + $0x108] sm:$0xff] %vm290_vm0, %v7864_v0 }
  0xba   : > { %325 = vst.msk [vmem:[#allocation2 + $0x110] sm:$0xff] %vm290_vm0, %v7864_v0  ;;  %326 = vst.msk [vmem:[#allocation2 + $0x118] sm:$0xff] %vm290_vm0, %v7864_v0 }
  0xbb   : > { %327 = vst.msk [vmem:[#allocation2 + $0x120] sm:$0xff] %vm290_vm0, %v7864_v0  ;;  %328 = vst.msk [vmem:[#allocation2 + $0x128] sm:$0xff] %vm290_vm0, %v7864_v0 }
  0xbc   : > { %329 = vst.msk [vmem:[#allocation2 + $0x130] sm:$0xff] %vm290_vm0, %v7864_v0  ;;  %330 = vst.msk [vmem:[#allocation2 + $0x138] sm:$0xff] %vm290_vm0, %v7864_v0 }
  0xbd   : > { %331 = vst.msk [vmem:[#allocation2 + $0x140] sm:$0xff] %vm290_vm0, %v7864_v0  ;;  %332 = vst.msk [vmem:[#allocation2 + $0x148] sm:$0xff] %vm290_vm0, %v7864_v0 }
  0xbe   : > { %333 = vst.msk [vmem:[#allocation2 + $0x150] sm:$0xff] %vm290_vm0, %v7864_v0  ;;  %334 = vst.msk [vmem:[#allocation2 + $0x158] sm:$0xff] %vm290_vm0, %v7864_v0 }
  0xbf   : > { %335 = vst.msk [vmem:[#allocation2 + $0x160] sm:$0xff] %vm290_vm0, %v7864_v0  ;;  %336 = vst.msk [vmem:[#allocation2 + $0x168] sm:$0xff] %vm290_vm0, %v7864_v0 }
  0xc0   : > { %337 = vst.msk [vmem:[#allocation2 + $0x170] sm:$0xff] %vm290_vm0, %v7864_v0  ;;  %338 = vst.msk [vmem:[#allocation2 + $0x178] sm:$0xff] %vm290_vm0, %v7864_v0 }
  0xc1   : > { %339 = vst.msk [vmem:[#allocation2 + $0x180] sm:$0xff] %vm290_vm0, %v7864_v0  ;;  %340 = vst.msk [vmem:[#allocation2 + $0x188] sm:$0xff] %vm290_vm0, %v7864_v0 }
  0xc2   : > { %341 = vst.msk [vmem:[#allocation2 + $0x190] sm:$0xff] %vm290_vm0, %v7864_v0  ;;  %342 = vst.msk [vmem:[#allocation2 + $0x198] sm:$0xff] %vm290_vm0, %v7864_v0 }
  0xc3   : > { %343 = vst.msk [vmem:[#allocation2 + $0x1a0] sm:$0xff] %vm290_vm0, %v7864_v0  ;;  %344 = vst.msk [vmem:[#allocation2 + $0x1a8] sm:$0xff] %vm290_vm0, %v7864_v0 }
  0xc4   : > { %345 = vst.msk [vmem:[#allocation2 + $0x1b0] sm:$0xff] %vm290_vm0, %v7864_v0  ;;  %346 = vst.msk [vmem:[#allocation2 + $0x1b8] sm:$0xff] %vm290_vm0, %v7864_v0 }
  0xc5   : > { %347 = vst.msk [vmem:[#allocation2 + $0x1c0] sm:$0xff] %vm290_vm0, %v7864_v0  ;;  %348 = vst.msk [vmem:[#allocation2 + $0x1c8] sm:$0xff] %vm290_vm0, %v7864_v0 }
  0xc6   : > { %349 = vst.msk [vmem:[#allocation2 + $0x1d0] sm:$0xff] %vm290_vm0, %v7864_v0  ;;  %350 = vst.msk [vmem:[#allocation2 + $0x1d8] sm:$0xff] %vm290_vm0, %v7864_v0 }
  0xc7   : > { %351 = vst.msk [vmem:[#allocation2 + $0x1e0] sm:$0xff] %vm290_vm0, %v7864_v0  ;;  %352 = vst.msk [vmem:[#allocation2 + $0x1e8] sm:$0xff] %vm290_vm0, %v7864_v0 }
  0xc8   : > { %353 = vst.msk [vmem:[#allocation2 + $0x1f0] sm:$0xff] %vm290_vm0, %v7864_v0  ;;  %354 = vst.msk [vmem:[#allocation2 + $0x1f8] sm:$0xff] %vm290_vm0, %v7864_v0 }
  0xc9   : > { %355 = vst.msk [vmem:[#allocation2 + $0x200] sm:$0xff] %vm290_vm0, %v7864_v0  ;;  %356 = vst.msk [vmem:[#allocation2 + $0x208] sm:$0xff] %vm290_vm0, %v7864_v0 }
  0xca   : > { %357 = vst.msk [vmem:[#allocation2 + $0x210] sm:$0xff] %vm290_vm0, %v7864_v0  ;;  %358 = vst.msk [vmem:[#allocation2 + $0x218] sm:$0xff] %vm290_vm0, %v7864_v0 }
  0xcb   : > { %359 = vst.msk [vmem:[#allocation2 + $0x220] sm:$0xff] %vm290_vm0, %v7864_v0  ;;  %360 = vst.msk [vmem:[#allocation2 + $0x228] sm:$0xff] %vm290_vm0, %v7864_v0 }
  0xcc   : > { %361 = vst.msk [vmem:[#allocation2 + $0x230] sm:$0xff] %vm290_vm0, %v7864_v0  ;;  %362 = vst.msk [vmem:[#allocation2 + $0x238] sm:$0xff] %vm290_vm0, %v7864_v0 }
  0xcd   : > { %363 = vst.msk [vmem:[#allocation2 + $0x240] sm:$0xff] %vm290_vm0, %v7864_v0  ;;  %364 = vst.msk [vmem:[#allocation2 + $0x248] sm:$0xff] %vm290_vm0, %v7864_v0 }
  0xce   : > { %365 = vst.msk [vmem:[#allocation2 + $0x250] sm:$0xff] %vm290_vm0, %v7864_v0  ;;  %366 = vst.msk [vmem:[#allocation2 + $0x258] sm:$0xff] %vm290_vm0, %v7864_v0 }
  0xcf   : > { %367 = vst.msk [vmem:[#allocation2 + $0x260] sm:$0xff] %vm290_vm0, %v7864_v0  ;;  %368 = vst.msk [vmem:[#allocation2 + $0x268] sm:$0xff] %vm290_vm0, %v7864_v0 }
  0xd0   : > { %369 = vst.msk [vmem:[#allocation2 + $0x270] sm:$0xff] %vm290_vm0, %v7864_v0  ;;  %370 = vst.msk [vmem:[#allocation2 + $0x278] sm:$0xff] %vm290_vm0, %v7864_v0 }
  0xd1   : > { %371 = vst.msk [vmem:[#allocation2 + $0x280] sm:$0xff] %vm290_vm0, %v7864_v0  ;;  %372 = vst.msk [vmem:[#allocation2 + $0x288] sm:$0xff] %vm290_vm0, %v7864_v0 }
  0xd2   : > { %373 = vst.msk [vmem:[#allocation2 + $0x290] sm:$0xff] %vm290_vm0, %v7864_v0  ;;  %374 = vst.msk [vmem:[#allocation2 + $0x298] sm:$0xff] %vm290_vm0, %v7864_v0 }
  0xd3   : > { %375 = vst.msk [vmem:[#allocation2 + $0x2a0] sm:$0xff] %vm290_vm0, %v7864_v0  ;;  %376 = vst.msk [vmem:[#allocation2 + $0x2a8] sm:$0xff] %vm290_vm0, %v7864_v0 }
  0xd4   : > { %377 = vst.msk [vmem:[#allocation2 + $0x2b0] sm:$0xff] %vm290_vm0, %v7864_v0  ;;  %378 = vst.msk [vmem:[#allocation2 + $0x2b8] sm:$0xff] %vm290_vm0, %v7864_v0 }
  0xd5   : > { %379 = vst.msk [vmem:[#allocation2 + $0x2c0] sm:$0xff] %vm290_vm0, %v7864_v0  ;;  %380 = vst.msk [vmem:[#allocation2 + $0x2c8] sm:$0xff] %vm290_vm0, %v7864_v0 }
  0xd6   : > { %381 = vst.msk [vmem:[#allocation2 + $0x2d0] sm:$0xff] %vm290_vm0, %v7864_v0  ;;  %382 = vst.msk [vmem:[#allocation2 + $0x2d8] sm:$0xff] %vm290_vm0, %v7864_v0 }
  0xd7   : > { %383 = vst.msk [vmem:[#allocation2 + $0x2e0] sm:$0xff] %vm290_vm0, %v7864_v0  ;;  %384 = vst.msk [vmem:[#allocation2 + $0x2e8] sm:$0xff] %vm290_vm0, %v7864_v0 }
  0xd8   : > { %385 = vst.msk [vmem:[#allocation2 + $0x2f0] sm:$0xff] %vm290_vm0, %v7864_v0  ;;  %386 = vst.msk [vmem:[#allocation2 + $0x2f8] sm:$0xff] %vm290_vm0, %v7864_v0 }
  0xd9   : > { %387 = vst.msk [vmem:[#allocation2 + $0x300] sm:$0xff] %vm290_vm0, %v7864_v0  ;;  %388 = vst.msk [vmem:[#allocation2 + $0x308] sm:$0xff] %vm290_vm0, %v7864_v0 }
  0xda   : > { %389 = vst.msk [vmem:[#allocation2 + $0x310] sm:$0xff] %vm290_vm0, %v7864_v0  ;;  %390 = vst.msk [vmem:[#allocation2 + $0x318] sm:$0xff] %vm290_vm0, %v7864_v0 }
  0xdb   : > { %391 = vst.msk [vmem:[#allocation2 + $0x320] sm:$0xff] %vm290_vm0, %v7864_v0  ;;  %392 = vst.msk [vmem:[#allocation2 + $0x328] sm:$0xff] %vm290_vm0, %v7864_v0 }
  0xdc   : > { %393 = vst.msk [vmem:[#allocation2 + $0x330] sm:$0xff] %vm290_vm0, %v7864_v0  ;;  %394 = vst.msk [vmem:[#allocation2 + $0x338] sm:$0xff] %vm290_vm0, %v7864_v0 }
  0xdd   : > { %395 = vst.msk [vmem:[#allocation2 + $0x340] sm:$0xff] %vm290_vm0, %v7864_v0  ;;  %396 = vst.msk [vmem:[#allocation2 + $0x348] sm:$0xff] %vm290_vm0, %v7864_v0 }
  0xde   : > { %397 = vst.msk [vmem:[#allocation2 + $0x350] sm:$0xff] %vm290_vm0, %v7864_v0  ;;  %398 = vst.msk [vmem:[#allocation2 + $0x358] sm:$0xff] %vm290_vm0, %v7864_v0 }
  0xdf   : > { %399 = vst.msk [vmem:[#allocation2 + $0x360] sm:$0xff] %vm290_vm0, %v7864_v0  ;;  %400 = vst.msk [vmem:[#allocation2 + $0x368] sm:$0xff] %vm290_vm0, %v7864_v0 }
  0xe0   : > { %401 = vst.msk [vmem:[#allocation2 + $0x370] sm:$0xff] %vm290_vm0, %v7864_v0  ;;  %402 = vst.msk [vmem:[#allocation2 + $0x378] sm:$0xff] %vm290_vm0, %v7864_v0 }
  0xe1   : > { %403 = vst.msk [vmem:[#allocation2 + $0x380] sm:$0xff] %vm290_vm0, %v7864_v0  ;;  %404 = vst.msk [vmem:[#allocation2 + $0x388] sm:$0xff] %vm290_vm0, %v7864_v0 }
  0xe2   : > { %405 = vst.msk [vmem:[#allocation2 + $0x390] sm:$0xff] %vm290_vm0, %v7864_v0  ;;  %406 = vst.msk [vmem:[#allocation2 + $0x398] sm:$0xff] %vm290_vm0, %v7864_v0 }
  0xe3   : > { %407 = vst.msk [vmem:[#allocation2 + $0x3a0] sm:$0xff] %vm290_vm0, %v7864_v0  ;;  %408 = vst.msk [vmem:[#allocation2 + $0x3a8] sm:$0xff] %vm290_vm0, %v7864_v0 }
  0xe4   : > { %409 = vst.msk [vmem:[#allocation2 + $0x3b0] sm:$0xff] %vm290_vm0, %v7864_v0  ;;  %410 = vst.msk [vmem:[#allocation2 + $0x3b8] sm:$0xff] %vm290_vm0, %v7864_v0 }
  0xe5   : > { %411 = vst.msk [vmem:[#allocation2 + $0x3c0] sm:$0xff] %vm290_vm0, %v7864_v0  ;;  %412 = vst.msk [vmem:[#allocation2 + $0x3c8] sm:$0xff] %vm290_vm0, %v7864_v0 }
  0xe6   : > { %413 = vst.msk [vmem:[#allocation2 + $0x3d0] sm:$0xff] %vm290_vm0, %v7864_v0  ;;  %414 = vst.msk [vmem:[#allocation2 + $0x3d8] sm:$0xff] %vm290_vm0, %v7864_v0 }
  0xe7   : > { %415 = vst.msk [vmem:[#allocation2 + $0x3e0] sm:$0xff] %vm290_vm0, %v7864_v0  ;;  %416 = vst.msk [vmem:[#allocation2 + $0x3e8] sm:$0xff] %vm290_vm0, %v7864_v0 }
  0xe8   : > { %417 = vst.msk [vmem:[#allocation2 + $0x3f0] sm:$0xff] %vm290_vm0, %v7864_v0  ;;  %418 = vst.msk [vmem:[#allocation2 + $0x3f8] sm:$0xff] %vm290_vm0, %v7864_v0 }
  0xe9 PF: > { %s6027_s28 = smul.u32 36, %s7840_s21  ;;  %v7160_v1 = vld [vmem:[%s8147_s9] sm:$0xff]   ;;  %vm1010_vm1 = vcmask 195584   ;;  %v7161_v2 = vld [vmem:[%s8147_s9 + $0x10] sm:$0xff]   ;;  %vm1203_vm2 = vcmask 1043456   ;;  %v7162_v10 = vld [vmem:[%s8147_s9 + $0x8] sm:$0xff]  }
  0xea   : > { %6231 = vmatprep.mubr.msk.bf16.mxu1 %vm1010_vm1, %v7160_v1  ;;  %6363 = vmatprep.mubr.msk.bf16.mxu0 %vm1010_vm1, %v7161_v2  ;;  %v7163_v11 = vld [vmem:[%s8147_s9 + $0x18] sm:$0xff]   ;;  %v7165_v12 = vld [vmem:[%s8147_s9 + $0x10] sm:$0xff]   ;;  %v7166_v13 = vld [vmem:[%s8147_s9 + $0x20] sm:$0xff]   ;;  %vm4542_vm3 = vcmask 48128   ;;  %p6019_p2 = scmp.ne.s32.totalorder %s7840_s21, 2 }
  0xeb   : > { %s8426_s30 = scalar_lea.vmem [#allocation6], %s6027_s28  ;;  %v7167_v14 = vld [vmem:[%s8147_s9 + $0x18] sm:$0xff]   ;;  %v7168_v15 = vld [vmem:[%s8147_s9 + $0x28] sm:$0xff]   ;;  %v7169_v16 = vld [vmem:[%s8147_s9 + $0x20] sm:$0xff]  }
  0xec   : > { %v7156_v3 = vld [vmem:[%s8426_s30] sm:$0xff]   ;;  %v7157_v4 = vld [vmem:[%s8426_s30 + $0xc] sm:$0xff]   ;;  %v7158_v5 = vld [vmem:[%s8426_s30 + $0x8] ss:$0 sps:$4 sm:$0xff]  }
  0xed   : > { %6227 = vmatprep.subr.bf16.mxu1 %v7156_v3  ;;  %6359 = vmatprep.subr.bf16.mxu0 %v7157_v4  ;;  %v7159_v6 = vld [vmem:[%s8426_s30 + $0x14] ss:$0 sps:$4 sm:$0xff]   ;;  %v1205_v7 = vsel %vm1203_vm2, %v7158_v5, 0  ;;  %v7164_v9 = vld [vmem:[%s8426_s30 + $0x18] sm:$0xff]   ;;  %v7171_v18 = vld [vmem:[%s8147_s9 + $0x28] sm:$0xff]  }
  0xee   : > { %6228 = vmatpush3.bf16.msra.mxu1 %v7156_v3  ;;  %6360 = vmatpush3.bf16.msra.mxu0 %v7157_v4  ;;  %v2536_v8 = vsel %vm1203_vm2, %v7159_v6, 0  ;;  %v7170_v17 = vld [vmem:[%s8147_s9 + $0x30] sm:$0xff]   ;;  %v7172_v19 = vld [vmem:[%s8147_s9 + $0x38] sm:$0xff]   ;;  %v7174_v21 = vld [vmem:[%s8147_s9 + $0x40] sm:$0xff]  }
  0xef   : > { %7011 = vmatprep.subr.msk.bf16.mxu1 %vm1203_vm2, %v7158_v5  ;;  %7012 = vmatprep.subr.msk.bf16.mxu0 %vm1203_vm2, %v7159_v6  ;;  %v7173_v20 = vld [vmem:[%s8147_s9 + $0x30] sm:$0xff]   ;;  %v7175_v22 = vld [vmem:[%s8147_s9 + $0x38] sm:$0xff]   ;;  %v7176_v23 = vld [vmem:[%s8147_s9 + $0x48] sm:$0xff]  }
  0xf0   : > { %v7177_v24 = vld [vmem:[%s8147_s9 + $0x40] sm:$0xff]   ;;  %v7178_v25 = vld [vmem:[%s8147_s9 + $0x50] sm:$0xff]   ;;  %v7179_v26 = vld [vmem:[%s8147_s9 + $0x48] sm:$0xff]  }
  0xf1   : > { %v7180_v27 = vld [vmem:[%s8147_s9 + $0x58] sm:$0xff]   ;;  %v7197_v28 = vld [vmem:[%s8426_s30 + $0x20] ss:$0 sps:$4 sm:$0xff]   ;;  %v7181_v29 = vld [vmem:[%s8147_s9 + $0x50] sm:$0xff]  }
  0xf2   : > { %6230 = vmatpush3.bf16.msra.mxu1 %v1205_v7  ;;  %6362 = vmatpush3.bf16.msra.mxu0 %v2536_v8  ;;  %v7182_v30 = vld [vmem:[%s8147_s9 + $0x60] sm:$0xff]   ;;  %v3867_v31 = vsel %vm1203_vm2, %v7197_v28, 0  ;;  %v7183_v32 = vld [vmem:[%s8147_s9 + $0x58] sm:$0xff]   ;;  %v7184_v33 = vld [vmem:[%s8147_s9 + $0x68] sm:$0xff]  }
  0xf3   : > { %6623 = vmatprep.subr.bf16.mxu1 %v7157_v4  ;;  %6491 = vmatprep.subr.bf16.mxu0 %v7164_v9  ;;  %v7185_v34 = vld [vmem:[%s8147_s9 + $0x60] sm:$0xff]   ;;  %v7186_v35 = vld [vmem:[%s8147_s9 + $0x70] sm:$0xff]   ;;  %v7187_v36 = vld [vmem:[%s8147_s9 + $0x68] sm:$0xff]  }
  0xf4   : > { %v7188_v37 = vld [vmem:[%s8147_s9 + $0x78] sm:$0xff]   ;;  %v7189_v38 = vld [vmem:[%s8147_s9 + $0x70] sm:$0xff]   ;;  %v7190_v39 = vld [vmem:[%s8147_s9 + $0x80] sm:$0xff]  }
  0xf5   : > { %6232 = vmatmul.mubr.msk.bf16.vlgmr.msra.gmra.mrb[0].mxu1 %vm1010_vm1, %v7162_v10  ;;  %6364 = vmatmul.mubr.msk.bf16.vlgmr.msra.gmra.mrb[0].mxu0 %vm1010_vm1, %v7163_v11  ;;  %v7191_v40 = vld [vmem:[%s8147_s9 + $0x78] sm:$0xff]   ;;  %v7192_v41 = vld [vmem:[%s8147_s9 + $0x88] sm:$0xff]   ;;  %v7193_v42 = vld [vmem:[%s8147_s9 + $0x80] sm:$0xff]  }
  0xf6   : > { %6625 = vmatpush3.bf16.msra.mxu1 %v7157_v4  ;;  %6492 = vmatpush3.bf16.msra.mxu0 %v7164_v9  ;;  %v7194_v43 = vld [vmem:[%s8147_s9 + $0x90] sm:$0xff]   ;;  %v7195_v44 = vld [vmem:[%s8147_s9 + $0x88] sm:$0xff]   ;;  %v7196_v45 = vld [vmem:[%s8147_s9 + $0x98] sm:$0xff]  }
  0xf7   : > { %6235 = vmatprep.mubr.msk.bf16.mxu1 %vm1010_vm1, %v7165_v12  ;;  %6367 = vmatprep.mubr.msk.bf16.mxu0 %vm1010_vm1, %v7166_v13  ;;  %v7198_v46 = vld [vmem:[%s8147_s9 + $0x90] sm:$0xff]   ;;  %v7199_v47 = vld [vmem:[%s8147_s9 + $0xa0] sm:$0xff]   ;;  %v7200_v48 = vld [vmem:[%s8147_s9 + $0x98] sm:$0xff]  }
  0xf8   : > { %7013 = vmatprep.subr.msk.bf16.mxu1 %vm1203_vm2, %v7159_v6  ;;  %7014 = vmatprep.subr.msk.bf16.mxu0 %vm1203_vm2, %v7197_v28  ;;  %v7201_v49 = vld [vmem:[%s8147_s9 + $0xa8] sm:$0xff]   ;;  %v7202_v50 = vld [vmem:[%s8147_s9 + $0xa0] sm:$0xff]   ;;  %v7203_v51 = vld [vmem:[%s8147_s9 + $0xb0] sm:$0xff]  }
  0xf9   : > { %v7204_v52 = vld [vmem:[%s8147_s9 + $0xa8] sm:$0xff]   ;;  %v7205_v53 = vld [vmem:[%s8147_s9 + $0xb8] sm:$0xff]   ;;  %v7206_v54 = vld [vmem:[%s8147_s9 + $0xb0] sm:$0xff]  }
  0xfa   : > { %6626 = vmatpush3.bf16.msra.mxu1 %v2536_v8  ;;  %6494 = vmatpush3.bf16.msra.mxu0 %v3867_v31  ;;  %v7207_v55 = vld [vmem:[%s8147_s9 + $0xc0] sm:$0xff]   ;;  %v7208_v56 = vld [vmem:[%s8147_s9 + $0xb8] sm:$0xff]   ;;  %v7209_v57 = vld [vmem:[%s8147_s9 + $0xc8] sm:$0xff]  }
  0xfb   : > { %v7210_v58 = vld [vmem:[%s8147_s9 + $0xc0] sm:$0xff]   ;;  %v7211_v59 = vld [vmem:[%s8147_s9 + $0xd0] sm:$0xff]   ;;  %v7212_v60 = vld [vmem:[%s8147_s9 + $0xc8] sm:$0xff]  }
  0xfc   : > { %v7213_v61 = vld [vmem:[%s8147_s9 + $0xd8] sm:$0xff]   ;;  %v7214_v62 = vld [vmem:[%s8147_s9 + $0xd0] sm:$0xff]   ;;  %v7215_v63 = vld [vmem:[%s8147_s9 + $0xe0] sm:$0xff]  }
  0xfd   : > { %6236 = vmatmul.mubr.msk.bf16.gmra.mrb[4].mxu1 %vm1010_vm1, %v7167_v14  ;;  %6368 = vmatmul.mubr.msk.bf16.gmra.mrb[4].mxu0 %vm1010_vm1, %v7168_v15  ;;  %v7216_v0 = vld [vmem:[%s8147_s9 + $0xd8] sm:$0xff]   ;;  %v7217_v1 = vld [vmem:[%s8147_s9 + $0xe8] sm:$0xff]   ;;  %v7218_v2 = vld [vmem:[%s8147_s9 + $0xe0] sm:$0xff]  }
  0xfe   : > { %6239 = vmatprep.mubr.msk.bf16.mxu1 %vm1010_vm1, %v7169_v16  ;;  %6371 = vmatprep.mubr.msk.bf16.mxu0 %vm1010_vm1, %v7170_v17  ;;  %v7219_v3 = vld [vmem:[%s8147_s9 + $0xf0] sm:$0xff]   ;;  %v7220_v4 = vld [vmem:[%s8147_s9 + $0xe8] sm:$0xff]   ;;  %v7221_v5 = vld [vmem:[%s8147_s9 + $0xf8] sm:$0xff]  }
  0xff   : > { %v7222_v6 = vld [vmem:[%s8147_s9 + $0xf0] sm:$0xff]   ;;  %v7223_v7 = vld [vmem:[%s8147_s9 + $0x100] sm:$0xff]   ;;  %v7224_v8 = vld [vmem:[%s8147_s9 + $0xf8] sm:$0xff]  }
 0x100   : > { %v7225_v9 = vld [vmem:[%s8147_s9 + $0x108] sm:$0xff]   ;;  %v7226_v10 = vld [vmem:[%s8147_s9 + $0x100] sm:$0xff]   ;;  %v7230_v14 = vld [vmem:[%s8147_s9 + $0x110] sm:$0xff]  }
 0x101   : > { %v7227_v11 = vld [vmem:[%s8147_s9 + $0x20] sm:$0xff]   ;;  %v7228_v12 = vld [vmem:[%s8147_s9 + $0x108] sm:$0xff]   ;;  %v7231_v15 = vld [vmem:[%s8147_s9 + $0x30] sm:$0xff]  }
 0x102   : > { %v7229_v13 = vld [vmem:[%s8147_s9 + $0x28] sm:$0xff]   ;;  %v7232_v16 = vld [vmem:[%s8147_s9 + $0x118] sm:$0xff]   ;;  %v7247_v31 = vld [vmem:[%s8147_s9 + $0x70] sm:$0xff]  }
 0x103   : > { %v7233_v17 = vld [vmem:[%s8147_s9 + $0x38] sm:$0xff]   ;;  %v7244_v28 = vld [vmem:[%s8147_s9 + $0x148] sm:$0xff]  }
 0x105   : > { %6240 = vmatmul.mubr.msk.bf16.gmra.mrb[8].mxu1 %vm1010_vm1, %v7171_v18  ;;  %6372 = vmatmul.mubr.msk.bf16.gmra.mrb[8].mxu0 %vm1010_vm1, %v7172_v19  ;;  %v7234_v18 = vld [vmem:[%s8147_s9 + $0x120] sm:$0xff]  }
 0x106   : > { %6243 = vmatprep.mubr.msk.bf16.mxu1 %vm1010_vm1, %v7173_v20  ;;  %6375 = vmatprep.mubr.msk.bf16.mxu0 %vm1010_vm1, %v7174_v21  ;;  %v7235_v19 = vld [vmem:[%s8147_s9 + $0x40] sm:$0xff]   ;;  %v7236_v20 = vld [vmem:[%s8147_s9 + $0x128] sm:$0xff]  }
 0x107   : > { %v7237_v21 = vld [vmem:[%s8147_s9 + $0x48] sm:$0xff]  }
 0x10d   : > { %6244 = vmatmul.mubr.msk.bf16.gmra.mrb[12].mxu1 %vm1010_vm1, %v7175_v22  ;;  %6376 = vmatmul.mubr.msk.bf16.gmra.mrb[12].mxu0 %vm1010_vm1, %v7176_v23  ;;  %v7238_v22 = vld [vmem:[%s8147_s9 + $0x130] sm:$0xff]  }
 0x10e   : > { %6247 = vmatprep.mubr.msk.bf16.mxu1 %vm1010_vm1, %v7177_v24  ;;  %6379 = vmatprep.mubr.msk.bf16.mxu0 %vm1010_vm1, %v7178_v25  ;;  %v7239_v23 = vld [vmem:[%s8147_s9 + $0x50] sm:$0xff]   ;;  %v7240_v24 = vld [vmem:[%s8147_s9 + $0x138] sm:$0xff]  }
 0x10f   : > { %v7241_v25 = vld [vmem:[%s8147_s9 + $0x58] sm:$0xff]  }
 0x115   : > { %6248 = vmatmul.mubr.msk.bf16.gmra.mrb[16].mxu1 %vm1010_vm1, %v7179_v26  ;;  %6380 = vmatmul.mubr.msk.bf16.gmra.mrb[16].mxu0 %vm1010_vm1, %v7180_v27  ;;  %v7242_v26 = vld [vmem:[%s8147_s9 + $0x140] sm:$0xff]  }
 0x116   : > { %6251 = vmatprep.mubr.msk.bf16.mxu1 %vm1010_vm1, %v7181_v29  ;;  %6383 = vmatprep.mubr.msk.bf16.mxu0 %vm1010_vm1, %v7182_v30  ;;  %v7243_v27 = vld [vmem:[%s8147_s9 + $0x60] sm:$0xff]   ;;  %v7245_v29 = vld [vmem:[%s8147_s9 + $0x68] sm:$0xff]   ;;  %v7246_v30 = vld [vmem:[%s8147_s9 + $0x150] sm:$0xff]  }
 0x11d   : > { %6252 = vmatmul.mubr.msk.bf16.gmra.mrb[20].mxu1 %vm1010_vm1, %v7183_v32  ;;  %6384 = vmatmul.mubr.msk.bf16.gmra.mrb[20].mxu0 %vm1010_vm1, %v7184_v33  ;;  %v7248_v32 = vld [vmem:[%s8147_s9 + $0x158] sm:$0xff]  }
 0x11e   : > { %6255 = vmatprep.mubr.msk.bf16.mxu1 %vm1010_vm1, %v7185_v34  ;;  %6387 = vmatprep.mubr.msk.bf16.mxu0 %vm1010_vm1, %v7186_v35  ;;  %v7249_v33 = vld [vmem:[%s8147_s9 + $0x78] sm:$0xff]   ;;  %v7250_v34 = vld [vmem:[%s8147_s9 + $0x160] sm:$0xff]  }
 0x11f   : > { %v7251_v35 = vld [vmem:[%s8147_s9 + $0x80] sm:$0xff]  }
 0x125   : > { %6256 = vmatmul.mubr.msk.bf16.gmra.mrb[24].mxu1 %vm1010_vm1, %v7187_v36  ;;  %6388 = vmatmul.mubr.msk.bf16.gmra.mrb[24].mxu0 %vm1010_vm1, %v7188_v37  ;;  %v7252_v36 = vld [vmem:[%s8147_s9 + $0x168] sm:$0xff]  }
 0x126   : > { %6259 = vmatprep.mubr.msk.bf16.mxu1 %vm1010_vm1, %v7189_v38  ;;  %6391 = vmatprep.mubr.msk.bf16.mxu0 %vm1010_vm1, %v7190_v39  ;;  %v7253_v37 = vld [vmem:[%s8147_s9 + $0x88] sm:$0xff]   ;;  %v7254_v38 = vld [vmem:[%s8147_s9 + $0x170] sm:$0xff]  }
 0x127   : > { %v7255_v39 = vld [vmem:[%s8147_s9 + $0x90] sm:$0xff]  }
 0x12d   : > { %6260 = vmatmul.mubr.msk.bf16.gmra.mrb[28].mxu1 %vm1010_vm1, %v7191_v40  ;;  %6392 = vmatmul.mubr.msk.bf16.gmra.mrb[28].mxu0 %vm1010_vm1, %v7192_v41  ;;  %v7256_v40 = vld [vmem:[%s8147_s9 + $0x178] sm:$0xff]  }
 0x12e   : > { %6263 = vmatprep.mubr.msk.bf16.mxu1 %vm1010_vm1, %v7193_v42  ;;  %6395 = vmatprep.mubr.msk.bf16.mxu0 %vm1010_vm1, %v7194_v43  ;;  %v7257_v41 = vld [vmem:[%s8147_s9 + $0x98] sm:$0xff]   ;;  %v7258_v42 = vld [vmem:[%s8147_s9 + $0x180] sm:$0xff]  }
 0x12f   : > { %v7259_v43 = vld [vmem:[%s8147_s9 + $0xa0] sm:$0xff]  }
 0x135   : > { %6264 = vmatmul.mubr.msk.bf16.gmra.mrb[32].mxu1 %vm1010_vm1, %v7195_v44  ;;  %6396 = vmatmul.mubr.msk.bf16.gmra.mrb[32].mxu0 %vm1010_vm1, %v7196_v45  ;;  %v7260_v44 = vld [vmem:[%s8147_s9 + $0x188] sm:$0xff]  }
 0x136   : > { %6267 = vmatprep.mubr.msk.bf16.mxu1 %vm1010_vm1, %v7198_v46  ;;  %6399 = vmatprep.mubr.msk.bf16.mxu0 %vm1010_vm1, %v7199_v47  ;;  %v7261_v45 = vld [vmem:[%s8147_s9 + $0xa8] sm:$0xff]   ;;  %v7262_v46 = vld [vmem:[%s8147_s9 + $0x190] sm:$0xff]  }
 0x137   : > { %v7263_v47 = vld [vmem:[%s8147_s9 + $0xb0] sm:$0xff]  }
 0x13d   : > { %6268 = vmatmul.mubr.msk.bf16.gmra.mrb[36].mxu1 %vm1010_vm1, %v7200_v48  ;;  %6400 = vmatmul.mubr.msk.bf16.gmra.mrb[36].mxu0 %vm1010_vm1, %v7201_v49  ;;  %v7264_v48 = vld [vmem:[%s8147_s9 + $0x198] sm:$0xff]  }
 0x13e   : > { %6271 = vmatprep.mubr.msk.bf16.mxu1 %vm1010_vm1, %v7202_v50  ;;  %6403 = vmatprep.mubr.msk.bf16.mxu0 %vm1010_vm1, %v7203_v51  ;;  %v7265_v49 = vld [vmem:[%s8147_s9 + $0xb8] sm:$0xff]   ;;  %v7266_v50 = vld [vmem:[%s8147_s9 + $0x1a0] sm:$0xff]  }
 0x13f   : > { %v7267_v51 = vld [vmem:[%s8147_s9 + $0xc0] sm:$0xff]  }
 0x145   : > { %6272 = vmatmul.mubr.msk.bf16.gmra.mrb[40].mxu1 %vm1010_vm1, %v7204_v52  ;;  %6404 = vmatmul.mubr.msk.bf16.gmra.mrb[40].mxu0 %vm1010_vm1, %v7205_v53  ;;  %v7268_v52 = vld [vmem:[%s8147_s9 + $0x1a8] sm:$0xff]  }
 0x146   : > { %6275 = vmatprep.mubr.msk.bf16.mxu1 %vm1010_vm1, %v7206_v54  ;;  %6407 = vmatprep.mubr.msk.bf16.mxu0 %vm1010_vm1, %v7207_v55  ;;  %v7269_v53 = vld [vmem:[%s8147_s9 + $0xc8] sm:$0xff]   ;;  %v7270_v54 = vld [vmem:[%s8147_s9 + $0x1b0] sm:$0xff]  }
 0x147   : > { %v7271_v55 = vld [vmem:[%s8147_s9 + $0xd0] sm:$0xff]  }
 0x14d   : > { %6276 = vmatmul.mubr.msk.bf16.gmra.mrb[44].mxu1 %vm1010_vm1, %v7208_v56  ;;  %6408 = vmatmul.mubr.msk.bf16.gmra.mrb[44].mxu0 %vm1010_vm1, %v7209_v57 }
 0x14e   : > { %6279 = vmatprep.mubr.msk.bf16.mxu1 %vm1010_vm1, %v7210_v58  ;;  %6411 = vmatprep.mubr.msk.bf16.mxu0 %vm1010_vm1, %v7211_v59  ;;  %v7272_v58 = vld [vmem:[%s8147_s9 + $0x1b8] sm:$0xff]  }
 0x155   : > { %6280 = vmatmul.mubr.msk.bf16.gmra.mrb[48].mxu1 %vm1010_vm1, %v7212_v60  ;;  %6412 = vmatmul.mubr.msk.bf16.gmra.mrb[48].mxu0 %vm1010_vm1, %v7213_v61  ;;  %v7273_v60 = vld [vmem:[%s8147_s9 + $0xd8] sm:$0xff]   ;;  %v7274_v61 = vld [vmem:[%s8147_s9 + $0x1c0] sm:$0xff]  }
 0x156   : > { %6283 = vmatprep.mubr.msk.bf16.mxu1 %vm1010_vm1, %v7214_v62  ;;  %6415 = vmatprep.mubr.msk.bf16.mxu0 %vm1010_vm1, %v7215_v63  ;;  %v7275_v63 = vld [vmem:[%s8147_s9 + $0xe0] sm:$0xff]  }
 0x15d   : > { %6284 = vmatmul.mubr.msk.bf16.gmra.mrb[52].mxu1 %vm1010_vm1, %v7216_v0  ;;  %6416 = vmatmul.mubr.msk.bf16.gmra.mrb[52].mxu0 %vm1010_vm1, %v7217_v1 }
 0x15e   : > { %6287 = vmatprep.mubr.msk.bf16.mxu1 %vm1010_vm1, %v7218_v2  ;;  %6419 = vmatprep.mubr.msk.bf16.mxu0 %vm1010_vm1, %v7219_v3  ;;  %v7276_v2 = vld [vmem:[%s8147_s9 + $0x1c8] sm:$0xff]  }
 0x165   : > { %6288 = vmatmul.mubr.msk.bf16.gmra.mrb[56].mxu1 %vm1010_vm1, %v7220_v4  ;;  %6420 = vmatmul.mubr.msk.bf16.gmra.mrb[56].mxu0 %vm1010_vm1, %v7221_v5  ;;  %v7277_v4 = vld [vmem:[%s8147_s9 + $0xe8] sm:$0xff]   ;;  %v7278_v5 = vld [vmem:[%s8147_s9 + $0x1d0] sm:$0xff]  }
 0x166   : > { %6291 = vmatprep.mubr.msk.bf16.mxu1 %vm1010_vm1, %v7222_v6  ;;  %6423 = vmatprep.mubr.msk.bf16.mxu0 %vm1010_vm1, %v7223_v7  ;;  %v7279_v7 = vld [vmem:[%s8147_s9 + $0xf0] sm:$0xff]  }
 0x16d   : > { %6292 = vmatmul.mubr.msk.bf16.gmra.mrb[60].mxu1 %vm1010_vm1, %v7224_v8  ;;  %6424 = vmatmul.mubr.msk.bf16.gmra.mrb[60].mxu0 %vm1010_vm1, %v7225_v9 }
 0x16e   : > { %6295 = vmatprep.mubr.msk.bf16.mxu1 %vm1010_vm1, %v7226_v10  ;;  %6495 = vmatprep.mubr.msk.bf16.mxu0 %vm1010_vm1, %v7227_v11  ;;  %v7280_v10 = vld [vmem:[%s8147_s9 + $0x1d8] sm:$0xff]  }
 0x175   : > { %6296 = vmatmul.mubr.msk.bf16.gmra.mrb[64].mxu1 %vm1010_vm1, %v7228_v12  ;;  %6496 = vmatmul.mubr.msk.bf16.vlgmr.msra.gmra.mrb[0].mxu0 %vm1010_vm1, %v7229_v13  ;;  %v7281_v12 = vld [vmem:[%s8147_s9 + $0xf8] sm:$0xff]   ;;  %v7282_v13 = vld [vmem:[%s8147_s9 + $0x1e0] sm:$0xff]  }
 0x176   : > { %6299 = vmatprep.mubr.msk.bf16.mxu1 %vm1010_vm1, %v7230_v14  ;;  %6499 = vmatprep.mubr.msk.bf16.mxu0 %vm1010_vm1, %v7231_v15  ;;  %v7283_v15 = vld [vmem:[%s8147_s9 + $0x100] sm:$0xff]  }
 0x17d   : > { %6300 = vmatmul.mubr.msk.bf16.gmra.mrb[68].mxu1 %vm1010_vm1, %v7232_v16  ;;  %6500 = vmatmul.mubr.msk.bf16.gmra.mrb[4].mxu0 %vm1010_vm1, %v7233_v17 }
 0x17e   : > { %6303 = vmatprep.mubr.msk.bf16.mxu1 %vm1010_vm1, %v7234_v18  ;;  %6503 = vmatprep.mubr.msk.bf16.mxu0 %vm1010_vm1, %v7235_v19  ;;  %v7284_v18 = vld [vmem:[%s8147_s9 + $0x1e8] sm:$0xff]  }
 0x185   : > { %6304 = vmatmul.mubr.msk.bf16.gmra.mrb[72].mxu1 %vm1010_vm1, %v7236_v20  ;;  %6504 = vmatmul.mubr.msk.bf16.gmra.mrb[8].mxu0 %vm1010_vm1, %v7237_v21  ;;  %v7285_v20 = vld [vmem:[%s8147_s9 + $0x108] sm:$0xff]   ;;  %v7286_v21 = vld [vmem:[%s8147_s9 + $0x1f0] sm:$0xff]  }
 0x186   : > { %6307 = vmatprep.mubr.msk.bf16.mxu1 %vm1010_vm1, %v7238_v22  ;;  %6507 = vmatprep.mubr.msk.bf16.mxu0 %vm1010_vm1, %v7239_v23  ;;  %v7287_v23 = vld [vmem:[%s8147_s9 + $0x110] sm:$0xff]  }
 0x18d   : > { %6308 = vmatmul.mubr.msk.bf16.gmra.mrb[76].mxu1 %vm1010_vm1, %v7240_v24  ;;  %6508 = vmatmul.mubr.msk.bf16.gmra.mrb[12].mxu0 %vm1010_vm1, %v7241_v25 }
 0x18e   : > { %6311 = vmatprep.mubr.msk.bf16.mxu1 %vm1010_vm1, %v7242_v26  ;;  %6511 = vmatprep.mubr.msk.bf16.mxu0 %vm1010_vm1, %v7243_v27  ;;  %v7288_v26 = vld [vmem:[%s8147_s9 + $0x1f8] sm:$0xff]  }
 0x195   : > { %6312 = vmatmul.mubr.msk.bf16.gmra.mrb[80].mxu1 %vm1010_vm1, %v7244_v28  ;;  %6512 = vmatmul.mubr.msk.bf16.gmra.mrb[16].mxu0 %vm1010_vm1, %v7245_v29  ;;  %v7289_v28 = vld [vmem:[%s8147_s9 + $0x118] sm:$0xff]   ;;  %v7290_v29 = vld [vmem:[%s8147_s9 + $0x110] sm:$0xff]  }
 0x196   : > { %6315 = vmatprep.mubr.msk.bf16.mxu1 %vm1010_vm1, %v7246_v30  ;;  %6515 = vmatprep.mubr.msk.bf16.mxu0 %vm1010_vm1, %v7247_v31  ;;  %v7291_v31 = vld [vmem:[%s8147_s9 + $0x120] sm:$0xff]  }
 0x19d   : > { %6316 = vmatmul.mubr.msk.bf16.gmra.mrb[84].mxu1 %vm1010_vm1, %v7248_v32  ;;  %6516 = vmatmul.mubr.msk.bf16.gmra.mrb[20].mxu0 %vm1010_vm1, %v7249_v33 }
 0x19e   : > { %6319 = vmatprep.mubr.msk.bf16.mxu1 %vm1010_vm1, %v7250_v34  ;;  %6519 = vmatprep.mubr.msk.bf16.mxu0 %vm1010_vm1, %v7251_v35  ;;  %v7292_v34 = vld [vmem:[%s8147_s9 + $0x118] sm:$0xff]  }
 0x1a5   : > { %6320 = vmatmul.mubr.msk.bf16.gmra.mrb[88].mxu1 %vm1010_vm1, %v7252_v36  ;;  %6520 = vmatmul.mubr.msk.bf16.gmra.mrb[24].mxu0 %vm1010_vm1, %v7253_v37  ;;  %v7293_v36 = vld [vmem:[%s8147_s9 + $0x128] sm:$0xff]   ;;  %v7294_v37 = vld [vmem:[%s8147_s9 + $0x120] sm:$0xff]  }
 0x1a6   : > { %6323 = vmatprep.mubr.msk.bf16.mxu1 %vm1010_vm1, %v7254_v38  ;;  %6523 = vmatprep.mubr.msk.bf16.mxu0 %vm1010_vm1, %v7255_v39  ;;  %v7295_v39 = vld [vmem:[%s8147_s9 + $0x130] sm:$0xff]  }
 0x1ad   : > { %6324 = vmatmul.mubr.msk.bf16.gmra.mrb[92].mxu1 %vm1010_vm1, %v7256_v40  ;;  %6524 = vmatmul.mubr.msk.bf16.gmra.mrb[28].mxu0 %vm1010_vm1, %v7257_v41 }
 0x1ae   : > { %6327 = vmatprep.mubr.msk.bf16.mxu1 %vm1010_vm1, %v7258_v42  ;;  %6527 = vmatprep.mubr.msk.bf16.mxu0 %vm1010_vm1, %v7259_v43  ;;  %v7296_v42 = vld [vmem:[%s8147_s9 + $0x128] sm:$0xff]  }
 0x1b5   : > { %6328 = vmatmul.mubr.msk.bf16.gmra.mrb[96].mxu1 %vm1010_vm1, %v7260_v44  ;;  %6528 = vmatmul.mubr.msk.bf16.gmra.mrb[32].mxu0 %vm1010_vm1, %v7261_v45  ;;  %v7297_v44 = vld [vmem:[%s8147_s9 + $0x138] sm:$0xff]   ;;  %v7298_v45 = vld [vmem:[%s8147_s9 + $0x130] sm:$0xff]  }
 0x1b6   : > { %6331 = vmatprep.mubr.msk.bf16.mxu1 %vm1010_vm1, %v7262_v46  ;;  %6531 = vmatprep.mubr.msk.bf16.mxu0 %vm1010_vm1, %v7263_v47  ;;  %v7299_v47 = vld [vmem:[%s8147_s9 + $0x140] sm:$0xff]  }
 0x1bd   : > { %6332 = vmatmul.mubr.msk.bf16.gmra.mrb[100].mxu1 %vm1010_vm1, %v7264_v48  ;;  %6532 = vmatmul.mubr.msk.bf16.gmra.mrb[36].mxu0 %vm1010_vm1, %v7265_v49 }
 0x1be   : > { %6335 = vmatprep.mubr.msk.bf16.mxu1 %vm1010_vm1, %v7266_v50  ;;  %6535 = vmatprep.mubr.msk.bf16.mxu0 %vm1010_vm1, %v7267_v51  ;;  %v7300_v50 = vld [vmem:[%s8147_s9 + $0x138] sm:$0xff]  }
 0x1c5   : > { %6336 = vmatmul.mubr.msk.bf16.gmra.mrb[104].mxu1 %vm1010_vm1, %v7268_v52  ;;  %6536 = vmatmul.mubr.msk.bf16.gmra.mrb[40].mxu0 %vm1010_vm1, %v7269_v53  ;;  %v7301_v52 = vld [vmem:[%s8147_s9 + $0x148] sm:$0xff]   ;;  %v7302_v53 = vld [vmem:[%s8147_s9 + $0x140] sm:$0xff]  }
 0x1c6   : > { %6339 = vmatprep.mubr.msk.bf16.mxu1 %vm1010_vm1, %v7270_v54  ;;  %6539 = vmatprep.mubr.msk.bf16.mxu0 %vm1010_vm1, %v7271_v55  ;;  %v7303_v55 = vld [vmem:[%s8147_s9 + $0x150] sm:$0xff]  }
 0x1c8   : > { %v8659_v56 = vpop.f32.mrb[0].mxu1 }
 0x1c9   : > { %v8661_v57 = vpop.f32.mrb[1].mxu1 }
 0x1ca   : > { %v8664_v59 = vpop.f32.mrb[2].mxu1 }
 0x1cb   : > { %v8668_v62 = vpop.f32.mrb[3].mxu1 }
 0x1cd   : > { %6340 = vmatmul.mubr.msk.bf16.gmra.mrb[108].mxu1 %vm1010_vm1, %v7272_v58  ;;  %6540 = vmatmul.mubr.msk.bf16.gmra.mrb[44].mxu0 %vm1010_vm1, %v7273_v60 }
 0x1ce   : > { %6343 = vmatprep.mubr.msk.bf16.mxu1 %vm1010_vm1, %v7274_v61  ;;  %6543 = vmatprep.mubr.msk.bf16.mxu0 %vm1010_vm1, %v7275_v63  ;;  %v7304_v61 = vld [vmem:[%s8147_s9 + $0x148] sm:$0xff]  }
 0x1d0   : > { %v8675_v0 = vpop.f32.mrb[4].mxu1 }
 0x1d1   : > { %v8677_v1 = vpop.f32.mrb[5].mxu1 }
 0x1d2   : > { %v8680_v3 = vpop.f32.mrb[6].mxu1 }
 0x1d3   : > { %v8684_v6 = vpop.f32.mrb[7].mxu1 }
 0x1d5   : > { %6344 = vmatmul.mubr.msk.bf16.gmra.mrb[112].mxu1 %vm1010_vm1, %v7276_v2  ;;  %6544 = vmatmul.mubr.msk.bf16.gmra.mrb[48].mxu0 %vm1010_vm1, %v7277_v4  ;;  %v7305_v2 = vld [vmem:[%s8147_s9 + $0x158] sm:$0xff]   ;;  %v7306_v4 = vld [vmem:[%s8147_s9 + $0x150] sm:$0xff]  }
 0x1d6   : > { %6347 = vmatprep.mubr.msk.bf16.mxu1 %vm1010_vm1, %v7278_v5  ;;  %6547 = vmatprep.mubr.msk.bf16.mxu0 %vm1010_vm1, %v7279_v7  ;;  %v7307_v7 = vld [vmem:[%s8147_s9 + $0x160] sm:$0xff]  }
 0x1d8   : > { %v8691_v8 = vpop.f32.mrb[8].mxu1 }
 0x1d9   : > { %v8693_v9 = vpop.f32.mrb[9].mxu1 }
 0x1da   : > { %v8696_v11 = vpop.f32.mrb[10].mxu1 }
 0x1db   : > { %v8700_v14 = vpop.f32.mrb[11].mxu1 }
 0x1dd   : > { %6348 = vmatmul.mubr.msk.bf16.gmra.mrb[116].mxu1 %vm1010_vm1, %v7280_v10  ;;  %6548 = vmatmul.mubr.msk.bf16.gmra.mrb[52].mxu0 %vm1010_vm1, %v7281_v12 }
 0x1de   : > { %6351 = vmatprep.mubr.msk.bf16.mxu1 %vm1010_vm1, %v7282_v13  ;;  %6551 = vmatprep.mubr.msk.bf16.mxu0 %vm1010_vm1, %v7283_v15  ;;  %v7308_v13 = vld [vmem:[%s8147_s9 + $0x158] sm:$0xff]  }
 0x1e0   : > { %v8707_v16 = vpop.f32.mrb[12].mxu1 }
 0x1e1   : > { %v8709_v17 = vpop.f32.mrb[13].mxu1 }
 0x1e2   : > { %v8712_v19 = vpop.f32.mrb[14].mxu1 }
 0x1e3   : > { %v8716_v22 = vpop.f32.mrb[15].mxu1 }
 0x1e5   : > { %6352 = vmatmul.mubr.msk.bf16.gmra.mrb[120].mxu1 %vm1010_vm1, %v7284_v18  ;;  %6552 = vmatmul.mubr.msk.bf16.gmra.mrb[56].mxu0 %vm1010_vm1, %v7285_v20  ;;  %v7309_v18 = vld [vmem:[%s8147_s9 + $0x168] sm:$0xff]   ;;  %v7310_v20 = vld [vmem:[%s8147_s9 + $0x160] sm:$0xff]  }
 0x1e6   : > { %6355 = vmatprep.mubr.msk.bf16.mxu1 %vm1010_vm1, %v7286_v21  ;;  %6555 = vmatprep.mubr.msk.bf16.mxu0 %vm1010_vm1, %v7287_v23  ;;  %v7311_v23 = vld [vmem:[%s8147_s9 + $0x170] sm:$0xff]  }
 0x1e8   : > { %v8723_v24 = vpop.f32.mrb[16].mxu1 }
 0x1e9   : > { %v8725_v25 = vpop.f32.mrb[17].mxu1 }
 0x1ea   : > { %v8728_v27 = vpop.f32.mrb[18].mxu1 }
 0x1eb   : > { %v8732_v30 = vpop.f32.mrb[19].mxu1 }
 0x1ed   : > { %6356 = vmatmul.mubr.msk.bf16.gmra.mrb[124].mxu1 %vm1010_vm1, %v7288_v26  ;;  %6556 = vmatmul.mubr.msk.bf16.gmra.mrb[60].mxu0 %vm1010_vm1, %v7289_v28 }
 0x1ee   : > { %6427 = vmatprep.mubr.msk.bf16.mxu1 %vm1010_vm1, %v7290_v29  ;;  %6559 = vmatprep.mubr.msk.bf16.mxu0 %vm1010_vm1, %v7291_v31  ;;  %v7312_v29 = vld [vmem:[%s8147_s9 + $0x168] sm:$0xff]  }
 0x1f0   : > { %v8739_v32 = vpop.f32.mrb[20].mxu1 }
 0x1f1   : > { %v8741_v33 = vpop.f32.mrb[21].mxu1 }
 0x1f2   : > { %v8744_v35 = vpop.f32.mrb[22].mxu1 }
 0x1f3   : > { %v8748_v38 = vpop.f32.mrb[23].mxu1 }
 0x1f5   : > { %6428 = vmatmul.mubr.msk.bf16.vlgmr.msra.gmra.mrb[64].mxu1 %vm1010_vm1, %v7292_v34  ;;  %6560 = vmatmul.mubr.msk.bf16.gmra.mrb[64].mxu0 %vm1010_vm1, %v7293_v36  ;;  %v7313_v34 = vld [vmem:[%s8147_s9 + $0x178] sm:$0xff]   ;;  %v7314_v36 = vld [vmem:[%s8147_s9 + $0x170] sm:$0xff]  }
 0x1f6   : > { %6431 = vmatprep.mubr.msk.bf16.mxu1 %vm1010_vm1, %v7294_v37  ;;  %6563 = vmatprep.mubr.msk.bf16.mxu0 %vm1010_vm1, %v7295_v39  ;;  %v7315_v39 = vld [vmem:[%s8147_s9 + $0x180] sm:$0xff]  }
 0x1f8   : > { %v8755_v40 = vpop.f32.mrb[24].mxu1 }
 0x1f9   : > { %v8757_v41 = vpop.f32.mrb[25].mxu1 }
 0x1fa   : > { %v8760_v43 = vpop.f32.mrb[26].mxu1 }
 0x1fb   : > { %v8764_v46 = vpop.f32.mrb[27].mxu1 }
 0x1fd   : > { %6432 = vmatmul.mubr.msk.bf16.gmra.mrb[68].mxu1 %vm1010_vm1, %v7296_v42  ;;  %6564 = vmatmul.mubr.msk.bf16.gmra.mrb[68].mxu0 %vm1010_vm1, %v7297_v44 }
 0x1fe   : > { %6435 = vmatprep.mubr.msk.bf16.mxu1 %vm1010_vm1, %v7298_v45  ;;  %6567 = vmatprep.mubr.msk.bf16.mxu0 %vm1010_vm1, %v7299_v47  ;;  %v7316_v45 = vld [vmem:[%s8147_s9 + $0x178] sm:$0xff]  }
 0x200   : > { %v8771_v48 = vpop.f32.mrb[28].mxu1 }
 0x201   : > { %v8773_v49 = vpop.f32.mrb[29].mxu1 }
 0x202   : > { %v8776_v51 = vpop.f32.mrb[30].mxu1 }
 0x203   : > { %v8780_v54 = vpop.f32.mrb[31].mxu1 }
 0x205   : > { %6436 = vmatmul.mubr.msk.bf16.gmra.mrb[72].mxu1 %vm1010_vm1, %v7300_v50  ;;  %6568 = vmatmul.mubr.msk.bf16.gmra.mrb[72].mxu0 %vm1010_vm1, %v7301_v52  ;;  %v7317_v50 = vld [vmem:[%s8147_s9 + $0x188] sm:$0xff]   ;;  %v7318_v52 = vld [vmem:[%s8147_s9 + $0x180] sm:$0xff]  }
 0x206   : > { %6439 = vmatprep.mubr.msk.bf16.mxu1 %vm1010_vm1, %v7302_v53  ;;  %6571 = vmatprep.mubr.msk.bf16.mxu0 %vm1010_vm1, %v7303_v55  ;;  %v7319_v55 = vld [vmem:[%s8147_s9 + $0x190] sm:$0xff]  }
 0x208   : > { %v8787_v58 = vpop.f32.mrb[32].mxu1 }
 0x209   : > { %v8789_v60 = vpop.f32.mrb[33].mxu1 }
 0x20a   : > { %v8792_v63 = vpop.f32.mrb[34].mxu1 }
 0x20b   : > { %v8796_v5 = vpop.f32.mrb[35].mxu1 }
 0x20d   : > { %6440 = vmatmul.mubr.msk.bf16.gmra.mrb[76].mxu1 %vm1010_vm1, %v7304_v61  ;;  %6572 = vmatmul.mubr.msk.bf16.gmra.mrb[76].mxu0 %vm1010_vm1, %v7305_v2 }
 0x20e   : > { %6443 = vmatprep.mubr.msk.bf16.mxu1 %vm1010_vm1, %v7306_v4  ;;  %6575 = vmatprep.mubr.msk.bf16.mxu0 %vm1010_vm1, %v7307_v7  ;;  %v7320_v4 = vld [vmem:[%s8147_s9 + $0x188] sm:$0xff]  }
 0x210   : > { %v8803_v10 = vpop.f32.mrb[36].mxu1 }
 0x211   : > { %v8805_v12 = vpop.f32.mrb[37].mxu1 }
 0x212   : > { %v8808_v15 = vpop.f32.mrb[38].mxu1 }
 0x213   : > { %v8812_v21 = vpop.f32.mrb[39].mxu1 }
 0x215   : > { %6444 = vmatmul.mubr.msk.bf16.gmra.mrb[80].mxu1 %vm1010_vm1, %v7308_v13  ;;  %6576 = vmatmul.mubr.msk.bf16.gmra.mrb[80].mxu0 %vm1010_vm1, %v7309_v18  ;;  %v7321_v13 = vld [vmem:[%s8147_s9 + $0x198] sm:$0xff]   ;;  %v7322_v18 = vld [vmem:[%s8147_s9 + $0x190] sm:$0xff]  }
 0x216   : > { %6447 = vmatprep.mubr.msk.bf16.mxu1 %vm1010_vm1, %v7310_v20  ;;  %6579 = vmatprep.mubr.msk.bf16.mxu0 %vm1010_vm1, %v7311_v23  ;;  %v7323_v23 = vld [vmem:[%s8147_s9 + $0x1a0] sm:$0xff]  }
 0x218   : > { %v8819_v26 = vpop.f32.mrb[40].mxu1 }
 0x219   : > { %v8821_v28 = vpop.f32.mrb[41].mxu1 }
 0x21a   : > { %v8824_v31 = vpop.f32.mrb[42].mxu1 }
 0x21b   : > { %v8828_v37 = vpop.f32.mrb[43].mxu1 }
 0x21d   : > { %6448 = vmatmul.mubr.msk.bf16.gmra.mrb[84].mxu1 %vm1010_vm1, %v7312_v29  ;;  %6580 = vmatmul.mubr.msk.bf16.gmra.mrb[84].mxu0 %vm1010_vm1, %v7313_v34 }
 0x21e   : > { %6451 = vmatprep.mubr.msk.bf16.mxu1 %vm1010_vm1, %v7314_v36  ;;  %6583 = vmatprep.mubr.msk.bf16.mxu0 %vm1010_vm1, %v7315_v39  ;;  %v7324_v36 = vld [vmem:[%s8147_s9 + $0x198] sm:$0xff]  }
 0x220   : > { %v8835_v42 = vpop.f32.mrb[44].mxu1 }
 0x221   : > { %v8837_v44 = vpop.f32.mrb[45].mxu1 }
 0x222   : > { %v8840_v47 = vpop.f32.mrb[46].mxu1 }
 0x223   : > { %9777 = vst [vmem:[#allocation20_spill] sm:$0xff] %v8840_v47  ;;  %v8844_v53 = vpop.f32.mrb[47].mxu1  ;;  %v7339_v47 = vld [vmem:[%s8147_s9 + $0x1e0] sm:$0xff]  }
 0x224   : > { %9778 = vst [vmem:[#allocation21_spill] sm:$0xff] %v8844_v53 }
 0x225   : > { %6452 = vmatmul.mubr.msk.bf16.gmra.mrb[88].mxu1 %vm1010_vm1, %v7316_v45  ;;  %6584 = vmatmul.mubr.msk.bf16.gmra.mrb[88].mxu0 %vm1010_vm1, %v7317_v50  ;;  %v7325_v45 = vld [vmem:[%s8147_s9 + $0x1a8] sm:$0xff]   ;;  %v7326_v50 = vld [vmem:[%s8147_s9 + $0x1a0] sm:$0xff]  }
 0x226   : > { %6455 = vmatprep.mubr.msk.bf16.mxu1 %vm1010_vm1, %v7318_v52  ;;  %6587 = vmatprep.mubr.msk.bf16.mxu0 %vm1010_vm1, %v7319_v55  ;;  %v7327_v55 = vld [vmem:[%s8147_s9 + $0x1b0] sm:$0xff]  }
 0x228   : > { %v8851_v61 = vpop.f32.mrb[48].mxu1 }
 0x229   : > { %9779 = vst [vmem:[#allocation22_spill] sm:$0xff] %v8851_v61  ;;  %v8853_v2 = vpop.f32.mrb[49].mxu1 }
 0x22a   : > { %9780 = vst [vmem:[#allocation23_spill] sm:$0xff] %v8853_v2  ;;  %v8856_v7 = vpop.f32.mrb[50].mxu1  ;;  %v7337_v2 = vld [vmem:[%s8147_s9 + $0x1d8] sm:$0xff]  }
 0x22b   : > { %9781 = vst [vmem:[#allocation24_spill] sm:$0xff] %v8856_v7  ;;  %v8860_v20 = vpop.f32.mrb[51].mxu1 }
 0x22c   : > { %9782 = vst [vmem:[#allocation25_spill] sm:$0xff] %v8860_v20 }
 0x22d   : > { %6456 = vmatmul.mubr.msk.bf16.gmra.mrb[92].mxu1 %vm1010_vm1, %v7320_v4  ;;  %6588 = vmatmul.mubr.msk.bf16.gmra.mrb[92].mxu0 %vm1010_vm1, %v7321_v13 }
 0x22e   : > { %6459 = vmatprep.mubr.msk.bf16.mxu1 %vm1010_vm1, %v7322_v18  ;;  %6591 = vmatprep.mubr.msk.bf16.mxu0 %vm1010_vm1, %v7323_v23  ;;  %v7328_v18 = vld [vmem:[%s8147_s9 + $0x1a8] sm:$0xff]  }
 0x230   : > { %v8867_v29 = vpop.f32.mrb[52].mxu1 }
 0x231   : > { %9783 = vst [vmem:[#allocation26_spill] sm:$0xff] %v8867_v29  ;;  %v8869_v34 = vpop.f32.mrb[53].mxu1  ;;  %v7335_v29 = vld [vmem:[%s8147_s9 + $0x1d0] sm:$0xff]  }
 0x232   : > { %9784 = vst [vmem:[#allocation27_spill] sm:$0xff] %v8869_v34  ;;  %v8872_v39 = vpop.f32.mrb[54].mxu1  ;;  %v7334_v34 = vld [vmem:[%s8147_s9 + $0x1c0] sm:$0xff]  }
 0x233   : > { %9785 = vst [vmem:[#allocation28_spill] sm:$0xff] %v8872_v39  ;;  %v8876_v52 = vpop.f32.mrb[55].mxu1  ;;  %v7330_v39 = vld [vmem:[%s8147_s9 + $0x1b0] sm:$0xff]  }
 0x234   : > { %9786 = vst [vmem:[#allocation29_spill] sm:$0xff] %v8876_v52  ;;  %v7329_v52 = vld [vmem:[%s8147_s9 + $0x1b8] sm:$0xff]  }
 0x235   : > { %6460 = vmatmul.mubr.msk.bf16.gmra.mrb[96].mxu1 %vm1010_vm1, %v7324_v36  ;;  %6592 = vmatmul.mubr.msk.bf16.gmra.mrb[96].mxu0 %vm1010_vm1, %v7325_v45  ;;  %v7331_v45 = vld [vmem:[%s8147_s9 + $0x1c0] sm:$0xff]  }
 0x236   : > { %6463 = vmatprep.mubr.msk.bf16.mxu1 %vm1010_vm1, %v7326_v50  ;;  %6595 = vmatprep.mubr.msk.bf16.mxu0 %vm1010_vm1, %v7327_v55 }
 0x238   : > { %v8883_v4 = vpop.f32.mrb[56].mxu1 }
 0x239   : > { %9787 = vst [vmem:[#allocation30_spill] sm:$0xff] %v8883_v4  ;;  %v8885_v13 = vpop.f32.mrb[57].mxu1  ;;  %v7333_v4 = vld [vmem:[%s8147_s9 + $0x1c8] sm:$0xff]  }
 0x23a   : > { %9788 = vst [vmem:[#allocation31_spill] sm:$0xff] %v8885_v13  ;;  %v8888_v23 = vpop.f32.mrb[58].mxu1  ;;  %v7332_v13 = vld [vmem:[%s8147_s9 + $0x1b8] sm:$0xff]  }
 0x23b   : > { %9789 = vst [vmem:[#allocation32_spill] sm:$0xff] %v8888_v23  ;;  %v8892_v36 = vpop.f32.mrb[59].mxu1 }
 0x23c   : > { %9790 = vst [vmem:[#allocation33_spill] sm:$0xff] %v8892_v36 }
 0x23d   : > { %6464 = vmatmul.mubr.msk.bf16.gmra.mrb[100].mxu1 %vm1010_vm1, %v7328_v18  ;;  %6596 = vmatmul.mubr.msk.bf16.gmra.mrb[100].mxu0 %vm1010_vm1, %v7329_v52  ;;  %v421_v18 = vld [vmem:[#allocation2 + $0x10] sm:$0xff]  ;;  %v422_v52 = vld [vmem:[#allocation2 + $0x18] sm:$0xff] }
 0x23e   : > { %6467 = vmatprep.mubr.msk.bf16.mxu1 %vm1010_vm1, %v7330_v39  ;;  %6599 = vmatprep.mubr.msk.bf16.mxu0 %vm1010_vm1, %v7331_v45  ;;  %v419_v39 = vld [vmem:[#allocation2] sm:$0xff]  ;;  %v1754_v45 = vadd.f32 %v8659_v56, %v421_v18 }
 0x240   : > { %v8899_v50 = vpop.f32.mrb[60].mxu1 }
 0x241   : > { %9791 = vst [vmem:[#allocation34_spill] sm:$0xff] %v8899_v50  ;;  %v8901_v55 = vpop.f32.mrb[61].mxu1  ;;  %v7336_v50 = vld [vmem:[%s8147_s9 + $0x1c8] sm:$0xff]  }
 0x242   : > { %9792 = vst [vmem:[#allocation35_spill] sm:$0xff] %v8901_v55  ;;  %v8904_v23 = vpop.f32.mrb[62].mxu1 }
 0x243   : > { %9793 = vst [vmem:[#allocation36_spill] sm:$0xff] %v8904_v23  ;;  %v8908_v36 = vpop.f32.mrb[63].mxu1  ;;  %v420_v23 = vld [vmem:[#allocation2 + $0x8] sm:$0xff] }
 0x244   : > { %9794 = vst [vmem:[#allocation37_spill] sm:$0xff] %v8908_v36  ;;  %v1752_v36 = vadd.f32 %v8661_v57, %v419_v39  ;;  %v425_v57 = vld [vmem:[#allocation2 + $0x30] sm:$0xff]  ;;  %v7342_v39 = vld [vmem:[%s8147_s9 + $0x1e0] sm:$0xff]  }
 0x245   : > { %6468 = vmatmul.mubr.msk.bf16.gmra.mrb[104].mxu1 %vm1010_vm1, %v7332_v13  ;;  %6600 = vmatmul.mubr.msk.bf16.gmra.mrb[104].mxu0 %vm1010_vm1, %v7333_v4  ;;  %v1755_v13 = vadd.f32 %v8664_v59, %v422_v52  ;;  %v7338_v4 = vld [vmem:[%s8147_s9 + $0x1d0] sm:$0xff]   ;;  %v423_v59 = vld [vmem:[#allocation2 + $0x20] sm:$0xff] }
 0x246   : > { %6471 = vmatprep.mubr.msk.bf16.mxu1 %vm1010_vm1, %v7334_v34  ;;  %6603 = vmatprep.mubr.msk.bf16.mxu0 %vm1010_vm1, %v7335_v29  ;;  %v1753_v34 = vadd.f32 %v8668_v62, %v420_v23  ;;  %v426_v62 = vld [vmem:[#allocation2 + $0x38] sm:$0xff] }
 0x247   : > { %v7340_v23 = vld [vmem:[%s8147_s9 + $0x1d8] sm:$0xff]  }
 0x248   : > { %v6497_v55 = vpop.f32.mrb[0].mxu0 }
 0x249   : > { %v6628_v20 = vadd.f32 %v6497_v55, %v1754_v45  ;;  %v3903_v7 = vpop.f32.mrb[1].mxu0 }
 0x24a   : > { %v6630_v61 = vadd.f32 %v3903_v7, %v1752_v36  ;;  %v6498_v53 = vpop.f32.mrb[2].mxu0  ;;  %v1756_v7 = vadd.f32 %v8677_v1, %v423_v59  ;;  %v1759_v36 = vadd.f32 %v8680_v3, %v426_v62  ;;  %v427_v3 = vld [vmem:[#allocation2 + $0x40] sm:$0xff]  ;;  %v7344_v59 = vld [vmem:[%s8147_s9 + $0x1e8] sm:$0xff]  }
 0x24b   : > { %4545 = vst.msk [vmem:[#allocation2 + $0x10] sm:$0xff] %vm4542_vm3, %v6628_v20  ;;  %v6632_v56 = vadd.f32 %v6498_v53, %v1755_v13  ;;  %v3906_v29 = vpop.f32.mrb[3].mxu0  ;;  %v1758_v53 = vadd.f32 %v8675_v0, %v425_v57  ;;  %v1760_v57 = vadd.f32 %v8693_v9, %v427_v3  ;;  %v7349_v3 = vld [vmem:[%s8147_s9 + $0x208] sm:$0xff]  }
 0x24c   : > { %4543 = vst.msk [vmem:[#allocation2] sm:$0xff] %vm4542_vm3, %v6630_v61  ;;  %v6634_v18 = vadd.f32 %v3906_v29, %v1753_v34  ;;  %v424_v61 = vld [vmem:[#allocation2 + $0x28] sm:$0xff]  ;;  %v429_v34 = vld [vmem:[#allocation2 + $0x50] sm:$0xff] }
 0x24d   : > { %6472 = vmatmul.mubr.msk.bf16.gmra.mrb[108].mxu1 %vm1010_vm1, %v7336_v50  ;;  %4546 = vst.msk [vmem:[#allocation2 + $0x18] sm:$0xff] %vm4542_vm3, %v6632_v56  ;;  %6604 = vmatmul.mubr.msk.bf16.gmra.mrb[108].mxu0 %vm1010_vm1, %v7337_v2  ;;  %v7341_v2 = vld [vmem:[%s8147_s9 + $0x1e8] sm:$0xff]   ;;  %v1757_v52 = vadd.f32 %v8684_v6, %v424_v61  ;;  %v430_v6 = vld [vmem:[#allocation2 + $0x58] sm:$0xff]  ;;  %v1762_v56 = vadd.f32 %v8691_v8, %v429_v34 }
 0x24e   : > { %6475 = vmatprep.mubr.msk.bf16.mxu1 %vm1010_vm1, %v7338_v4  ;;  %4544 = vst.msk [vmem:[#allocation2 + $0x8] sm:$0xff] %vm4542_vm3, %v6634_v18  ;;  %6607 = vmatprep.mubr.msk.bf16.mxu0 %vm1010_vm1, %v7339_v47  ;;  %v7343_v4 = vld [vmem:[%s8147_s9 + $0x1f0] sm:$0xff]   ;;  %v428_v29 = vld [vmem:[#allocation2 + $0x48] sm:$0xff]  ;;  %v1763_v62 = vadd.f32 %v8696_v11, %v430_v6  ;;  %v431_v11 = vld [vmem:[#allocation2 + $0x60] sm:$0xff] }
 0x24f   : > { %v7350_v6 = vld [vmem:[%s8147_s9 + $0x200] sm:$0xff]  }
 0x250   : > { %v6501_v20 = vpop.f32.mrb[4].mxu0 }
 0x251   : > { %v6636_v50 = vadd.f32 %v6501_v20, %v1758_v53  ;;  %v3919_v55 = vpop.f32.mrb[5].mxu0  ;;  %v7346_v20 = vld [vmem:[%s8147_s9 + $0x1f0] sm:$0xff]  }
 0x252   : > { %v6638_v45 = vadd.f32 %v3919_v55, %v1756_v7  ;;  %v6502_v13 = vpop.f32.mrb[6].mxu0  ;;  %v7345_v7 = vld [vmem:[%s8147_s9 + $0x1f8] sm:$0xff]   ;;  %v7347_v55 = vld [vmem:[%s8147_s9 + $0x200] sm:$0xff]  }
 0x253   : > { %4549 = vst.msk [vmem:[#allocation2 + $0x30] sm:$0xff] %vm4542_vm3, %v6636_v50  ;;  %v6640_v47 = vadd.f32 %v6502_v13, %v1759_v36  ;;  %v3922_v0 = vpop.f32.mrb[7].mxu0  ;;  %v1764_v13 = vadd.f32 %v8709_v17, %v431_v11 }
 0x254   : > { %4547 = vst.msk [vmem:[#allocation2 + $0x20] sm:$0xff] %vm4542_vm3, %v6638_v45  ;;  %v6642_v1 = vadd.f32 %v3922_v0, %v1757_v52  ;;  %v432_v45 = vld [vmem:[#allocation2 + $0x68] sm:$0xff] }
 0x255   : > { %6476 = vmatmul.mubr.msk.bf16.gmra.mrb[112].mxu1 %vm1010_vm1, %v7340_v23  ;;  %4550 = vst.msk [vmem:[#allocation2 + $0x38] sm:$0xff] %vm4542_vm3, %v6640_v47  ;;  %6608 = vmatmul.mubr.msk.bf16.gmra.mrb[112].mxu0 %vm1010_vm1, %v7341_v2  ;;  %v1761_v23 = vadd.f32 %v8700_v14, %v428_v29  ;;  %v434_v14 = vld [vmem:[#allocation2 + $0x78] sm:$0xff] }
 0x256   : > { %6479 = vmatprep.mubr.msk.bf16.mxu1 %vm1010_vm1, %v7342_v39  ;;  %4548 = vst.msk [vmem:[#allocation2 + $0x28] sm:$0xff] %vm4542_vm3, %v6642_v1  ;;  %6611 = vmatprep.mubr.msk.bf16.mxu0 %vm1010_vm1, %v7343_v4  ;;  %v433_v39 = vld [vmem:[#allocation2 + $0x70] sm:$0xff]  ;;  %v7348_v47 = vld [vmem:[%s8147_s9 + $0x1f8] sm:$0xff]   ;;  %v1767_v0 = vadd.f32 %v8712_v19, %v434_v14  ;;  %v435_v19 = vld [vmem:[#allocation2 + $0x80] sm:$0xff] }
 0x257   : > { %v1766_v52 = vadd.f32 %v8707_v16, %v433_v39 }
 0x258   : > { %v6505_v18 = vpop.f32.mrb[8].mxu0 }
 0x259   : > { %v6644_v53 = vadd.f32 %v6505_v18, %v1762_v56  ;;  %v3935_v61 = vpop.f32.mrb[9].mxu0  ;;  %v1765_v56 = vadd.f32 %v8716_v22, %v432_v45  ;;  %v7351_v18 = vld [vmem:[%s8147_s9 + $0x210] sm:$0xff]   ;;  %v438_v22 = vld [vmem:[#allocation2 + $0x98] sm:$0xff]  ;;  %v440_v45 = vld [vmem:[#allocation2 + $0xa8] sm:$0xff] }
 0x25a   : > { %v6646_v36 = vadd.f32 %v3935_v61, %v1760_v57  ;;  %v6506_v50 = vpop.f32.mrb[10].mxu0  ;;  %v436_v61 = vld [vmem:[#allocation2 + $0x88] sm:$0xff] }
 0x25b   : > { %4553 = vst.msk [vmem:[#allocation2 + $0x50] sm:$0xff] %vm4542_vm3, %v6644_v53  ;;  %v6648_v2 = vadd.f32 %v6506_v50, %v1763_v62  ;;  %v3938_v8 = vpop.f32.mrb[11].mxu0  ;;  %v437_v62 = vld [vmem:[#allocation2 + $0x90] sm:$0xff] }
 0x25c   : > { %4551 = vst.msk [vmem:[#allocation2 + $0x40] sm:$0xff] %vm4542_vm3, %v6646_v36  ;;  %v6650_v9 = vadd.f32 %v3938_v8, %v1761_v23  ;;  %v1770_v53 = vadd.f32 %v8723_v24, %v437_v62  ;;  %v7352_v23 = vld [vmem:[%s8147_s9 + $0x208] sm:$0xff]   ;;  %v1771_v36 = vadd.f32 %v8728_v27, %v438_v22  ;;  %v1769_v8 = vadd.f32 %v8732_v30, %v436_v61  ;;  %v442_v27 = vld [vmem:[#allocation2 + $0xb8] sm:$0xff] }
 0x25d   : > { %6480 = vmatmul.mubr.msk.bf16.gmra.mrb[116].mxu1 %vm1010_vm1, %v7344_v59  ;;  %4554 = vst.msk [vmem:[#allocation2 + $0x58] sm:$0xff] %vm4542_vm3, %v6648_v2  ;;  %6612 = vmatmul.mubr.msk.bf16.gmra.mrb[116].mxu0 %vm1010_vm1, %v7345_v7  ;;  %v1768_v7 = vadd.f32 %v8725_v25, %v435_v19  ;;  %v7353_v2 = vld [vmem:[%s8147_s9 + $0x218] sm:$0xff]   ;;  %v439_v25 = vld [vmem:[#allocation2 + $0xa0] sm:$0xff] }
 0x25e   : > { %6483 = vmatprep.mubr.msk.bf16.mxu1 %vm1010_vm1, %v7346_v20  ;;  %4552 = vst.msk [vmem:[#allocation2 + $0x48] sm:$0xff] %vm4542_vm3, %v6650_v9  ;;  %6615 = vmatprep.mubr.msk.bf16.mxu0 %vm1010_vm1, %v7347_v55 }
 0x260   : > { %v6509_v4 = vpop.f32.mrb[12].mxu0 }
 0x261   : > { %v6652_v34 = vadd.f32 %v6509_v4, %v1766_v52  ;;  %v3951_v1 = vpop.f32.mrb[13].mxu0  ;;  %v441_v52 = vld [vmem:[#allocation2 + $0xb0] sm:$0xff] }
 0x262   : > { %v6654_v29 = vadd.f32 %v3951_v1, %v1764_v13  ;;  %v6510_v57 = vpop.f32.mrb[14].mxu0  ;;  %v1774_v30 = vadd.f32 %v8739_v32, %v441_v52  ;;  %v1772_v13 = vadd.f32 %v8741_v33, %v439_v25  ;;  %v1773_v1 = vadd.f32 %v8748_v38, %v440_v45  ;;  %v446_v33 = vld [vmem:[#allocation2 + $0xd8] sm:$0xff]  ;;  %v453_v25 = vld [vmem:[#allocation2 + $0x110] sm:$0xff] }
 0x263   : > { %4557 = vst.msk [vmem:[#allocation2 + $0x70] sm:$0xff] %vm4542_vm3, %v6652_v34  ;;  %v6656_v59 = vadd.f32 %v6510_v57, %v1767_v0  ;;  %v3954_v16 = vpop.f32.mrb[15].mxu0  ;;  %v445_v57 = vld [vmem:[#allocation2 + $0xd0] sm:$0xff]  ;;  %v1779_v62 = vadd.f32 %v8760_v43, %v446_v33 }
 0x264   : > { %4555 = vst.msk [vmem:[#allocation2 + $0x60] sm:$0xff] %vm4542_vm3, %v6654_v29  ;;  %v6658_v17 = vadd.f32 %v3954_v16, %v1765_v56 }
 0x265   : > { %6484 = vmatmul.mubr.msk.bf16.gmra.mrb[120].mxu1 %vm1010_vm1, %v7348_v47  ;;  %4558 = vst.msk [vmem:[#allocation2 + $0x78] sm:$0xff] %vm4542_vm3, %v6656_v59  ;;  %6616 = vmatmul.mubr.msk.bf16.gmra.mrb[120].mxu0 %vm1010_vm1, %v7349_v3  ;;  %v1775_v47 = vadd.f32 %v8744_v35, %v442_v27  ;;  %v1778_v35 = vadd.f32 %v8755_v40, %v445_v57  ;;  %v444_v59 = vld [vmem:[#allocation2 + $0xc8] sm:$0xff]  ;;  %v451_v27 = vld [vmem:[#allocation2 + $0x100] sm:$0xff] }
 0x266   : > { %6487 = vmatprep.mubr.msk.bf16.mxu1 %vm1010_vm1, %v7350_v6  ;;  %4556 = vst.msk [vmem:[#allocation2 + $0x68] sm:$0xff] %vm4542_vm3, %v6658_v17  ;;  %6619 = vmatprep.mubr.msk.bf16.mxu0 %vm1010_vm1, %v7351_v18  ;;  %v443_v18 = vld [vmem:[#allocation2 + $0xc0] sm:$0xff]  ;;  %v1777_v22 = vadd.f32 %v8764_v46, %v444_v59  ;;  %v456_v57 = vld [vmem:[#allocation2 + $0x128] sm:$0xff] }
 0x267   : > { %v1776_v38 = vadd.f32 %v8757_v41, %v443_v18  ;;  %v450_v41 = vld [vmem:[#allocation2 + $0xf8] sm:$0xff]  ;;  %v1789_v59 = vadd.f32 %v8812_v21, %v456_v57 }
 0x268   : > { %v6513_v20 = vpop.f32.mrb[16].mxu0 }
 0x269   : > { %v6660_v50 = vadd.f32 %v6513_v20, %v1770_v53  ;;  %v3967_v55 = vpop.f32.mrb[17].mxu0 }
 0x26a   : > { %v6662_v39 = vadd.f32 %v3967_v55, %v1768_v7  ;;  %v6514_v9 = vpop.f32.mrb[18].mxu0 }
 0x26b   : > { %4561 = vst.msk [vmem:[#allocation2 + $0x90] sm:$0xff] %vm4542_vm3, %v6660_v50  ;;  %v6664_v11 = vadd.f32 %v6514_v9, %v1771_v36  ;;  %v3970_v14 = vpop.f32.mrb[19].mxu0  ;;  %v447_v36 = vld [vmem:[#allocation2 + $0xe0] sm:$0xff]  ;;  %v448_v50 = vld [vmem:[#allocation2 + $0xe8] sm:$0xff] }
 0x26c   : > { %4559 = vst.msk [vmem:[#allocation2 + $0x80] sm:$0xff] %vm4542_vm3, %v6662_v39  ;;  %v6666_v24 = vadd.f32 %v3970_v14, %v1769_v8  ;;  %v1780_v46 = vadd.f32 %v8773_v49, %v447_v36  ;;  %v1781_v9 = vadd.f32 %v8780_v54, %v448_v50  ;;  %v454_v49 = vld [vmem:[#allocation2 + $0x118] sm:$0xff]  ;;  %v1784_v54 = vadd.f32 %v8789_v60, %v451_v27 }
 0x26d   : > { %6488 = vmatmul.mubr.msk.bf16.gmra.mrb[124].mxu1 %vm1010_vm1, %v7352_v23  ;;  %4562 = vst.msk [vmem:[#allocation2 + $0x98] sm:$0xff] %vm4542_vm3, %v6664_v11  ;;  %6620 = vmatmul.mubr.msk.bf16.gmra.mrb[124].mxu0 %vm1010_vm1, %v7353_v2  ;;  %v449_v23 = vld [vmem:[#allocation2 + $0xf0] sm:$0xff]  ;;  %v1783_v2 = vadd.f32 %v8776_v51, %v450_v41  ;;  %v1786_v51 = vadd.f32 %v8787_v58, %v453_v25  ;;  %v458_v60 = vld [vmem:[#allocation2 + $0x138] sm:$0xff] }
 0x26e   : > { %4560 = vst.msk [vmem:[#allocation2 + $0x88] sm:$0xff] %vm4542_vm3, %v6666_v24  ;;  %v1782_v43 = vadd.f32 %v8771_v48, %v449_v23  ;;  %v1791_v18 = vadd.f32 %v8808_v15, %v458_v60 }
 0x270   : > { %v6517_v4 = vpop.f32.mrb[20].mxu0 }
 0x271   : > { %v6668_v0 = vadd.f32 %v6517_v4, %v1774_v30  ;;  %v3983_v34 = vpop.f32.mrb[21].mxu0  ;;  %v452_v30 = vld [vmem:[#allocation2 + $0x108] sm:$0xff] }
 0x272   : > { %v6670_v3 = vadd.f32 %v3983_v34, %v1772_v13  ;;  %v6518_v6 = vpop.f32.mrb[22].mxu0  ;;  %v1787_v13 = vadd.f32 %v8792_v63, %v454_v49 }
 0x273   : > { %4565 = vst.msk [vmem:[#allocation2 + $0xb0] sm:$0xff] %vm4542_vm3, %v6668_v0  ;;  %v6672_v56 = vadd.f32 %v6518_v6, %v1775_v47  ;;  %v3986_v29 = vpop.f32.mrb[23].mxu0  ;;  %v1785_v0 = vadd.f32 %v8796_v5, %v452_v30  ;;  %v467_v30 = vld [vmem:[#allocation2 + $0x180] sm:$0xff] }
 0x274   : > { %4563 = vst.msk [vmem:[#allocation2 + $0xa0] sm:$0xff] %vm4542_vm3, %v6670_v3  ;;  %v6674_v32 = vadd.f32 %v3986_v29, %v1773_v1  ;;  %v455_v29 = vld [vmem:[#allocation2 + $0x120] sm:$0xff] }
 0x275   : > { %4566 = vst.msk [vmem:[#allocation2 + $0xb8] sm:$0xff] %vm4542_vm3, %v6672_v56  ;;  %v457_v56 = vld [vmem:[#allocation2 + $0x130] sm:$0xff]  ;;  %v1788_v5 = vadd.f32 %v8805_v12, %v455_v29  ;;  %v462_v12 = vld [vmem:[#allocation2 + $0x158] sm:$0xff] }
 0x276   : > { %4564 = vst.msk [vmem:[#allocation2 + $0xa8] sm:$0xff] %vm4542_vm3, %v6674_v32  ;;  %v1790_v63 = vadd.f32 %v8803_v10, %v457_v56  ;;  %v9800_v56 = vld [vmem:[#allocation25_spill] sm:$0xff] }
 0x278   : > { %v6521_v16 = vpop.f32.mrb[24].mxu0 }
 0x279   : > { %v6676_v17 = vadd.f32 %v6521_v16, %v1778_v35  ;;  %v3999_v19 = vpop.f32.mrb[25].mxu0 }
 0x27a   : > { %v6678_v53 = vadd.f32 %v3999_v19, %v1776_v38  ;;  %v6522_v61 = vpop.f32.mrb[26].mxu0  ;;  %v461_v19 = vld [vmem:[#allocation2 + $0x150] sm:$0xff] }
 0x27b   : > { %4569 = vst.msk [vmem:[#allocation2 + $0xd0] sm:$0xff] %vm4542_vm3, %v6676_v17  ;;  %v6680_v7 = vadd.f32 %v6522_v61, %v1779_v62  ;;  %v4002_v20 = vpop.f32.mrb[27].mxu0  ;;  %v1794_v15 = vadd.f32 %v8819_v26, %v461_v19  ;;  %v9803_v19 = vld [vmem:[#allocation28_spill] sm:$0xff] }
 0x27c   : > { %4567 = vst.msk [vmem:[#allocation2 + $0xc0] sm:$0xff] %vm4542_vm3, %v6678_v53  ;;  %v6682_v40 = vadd.f32 %v4002_v20, %v1777_v22  ;;  %v459_v22 = vld [vmem:[#allocation2 + $0x140] sm:$0xff]  ;;  %v460_v53 = vld [vmem:[#allocation2 + $0x148] sm:$0xff] }
 0x27d   : > { %4570 = vst.msk [vmem:[#allocation2 + $0xd8] sm:$0xff] %vm4542_vm3, %v6680_v7  ;;  %v1792_v21 = vadd.f32 %v8821_v28, %v459_v22  ;;  %v1795_v7 = vadd.f32 %v8824_v31, %v462_v12  ;;  %v466_v28 = vld [vmem:[#allocation2 + $0x178] sm:$0xff] }
 0x27e   : > { %4568 = vst.msk [vmem:[#allocation2 + $0xc8] sm:$0xff] %vm4542_vm3, %v6682_v40  ;;  %v1793_v40 = vadd.f32 %v8828_v37, %v460_v53 }
 0x280   : > { %v6525_v55 = vpop.f32.mrb[28].mxu0 }
 0x281   : > { %v6684_v8 = vadd.f32 %v6525_v55, %v1782_v43  ;;  %v4015_v39 = vpop.f32.mrb[29].mxu0  ;;  %v463_v55 = vld [vmem:[#allocation2 + $0x160] sm:$0xff] }
 0x282   : > { %v6686_v11 = vadd.f32 %v4015_v39, %v1780_v46  ;;  %v6526_v14 = vpop.f32.mrb[30].mxu0  ;;  %v465_v46 = vld [vmem:[#allocation2 + $0x170] sm:$0xff]  ;;  %v1796_v37 = vadd.f32 %v8837_v44, %v463_v55  ;;  %v470_v44 = vld [vmem:[#allocation2 + $0x198] sm:$0xff] }
 0x283   : > { %4573 = vst.msk [vmem:[#allocation2 + $0xf0] sm:$0xff] %vm4542_vm3, %v6684_v8  ;;  %v6688_v52 = vadd.f32 %v6526_v14, %v1783_v2  ;;  %v4018_v24 = vpop.f32.mrb[31].mxu0  ;;  %v1798_v31 = vadd.f32 %v8835_v42, %v465_v46  ;;  %v464_v2 = vld [vmem:[#allocation2 + $0x168] sm:$0xff]  ;;  %v9795_v39 = vld [vmem:[#allocation20_spill] sm:$0xff] }
 0x284   : > { %4571 = vst.msk [vmem:[#allocation2 + $0xe0] sm:$0xff] %vm4542_vm3, %v6686_v11  ;;  %v6690_v48 = vadd.f32 %v4018_v24, %v1781_v9  ;;  %v1799_v9 = vadd.f32 %v9795_v39, %v466_v28  ;;  %v476_v46 = vld [vmem:[#allocation2 + $0x1c8] sm:$0xff]  ;;  %v9808_v39 = vld [vmem:[#allocation33_spill] sm:$0xff] }
 0x285   : > { %4574 = vst.msk [vmem:[#allocation2 + $0xf8] sm:$0xff] %vm4542_vm3, %v6688_v52  ;;  %v9796_v52 = vld [vmem:[#allocation21_spill] sm:$0xff] }
 0x286   : > { %4572 = vst.msk [vmem:[#allocation2 + $0xe8] sm:$0xff] %vm4542_vm3, %v6690_v48  ;;  %v1797_v24 = vadd.f32 %v9796_v52, %v464_v2 }
 0x288   : > { %v6529_v45 = vpop.f32.mrb[32].mxu0 }
 0x289   : > { %v6692_v4 = vadd.f32 %v6529_v45, %v1786_v51  ;;  %v4031_v47 = vpop.f32.mrb[33].mxu0  ;;  %v469_v51 = vld [vmem:[#allocation2 + $0x190] sm:$0xff] }
 0x28a   : > { %v6694_v34 = vadd.f32 %v4031_v47, %v1784_v54  ;;  %v6530_v1 = vpop.f32.mrb[34].mxu0  ;;  %v9797_v54 = vld [vmem:[#allocation22_spill] sm:$0xff] }
 0x28b   : > { %4577 = vst.msk [vmem:[#allocation2 + $0x110] sm:$0xff] %vm4542_vm3, %v6692_v4  ;;  %v6696_v3 = vadd.f32 %v6530_v1, %v1787_v13  ;;  %v4034_v6 = vpop.f32.mrb[35].mxu0  ;;  %v1802_v45 = vadd.f32 %v9797_v54, %v469_v51  ;;  %v468_v13 = vld [vmem:[#allocation2 + $0x188] sm:$0xff]  ;;  %v9809_v51 = vld [vmem:[#allocation34_spill] sm:$0xff] }
 0x28c   : > { %4575 = vst.msk [vmem:[#allocation2 + $0x100] sm:$0xff] %vm4542_vm3, %v6694_v34  ;;  %v6698_v58 = vadd.f32 %v4034_v6, %v1785_v0  ;;  %v9798_v4 = vld [vmem:[#allocation23_spill] sm:$0xff]  ;;  %v9799_v34 = vld [vmem:[#allocation24_spill] sm:$0xff] }
 0x28d   : > { %4578 = vst.msk [vmem:[#allocation2 + $0x118] sm:$0xff] %vm4542_vm3, %v6696_v3  ;;  %v1800_v47 = vadd.f32 %v9798_v4, %v467_v30  ;;  %v1803_v1 = vadd.f32 %v9799_v34, %v470_v44  ;;  %v480_v30 = vld [vmem:[#allocation2 + $0x1e8] sm:$0xff]  ;;  %v9812_v34 = vld [vmem:[#allocation37_spill] sm:$0xff] }
 0x28e   : > { %4576 = vst.msk [vmem:[#allocation2 + $0x108] sm:$0xff] %vm4542_vm3, %v6698_v58  ;;  %v1801_v58 = vadd.f32 %v9800_v56, %v468_v13  ;;  %v9810_v44 = vld [vmem:[#allocation35_spill] sm:$0xff]  ;;  %v9811_v13 = vld [vmem:[#allocation36_spill] sm:$0xff] }
 0x290   : > { %v6533_v32 = vpop.f32.mrb[36].mxu0 }
 0x291   : > { %v6700_v33 = vadd.f32 %v6533_v32, %v1790_v63  ;;  %v4047_v35 = vpop.f32.mrb[37].mxu0 }
 0x292   : > { %v6702_v38 = vadd.f32 %v4047_v35, %v1788_v5  ;;  %v6534_v16 = vpop.f32.mrb[38].mxu0  ;;  %v473_v5 = vld [vmem:[#allocation2 + $0x1b0] sm:$0xff]  ;;  %v9801_v35 = vld [vmem:[#allocation26_spill] sm:$0xff] }
 0x293   : > { %4581 = vst.msk [vmem:[#allocation2 + $0x130] sm:$0xff] %vm4542_vm3, %v6700_v33  ;;  %v6704_v62 = vadd.f32 %v6534_v16, %v1791_v18  ;;  %v4050_v17 = vpop.f32.mrb[39].mxu0  ;;  %v471_v18 = vld [vmem:[#allocation2 + $0x1a0] sm:$0xff]  ;;  %v474_v33 = vld [vmem:[#allocation2 + $0x1b8] sm:$0xff]  ;;  %v9802_v16 = vld [vmem:[#allocation27_spill] sm:$0xff] }
 0x294   : > { %4579 = vst.msk [vmem:[#allocation2 + $0x120] sm:$0xff] %vm4542_vm3, %v6702_v38  ;;  %v6706_v10 = vadd.f32 %v4050_v17, %v1789_v59  ;;  %v1806_v59 = vadd.f32 %v9801_v35, %v473_v5  ;;  %v472_v38 = vld [vmem:[#allocation2 + $0x1a8] sm:$0xff]  ;;  %v486_v5 = vld [vmem:[#allocation2 + $0x218] sm:$0xff] }
 0x295   : > { %4582 = vst.msk [vmem:[#allocation2 + $0x138] sm:$0xff] %vm4542_vm3, %v6704_v62  ;;  %v1804_v62 = vadd.f32 %v9802_v16, %v471_v18  ;;  %v484_v35 = vld [vmem:[#allocation2 + $0x208] sm:$0xff] }
 0x296   : > { %4580 = vst.msk [vmem:[#allocation2 + $0x128] sm:$0xff] %vm4542_vm3, %v6706_v10  ;;  %v1807_v10 = vadd.f32 %v9803_v19, %v474_v33 }
 0x298   : > { %v6537_v61 = vpop.f32.mrb[40].mxu0 }
 0x299   : > { %v6708_v20 = vadd.f32 %v6537_v61, %v1794_v15  ;;  %v4063_v23 = vpop.f32.mrb[41].mxu0  ;;  %v9804_v15 = vld [vmem:[#allocation29_spill] sm:$0xff] }
 0x29a   : > { %v6710_v36 = vadd.f32 %v4063_v23, %v1792_v21  ;;  %v6538_v41 = vpop.f32.mrb[42].mxu0  ;;  %v1805_v53 = vadd.f32 %v9804_v15, %v472_v38  ;;  %v477_v23 = vld [vmem:[#allocation2 + $0x1d0] sm:$0xff] }
 0x29b   : > { %4585 = vst.msk [vmem:[#allocation2 + $0x150] sm:$0xff] %vm4542_vm3, %v6708_v20  ;;  %v6712_v43 = vadd.f32 %v6538_v41, %v1795_v7  ;;  %v4066_v50 = vpop.f32.mrb[43].mxu0  ;;  %v478_v41 = vld [vmem:[#allocation2 + $0x1d8] sm:$0xff] }
 0x29c   : > { %4583 = vst.msk [vmem:[#allocation2 + $0x140] sm:$0xff] %vm4542_vm3, %v6710_v36  ;;  %v6714_v26 = vadd.f32 %v4066_v50, %v1793_v40  ;;  %v475_v36 = vld [vmem:[#allocation2 + $0x1c0] sm:$0xff] }
 0x29d   : > { %4586 = vst.msk [vmem:[#allocation2 + $0x158] sm:$0xff] %vm4542_vm3, %v6712_v43  ;;  %v9805_v43 = vld [vmem:[#allocation30_spill] sm:$0xff] }
 0x29e   : > { %4584 = vst.msk [vmem:[#allocation2 + $0x148] sm:$0xff] %vm4542_vm3, %v6714_v26  ;;  %v1810_v50 = vadd.f32 %v9805_v43, %v477_v23  ;;  %v9806_v26 = vld [vmem:[#allocation31_spill] sm:$0xff]  ;;  %v490_v23 = vld [vmem:[#allocation2 + $0x238] sm:$0xff] }
 0x29f   : > { %v1808_v55 = vadd.f32 %v9806_v26, %v475_v36  ;;  %v488_v43 = vld [vmem:[#allocation2 + $0x228] sm:$0xff] }
 0x2a0   : > { %v6541_v8 = vpop.f32.mrb[44].mxu0 }
 0x2a1   : > { %v6716_v11 = vadd.f32 %v6541_v8, %v1798_v31  ;;  %v4079_v14 = vpop.f32.mrb[45].mxu0  ;;  %v9807_v31 = vld [vmem:[#allocation32_spill] sm:$0xff] }
 0x2a2   : > { %v6718_v25 = vadd.f32 %v4079_v14, %v1796_v37  ;;  %v6542_v48 = vpop.f32.mrb[46].mxu0  ;;  %v1811_v2 = vadd.f32 %v9807_v31, %v478_v41 }
 0x2a3   : > { %4589 = vst.msk [vmem:[#allocation2 + $0x170] sm:$0xff] %vm4542_vm3, %v6716_v11  ;;  %v6720_v27 = vadd.f32 %v6542_v48, %v1799_v9  ;;  %v4082_v49 = vpop.f32.mrb[47].mxu0  ;;  %v1809_v9 = vadd.f32 %v9808_v39, %v476_v46 }
 0x2a4   : > { %4587 = vst.msk [vmem:[#allocation2 + $0x160] sm:$0xff] %vm4542_vm3, %v6718_v25  ;;  %v6722_v42 = vadd.f32 %v4082_v49, %v1797_v24  ;;  %v481_v25 = vld [vmem:[#allocation2 + $0x1f0] sm:$0xff]  ;;  %v482_v49 = vld [vmem:[#allocation2 + $0x1f8] sm:$0xff] }
 0x2a5   : > { %4590 = vst.msk [vmem:[#allocation2 + $0x178] sm:$0xff] %vm4542_vm3, %v6720_v27  ;;  %v479_v27 = vld [vmem:[#allocation2 + $0x1e0] sm:$0xff]  ;;  %v1815_v4 = vadd.f32 %v9811_v13, %v482_v49 }
 0x2a6   : > { %4588 = vst.msk [vmem:[#allocation2 + $0x168] sm:$0xff] %vm4542_vm3, %v6722_v42  ;;  %v1814_v42 = vadd.f32 %v9809_v51, %v481_v25  ;;  %v1812_v54 = vadd.f32 %v9810_v44, %v479_v27  ;;  %v494_v25 = vld [vmem:[#allocation2 + $0x258] sm:$0xff]  ;;  %v492_v51 = vld [vmem:[#allocation2 + $0x248] sm:$0xff] }
 0x2a8   : > { %v6545_v0 = vpop.f32.mrb[48].mxu0 }
 0x2a9   : > { %v6724_v3 = vadd.f32 %v6545_v0, %v1802_v45  ;;  %v4095_v6 = vpop.f32.mrb[49].mxu0 }
 0x2aa   : > { %v6726_v29 = vadd.f32 %v4095_v6, %v1800_v47  ;;  %v6546_v60 = vpop.f32.mrb[50].mxu0 }
 0x2ab   : > { %4593 = vst.msk [vmem:[#allocation2 + $0x190] sm:$0xff] %vm4542_vm3, %v6724_v3  ;;  %v6728_v63 = vadd.f32 %v6546_v60, %v1803_v1  ;;  %v4098_v57 = vpop.f32.mrb[51].mxu0  ;;  %v1813_v1 = vadd.f32 %v9812_v34, %v480_v30  ;;  %v485_v60 = vld [vmem:[#allocation2 + $0x210] sm:$0xff] }
 0x2ac   : > { %4591 = vst.msk [vmem:[#allocation2 + $0x180] sm:$0xff] %vm4542_vm3, %v6726_v29  ;;  %v6730_v32 = vadd.f32 %v4098_v57, %v1801_v58 }
 0x2ad   : > { %4594 = vst.msk [vmem:[#allocation2 + $0x198] sm:$0xff] %vm4542_vm3, %v6728_v63  ;;  %v483_v63 = vld [vmem:[#allocation2 + $0x200] sm:$0xff] }
 0x2ae   : > { %4592 = vst.msk [vmem:[#allocation2 + $0x188] sm:$0xff] %vm4542_vm3, %v6730_v32 }
 0x2b0   : > { %v6549_v17 = vpop.f32.mrb[52].mxu0 }
 0x2b1   : > { %v6732_v22 = vadd.f32 %v6549_v17, %v1806_v59  ;;  %v4111_v12 = vpop.f32.mrb[53].mxu0 }
 0x2b2   : > { %v6734_v21 = vadd.f32 %v4111_v12, %v1804_v62  ;;  %v6550_v61 = vpop.f32.mrb[54].mxu0 }
 0x2b3   : > { %4597 = vst.msk [vmem:[#allocation2 + $0x1b0] sm:$0xff] %vm4542_vm3, %v6732_v22  ;;  %v6736_v7 = vadd.f32 %v6550_v61, %v1807_v10  ;;  %v4114_v20 = vpop.f32.mrb[55].mxu0  ;;  %v489_v61 = vld [vmem:[#allocation2 + $0x230] sm:$0xff] }
 0x2b4   : > { %4595 = vst.msk [vmem:[#allocation2 + $0x1a0] sm:$0xff] %vm4542_vm3, %v6734_v21  ;;  %v6738_v40 = vadd.f32 %v4114_v20, %v1805_v53 }
 0x2b5   : > { %4598 = vst.msk [vmem:[#allocation2 + $0x1b8] sm:$0xff] %vm4542_vm3, %v6736_v7  ;;  %v487_v7 = vld [vmem:[#allocation2 + $0x220] sm:$0xff] }
 0x2b6   : > { %4596 = vst.msk [vmem:[#allocation2 + $0x1a8] sm:$0xff] %vm4542_vm3, %v6738_v40 }
 0x2b8   : > { %v6553_v28 = vpop.f32.mrb[56].mxu0 }
 0x2b9   : > { %v6740_v37 = vadd.f32 %v6553_v28, %v1810_v50  ;;  %v4127_v8 = vpop.f32.mrb[57].mxu0 }
 0x2ba   : > { %v6742_v11 = vadd.f32 %v4127_v8, %v1808_v55  ;;  %v6554_v14 = vpop.f32.mrb[58].mxu0 }
 0x2bb   : > { %4601 = vst.msk [vmem:[#allocation2 + $0x1d0] sm:$0xff] %vm4542_vm3, %v6740_v37  ;;  %v6744_v52 = vadd.f32 %v6554_v14, %v1811_v2  ;;  %v4130_v24 = vpop.f32.mrb[59].mxu0  ;;  %v493_v14 = vld [vmem:[#allocation2 + $0x250] sm:$0xff] }
 0x2bc   : > { %4599 = vst.msk [vmem:[#allocation2 + $0x1c0] sm:$0xff] %vm4542_vm3, %v6742_v11  ;;  %v6746_v48 = vadd.f32 %v4130_v24, %v1809_v9 }
 0x2bd   : > { %4602 = vst.msk [vmem:[#allocation2 + $0x1d8] sm:$0xff] %vm4542_vm3, %v6744_v52  ;;  %v491_v52 = vld [vmem:[#allocation2 + $0x240] sm:$0xff] }
 0x2be   : > { %4600 = vst.msk [vmem:[#allocation2 + $0x1c8] sm:$0xff] %vm4542_vm3, %v6746_v48 }
 0x2c0   : > { %v6557_v45 = vpop.f32.mrb[60].mxu0 }
 0x2c1   : > { %v6748_v47 = vadd.f32 %v6557_v45, %v1814_v42  ;;  %v4143_v0 = vpop.f32.mrb[61].mxu0 }
 0x2c2   : > { %v6750_v3 = vadd.f32 %v4143_v0, %v1812_v54  ;;  %v6558_v6 = vpop.f32.mrb[62].mxu0 }
 0x2c3   : > { %4605 = vst.msk [vmem:[#allocation2 + $0x1f0] sm:$0xff] %vm4542_vm3, %v6748_v47  ;;  %v6752_v56 = vadd.f32 %v6558_v6, %v1815_v4  ;;  %v4146_v58 = vpop.f32.mrb[63].mxu0  ;;  %v497_v6 = vld [vmem:[#allocation2 + $0x270] sm:$0xff] }
 0x2c4   : > { %4603 = vst.msk [vmem:[#allocation2 + $0x1e0] sm:$0xff] %vm4542_vm3, %v6750_v3  ;;  %v6754_v29 = vadd.f32 %v4146_v58, %v1813_v1 }
 0x2c5   : > { %4606 = vst.msk [vmem:[#allocation2 + $0x1f8] sm:$0xff] %vm4542_vm3, %v6752_v56  ;;  %v495_v56 = vld [vmem:[#allocation2 + $0x260] sm:$0xff] }
 0x2c6   : > { %4604 = vst.msk [vmem:[#allocation2 + $0x1e8] sm:$0xff] %vm4542_vm3, %v6754_v29  ;;  %v498_v29 = vld [vmem:[#allocation2 + $0x278] sm:$0xff] }
 0x2c8   : > { %v6429_v57 = vpop.f32.mrb[64].mxu1  ;;  %v6561_v18 = vpop.f32.mrb[64].mxu0 }
 0x2c9   : > { %v6755_v32 = vadd.f32 %v6429_v57, %v485_v60  ;;  %v2828_v33 = vpop.f32.mrb[65].mxu1  ;;  %v4159_v38 = vpop.f32.mrb[65].mxu0 }
 0x2ca   : > { %v6757_v59 = vadd.f32 %v2828_v33, %v483_v63  ;;  %v6430_v16 = vpop.f32.mrb[66].mxu1  ;;  %v6562_v19 = vpop.f32.mrb[66].mxu0 }
 0x2cb   : > { %v6756_v62 = vadd.f32 %v6755_v32, %v6561_v18  ;;  %v6759_v17 = vadd.f32 %v6430_v16, %v486_v5  ;;  %v2831_v10 = vpop.f32.mrb[67].mxu1  ;;  %v4162_v15 = vpop.f32.mrb[67].mxu0  ;;  %v496_v5 = vld [vmem:[#allocation2 + $0x268] sm:$0xff] }
 0x2cc   : > { %v6758_v22 = vadd.f32 %v6757_v59, %v4159_v38  ;;  %v6761_v12 = vadd.f32 %v2831_v10, %v484_v35 }
 0x2cd   : > { %4609 = vst.msk [vmem:[#allocation2 + $0x210] sm:$0xff] %vm4542_vm3, %v6756_v62  ;;  %v6760_v53 = vadd.f32 %v6759_v17, %v6562_v19 }
 0x2ce   : > { %4607 = vst.msk [vmem:[#allocation2 + $0x200] sm:$0xff] %vm4542_vm3, %v6758_v22  ;;  %v6762_v21 = vadd.f32 %v6761_v12, %v4162_v15  ;;  %v501_v12 = vld [vmem:[#allocation2 + $0x290] sm:$0xff]  ;;  %v499_v15 = vld [vmem:[#allocation2 + $0x280] sm:$0xff] }
 0x2cf   : > { %4610 = vst.msk [vmem:[#allocation2 + $0x218] sm:$0xff] %vm4542_vm3, %v6760_v53 }
 0x2d0   : > { %4608 = vst.msk [vmem:[#allocation2 + $0x208] sm:$0xff] %vm4542_vm3, %v6762_v21  ;;  %v6433_v20 = vpop.f32.mrb[68].mxu1  ;;  %v6565_v36 = vpop.f32.mrb[68].mxu0  ;;  %v502_v21 = vld [vmem:[#allocation2 + $0x298] sm:$0xff] }
 0x2d1   : > { %v6763_v40 = vadd.f32 %v6433_v20, %v489_v61  ;;  %v2844_v41 = vpop.f32.mrb[69].mxu1  ;;  %v4175_v46 = vpop.f32.mrb[69].mxu0 }
 0x2d2   : > { %v6765_v50 = vadd.f32 %v2844_v41, %v487_v7  ;;  %v6434_v26 = vpop.f32.mrb[70].mxu1  ;;  %v6566_v31 = vpop.f32.mrb[70].mxu0 }
 0x2d3   : > { %v6764_v55 = vadd.f32 %v6763_v40, %v6565_v36  ;;  %v6767_v28 = vadd.f32 %v6434_v26, %v490_v23  ;;  %v2847_v2 = vpop.f32.mrb[71].mxu1  ;;  %v4178_v39 = vpop.f32.mrb[71].mxu0  ;;  %v500_v23 = vld [vmem:[#allocation2 + $0x288] sm:$0xff] }
 0x2d4   : > { %v6766_v37 = vadd.f32 %v6765_v50, %v4175_v46  ;;  %v6769_v8 = vadd.f32 %v2847_v2, %v488_v43 }
 0x2d5   : > { %4613 = vst.msk [vmem:[#allocation2 + $0x230] sm:$0xff] %vm4542_vm3, %v6764_v55  ;;  %v6768_v9 = vadd.f32 %v6767_v28, %v6566_v31 }
 0x2d6   : > { %4611 = vst.msk [vmem:[#allocation2 + $0x220] sm:$0xff] %vm4542_vm3, %v6766_v37  ;;  %v6770_v11 = vadd.f32 %v6769_v8, %v4178_v39  ;;  %v505_v8 = vld [vmem:[#allocation2 + $0x2b0] sm:$0xff]  ;;  %v503_v39 = vld [vmem:[#allocation2 + $0x2a0] sm:$0xff] }
 0x2d7   : > { %4614 = vst.msk [vmem:[#allocation2 + $0x238] sm:$0xff] %vm4542_vm3, %v6768_v9 }
 0x2d8   : > { %4612 = vst.msk [vmem:[#allocation2 + $0x228] sm:$0xff] %vm4542_vm3, %v6770_v11  ;;  %v6437_v24 = vpop.f32.mrb[72].mxu1  ;;  %v6569_v27 = vpop.f32.mrb[72].mxu0  ;;  %v506_v11 = vld [vmem:[#allocation2 + $0x2b8] sm:$0xff] }
 0x2d9   : > { %v6771_v48 = vadd.f32 %v6437_v24, %v493_v14  ;;  %v2860_v49 = vpop.f32.mrb[73].mxu1  ;;  %v4191_v30 = vpop.f32.mrb[73].mxu0 }
 0x2da   : > { %v6773_v42 = vadd.f32 %v2860_v49, %v491_v52  ;;  %v6438_v44 = vpop.f32.mrb[74].mxu1  ;;  %v6570_v13 = vpop.f32.mrb[74].mxu0 }
 0x2db   : > { %v6772_v54 = vadd.f32 %v6771_v48, %v6569_v27  ;;  %v6775_v45 = vadd.f32 %v6438_v44, %v494_v25  ;;  %v2863_v4 = vpop.f32.mrb[75].mxu1  ;;  %v4194_v34 = vpop.f32.mrb[75].mxu0  ;;  %v504_v25 = vld [vmem:[#allocation2 + $0x2a8] sm:$0xff] }
 0x2dc   : > { %v6774_v47 = vadd.f32 %v6773_v42, %v4191_v30  ;;  %v6777_v0 = vadd.f32 %v2863_v4, %v492_v51 }
 0x2dd   : > { %4617 = vst.msk [vmem:[#allocation2 + $0x250] sm:$0xff] %vm4542_vm3, %v6772_v54  ;;  %v6776_v1 = vadd.f32 %v6775_v45, %v6570_v13 }
 0x2de   : > { %4615 = vst.msk [vmem:[#allocation2 + $0x240] sm:$0xff] %vm4542_vm3, %v6774_v47  ;;  %v6778_v3 = vadd.f32 %v6777_v0, %v4194_v34  ;;  %v509_v0 = vld [vmem:[#allocation2 + $0x2d0] sm:$0xff]  ;;  %v507_v34 = vld [vmem:[#allocation2 + $0x2c0] sm:$0xff] }
 0x2df   : > { %4618 = vst.msk [vmem:[#allocation2 + $0x258] sm:$0xff] %vm4542_vm3, %v6776_v1 }
 0x2e0   : > { %4616 = vst.msk [vmem:[#allocation2 + $0x248] sm:$0xff] %vm4542_vm3, %v6778_v3  ;;  %v6441_v58 = vpop.f32.mrb[76].mxu1  ;;  %v6573_v63 = vpop.f32.mrb[76].mxu0  ;;  %v510_v3 = vld [vmem:[#allocation2 + $0x2d8] sm:$0xff] }
 0x2e1   : > { %v6779_v60 = vadd.f32 %v6441_v58, %v497_v6  ;;  %v2876_v57 = vpop.f32.mrb[77].mxu1  ;;  %v4207_v18 = vpop.f32.mrb[77].mxu0 }
 0x2e2   : > { %v6781_v32 = vadd.f32 %v2876_v57, %v495_v56  ;;  %v6442_v33 = vpop.f32.mrb[78].mxu1  ;;  %v6574_v38 = vpop.f32.mrb[78].mxu0 }
 0x2e3   : > { %v6780_v35 = vadd.f32 %v6779_v60, %v6573_v63  ;;  %v6783_v59 = vadd.f32 %v6442_v33, %v498_v29  ;;  %v2879_v16 = vpop.f32.mrb[79].mxu1  ;;  %v4210_v19 = vpop.f32.mrb[79].mxu0  ;;  %v508_v29 = vld [vmem:[#allocation2 + $0x2c8] sm:$0xff] }
 0x2e4   : > { %v6782_v62 = vadd.f32 %v6781_v32, %v4207_v18  ;;  %v6785_v17 = vadd.f32 %v2879_v16, %v496_v5 }
 0x2e5   : > { %4621 = vst.msk [vmem:[#allocation2 + $0x270] sm:$0xff] %vm4542_vm3, %v6780_v35  ;;  %v6784_v10 = vadd.f32 %v6783_v59, %v6574_v38 }
 0x2e6   : > { %4619 = vst.msk [vmem:[#allocation2 + $0x260] sm:$0xff] %vm4542_vm3, %v6782_v62  ;;  %v6786_v22 = vadd.f32 %v6785_v17, %v4210_v19  ;;  %v513_v17 = vld [vmem:[#allocation2 + $0x2f0] sm:$0xff]  ;;  %v511_v19 = vld [vmem:[#allocation2 + $0x2e0] sm:$0xff] }
 0x2e7   : > { %4622 = vst.msk [vmem:[#allocation2 + $0x278] sm:$0xff] %vm4542_vm3, %v6784_v10 }
 0x2e8   : > { %4620 = vst.msk [vmem:[#allocation2 + $0x268] sm:$0xff] %vm4542_vm3, %v6786_v22  ;;  %v6445_v53 = vpop.f32.mrb[80].mxu1  ;;  %v6577_v7 = vpop.f32.mrb[80].mxu0  ;;  %v514_v22 = vld [vmem:[#allocation2 + $0x2f8] sm:$0xff] }
 0x2e9   : > { %v6787_v61 = vadd.f32 %v6445_v53, %v501_v12  ;;  %v2892_v20 = vpop.f32.mrb[81].mxu1  ;;  %v4223_v36 = vpop.f32.mrb[81].mxu0 }
 0x2ea   : > { %v6789_v40 = vadd.f32 %v2892_v20, %v499_v15  ;;  %v6446_v41 = vpop.f32.mrb[82].mxu1  ;;  %v6578_v46 = vpop.f32.mrb[82].mxu0 }
 0x2eb   : > { %v6788_v43 = vadd.f32 %v6787_v61, %v6577_v7  ;;  %v6791_v50 = vadd.f32 %v6446_v41, %v502_v21  ;;  %v2895_v26 = vpop.f32.mrb[83].mxu1  ;;  %v4226_v31 = vpop.f32.mrb[83].mxu0  ;;  %v512_v21 = vld [vmem:[#allocation2 + $0x2e8] sm:$0xff] }
 0x2ec   : > { %v6790_v55 = vadd.f32 %v6789_v40, %v4223_v36  ;;  %v6793_v28 = vadd.f32 %v2895_v26, %v500_v23 }
 0x2ed   : > { %4625 = vst.msk [vmem:[#allocation2 + $0x290] sm:$0xff] %vm4542_vm3, %v6788_v43  ;;  %v6792_v2 = vadd.f32 %v6791_v50, %v6578_v46 }
 0x2ee   : > { %4623 = vst.msk [vmem:[#allocation2 + $0x280] sm:$0xff] %vm4542_vm3, %v6790_v55  ;;  %v6794_v37 = vadd.f32 %v6793_v28, %v4226_v31  ;;  %v517_v28 = vld [vmem:[#allocation2 + $0x310] sm:$0xff]  ;;  %v515_v31 = vld [vmem:[#allocation2 + $0x300] sm:$0xff] }
 0x2ef   : > { %4626 = vst.msk [vmem:[#allocation2 + $0x298] sm:$0xff] %vm4542_vm3, %v6792_v2 }
 0x2f0   : > { %4624 = vst.msk [vmem:[#allocation2 + $0x288] sm:$0xff] %vm4542_vm3, %v6794_v37  ;;  %v6449_v9 = vpop.f32.mrb[84].mxu1  ;;  %v6581_v52 = vpop.f32.mrb[84].mxu0  ;;  %v518_v37 = vld [vmem:[#allocation2 + $0x318] sm:$0xff] }
 0x2f1   : > { %v6795_v14 = vadd.f32 %v6449_v9, %v505_v8  ;;  %v2908_v24 = vpop.f32.mrb[85].mxu1  ;;  %v4239_v27 = vpop.f32.mrb[85].mxu0 }
 0x2f2   : > { %v6797_v48 = vadd.f32 %v2908_v24, %v503_v39  ;;  %v6450_v49 = vpop.f32.mrb[86].mxu1  ;;  %v6582_v30 = vpop.f32.mrb[86].mxu0 }
 0x2f3   : > { %v6796_v51 = vadd.f32 %v6795_v14, %v6581_v52  ;;  %v6799_v42 = vadd.f32 %v6450_v49, %v506_v11  ;;  %v2911_v44 = vpop.f32.mrb[87].mxu1  ;;  %v4242_v13 = vpop.f32.mrb[87].mxu0  ;;  %v516_v11 = vld [vmem:[#allocation2 + $0x308] sm:$0xff] }
 0x2f4   : > { %v6798_v54 = vadd.f32 %v6797_v48, %v4239_v27  ;;  %v6801_v45 = vadd.f32 %v2911_v44, %v504_v25 }
 0x2f5   : > { %4629 = vst.msk [vmem:[#allocation2 + $0x2b0] sm:$0xff] %vm4542_vm3, %v6796_v51  ;;  %v6800_v4 = vadd.f32 %v6799_v42, %v6582_v30 }
 0x2f6   : > { %4627 = vst.msk [vmem:[#allocation2 + $0x2a0] sm:$0xff] %vm4542_vm3, %v6798_v54  ;;  %v6802_v47 = vadd.f32 %v6801_v45, %v4242_v13  ;;  %v521_v45 = vld [vmem:[#allocation2 + $0x330] sm:$0xff]  ;;  %v519_v13 = vld [vmem:[#allocation2 + $0x320] sm:$0xff] }
 0x2f7   : > { %4630 = vst.msk [vmem:[#allocation2 + $0x2b8] sm:$0xff] %vm4542_vm3, %v6800_v4 }
 0x2f8   : > { %4628 = vst.msk [vmem:[#allocation2 + $0x2a8] sm:$0xff] %vm4542_vm3, %v6802_v47  ;;  %v6453_v1 = vpop.f32.mrb[88].mxu1  ;;  %v6585_v56 = vpop.f32.mrb[88].mxu0  ;;  %v522_v47 = vld [vmem:[#allocation2 + $0x338] sm:$0xff] }
 0x2f9   : > { %v6803_v6 = vadd.f32 %v6453_v1, %v509_v0  ;;  %v2924_v58 = vpop.f32.mrb[89].mxu1  ;;  %v4255_v63 = vpop.f32.mrb[89].mxu0 }
 0x2fa   : > { %v6805_v60 = vadd.f32 %v2924_v58, %v507_v34  ;;  %v6454_v57 = vpop.f32.mrb[90].mxu1  ;;  %v6586_v18 = vpop.f32.mrb[90].mxu0 }
 0x2fb   : > { %v6804_v5 = vadd.f32 %v6803_v6, %v6585_v56  ;;  %v6807_v32 = vadd.f32 %v6454_v57, %v510_v3  ;;  %v2927_v33 = vpop.f32.mrb[91].mxu1  ;;  %v4258_v38 = vpop.f32.mrb[91].mxu0  ;;  %v520_v3 = vld [vmem:[#allocation2 + $0x328] sm:$0xff] }
 0x2fc   : > { %v6806_v35 = vadd.f32 %v6805_v60, %v4255_v63  ;;  %v6809_v59 = vadd.f32 %v2927_v33, %v508_v29 }
 0x2fd   : > { %4633 = vst.msk [vmem:[#allocation2 + $0x2d0] sm:$0xff] %vm4542_vm3, %v6804_v5  ;;  %v6808_v16 = vadd.f32 %v6807_v32, %v6586_v18 }
 0x2fe   : > { %4631 = vst.msk [vmem:[#allocation2 + $0x2c0] sm:$0xff] %vm4542_vm3, %v6806_v35  ;;  %v6810_v62 = vadd.f32 %v6809_v59, %v4258_v38  ;;  %v525_v59 = vld [vmem:[#allocation2 + $0x350] sm:$0xff]  ;;  %v523_v38 = vld [vmem:[#allocation2 + $0x340] sm:$0xff] }
 0x2ff   : > { %4634 = vst.msk [vmem:[#allocation2 + $0x2d8] sm:$0xff] %vm4542_vm3, %v6808_v16 }
 0x300   : > { %4632 = vst.msk [vmem:[#allocation2 + $0x2c8] sm:$0xff] %vm4542_vm3, %v6810_v62  ;;  %v6457_v10 = vpop.f32.mrb[92].mxu1  ;;  %v6589_v15 = vpop.f32.mrb[92].mxu0  ;;  %v526_v62 = vld [vmem:[#allocation2 + $0x358] sm:$0xff] }
 0x301   : > { %v6811_v12 = vadd.f32 %v6457_v10, %v513_v17  ;;  %v2940_v53 = vpop.f32.mrb[93].mxu1  ;;  %v4271_v7 = vpop.f32.mrb[93].mxu0 }
 0x302   : > { %v6813_v61 = vadd.f32 %v2940_v53, %v511_v19  ;;  %v6458_v20 = vpop.f32.mrb[94].mxu1  ;;  %v6590_v36 = vpop.f32.mrb[94].mxu0 }
 0x303   : > { %v6812_v23 = vadd.f32 %v6811_v12, %v6589_v15  ;;  %v6815_v40 = vadd.f32 %v6458_v20, %v514_v22  ;;  %v2943_v41 = vpop.f32.mrb[95].mxu1  ;;  %v4274_v46 = vpop.f32.mrb[95].mxu0  ;;  %v524_v22 = vld [vmem:[#allocation2 + $0x348] sm:$0xff] }
 0x304   : > { %v6814_v43 = vadd.f32 %v6813_v61, %v4271_v7  ;;  %v6817_v50 = vadd.f32 %v2943_v41, %v512_v21 }
 0x305   : > { %4637 = vst.msk [vmem:[#allocation2 + $0x2f0] sm:$0xff] %vm4542_vm3, %v6812_v23  ;;  %v6816_v26 = vadd.f32 %v6815_v40, %v6590_v36 }
 0x306   : > { %4635 = vst.msk [vmem:[#allocation2 + $0x2e0] sm:$0xff] %vm4542_vm3, %v6814_v43  ;;  %v6818_v55 = vadd.f32 %v6817_v50, %v4274_v46  ;;  %v529_v50 = vld [vmem:[#allocation2 + $0x370] sm:$0xff]  ;;  %v527_v46 = vld [vmem:[#allocation2 + $0x360] sm:$0xff] }
 0x307   : > { %4638 = vst.msk [vmem:[#allocation2 + $0x2f8] sm:$0xff] %vm4542_vm3, %v6816_v26 }
 0x308   : > { %4636 = vst.msk [vmem:[#allocation2 + $0x2e8] sm:$0xff] %vm4542_vm3, %v6818_v55  ;;  %v6461_v2 = vpop.f32.mrb[96].mxu1  ;;  %v6593_v39 = vpop.f32.mrb[96].mxu0  ;;  %v530_v55 = vld [vmem:[#allocation2 + $0x378] sm:$0xff] }
 0x309   : > { %v6819_v8 = vadd.f32 %v6461_v2, %v517_v28  ;;  %v2956_v9 = vpop.f32.mrb[97].mxu1  ;;  %v4287_v52 = vpop.f32.mrb[97].mxu0 }
 0x30a   : > { %v6821_v14 = vadd.f32 %v2956_v9, %v515_v31  ;;  %v6462_v24 = vpop.f32.mrb[98].mxu1  ;;  %v6594_v27 = vpop.f32.mrb[98].mxu0 }
 0x30b   : > { %v6820_v25 = vadd.f32 %v6819_v8, %v6593_v39  ;;  %v6823_v48 = vadd.f32 %v6462_v24, %v518_v37  ;;  %v2959_v49 = vpop.f32.mrb[99].mxu1  ;;  %v4290_v30 = vpop.f32.mrb[99].mxu0  ;;  %v528_v37 = vld [vmem:[#allocation2 + $0x368] sm:$0xff] }
 0x30c   : > { %v6822_v51 = vadd.f32 %v6821_v14, %v4287_v52  ;;  %v6825_v42 = vadd.f32 %v2959_v49, %v516_v11 }
 0x30d   : > { %4641 = vst.msk [vmem:[#allocation2 + $0x310] sm:$0xff] %vm4542_vm3, %v6820_v25  ;;  %v6824_v44 = vadd.f32 %v6823_v48, %v6594_v27 }
 0x30e   : > { %4639 = vst.msk [vmem:[#allocation2 + $0x300] sm:$0xff] %vm4542_vm3, %v6822_v51  ;;  %v6826_v54 = vadd.f32 %v6825_v42, %v4290_v30  ;;  %v533_v42 = vld [vmem:[#allocation2 + $0x390] sm:$0xff]  ;;  %v531_v30 = vld [vmem:[#allocation2 + $0x380] sm:$0xff] }
 0x30f   : > { %4642 = vst.msk [vmem:[#allocation2 + $0x318] sm:$0xff] %vm4542_vm3, %v6824_v44 }
 0x310   : > { %4640 = vst.msk [vmem:[#allocation2 + $0x308] sm:$0xff] %vm4542_vm3, %v6826_v54  ;;  %v6465_v4 = vpop.f32.mrb[100].mxu1  ;;  %v6597_v34 = vpop.f32.mrb[100].mxu0  ;;  %v534_v54 = vld [vmem:[#allocation2 + $0x398] sm:$0xff] }
 0x311   : > { %v6827_v0 = vadd.f32 %v6465_v4, %v521_v45  ;;  %v2972_v1 = vpop.f32.mrb[101].mxu1  ;;  %v4303_v56 = vpop.f32.mrb[101].mxu0 }
 0x312   : > { %v6829_v6 = vadd.f32 %v2972_v1, %v519_v13  ;;  %v6466_v58 = vpop.f32.mrb[102].mxu1  ;;  %v6598_v63 = vpop.f32.mrb[102].mxu0 }
 0x313   : > { %v6828_v29 = vadd.f32 %v6827_v0, %v6597_v34  ;;  %v6831_v60 = vadd.f32 %v6466_v58, %v522_v47  ;;  %v2975_v57 = vpop.f32.mrb[103].mxu1  ;;  %v4306_v18 = vpop.f32.mrb[103].mxu0  ;;  %v532_v47 = vld [vmem:[#allocation2 + $0x388] sm:$0xff] }
 0x314   : > { %v6830_v5 = vadd.f32 %v6829_v6, %v4303_v56  ;;  %v6833_v32 = vadd.f32 %v2975_v57, %v520_v3 }
 0x315   : > { %4645 = vst.msk [vmem:[#allocation2 + $0x330] sm:$0xff] %vm4542_vm3, %v6828_v29  ;;  %v6832_v33 = vadd.f32 %v6831_v60, %v6598_v63 }
 0x316   : > { %4643 = vst.msk [vmem:[#allocation2 + $0x320] sm:$0xff] %vm4542_vm3, %v6830_v5  ;;  %v6834_v35 = vadd.f32 %v6833_v32, %v4306_v18  ;;  %v537_v32 = vld [vmem:[#allocation2 + $0x3b0] sm:$0xff]  ;;  %v535_v18 = vld [vmem:[#allocation2 + $0x3a0] sm:$0xff] }
 0x317   : > { %4646 = vst.msk [vmem:[#allocation2 + $0x338] sm:$0xff] %vm4542_vm3, %v6832_v33 }
 0x318   : > { %4644 = vst.msk [vmem:[#allocation2 + $0x328] sm:$0xff] %vm4542_vm3, %v6834_v35  ;;  %v6469_v16 = vpop.f32.mrb[104].mxu1  ;;  %v6601_v19 = vpop.f32.mrb[104].mxu0  ;;  %v538_v35 = vld [vmem:[#allocation2 + $0x3b8] sm:$0xff] }
 0x319   : > { %v6835_v17 = vadd.f32 %v6469_v16, %v525_v59  ;;  %v2988_v10 = vpop.f32.mrb[105].mxu1  ;;  %v4319_v15 = vpop.f32.mrb[105].mxu0 }
 0x31a   : > { %v6837_v12 = vadd.f32 %v2988_v10, %v523_v38  ;;  %v6470_v53 = vpop.f32.mrb[106].mxu1  ;;  %v6602_v7 = vpop.f32.mrb[106].mxu0 }
 0x31b   : > { %v6836_v21 = vadd.f32 %v6835_v17, %v6601_v19  ;;  %v6839_v61 = vadd.f32 %v6470_v53, %v526_v62  ;;  %v2991_v20 = vpop.f32.mrb[107].mxu1  ;;  %v4322_v36 = vpop.f32.mrb[107].mxu0  ;;  %v536_v62 = vld [vmem:[#allocation2 + $0x3a8] sm:$0xff] }
 0x31c   : > { %v6838_v23 = vadd.f32 %v6837_v12, %v4319_v15  ;;  %v6841_v40 = vadd.f32 %v2991_v20, %v524_v22 }
 0x31d   : > { %4649 = vst.msk [vmem:[#allocation2 + $0x350] sm:$0xff] %vm4542_vm3, %v6836_v21  ;;  %v6840_v41 = vadd.f32 %v6839_v61, %v6602_v7 }
 0x31e   : > { %4647 = vst.msk [vmem:[#allocation2 + $0x340] sm:$0xff] %vm4542_vm3, %v6838_v23  ;;  %v6842_v43 = vadd.f32 %v6841_v40, %v4322_v36  ;;  %v541_v40 = vld [vmem:[#allocation2 + $0x3d0] sm:$0xff]  ;;  %v539_v36 = vld [vmem:[#allocation2 + $0x3c0] sm:$0xff] }
 0x31f   : > { %4650 = vst.msk [vmem:[#allocation2 + $0x358] sm:$0xff] %vm4542_vm3, %v6840_v41 }
 0x320   : > { %4648 = vst.msk [vmem:[#allocation2 + $0x348] sm:$0xff] %vm4542_vm3, %v6842_v43  ;;  %v6473_v26 = vpop.f32.mrb[108].mxu1  ;;  %v6605_v31 = vpop.f32.mrb[108].mxu0  ;;  %v542_v43 = vld [vmem:[#allocation2 + $0x3d8] sm:$0xff] }
 0x321   : > { %v6843_v28 = vadd.f32 %v6473_v26, %v529_v50  ;;  %v3004_v2 = vpop.f32.mrb[109].mxu1  ;;  %v4335_v39 = vpop.f32.mrb[109].mxu0 }
 0x322   : > { %v6845_v8 = vadd.f32 %v3004_v2, %v527_v46  ;;  %v6474_v9 = vpop.f32.mrb[110].mxu1  ;;  %v6606_v52 = vpop.f32.mrb[110].mxu0 }
 0x323   : > { %v6844_v11 = vadd.f32 %v6843_v28, %v6605_v31  ;;  %v6847_v14 = vadd.f32 %v6474_v9, %v530_v55  ;;  %v3007_v24 = vpop.f32.mrb[111].mxu1  ;;  %v4338_v27 = vpop.f32.mrb[111].mxu0  ;;  %v540_v55 = vld [vmem:[#allocation2 + $0x3c8] sm:$0xff] }
 0x324   : > { %v6846_v25 = vadd.f32 %v6845_v8, %v4335_v39  ;;  %v6849_v48 = vadd.f32 %v3007_v24, %v528_v37 }
 0x325   : > { %4653 = vst.msk [vmem:[#allocation2 + $0x370] sm:$0xff] %vm4542_vm3, %v6844_v11  ;;  %v6848_v49 = vadd.f32 %v6847_v14, %v6606_v52 }
 0x326   : > { %4651 = vst.msk [vmem:[#allocation2 + $0x360] sm:$0xff] %vm4542_vm3, %v6846_v25  ;;  %v6850_v51 = vadd.f32 %v6849_v48, %v4338_v27  ;;  %v545_v48 = vld [vmem:[#allocation2 + $0x3f0] sm:$0xff]  ;;  %v543_v27 = vld [vmem:[#allocation2 + $0x3e0] sm:$0xff] }
 0x327   : > { %4654 = vst.msk [vmem:[#allocation2 + $0x378] sm:$0xff] %vm4542_vm3, %v6848_v49 }
 0x328   : > { %4652 = vst.msk [vmem:[#allocation2 + $0x368] sm:$0xff] %vm4542_vm3, %v6850_v51  ;;  %v6477_v44 = vpop.f32.mrb[112].mxu1  ;;  %v6609_v13 = vpop.f32.mrb[112].mxu0  ;;  %v546_v51 = vld [vmem:[#allocation2 + $0x3f8] sm:$0xff] }
 0x329   : > { %v6851_v45 = vadd.f32 %v6477_v44, %v533_v42  ;;  %v3020_v4 = vpop.f32.mrb[113].mxu1  ;;  %v4351_v34 = vpop.f32.mrb[113].mxu0 }
 0x32a   : > { %v6853_v0 = vadd.f32 %v3020_v4, %v531_v30  ;;  %v6478_v1 = vpop.f32.mrb[114].mxu1  ;;  %v6610_v56 = vpop.f32.mrb[114].mxu0 }
 0x32b   : > { %v6852_v3 = vadd.f32 %v6851_v45, %v6609_v13  ;;  %v6855_v6 = vadd.f32 %v6478_v1, %v534_v54  ;;  %v3023_v58 = vpop.f32.mrb[115].mxu1  ;;  %v4354_v63 = vpop.f32.mrb[115].mxu0  ;;  %v544_v54 = vld [vmem:[#allocation2 + $0x3e8] sm:$0xff] }
 0x32c   : > { %v6854_v29 = vadd.f32 %v6853_v0, %v4351_v34  ;;  %v6857_v60 = vadd.f32 %v3023_v58, %v532_v47 }
 0x32d   : > { %4657 = vst.msk [vmem:[#allocation2 + $0x390] sm:$0xff] %vm4542_vm3, %v6852_v3  ;;  %v6856_v57 = vadd.f32 %v6855_v6, %v6610_v56 }
 0x32e   : > { %4655 = vst.msk [vmem:[#allocation2 + $0x380] sm:$0xff] %vm4542_vm3, %v6854_v29  ;;  %v6858_v5 = vadd.f32 %v6857_v60, %v4354_v63  ;;  %v4675_v60 = vld [vmem:[#allocation2] sm:$0xff] (!%p6019_p2)  ;;  %v9144_v63 = vld [vmem:[#allocation8] ss:$0 sm:$0xff] (!%p6019_p2) }
 0x32f   : > { %4658 = vst.msk [vmem:[#allocation2 + $0x398] sm:$0xff] %vm4542_vm3, %v6856_v57  ;;  %v9146_v57 = vld [vmem:[#allocation9] ss:$0 sm:$0xff] (!%p6019_p2) }
 0x330   : > { %4656 = vst.msk [vmem:[#allocation2 + $0x388] sm:$0xff] %vm4542_vm3, %v6858_v5  ;;  %v6481_v33 = vpop.f32.mrb[116].mxu1  ;;  %v6613_v38 = vpop.f32.mrb[116].mxu0  ;;  %v4810_v5 = vmul.f32 (!%p6019_p2), %v9144_v63, %v4675_v60 }
 0x331   : > { %v6859_v59 = vadd.f32 %v6481_v33, %v537_v32  ;;  %v3036_v16 = vpop.f32.mrb[117].mxu1  ;;  %v4367_v19 = vpop.f32.mrb[117].mxu0  ;;  %v4676_v32 = vld [vmem:[#allocation2 + $0x8] sm:$0xff] (!%p6019_p2)  ;;  %v4678_v33 = vld [vmem:[#allocation2 + $0x18] sm:$0xff] (!%p6019_p2) }
 0x332   : > { %v6861_v17 = vadd.f32 %v3036_v16, %v535_v18  ;;  %v6482_v10 = vpop.f32.mrb[118].mxu1  ;;  %v6614_v15 = vpop.f32.mrb[118].mxu0  ;;  %v4677_v18 = vld [vmem:[#allocation2 + $0x10] sm:$0xff] (!%p6019_p2)  ;;  %v4679_v16 = vld [vmem:[#allocation2 + $0x20] sm:$0xff] (!%p6019_p2) }
 0x333   : > { %v6860_v22 = vadd.f32 %v6859_v59, %v6613_v38  ;;  %v6863_v12 = vadd.f32 %v6482_v10, %v538_v35  ;;  %v3039_v53 = vpop.f32.mrb[119].mxu1  ;;  %v4370_v7 = vpop.f32.mrb[119].mxu0  ;;  %v4811_v35 = vmul.f32 (!%p6019_p2), %v9144_v63, %v4676_v32  ;;  %v4812_v59 = vmul.f32 (!%p6019_p2), %v9144_v63, %v4677_v18 }
 0x334   : > { %v6862_v21 = vadd.f32 %v6861_v17, %v4367_v19  ;;  %v6865_v61 = vadd.f32 %v3039_v53, %v536_v62  ;;  %v4813_v38 = vmul.f32 (!%p6019_p2), %v9144_v63, %v4678_v33  ;;  %v4680_v62 = vld [vmem:[#allocation2 + $0x28] sm:$0xff] (!%p6019_p2)  ;;  %v4681_v17 = vld [vmem:[#allocation2 + $0x30] sm:$0xff] (!%p6019_p2)  ;;  %v4945_v19 = vadd.f32 (!%p6019_p2), %v9146_v57, %v4810_v5  ;;  %v4683_v53 = vld [vmem:[#allocation2 + $0x40] sm:$0xff] (!%p6019_p2) }
 0x335   : > { %4661 = vst.msk [vmem:[#allocation2 + $0x3b0] sm:$0xff] %vm4542_vm3, %v6860_v22  ;;  %v6864_v20 = vadd.f32 %v6863_v12, %v6614_v15  ;;  %v4814_v10 = vmul.f32 (!%p6019_p2), %v9144_v63, %v4679_v16  ;;  %v4815_v22 = vmul.f32 (!%p6019_p2), %v9144_v63, %v4680_v62  ;;  %v4816_v12 = vmul.f32 (!%p6019_p2), %v9144_v63, %v4681_v17  ;;  %v4682_v15 = vld [vmem:[#allocation2 + $0x38] sm:$0xff] (!%p6019_p2)  ;;  %v4699_v62 = vld [vmem:[#allocation2 + $0xc0] sm:$0xff] (!%p6019_p2) }
 0x336   : > { %4659 = vst.msk [vmem:[#allocation2 + $0x3a0] sm:$0xff] %vm4542_vm3, %v6862_v21  ;;  %v6866_v23 = vadd.f32 %v6865_v61, %v4370_v7  ;;  %v4684_v21 = vld [vmem:[#allocation2 + $0x48] sm:$0xff] (!%p6019_p2)  ;;  %v4946_v61 = vadd.f32 (!%p6019_p2), %v9146_v57, %v4811_v35  ;;  %v4947_v7 = vadd.f32 (!%p6019_p2), %v9146_v57, %v4812_v59  ;;  %7354 = vtanh.f32 (!%p6019_p2), %v4945_v19  ;;  %v4698_v33 = vld [vmem:[#allocation2 + $0xb8] sm:$0xff] (!%p6019_p2) }
 0x337   : > { %4662 = vst.msk [vmem:[#allocation2 + $0x3b8] sm:$0xff] %vm4542_vm3, %v6864_v20  ;;  %v4948_v20 = vadd.f32 (!%p6019_p2), %v9146_v57, %v4813_v38 }
 0x338   : > { %4660 = vst.msk [vmem:[#allocation2 + $0x3a8] sm:$0xff] %vm4542_vm3, %v6866_v23  ;;  %v6485_v41 = vpop.f32.mrb[120].mxu1  ;;  %v6617_v46 = vpop.f32.mrb[120].mxu0  ;;  %v4817_v23 = vmul.f32 (!%p6019_p2), %v9144_v63, %v4682_v15  ;;  %7356 = vtanh.f32 (!%p6019_p2), %v4946_v61  ;;  %v4833_v61 = vmul.f32 (!%p6019_p2), %v9144_v63, %v4698_v33 }
 0x339   : > { %v6867_v50 = vadd.f32 %v6485_v41, %v541_v40  ;;  %v3052_v26 = vpop.f32.mrb[121].mxu1  ;;  %v4383_v31 = vpop.f32.mrb[121].mxu0  ;;  %v4685_v40 = vld [vmem:[#allocation2 + $0x50] sm:$0xff] (!%p6019_p2)  ;;  %v4686_v41 = vld [vmem:[#allocation2 + $0x58] sm:$0xff] (!%p6019_p2)  ;;  %7358 = vtanh.f32 (!%p6019_p2), %v4947_v7 }
 0x33a   : > { %v6869_v28 = vadd.f32 %v3052_v26, %v539_v36  ;;  %v6486_v2 = vpop.f32.mrb[122].mxu1  ;;  %v6618_v39 = vpop.f32.mrb[122].mxu0  ;;  %v4949_v36 = vadd.f32 (!%p6019_p2), %v9146_v57, %v4814_v10  ;;  %v4687_v26 = vld [vmem:[#allocation2 + $0x60] sm:$0xff] (!%p6019_p2)  ;;  %7360 = vtanh.f32 (!%p6019_p2), %v4948_v20  ;;  %v4701_v7 = vld [vmem:[#allocation2 + $0xd0] sm:$0xff] (!%p6019_p2) }
 0x33b   : > { %v6868_v37 = vadd.f32 %v6867_v50, %v6617_v46  ;;  %v6871_v8 = vadd.f32 %v6486_v2, %v542_v43  ;;  %v3055_v9 = vpop.f32.mrb[123].mxu1  ;;  %v4386_v52 = vpop.f32.mrb[123].mxu0  ;;  %v4950_v43 = vadd.f32 (!%p6019_p2), %v9146_v57, %v4815_v22  ;;  %v4818_v50 = vmul.f32 (!%p6019_p2), %v9144_v63, %v4683_v53 }
 0x33c   : > { %v6870_v11 = vadd.f32 %v6869_v28, %v4383_v31  ;;  %v6873_v14 = vadd.f32 %v3055_v9, %v540_v55  ;;  %v4819_v46 = vmul.f32 (!%p6019_p2), %v9144_v63, %v4684_v21  ;;  %v4951_v55 = vadd.f32 (!%p6019_p2), %v9146_v57, %v4816_v12  ;;  %v4688_v31 = vld [vmem:[#allocation2 + $0x68] sm:$0xff] (!%p6019_p2) }
 0x33d   : > { %4665 = vst.msk [vmem:[#allocation2 + $0x3d0] sm:$0xff] %vm4542_vm3, %v6868_v37  ;;  %v6872_v24 = vadd.f32 %v6871_v8, %v6618_v39  ;;  %v4820_v28 = vmul.f32 (!%p6019_p2), %v9144_v63, %v4685_v40  ;;  %v4952_v2 = vadd.f32 (!%p6019_p2), %v9146_v57, %v4817_v23  ;;  %v4821_v37 = vmul.f32 (!%p6019_p2), %v9144_v63, %v4686_v41  ;;  %v4689_v8 = vld [vmem:[#allocation2 + $0x70] sm:$0xff] (!%p6019_p2)  ;;  %v4700_v12 = vld [vmem:[#allocation2 + $0xc8] sm:$0xff] (!%p6019_p2)  ;;  %v4702_v41 = vld [vmem:[#allocation2 + $0xd8] sm:$0xff] (!%p6019_p2) }
 0x33e   : > { %4663 = vst.msk [vmem:[#allocation2 + $0x3c0] sm:$0xff] %vm4542_vm3, %v6870_v11  ;;  %v6874_v25 = vadd.f32 %v6873_v14, %v4386_v52  ;;  %7362 = vtanh.f32 (!%p6019_p2), %v4949_v36  ;;  %v4953_v39 = vadd.f32 (!%p6019_p2), %v9146_v57, %v4818_v50  ;;  %v4822_v9 = vmul.f32 (!%p6019_p2), %v9144_v63, %v4687_v26  ;;  %v4690_v11 = vld [vmem:[#allocation2 + $0x78] sm:$0xff] (!%p6019_p2) }
 0x33f   : > { %4666 = vst.msk [vmem:[#allocation2 + $0x3d8] sm:$0xff] %vm4542_vm3, %v6872_v24  ;;  %7364 = vtanh.f32 (!%p6019_p2), %v4950_v43  ;;  %v4954_v14 = vadd.f32 (!%p6019_p2), %v9146_v57, %v4819_v46  ;;  %v4823_v52 = vmul.f32 (!%p6019_p2), %v9144_v63, %v4688_v31  ;;  %v4691_v24 = vld [vmem:[#allocation2 + $0x80] sm:$0xff] (!%p6019_p2)  ;;  %v4834_v36 = vmul.f32 (!%p6019_p2), %v9144_v63, %v4699_v62 }
 0x340   : > { %4664 = vst.msk [vmem:[#allocation2 + $0x3c8] sm:$0xff] %vm4542_vm3, %v6874_v25  ;;  %v6489_v49 = vpop.f32.mrb[124].mxu1  ;;  %v6621_v30 = vpop.f32.mrb[124].mxu0  ;;  %7366 = vtanh.f32 (!%p6019_p2), %v4951_v55  ;;  %v4955_v25 = vadd.f32 (!%p6019_p2), %v9146_v57, %v4820_v28  ;;  %v4835_v26 = vmul.f32 (!%p6019_p2), %v9144_v63, %v4700_v12  ;;  %v4703_v55 = vld [vmem:[#allocation2 + $0xe0] sm:$0xff] (!%p6019_p2) }
 0x341   : > { %v6875_v42 = vadd.f32 %v6489_v49, %v545_v48  ;;  %v3068_v44 = vpop.f32.mrb[125].mxu1  ;;  %v4399_v13 = vpop.f32.mrb[125].mxu0  ;;  %v4824_v48 = vmul.f32 (!%p6019_p2), %v9144_v63, %v4689_v8  ;;  %7368 = vtanh.f32 (!%p6019_p2), %v4952_v2  ;;  %v4956_v49 = vadd.f32 (!%p6019_p2), %v9146_v57, %v4821_v37  ;;  %v4704_v8 = vld [vmem:[#allocation2 + $0xe8] sm:$0xff] (!%p6019_p2) }
 0x342   : > { %v6877_v45 = vadd.f32 %v3068_v44, %v543_v27  ;;  %v6490_v4 = vpop.f32.mrb[126].mxu1  ;;  %v6622_v34 = vpop.f32.mrb[126].mxu0  ;;  %4674 = sbr.rel (%p6019_p2) target bundleno = 968 (0x3c8), region = 60  ;;  %v4692_v27 = vld [vmem:[#allocation2 + $0x88] sm:$0xff] (!%p6019_p2)  ;;  %7370 = vtanh.f32 (!%p6019_p2), %v4953_v39  ;;  %v4826_v44 = vmul.f32 (!%p6019_p2), %v9144_v63, %v4691_v24  ;;  %v4836_v37 = vmul.f32 (!%p6019_p2), %v9144_v63, %v4701_v7 }
 0x343   : > { %v6876_v47 = vadd.f32 %v6875_v42, %v6621_v30  ;;  %v6879_v0 = vadd.f32 %v6490_v4, %v546_v51  ;;  %v3071_v1 = vpop.f32.mrb[127].mxu1  ;;  %v4402_v56 = vpop.f32.mrb[127].mxu0  ;;  %v4825_v51 = vmul.f32 (!%p6019_p2), %v9144_v63, %v4690_v11  ;;  %v4693_v42 = vld [vmem:[#allocation2 + $0x90] sm:$0xff] (!%p6019_p2)  ;;  %v4957_v30 = vadd.f32 (!%p6019_p2), %v9146_v57, %v4822_v9  ;;  %v4695_v4 = vld [vmem:[#allocation2 + $0xa0] sm:$0xff] (!%p6019_p2) }
 0x344   : > { %v6878_v3 = vadd.f32 %v6877_v45, %v4399_v13  ;;  %v6881_v6 = vadd.f32 %v3071_v1, %v544_v54  ;;  %v4694_v54 = vld [vmem:[#allocation2 + $0x98] sm:$0xff] (!%p6019_p2)  ;;  %7372 = vtanh.f32 (!%p6019_p2), %v4954_v14  ;;  %v4958_v45 = vadd.f32 (!%p6019_p2), %v9146_v57, %v4823_v52  ;;  %v4696_v1 = vld [vmem:[#allocation2 + $0xa8] sm:$0xff] (!%p6019_p2)  ;;  %v4705_v52 = vld [vmem:[#allocation2 + $0xf0] sm:$0xff] (!%p6019_p2) }
 0x345   : > { %4669 = vst.msk [vmem:[#allocation2 + $0x3f0] sm:$0xff] %vm4542_vm3, %v6876_v47  ;;  %v6880_v58 = vadd.f32 %v6879_v0, %v6622_v34  ;;  %v4827_v13 = vmul.f32 (!%p6019_p2), %v9144_v63, %v4692_v27  ;;  %v7355_v47 = vpop.eup (!%p6019_p2), %7354  ;;  %7374 = vtanh.f32 (!%p6019_p2), %v4955_v25  ;;  %v4959_v0 = vadd.f32 (!%p6019_p2), %v9146_v57, %v4824_v48 }
 0x346   : > { %4667 = vst.msk [vmem:[#allocation2 + $0x3e0] sm:$0xff] %vm4542_vm3, %v6878_v3  ;;  %v6882_v29 = vadd.f32 %v6881_v6, %v4402_v56  ;;  %v4828_v34 = vmul.f32 (!%p6019_p2), %v9144_v63, %v4693_v42  ;;  %v7357_v3 = vpop.eup (!%p6019_p2), %7356  ;;  %v5201_v6 = vmul.f32 (!%p6019_p2), 10.0, %v7355_v47  ;;  %7376 = vtanh.f32 (!%p6019_p2), %v4956_v49  ;;  %v4706_v49 = vld [vmem:[#allocation2 + $0xf8] sm:$0xff] (!%p6019_p2) }
 0x347   : > { %4670 = vst.msk [vmem:[#allocation2 + $0x3f8] sm:$0xff] %vm4542_vm3, %v6880_v58  ;;  %v4960_v56 = vadd.f32 (!%p6019_p2), %v9146_v57, %v4825_v51  ;;  %v4829_v58 = vmul.f32 (!%p6019_p2), %v9144_v63, %v4694_v54  ;;  %v7359_v60 = vpop.eup (!%p6019_p2), %7358  ;;  %v5202_v5 = vmul.f32 (!%p6019_p2), 10.0, %v7357_v3  ;;  %7378 = vtanh.f32 (!%p6019_p2), %v4957_v30  ;;  %v4707_v54 = vld [vmem:[#allocation2 + $0x100] sm:$0xff] (!%p6019_p2) }
 0x348   : > { %4668 = vst.msk [vmem:[#allocation2 + $0x3e8] sm:$0xff] %vm4542_vm3, %v6882_v29  ;;  %v4697_v29 = vld [vmem:[#allocation2 + $0xb0] sm:$0xff] (!%p6019_p2)  ;;  %v4961_v32 = vadd.f32 (!%p6019_p2), %v9146_v57, %v4826_v44  ;;  %v4830_v18 = vmul.f32 (!%p6019_p2), %v9144_v63, %v4695_v4  ;;  %v7361_v35 = vpop.eup (!%p6019_p2), %7360  ;;  %5329 = vst.msk [vmem:[%s8164_s26] sm:$0xff] (!%p6019_p2), %vm4542_vm3, %v5201_v6  ;;  %v5203_v59 = vmul.f32 (!%p6019_p2), 10.0, %v7359_v60  ;;  %7380 = vtanh.f32 (!%p6019_p2), %v4958_v45 }
 0x349   : > { %v4962_v38 = vadd.f32 %v9146_v57, %v4827_v13  ;;  %v4831_v16 = vmul.f32 %v9144_v63, %v4696_v1  ;;  %v7363_v17 = vpop.eup %7362  ;;  %5330 = vst.msk [vmem:[%s8164_s26 + $0x8] sm:$0xff] %vm4542_vm3, %v5202_v5  ;;  %v5204_v19 = vmul.f32 10.0, %v7361_v35  ;;  %7382 = vtanh.f32 %v4959_v0  ;;  %v4708_v0 = vld [vmem:[#allocation2 + $0x108] sm:$0xff] }
 0x34a   : > { %v4963_v10 = vadd.f32 %v9146_v57, %v4828_v34  ;;  %v4832_v22 = vmul.f32 %v9144_v63, %v4697_v29  ;;  %v7365_v15 = vpop.eup %7364  ;;  %5331 = vst.msk [vmem:[%s8164_s26 + $0x10] sm:$0xff] %vm4542_vm3, %v5203_v59  ;;  %v5205_v53 = vmul.f32 10.0, %v7363_v17  ;;  %7384 = vtanh.f32 %v4960_v56  ;;  %v4709_v56 = vld [vmem:[#allocation2 + $0x110] sm:$0xff] }
 0x34b   : > { %v4964_v21 = vadd.f32 %v9146_v57, %v4829_v58  ;;  %v7367_v20 = vpop.eup %7366  ;;  %5332 = vst.msk [vmem:[%s8164_s26 + $0x18] sm:$0xff] %vm4542_vm3, %v5204_v19  ;;  %v5206_v23 = vmul.f32 10.0, %v7365_v15  ;;  %7386 = vtanh.f32 %v4961_v32  ;;  %v4965_v40 = vadd.f32 %v9146_v57, %v4830_v18  ;;  %v4710_v32 = vld [vmem:[#allocation2 + $0x118] sm:$0xff] }
 0x34c   : > { %v7369_v43 = vpop.eup %7368  ;;  %5333 = vst.msk [vmem:[%s8164_s26 + $0x20] sm:$0xff] %vm4542_vm3, %v5205_v53  ;;  %v5207_v50 = vmul.f32 10.0, %v7367_v20  ;;  %7388 = vtanh.f32 %v4962_v38  ;;  %v4966_v46 = vadd.f32 %v9146_v57, %v4831_v16  ;;  %v4967_v2 = vadd.f32 %v9146_v57, %v4832_v22  ;;  %v4711_v38 = vld [vmem:[#allocation2 + $0x120] sm:$0xff] }
 0x34d   : > { %v7371_v28 = vpop.eup %7370  ;;  %5334 = vst.msk [vmem:[%s8164_s26 + $0x28] sm:$0xff] %vm4542_vm3, %v5206_v23  ;;  %v5208_v31 = vmul.f32 10.0, %v7369_v43  ;;  %7390 = vtanh.f32 %v4963_v10  ;;  %v4968_v11 = vadd.f32 %v9146_v57, %v4833_v61  ;;  %v4837_v14 = vmul.f32 %v9144_v63, %v4702_v41  ;;  %v4712_v10 = vld [vmem:[#allocation2 + $0x128] sm:$0xff] }
 0x34e   : > { %v7373_v39 = vpop.eup %7372  ;;  %5335 = vst.msk [vmem:[%s8164_s26 + $0x30] sm:$0xff] %vm4542_vm3, %v5207_v50  ;;  %v5209_v9 = vmul.f32 10.0, %v7371_v28  ;;  %7392 = vtanh.f32 %v4964_v21  ;;  %v4969_v48 = vadd.f32 %v9146_v57, %v4834_v36  ;;  %v4838_v27 = vmul.f32 %v9144_v63, %v4703_v55  ;;  %v4713_v21 = vld [vmem:[#allocation2 + $0x130] sm:$0xff] }
 0x34f   : > { %v7375_v24 = vpop.eup %7374  ;;  %5336 = vst.msk [vmem:[%s8164_s26 + $0x38] sm:$0xff] %vm4542_vm3, %v5208_v31  ;;  %v5210_v25 = vmul.f32 10.0, %v7373_v39  ;;  %7394 = vtanh.f32 %v4965_v40  ;;  %v4970_v30 = vadd.f32 %v9146_v57, %v4835_v26  ;;  %v4839_v44 = vmul.f32 %v9144_v63, %v4704_v8  ;;  %v4714_v40 = vld [vmem:[#allocation2 + $0x138] sm:$0xff] }
 0x350   : > { %v7377_v51 = vpop.eup %7376  ;;  %5337 = vst.msk [vmem:[%s8164_s26 + $0x40] sm:$0xff] %vm4542_vm3, %v5209_v9  ;;  %v5211_v42 = vmul.f32 10.0, %v7375_v24  ;;  %7396 = vtanh.f32 %v4966_v46  ;;  %v4971_v4 = vadd.f32 %v9146_v57, %v4836_v37  ;;  %v4840_v47 = vmul.f32 %v9144_v63, %v4705_v52  ;;  %v4715_v46 = vld [vmem:[#allocation2 + $0x140] sm:$0xff] }
 0x351   : > { %v7379_v45 = vpop.eup %7378  ;;  %5338 = vst.msk [vmem:[%s8164_s26 + $0x48] sm:$0xff] %vm4542_vm3, %v5210_v25  ;;  %v5212_v13 = vmul.f32 10.0, %v7377_v51  ;;  %7398 = vtanh.f32 %v4967_v2  ;;  %v4972_v3 = vadd.f32 %v9146_v57, %v4837_v14  ;;  %v4841_v6 = vmul.f32 %v9144_v63, %v4706_v49  ;;  %v4716_v2 = vld [vmem:[#allocation2 + $0x148] sm:$0xff] }
 0x352   : > { %v7381_v34 = vpop.eup %7380  ;;  %5339 = vst.msk [vmem:[%s8164_s26 + $0x50] sm:$0xff] %vm4542_vm3, %v5211_v42  ;;  %v5213_v1 = vmul.f32 10.0, %v7379_v45  ;;  %7400 = vtanh.f32 %v4968_v11  ;;  %v4973_v60 = vadd.f32 %v9146_v57, %v4838_v27  ;;  %v4842_v5 = vmul.f32 %v9144_v63, %v4707_v54  ;;  %v4717_v11 = vld [vmem:[#allocation2 + $0x150] sm:$0xff] }
 0x353   : > { %v7383_v58 = vpop.eup %7382  ;;  %5340 = vst.msk [vmem:[%s8164_s26 + $0x58] sm:$0xff] %vm4542_vm3, %v5212_v13  ;;  %v5214_v29 = vmul.f32 10.0, %v7381_v34  ;;  %7402 = vtanh.f32 %v4969_v48  ;;  %v4974_v35 = vadd.f32 %v9146_v57, %v4839_v44  ;;  %v4843_v59 = vmul.f32 %v9144_v63, %v4708_v0  ;;  %v4718_v48 = vld [vmem:[#allocation2 + $0x158] sm:$0xff] }
 0x354   : > { %v7385_v18 = vpop.eup %7384  ;;  %5341 = vst.msk [vmem:[%s8164_s26 + $0x60] sm:$0xff] %vm4542_vm3, %v5213_v1  ;;  %v5215_v33 = vmul.f32 10.0, %v7383_v58  ;;  %7404 = vtanh.f32 %v4970_v30  ;;  %v4975_v17 = vadd.f32 %v9146_v57, %v4840_v47  ;;  %v4844_v19 = vmul.f32 %v9144_v63, %v4709_v56  ;;  %v4719_v30 = vld [vmem:[#allocation2 + $0x160] sm:$0xff] }
 0x355   : > { %v7387_v16 = vpop.eup %7386  ;;  %5342 = vst.msk [vmem:[%s8164_s26 + $0x68] sm:$0xff] %vm4542_vm3, %v5214_v29  ;;  %v5216_v62 = vmul.f32 10.0, %v7385_v18  ;;  %7406 = vtanh.f32 %v4971_v4  ;;  %v4976_v15 = vadd.f32 %v9146_v57, %v4841_v6  ;;  %v4845_v53 = vmul.f32 %v9144_v63, %v4710_v32  ;;  %v4720_v4 = vld [vmem:[#allocation2 + $0x168] sm:$0xff] }
 0x356   : > { %v7389_v22 = vpop.eup %7388  ;;  %5343 = vst.msk [vmem:[%s8164_s26 + $0x70] sm:$0xff] %vm4542_vm3, %v5215_v33  ;;  %v5217_v12 = vmul.f32 10.0, %v7387_v16  ;;  %7408 = vtanh.f32 %v4972_v3  ;;  %v4977_v20 = vadd.f32 %v9146_v57, %v4842_v5  ;;  %v4846_v23 = vmul.f32 %v9144_v63, %v4711_v38  ;;  %v4721_v3 = vld [vmem:[#allocation2 + $0x170] sm:$0xff] }
 0x357   : > { %v7391_v61 = vpop.eup %7390  ;;  %5344 = vst.msk [vmem:[%s8164_s26 + $0x78] sm:$0xff] %vm4542_vm3, %v5216_v62  ;;  %v5218_v7 = vmul.f32 10.0, %v7389_v22  ;;  %7410 = vtanh.f32 %v4973_v60  ;;  %v4978_v43 = vadd.f32 %v9146_v57, %v4843_v59  ;;  %v4847_v50 = vmul.f32 %v9144_v63, %v4712_v10  ;;  %v4722_v60 = vld [vmem:[#allocation2 + $0x178] sm:$0xff] }
 0x358   : > { %v7393_v36 = vpop.eup %7392  ;;  %5345 = vst.msk [vmem:[%s8164_s26 + $0x80] sm:$0xff] %vm4542_vm3, %v5217_v12  ;;  %v5219_v41 = vmul.f32 10.0, %v7391_v61  ;;  %7412 = vtanh.f32 %v4974_v35  ;;  %v4979_v28 = vadd.f32 %v9146_v57, %v4844_v19  ;;  %v4848_v31 = vmul.f32 %v9144_v63, %v4713_v21  ;;  %v4723_v35 = vld [vmem:[#allocation2 + $0x180] sm:$0xff] }
 0x359   : > { %v7395_v26 = vpop.eup %7394  ;;  %5346 = vst.msk [vmem:[%s8164_s26 + $0x88] sm:$0xff] %vm4542_vm3, %v5218_v7  ;;  %v5220_v55 = vmul.f32 10.0, %v7393_v36  ;;  %7414 = vtanh.f32 %v4975_v17  ;;  %v4980_v39 = vadd.f32 %v9146_v57, %v4845_v53  ;;  %v4849_v9 = vmul.f32 %v9144_v63, %v4714_v40  ;;  %v4724_v17 = vld [vmem:[#allocation2 + $0x188] sm:$0xff] }
 0x35a   : > { %v7397_v37 = vpop.eup %7396  ;;  %5347 = vst.msk [vmem:[%s8164_s26 + $0x90] sm:$0xff] %vm4542_vm3, %v5219_v41  ;;  %v5221_v8 = vmul.f32 10.0, %v7395_v26  ;;  %7416 = vtanh.f32 %v4976_v15  ;;  %v4981_v24 = vadd.f32 %v9146_v57, %v4846_v23  ;;  %v4850_v25 = vmul.f32 %v9144_v63, %v4715_v46  ;;  %v4725_v15 = vld [vmem:[#allocation2 + $0x190] sm:$0xff] }
 0x35b   : > { %v7399_v14 = vpop.eup %7398  ;;  %5348 = vst.msk [vmem:[%s8164_s26 + $0x98] sm:$0xff] %vm4542_vm3, %v5220_v55  ;;  %v5222_v52 = vmul.f32 10.0, %v7397_v37  ;;  %7418 = vtanh.f32 %v4977_v20  ;;  %v4982_v51 = vadd.f32 %v9146_v57, %v4847_v50  ;;  %v4851_v42 = vmul.f32 %v9144_v63, %v4716_v2  ;;  %v4726_v20 = vld [vmem:[#allocation2 + $0x198] sm:$0xff] }
 0x35c   : > { %v7401_v27 = vpop.eup %7400  ;;  %5349 = vst.msk [vmem:[%s8164_s26 + $0xa0] sm:$0xff] %vm4542_vm3, %v5221_v8  ;;  %v5223_v49 = vmul.f32 10.0, %v7399_v14  ;;  %7420 = vtanh.f32 %v4978_v43  ;;  %v4983_v45 = vadd.f32 %v9146_v57, %v4848_v31  ;;  %v4852_v13 = vmul.f32 %v9144_v63, %v4717_v11  ;;  %v4727_v43 = vld [vmem:[#allocation2 + $0x1a0] sm:$0xff] }
 0x35d   : > { %v7403_v44 = vpop.eup %7402  ;;  %5350 = vst.msk [vmem:[%s8164_s26 + $0xa8] sm:$0xff] %vm4542_vm3, %v5222_v52  ;;  %v5224_v54 = vmul.f32 10.0, %v7401_v27  ;;  %7422 = vtanh.f32 %v4979_v28  ;;  %v4984_v34 = vadd.f32 %v9146_v57, %v4849_v9  ;;  %v4853_v1 = vmul.f32 %v9144_v63, %v4718_v48  ;;  %v4728_v28 = vld [vmem:[#allocation2 + $0x1a8] sm:$0xff] }
 0x35e   : > { %v7405_v47 = vpop.eup %7404  ;;  %5351 = vst.msk [vmem:[%s8164_s26 + $0xb0] sm:$0xff] %vm4542_vm3, %v5223_v49  ;;  %v5225_v0 = vmul.f32 10.0, %v7403_v44  ;;  %7424 = vtanh.f32 %v4980_v39  ;;  %v4985_v58 = vadd.f32 %v9146_v57, %v4850_v25  ;;  %v4854_v29 = vmul.f32 %v9144_v63, %v4719_v30  ;;  %v4729_v39 = vld [vmem:[#allocation2 + $0x1b0] sm:$0xff] }
 0x35f   : > { %v7407_v6 = vpop.eup %7406  ;;  %5352 = vst.msk [vmem:[%s8164_s26 + $0xb8] sm:$0xff] %vm4542_vm3, %v5224_v54  ;;  %v5226_v56 = vmul.f32 10.0, %v7405_v47  ;;  %7426 = vtanh.f32 %v4981_v24  ;;  %v4986_v18 = vadd.f32 %v9146_v57, %v4851_v42  ;;  %v4855_v33 = vmul.f32 %v9144_v63, %v4720_v4  ;;  %v4730_v24 = vld [vmem:[#allocation2 + $0x1b8] sm:$0xff] }
 0x360   : > { %v7409_v5 = vpop.eup %7408  ;;  %5353 = vst.msk [vmem:[%s8164_s26 + $0xc0] sm:$0xff] %vm4542_vm3, %v5225_v0  ;;  %v5227_v32 = vmul.f32 10.0, %v7407_v6  ;;  %7428 = vtanh.f32 %v4982_v51  ;;  %v4987_v16 = vadd.f32 %v9146_v57, %v4852_v13  ;;  %v4856_v62 = vmul.f32 %v9144_v63, %v4721_v3  ;;  %v4731_v51 = vld [vmem:[#allocation2 + $0x1c0] sm:$0xff] }
 0x361   : > { %v7411_v59 = vpop.eup %7410  ;;  %5354 = vst.msk [vmem:[%s8164_s26 + $0xc8] sm:$0xff] %vm4542_vm3, %v5226_v56  ;;  %v5228_v38 = vmul.f32 10.0, %v7409_v5  ;;  %7430 = vtanh.f32 %v4983_v45  ;;  %v4988_v22 = vadd.f32 %v9146_v57, %v4853_v1  ;;  %v4857_v12 = vmul.f32 %v9144_v63, %v4722_v60  ;;  %v4732_v45 = vld [vmem:[#allocation2 + $0x1c8] sm:$0xff] }
 0x362   : > { %v7413_v19 = vpop.eup %7412  ;;  %5355 = vst.msk [vmem:[%s8164_s26 + $0xd0] sm:$0xff] %vm4542_vm3, %v5227_v32  ;;  %v5229_v10 = vmul.f32 10.0, %v7411_v59  ;;  %7432 = vtanh.f32 %v4984_v34  ;;  %v4989_v61 = vadd.f32 %v9146_v57, %v4854_v29  ;;  %v4858_v7 = vmul.f32 %v9144_v63, %v4723_v35  ;;  %v4733_v34 = vld [vmem:[#allocation2 + $0x1d0] sm:$0xff] }
 0x363   : > { %v7415_v53 = vpop.eup %7414  ;;  %5356 = vst.msk [vmem:[%s8164_s26 + $0xd8] sm:$0xff] %vm4542_vm3, %v5228_v38  ;;  %v5230_v21 = vmul.f32 10.0, %v7413_v19  ;;  %7434 = vtanh.f32 %v4985_v58  ;;  %v4990_v36 = vadd.f32 %v9146_v57, %v4855_v33  ;;  %v4859_v41 = vmul.f32 %v9144_v63, %v4724_v17  ;;  %v4734_v58 = vld [vmem:[#allocation2 + $0x1d8] sm:$0xff] }
 0x364   : > { %v7417_v23 = vpop.eup %7416  ;;  %5357 = vst.msk [vmem:[%s8164_s26 + $0xe0] sm:$0xff] %vm4542_vm3, %v5229_v10  ;;  %v5231_v40 = vmul.f32 10.0, %v7415_v53  ;;  %7436 = vtanh.f32 %v4986_v18  ;;  %v4991_v26 = vadd.f32 %v9146_v57, %v4856_v62  ;;  %v4860_v55 = vmul.f32 %v9144_v63, %v4725_v15  ;;  %v4735_v18 = vld [vmem:[#allocation2 + $0x1e0] sm:$0xff] }
 0x365   : > { %v7419_v50 = vpop.eup %7418  ;;  %5358 = vst.msk [vmem:[%s8164_s26 + $0xe8] sm:$0xff] %vm4542_vm3, %v5230_v21  ;;  %v5232_v46 = vmul.f32 10.0, %v7417_v23  ;;  %7438 = vtanh.f32 %v4987_v16  ;;  %v4992_v37 = vadd.f32 %v9146_v57, %v4857_v12  ;;  %v4861_v8 = vmul.f32 %v9144_v63, %v4726_v20  ;;  %v4736_v16 = vld [vmem:[#allocation2 + $0x1e8] sm:$0xff] }
 0x366   : > { %v7421_v31 = vpop.eup %7420  ;;  %5359 = vst.msk [vmem:[%s8164_s26 + $0xf0] sm:$0xff] %vm4542_vm3, %v5231_v40  ;;  %v5233_v2 = vmul.f32 10.0, %v7419_v50  ;;  %7440 = vtanh.f32 %v4988_v22  ;;  %v4993_v14 = vadd.f32 %v9146_v57, %v4858_v7  ;;  %v4862_v52 = vmul.f32 %v9144_v63, %v4727_v43  ;;  %v4737_v22 = vld [vmem:[#allocation2 + $0x1f0] sm:$0xff] }
 0x367   : > { %v7423_v9 = vpop.eup %7422  ;;  %5360 = vst.msk [vmem:[%s8164_s26 + $0xf8] sm:$0xff] %vm4542_vm3, %v5232_v46  ;;  %v5234_v11 = vmul.f32 10.0, %v7421_v31  ;;  %7442 = vtanh.f32 %v4989_v61  ;;  %v4994_v27 = vadd.f32 %v9146_v57, %v4859_v41  ;;  %v4863_v49 = vmul.f32 %v9144_v63, %v4728_v28  ;;  %v4738_v61 = vld [vmem:[#allocation2 + $0x1f8] sm:$0xff] }
 0x368   : > { %v7425_v25 = vpop.eup %7424  ;;  %5361 = vst.msk [vmem:[%s8164_s26 + $0x100] sm:$0xff] %vm4542_vm3, %v5233_v2  ;;  %v5235_v48 = vmul.f32 10.0, %v7423_v9  ;;  %7444 = vtanh.f32 %v4990_v36  ;;  %v4995_v44 = vadd.f32 %v9146_v57, %v4860_v55  ;;  %v4864_v54 = vmul.f32 %v9144_v63, %v4729_v39  ;;  %v4739_v36 = vld [vmem:[#allocation2 + $0x200] sm:$0xff] }
 0x369   : > { %v7427_v42 = vpop.eup %7426  ;;  %5362 = vst.msk [vmem:[%s8164_s26 + $0x108] sm:$0xff] %vm4542_vm3, %v5234_v11  ;;  %v5236_v30 = vmul.f32 10.0, %v7425_v25  ;;  %7446 = vtanh.f32 %v4991_v26  ;;  %v4996_v47 = vadd.f32 %v9146_v57, %v4861_v8  ;;  %v4865_v0 = vmul.f32 %v9144_v63, %v4730_v24  ;;  %v4740_v26 = vld [vmem:[#allocation2 + $0x208] sm:$0xff] }
 0x36a   : > { %v7429_v13 = vpop.eup %7428  ;;  %5363 = vst.msk [vmem:[%s8164_s26 + $0x110] sm:$0xff] %vm4542_vm3, %v5235_v48  ;;  %v5237_v4 = vmul.f32 10.0, %v7427_v42  ;;  %7448 = vtanh.f32 %v4992_v37  ;;  %v4997_v6 = vadd.f32 %v9146_v57, %v4862_v52  ;;  %v4866_v56 = vmul.f32 %v9144_v63, %v4731_v51  ;;  %v4741_v37 = vld [vmem:[#allocation2 + $0x210] sm:$0xff] }
 0x36b   : > { %v7431_v1 = vpop.eup %7430  ;;  %5364 = vst.msk [vmem:[%s8164_s26 + $0x118] sm:$0xff] %vm4542_vm3, %v5236_v30  ;;  %v5238_v3 = vmul.f32 10.0, %v7429_v13  ;;  %7450 = vtanh.f32 %v4993_v14  ;;  %v4998_v5 = vadd.f32 %v9146_v57, %v4863_v49  ;;  %v4867_v32 = vmul.f32 %v9144_v63, %v4732_v45  ;;  %v4742_v14 = vld [vmem:[#allocation2 + $0x218] sm:$0xff] }
 0x36c   : > { %v7433_v29 = vpop.eup %7432  ;;  %5365 = vst.msk [vmem:[%s8164_s26 + $0x120] sm:$0xff] %vm4542_vm3, %v5237_v4  ;;  %v5239_v60 = vmul.f32 10.0, %v7431_v1  ;;  %7452 = vtanh.f32 %v4994_v27  ;;  %v4999_v59 = vadd.f32 %v9146_v57, %v4864_v54  ;;  %v4868_v38 = vmul.f32 %v9144_v63, %v4733_v34  ;;  %v4743_v27 = vld [vmem:[#allocation2 + $0x220] sm:$0xff] }
 0x36d   : > { %v7435_v33 = vpop.eup %7434  ;;  %5366 = vst.msk [vmem:[%s8164_s26 + $0x128] sm:$0xff] %vm4542_vm3, %v5238_v3  ;;  %v5240_v35 = vmul.f32 10.0, %v7433_v29  ;;  %7454 = vtanh.f32 %v4995_v44  ;;  %v5000_v19 = vadd.f32 %v9146_v57, %v4865_v0  ;;  %v4869_v10 = vmul.f32 %v9144_v63, %v4734_v58  ;;  %v4744_v44 = vld [vmem:[#allocation2 + $0x228] sm:$0xff] }
 0x36e   : > { %v7437_v62 = vpop.eup %7436  ;;  %5367 = vst.msk [vmem:[%s8164_s26 + $0x130] sm:$0xff] %vm4542_vm3, %v5239_v60  ;;  %v5241_v17 = vmul.f32 10.0, %v7435_v33  ;;  %7456 = vtanh.f32 %v4996_v47  ;;  %v5001_v53 = vadd.f32 %v9146_v57, %v4866_v56  ;;  %v4870_v21 = vmul.f32 %v9144_v63, %v4735_v18  ;;  %v4745_v47 = vld [vmem:[#allocation2 + $0x230] sm:$0xff] }
 0x36f   : > { %v7439_v12 = vpop.eup %7438  ;;  %5368 = vst.msk [vmem:[%s8164_s26 + $0x138] sm:$0xff] %vm4542_vm3, %v5240_v35  ;;  %v5242_v15 = vmul.f32 10.0, %v7437_v62  ;;  %7458 = vtanh.f32 %v4997_v6  ;;  %v5002_v23 = vadd.f32 %v9146_v57, %v4867_v32  ;;  %v4871_v40 = vmul.f32 %v9144_v63, %v4736_v16  ;;  %v4746_v6 = vld [vmem:[#allocation2 + $0x238] sm:$0xff] }
 0x370   : > { %v7441_v7 = vpop.eup %7440  ;;  %5369 = vst.msk [vmem:[%s8164_s26 + $0x140] sm:$0xff] %vm4542_vm3, %v5241_v17  ;;  %v5243_v20 = vmul.f32 10.0, %v7439_v12  ;;  %7460 = vtanh.f32 %v4998_v5  ;;  %v5003_v50 = vadd.f32 %v9146_v57, %v4868_v38  ;;  %v4872_v46 = vmul.f32 %v9144_v63, %v4737_v22  ;;  %v4747_v5 = vld [vmem:[#allocation2 + $0x240] sm:$0xff] }
 0x371   : > { %v7443_v41 = vpop.eup %7442  ;;  %5370 = vst.msk [vmem:[%s8164_s26 + $0x148] sm:$0xff] %vm4542_vm3, %v5242_v15  ;;  %v5244_v43 = vmul.f32 10.0, %v7441_v7  ;;  %7462 = vtanh.f32 %v4999_v59  ;;  %v5004_v31 = vadd.f32 %v9146_v57, %v4869_v10  ;;  %v4873_v2 = vmul.f32 %v9144_v63, %v4738_v61  ;;  %v4748_v59 = vld [vmem:[#allocation2 + $0x248] sm:$0xff] }
 0x372   : > { %v7445_v55 = vpop.eup %7444  ;;  %5371 = vst.msk [vmem:[%s8164_s26 + $0x150] sm:$0xff] %vm4542_vm3, %v5243_v20  ;;  %v5245_v28 = vmul.f32 10.0, %v7443_v41  ;;  %7464 = vtanh.f32 %v5000_v19  ;;  %v5005_v9 = vadd.f32 %v9146_v57, %v4870_v21  ;;  %v4874_v11 = vmul.f32 %v9144_v63, %v4739_v36  ;;  %v4749_v19 = vld [vmem:[#allocation2 + $0x250] sm:$0xff] }
 0x373   : > { %v7447_v8 = vpop.eup %7446  ;;  %5372 = vst.msk [vmem:[%s8164_s26 + $0x158] sm:$0xff] %vm4542_vm3, %v5244_v43  ;;  %v5246_v39 = vmul.f32 10.0, %v7445_v55  ;;  %7466 = vtanh.f32 %v5001_v53  ;;  %v5006_v25 = vadd.f32 %v9146_v57, %v4871_v40  ;;  %v4875_v48 = vmul.f32 %v9144_v63, %v4740_v26  ;;  %v4750_v53 = vld [vmem:[#allocation2 + $0x258] sm:$0xff] }
 0x374   : > { %v7449_v52 = vpop.eup %7448  ;;  %5373 = vst.msk [vmem:[%s8164_s26 + $0x160] sm:$0xff] %vm4542_vm3, %v5245_v28  ;;  %v5247_v24 = vmul.f32 10.0, %v7447_v8  ;;  %7468 = vtanh.f32 %v5002_v23  ;;  %v5007_v42 = vadd.f32 %v9146_v57, %v4872_v46  ;;  %v4876_v30 = vmul.f32 %v9144_v63, %v4741_v37  ;;  %v4751_v23 = vld [vmem:[#allocation2 + $0x260] sm:$0xff] }
 0x375   : > { %v7451_v49 = vpop.eup %7450  ;;  %5374 = vst.msk [vmem:[%s8164_s26 + $0x168] sm:$0xff] %vm4542_vm3, %v5246_v39  ;;  %v5248_v51 = vmul.f32 10.0, %v7449_v52  ;;  %7470 = vtanh.f32 %v5003_v50  ;;  %v5008_v13 = vadd.f32 %v9146_v57, %v4873_v2  ;;  %v4877_v4 = vmul.f32 %v9144_v63, %v4742_v14  ;;  %v4752_v50 = vld [vmem:[#allocation2 + $0x268] sm:$0xff] }
 0x376   : > { %v7453_v54 = vpop.eup %7452  ;;  %5375 = vst.msk [vmem:[%s8164_s26 + $0x170] sm:$0xff] %vm4542_vm3, %v5247_v24  ;;  %v5249_v45 = vmul.f32 10.0, %v7451_v49  ;;  %7472 = vtanh.f32 %v5004_v31  ;;  %v5009_v1 = vadd.f32 %v9146_v57, %v4874_v11  ;;  %v4878_v3 = vmul.f32 %v9144_v63, %v4743_v27  ;;  %v4753_v31 = vld [vmem:[#allocation2 + $0x270] sm:$0xff] }
 0x377   : > { %v7455_v0 = vpop.eup %7454  ;;  %5376 = vst.msk [vmem:[%s8164_s26 + $0x178] sm:$0xff] %vm4542_vm3, %v5248_v51  ;;  %v5250_v34 = vmul.f32 10.0, %v7453_v54  ;;  %7474 = vtanh.f32 %v5005_v9  ;;  %v5010_v29 = vadd.f32 %v9146_v57, %v4875_v48  ;;  %v4879_v60 = vmul.f32 %v9144_v63, %v4744_v44  ;;  %v4754_v9 = vld [vmem:[#allocation2 + $0x278] sm:$0xff] }
 0x378   : > { %v7457_v56 = vpop.eup %7456  ;;  %5377 = vst.msk [vmem:[%s8164_s26 + $0x180] sm:$0xff] %vm4542_vm3, %v5249_v45  ;;  %v5251_v58 = vmul.f32 10.0, %v7455_v0  ;;  %7476 = vtanh.f32 %v5006_v25  ;;  %v5011_v33 = vadd.f32 %v9146_v57, %v4876_v30  ;;  %v4880_v35 = vmul.f32 %v9144_v63, %v4745_v47  ;;  %v4755_v25 = vld [vmem:[#allocation2 + $0x280] sm:$0xff] }
 0x379   : > { %v7459_v32 = vpop.eup %7458  ;;  %5378 = vst.msk [vmem:[%s8164_s26 + $0x188] sm:$0xff] %vm4542_vm3, %v5250_v34  ;;  %v5252_v18 = vmul.f32 10.0, %v7457_v56  ;;  %7478 = vtanh.f32 %v5007_v42  ;;  %v5012_v62 = vadd.f32 %v9146_v57, %v4877_v4  ;;  %v4881_v17 = vmul.f32 %v9144_v63, %v4746_v6  ;;  %v4756_v42 = vld [vmem:[#allocation2 + $0x288] sm:$0xff] }
 0x37a   : > { %v7461_v38 = vpop.eup %7460  ;;  %5379 = vst.msk [vmem:[%s8164_s26 + $0x190] sm:$0xff] %vm4542_vm3, %v5251_v58  ;;  %v5253_v16 = vmul.f32 10.0, %v7459_v32  ;;  %7480 = vtanh.f32 %v5008_v13  ;;  %v5013_v12 = vadd.f32 %v9146_v57, %v4878_v3  ;;  %v4882_v15 = vmul.f32 %v9144_v63, %v4747_v5  ;;  %v4757_v13 = vld [vmem:[#allocation2 + $0x290] sm:$0xff] }
 0x37b   : > { %v7463_v10 = vpop.eup %7462  ;;  %5380 = vst.msk [vmem:[%s8164_s26 + $0x198] sm:$0xff] %vm4542_vm3, %v5252_v18  ;;  %v5254_v22 = vmul.f32 10.0, %v7461_v38  ;;  %7482 = vtanh.f32 %v5009_v1  ;;  %v5014_v7 = vadd.f32 %v9146_v57, %v4879_v60  ;;  %v4883_v20 = vmul.f32 %v9144_v63, %v4748_v59  ;;  %v4758_v1 = vld [vmem:[#allocation2 + $0x298] sm:$0xff]  ;;  %v9433_v18 = vld [vmem:[#allocation8] ss:$0 sm:$0xff] }
 0x37c   : > { %v7465_v21 = vpop.eup %7464  ;;  %5381 = vst.msk [vmem:[%s8164_s26 + $0x1a0] sm:$0xff] %vm4542_vm3, %v5253_v16  ;;  %v5255_v61 = vmul.f32 10.0, %v7463_v10  ;;  %7484 = vtanh.f32 %v5010_v29  ;;  %v5015_v41 = vadd.f32 %v9146_v57, %v4880_v35  ;;  %v4884_v43 = vmul.f32 %v9144_v63, %v4749_v19  ;;  %v4759_v29 = vld [vmem:[#allocation2 + $0x2a0] sm:$0xff]  ;;  %v4760_v35 = vld [vmem:[#allocation2 + $0x2a8] sm:$0xff] }
 0x37d   : > { %v7467_v40 = vpop.eup %7466  ;;  %5382 = vst.msk [vmem:[%s8164_s26 + $0x1a8] sm:$0xff] %vm4542_vm3, %v5254_v22  ;;  %v5256_v36 = vmul.f32 10.0, %v7465_v21  ;;  %7486 = vtanh.f32 %v5011_v33  ;;  %v5016_v55 = vadd.f32 %v9146_v57, %v4881_v17  ;;  %v4885_v28 = vmul.f32 %v9144_v63, %v4750_v53  ;;  %v4761_v17 = vld [vmem:[#allocation2 + $0x2b0] sm:$0xff] }
 0x37e   : > { %v7469_v46 = vpop.eup %7468  ;;  %5383 = vst.msk [vmem:[%s8164_s26 + $0x1b0] sm:$0xff] %vm4542_vm3, %v5255_v61  ;;  %v5257_v26 = vmul.f32 10.0, %v7467_v40  ;;  %7488 = vtanh.f32 %v5012_v62  ;;  %v5017_v8 = vadd.f32 %v9146_v57, %v4882_v15  ;;  %v4886_v39 = vmul.f32 %v9144_v63, %v4751_v23 }
 0x37f   : > { %v7471_v2 = vpop.eup %7470  ;;  %5384 = vst.msk [vmem:[%s8164_s26 + $0x1b8] sm:$0xff] %vm4542_vm3, %v5256_v36  ;;  %v5258_v37 = vmul.f32 10.0, %v7469_v46  ;;  %7490 = vtanh.f32 %v5013_v12  ;;  %v5018_v52 = vadd.f32 %v9146_v57, %v4883_v20  ;;  %v4887_v24 = vmul.f32 %v9144_v63, %v4752_v50  ;;  %v4762_v12 = vld [vmem:[#allocation2 + $0x2b8] sm:$0xff] }
 0x380   : > { %v7473_v11 = vpop.eup %7472  ;;  %5385 = vst.msk [vmem:[%s8164_s26 + $0x1c0] sm:$0xff] %vm4542_vm3, %v5257_v26  ;;  %v5259_v14 = vmul.f32 10.0, %v7471_v2  ;;  %7492 = vtanh.f32 %v5014_v7  ;;  %v5019_v49 = vadd.f32 %v9146_v57, %v4884_v43  ;;  %v4888_v51 = vmul.f32 %v9144_v63, %v4753_v31  ;;  %v4763_v7 = vld [vmem:[#allocation2 + $0x2c0] sm:$0xff] }
 0x381   : > { %v7475_v48 = vpop.eup %7474  ;;  %5386 = vst.msk [vmem:[%s8164_s26 + $0x1c8] sm:$0xff] %vm4542_vm3, %v5258_v37  ;;  %v5260_v27 = vmul.f32 10.0, %v7473_v11  ;;  %7494 = vtanh.f32 %v5015_v41  ;;  %v5020_v54 = vadd.f32 %v9146_v57, %v4885_v28  ;;  %v4889_v45 = vmul.f32 %v9144_v63, %v4754_v9  ;;  %v4764_v41 = vld [vmem:[#allocation2 + $0x2c8] sm:$0xff] }
 0x382   : > { %v7477_v30 = vpop.eup %7476  ;;  %5387 = vst.msk [vmem:[%s8164_s26 + $0x1d0] sm:$0xff] %vm4542_vm3, %v5259_v14  ;;  %v5261_v44 = vmul.f32 10.0, %v7475_v48  ;;  %7496 = vtanh.f32 %v5016_v55  ;;  %v5021_v0 = vadd.f32 %v9146_v57, %v4886_v39  ;;  %v4890_v34 = vmul.f32 %v9144_v63, %v4755_v25  ;;  %v4765_v55 = vld [vmem:[#allocation2 + $0x2d0] sm:$0xff] }
 0x383   : > { %v7479_v4 = vpop.eup %7478  ;;  %5388 = vst.msk [vmem:[%s8164_s26 + $0x1d8] sm:$0xff] %vm4542_vm3, %v5260_v27  ;;  %v5262_v47 = vmul.f32 10.0, %v7477_v30  ;;  %7498 = vtanh.f32 %v5017_v8  ;;  %v5022_v56 = vadd.f32 %v9146_v57, %v4887_v24  ;;  %v4891_v58 = vmul.f32 %v9144_v63, %v4756_v42  ;;  %v9438_v63 = vld [vmem:[#allocation9] ss:$0 sm:$0xff]  ;;  %v4766_v8 = vld [vmem:[#allocation2 + $0x2d8] sm:$0xff] }
 0x384   : > { %v7481_v3 = vpop.eup %7480  ;;  %5389 = vst.msk [vmem:[%s8164_s26 + $0x1e0] sm:$0xff] %vm4542_vm3, %v5261_v44  ;;  %v5263_v6 = vmul.f32 10.0, %v7479_v4  ;;  %7500 = vtanh.f32 %v5018_v52  ;;  %v5023_v32 = vadd.f32 %v9146_v57, %v4888_v51  ;;  %v4892_v33 = vmul.f32 %v9433_v18, %v4757_v13  ;;  %v4767_v52 = vld [vmem:[#allocation2 + $0x2e0] sm:$0xff] }
 0x385   : > { %v7483_v60 = vpop.eup %7482  ;;  %5390 = vst.msk [vmem:[%s8164_s26 + $0x1e8] sm:$0xff] %vm4542_vm3, %v5262_v47  ;;  %v5264_v5 = vmul.f32 10.0, %v7481_v3  ;;  %7502 = vtanh.f32 %v5019_v49  ;;  %v5024_v16 = vadd.f32 %v9438_v63, %v4889_v45  ;;  %v4893_v62 = vmul.f32 %v9433_v18, %v4758_v1  ;;  %v4768_v49 = vld [vmem:[#allocation2 + $0x2e8] sm:$0xff] }
 0x386   : > { %v7485_v59 = vpop.eup %7484  ;;  %5391 = vst.msk [vmem:[%s8164_s26 + $0x1f0] sm:$0xff] %vm4542_vm3, %v5263_v6  ;;  %v5265_v38 = vmul.f32 10.0, %v7483_v60  ;;  %7504 = vtanh.f32 %v5020_v54  ;;  %v5025_v10 = vadd.f32 %v9438_v63, %v4890_v34  ;;  %v4894_v22 = vmul.f32 %v9433_v18, %v4759_v29  ;;  %v4769_v54 = vld [vmem:[#allocation2 + $0x2f0] sm:$0xff] }
 0x387   : > { %v7487_v57 = vpop.eup %7486  ;;  %5392 = vst.msk [vmem:[%s8164_s26 + $0x1f8] sm:$0xff] %vm4542_vm3, %v5264_v5  ;;  %v5266_v19 = vmul.f32 10.0, %v7485_v59  ;;  %7506 = vtanh.f32 %v5021_v0  ;;  %v5026_v21 = vadd.f32 %v9438_v63, %v4891_v58  ;;  %v4895_v61 = vmul.f32 %v9433_v18, %v4760_v35  ;;  %v4770_v0 = vld [vmem:[#allocation2 + $0x2f8] sm:$0xff] }
 0x388   : > { %v7489_v15 = vpop.eup %7488  ;;  %5393 = vst.msk [vmem:[%s8164_s26 + $0x200] sm:$0xff] %vm4542_vm3, %v5265_v38  ;;  %v5267_v53 = vmul.f32 10.0, %v7487_v57  ;;  %7508 = vtanh.f32 %v5022_v56  ;;  %v5027_v40 = vadd.f32 %v9438_v63, %v4892_v33  ;;  %v4896_v36 = vmul.f32 %v9433_v18, %v4761_v17  ;;  %v4771_v56 = vld [vmem:[#allocation2 + $0x300] sm:$0xff] }
 0x389   : > { %v7491_v20 = vpop.eup %7490  ;;  %5394 = vst.msk [vmem:[%s8164_s26 + $0x208] sm:$0xff] %vm4542_vm3, %v5266_v19  ;;  %v5268_v23 = vmul.f32 10.0, %v7489_v15  ;;  %7510 = vtanh.f32 %v5023_v32  ;;  %v5028_v46 = vadd.f32 %v9438_v63, %v4893_v62  ;;  %v4897_v26 = vmul.f32 %v9433_v18, %v4762_v12  ;;  %v4772_v32 = vld [vmem:[#allocation2 + $0x308] sm:$0xff] }
 0x38a   : > { %v7493_v43 = vpop.eup %7492  ;;  %5395 = vst.msk [vmem:[%s8164_s26 + $0x210] sm:$0xff] %vm4542_vm3, %v5267_v53  ;;  %v5269_v50 = vmul.f32 10.0, %v7491_v20  ;;  %7512 = vtanh.f32 %v5024_v16  ;;  %v5029_v2 = vadd.f32 %v9438_v63, %v4894_v22  ;;  %v4898_v37 = vmul.f32 %v9433_v18, %v4763_v7  ;;  %v4773_v16 = vld [vmem:[#allocation2 + $0x310] sm:$0xff] }
 0x38b   : > { %v7495_v28 = vpop.eup %7494  ;;  %5396 = vst.msk [vmem:[%s8164_s26 + $0x218] sm:$0xff] %vm4542_vm3, %v5268_v23  ;;  %v5270_v31 = vmul.f32 10.0, %v7493_v43  ;;  %7514 = vtanh.f32 %v5025_v10  ;;  %v5030_v11 = vadd.f32 %v9438_v63, %v4895_v61  ;;  %v4899_v14 = vmul.f32 %v9433_v18, %v4764_v41  ;;  %v4774_v10 = vld [vmem:[#allocation2 + $0x318] sm:$0xff] }
 0x38c   : > { %v7497_v39 = vpop.eup %7496  ;;  %5397 = vst.msk [vmem:[%s8164_s26 + $0x220] sm:$0xff] %vm4542_vm3, %v5269_v50  ;;  %v5271_v9 = vmul.f32 10.0, %v7495_v28  ;;  %7516 = vtanh.f32 %v5026_v21  ;;  %v5031_v48 = vadd.f32 %v9438_v63, %v4896_v36  ;;  %v4900_v27 = vmul.f32 %v9433_v18, %v4765_v55  ;;  %v4775_v21 = vld [vmem:[#allocation2 + $0x320] sm:$0xff] }
 0x38d   : > { %v7499_v24 = vpop.eup %7498  ;;  %5398 = vst.msk [vmem:[%s8164_s26 + $0x228] sm:$0xff] %vm4542_vm3, %v5270_v31  ;;  %v5272_v25 = vmul.f32 10.0, %v7497_v39  ;;  %7518 = vtanh.f32 %v5027_v40  ;;  %v5032_v30 = vadd.f32 %v9438_v63, %v4897_v26  ;;  %v4901_v44 = vmul.f32 %v9433_v18, %v4766_v8  ;;  %v4776_v40 = vld [vmem:[#allocation2 + $0x328] sm:$0xff] }
 0x38e   : > { %v7501_v51 = vpop.eup %7500  ;;  %5399 = vst.msk [vmem:[%s8164_s26 + $0x230] sm:$0xff] %vm4542_vm3, %v5271_v9  ;;  %v5273_v42 = vmul.f32 10.0, %v7499_v24  ;;  %7520 = vtanh.f32 %v5028_v46  ;;  %v5033_v4 = vadd.f32 %v9438_v63, %v4898_v37  ;;  %v4902_v47 = vmul.f32 %v9433_v18, %v4767_v52  ;;  %v4777_v46 = vld [vmem:[#allocation2 + $0x330] sm:$0xff] }
 0x38f   : > { %v7503_v45 = vpop.eup %7502  ;;  %5400 = vst.msk [vmem:[%s8164_s26 + $0x238] sm:$0xff] %vm4542_vm3, %v5272_v25  ;;  %v5274_v13 = vmul.f32 10.0, %v7501_v51  ;;  %7522 = vtanh.f32 %v5029_v2  ;;  %v5034_v3 = vadd.f32 %v9438_v63, %v4899_v14  ;;  %v4903_v6 = vmul.f32 %v9433_v18, %v4768_v49  ;;  %v4778_v2 = vld [vmem:[#allocation2 + $0x338] sm:$0xff] }
 0x390   : > { %v7505_v34 = vpop.eup %7504  ;;  %5401 = vst.msk [vmem:[%s8164_s26 + $0x240] sm:$0xff] %vm4542_vm3, %v5273_v42  ;;  %v5275_v1 = vmul.f32 10.0, %v7503_v45  ;;  %7524 = vtanh.f32 %v5030_v11  ;;  %v5035_v60 = vadd.f32 %v9438_v63, %v4900_v27  ;;  %v4904_v5 = vmul.f32 %v9433_v18, %v4769_v54  ;;  %v4779_v11 = vld [vmem:[#allocation2 + $0x340] sm:$0xff] }
 0x391   : > { %v7507_v58 = vpop.eup %7506  ;;  %5402 = vst.msk [vmem:[%s8164_s26 + $0x248] sm:$0xff] %vm4542_vm3, %v5274_v13  ;;  %v5276_v29 = vmul.f32 10.0, %v7505_v34  ;;  %7526 = vtanh.f32 %v5031_v48  ;;  %v5036_v59 = vadd.f32 %v9438_v63, %v4901_v44  ;;  %v4905_v38 = vmul.f32 %v9433_v18, %v4770_v0  ;;  %v4780_v48 = vld [vmem:[#allocation2 + $0x348] sm:$0xff] }
 0x392   : > { %v7509_v33 = vpop.eup %7508  ;;  %5403 = vst.msk [vmem:[%s8164_s26 + $0x250] sm:$0xff] %vm4542_vm3, %v5275_v1  ;;  %v5277_v35 = vmul.f32 10.0, %v7507_v58  ;;  %7528 = vtanh.f32 %v5032_v30  ;;  %v5037_v57 = vadd.f32 %v9438_v63, %v4902_v47  ;;  %v4906_v19 = vmul.f32 %v9433_v18, %v4771_v56  ;;  %v4781_v30 = vld [vmem:[#allocation2 + $0x350] sm:$0xff] }
 0x393   : > { %v7511_v62 = vpop.eup %7510  ;;  %5404 = vst.msk [vmem:[%s8164_s26 + $0x258] sm:$0xff] %vm4542_vm3, %v5276_v29  ;;  %v5278_v17 = vmul.f32 10.0, %v7509_v33  ;;  %7530 = vtanh.f32 %v5033_v4  ;;  %v5038_v15 = vadd.f32 %v9438_v63, %v4903_v6  ;;  %v4907_v53 = vmul.f32 %v9433_v18, %v4772_v32  ;;  %v4782_v4 = vld [vmem:[#allocation2 + $0x358] sm:$0xff] }
 0x394   : > { %v7513_v22 = vpop.eup %7512  ;;  %5405 = vst.msk [vmem:[%s8164_s26 + $0x260] sm:$0xff] %vm4542_vm3, %v5277_v35  ;;  %v5279_v12 = vmul.f32 10.0, %v7511_v62  ;;  %7532 = vtanh.f32 %v5034_v3  ;;  %v5039_v20 = vadd.f32 %v9438_v63, %v4904_v5  ;;  %v4908_v23 = vmul.f32 %v9433_v18, %v4773_v16  ;;  %v4783_v3 = vld [vmem:[#allocation2 + $0x360] sm:$0xff] }
 0x395   : > { %v7515_v61 = vpop.eup %7514  ;;  %5406 = vst.msk [vmem:[%s8164_s26 + $0x268] sm:$0xff] %vm4542_vm3, %v5278_v17  ;;  %v5280_v7 = vmul.f32 10.0, %v7513_v22  ;;  %7534 = vtanh.f32 %v5035_v60  ;;  %v5040_v43 = vadd.f32 %v9438_v63, %v4905_v38  ;;  %v4909_v50 = vmul.f32 %v9433_v18, %v4774_v10  ;;  %v4784_v60 = vld [vmem:[#allocation2 + $0x368] sm:$0xff] }
 0x396   : > { %v7517_v36 = vpop.eup %7516  ;;  %5407 = vst.msk [vmem:[%s8164_s26 + $0x270] sm:$0xff] %vm4542_vm3, %v5279_v12  ;;  %v5281_v41 = vmul.f32 10.0, %v7515_v61  ;;  %7536 = vtanh.f32 %v5036_v59  ;;  %v5041_v28 = vadd.f32 %v9438_v63, %v4906_v19  ;;  %v4910_v31 = vmul.f32 %v9433_v18, %v4775_v21  ;;  %v4785_v59 = vld [vmem:[#allocation2 + $0x370] sm:$0xff] }
 0x397   : > { %v7519_v26 = vpop.eup %7518  ;;  %5408 = vst.msk [vmem:[%s8164_s26 + $0x278] sm:$0xff] %vm4542_vm3, %v5280_v7  ;;  %v5282_v55 = vmul.f32 10.0, %v7517_v36  ;;  %7538 = vtanh.f32 %v5037_v57  ;;  %v5042_v39 = vadd.f32 %v9438_v63, %v4907_v53  ;;  %v4911_v9 = vmul.f32 %v9433_v18, %v4776_v40  ;;  %v4786_v57 = vld [vmem:[#allocation2 + $0x378] sm:$0xff] }
 0x398   : > { %v7521_v37 = vpop.eup %7520  ;;  %5409 = vst.msk [vmem:[%s8164_s26 + $0x280] sm:$0xff] %vm4542_vm3, %v5281_v41  ;;  %v5283_v8 = vmul.f32 10.0, %v7519_v26  ;;  %7540 = vtanh.f32 %v5038_v15  ;;  %v5043_v24 = vadd.f32 %v9438_v63, %v4908_v23  ;;  %v4912_v25 = vmul.f32 %v9433_v18, %v4777_v46  ;;  %v4787_v15 = vld [vmem:[#allocation2 + $0x380] sm:$0xff] }
 0x399   : > { %v7523_v14 = vpop.eup %7522  ;;  %5410 = vst.msk [vmem:[%s8164_s26 + $0x288] sm:$0xff] %vm4542_vm3, %v5282_v55  ;;  %v5284_v52 = vmul.f32 10.0, %v7521_v37  ;;  %7542 = vtanh.f32 %v5039_v20  ;;  %v5044_v51 = vadd.f32 %v9438_v63, %v4909_v50  ;;  %v4913_v42 = vmul.f32 %v9433_v18, %v4778_v2  ;;  %v4788_v20 = vld [vmem:[#allocation2 + $0x388] sm:$0xff] }
 0x39a   : > { %v7525_v27 = vpop.eup %7524  ;;  %5411 = vst.msk [vmem:[%s8164_s26 + $0x290] sm:$0xff] %vm4542_vm3, %v5283_v8  ;;  %v5285_v49 = vmul.f32 10.0, %v7523_v14  ;;  %7544 = vtanh.f32 %v5040_v43  ;;  %v5045_v45 = vadd.f32 %v9438_v63, %v4910_v31  ;;  %v4914_v13 = vmul.f32 %v9433_v18, %v4779_v11  ;;  %v4789_v43 = vld [vmem:[#allocation2 + $0x390] sm:$0xff] }
 0x39b   : > { %v7527_v44 = vpop.eup %7526  ;;  %5412 = vst.msk [vmem:[%s8164_s26 + $0x298] sm:$0xff] %vm4542_vm3, %v5284_v52  ;;  %v5286_v54 = vmul.f32 10.0, %v7525_v27  ;;  %7546 = vtanh.f32 %v5041_v28  ;;  %v5046_v34 = vadd.f32 %v9438_v63, %v4911_v9  ;;  %v4915_v1 = vmul.f32 %v9433_v18, %v4780_v48  ;;  %v4790_v28 = vld [vmem:[#allocation2 + $0x398] sm:$0xff] }
 0x39c   : > { %v7529_v47 = vpop.eup %7528  ;;  %5413 = vst.msk [vmem:[%s8164_s26 + $0x2a0] sm:$0xff] %vm4542_vm3, %v5285_v49  ;;  %v5287_v0 = vmul.f32 10.0, %v7527_v44  ;;  %7548 = vtanh.f32 %v5042_v39  ;;  %v5047_v58 = vadd.f32 %v9438_v63, %v4912_v25  ;;  %v4916_v29 = vmul.f32 %v9433_v18, %v4781_v30  ;;  %v4791_v39 = vld [vmem:[#allocation2 + $0x3a0] sm:$0xff] }
 0x39d   : > { %v7531_v6 = vpop.eup %7530  ;;  %5414 = vst.msk [vmem:[%s8164_s26 + $0x2a8] sm:$0xff] %vm4542_vm3, %v5286_v54  ;;  %v5288_v56 = vmul.f32 10.0, %v7529_v47  ;;  %7550 = vtanh.f32 %v5043_v24  ;;  %v5048_v33 = vadd.f32 %v9438_v63, %v4913_v42  ;;  %v4917_v35 = vmul.f32 %v9433_v18, %v4782_v4  ;;  %v4792_v24 = vld [vmem:[#allocation2 + $0x3a8] sm:$0xff] }
 0x39e   : > { %v7533_v5 = vpop.eup %7532  ;;  %5415 = vst.msk [vmem:[%s8164_s26 + $0x2b0] sm:$0xff] %vm4542_vm3, %v5287_v0  ;;  %v5289_v32 = vmul.f32 10.0, %v7531_v6  ;;  %7552 = vtanh.f32 %v5044_v51  ;;  %v5049_v62 = vadd.f32 %v9438_v63, %v4914_v13  ;;  %v4918_v17 = vmul.f32 %v9433_v18, %v4783_v3  ;;  %v4793_v51 = vld [vmem:[#allocation2 + $0x3b0] sm:$0xff] }
 0x39f   : > { %v7535_v38 = vpop.eup %7534  ;;  %5416 = vst.msk [vmem:[%s8164_s26 + $0x2b8] sm:$0xff] %vm4542_vm3, %v5288_v56  ;;  %v5290_v16 = vmul.f32 10.0, %v7533_v5  ;;  %7554 = vtanh.f32 %v5045_v45  ;;  %v5050_v22 = vadd.f32 %v9438_v63, %v4915_v1  ;;  %v4919_v12 = vmul.f32 %v9433_v18, %v4784_v60  ;;  %v4794_v45 = vld [vmem:[#allocation2 + $0x3b8] sm:$0xff] }
 0x3a0   : > { %v7537_v19 = vpop.eup %7536  ;;  %5417 = vst.msk [vmem:[%s8164_s26 + $0x2c0] sm:$0xff] %vm4542_vm3, %v5289_v32  ;;  %v5291_v10 = vmul.f32 10.0, %v7535_v38  ;;  %7556 = vtanh.f32 %v5046_v34  ;;  %v5051_v61 = vadd.f32 %v9438_v63, %v4916_v29  ;;  %v4920_v7 = vmul.f32 %v9433_v18, %v4785_v59  ;;  %v4795_v34 = vld [vmem:[#allocation2 + $0x3c0] sm:$0xff] }
 0x3a1   : > { %v7539_v53 = vpop.eup %7538  ;;  %5418 = vst.msk [vmem:[%s8164_s26 + $0x2c8] sm:$0xff] %vm4542_vm3, %v5290_v16  ;;  %v5292_v21 = vmul.f32 10.0, %v7537_v19  ;;  %7558 = vtanh.f32 %v5047_v58  ;;  %v5052_v36 = vadd.f32 %v9438_v63, %v4917_v35  ;;  %v4921_v41 = vmul.f32 %v9433_v18, %v4786_v57  ;;  %v4796_v58 = vld [vmem:[#allocation2 + $0x3c8] sm:$0xff] }
 0x3a2   : > { %v7541_v23 = vpop.eup %7540  ;;  %5419 = vst.msk [vmem:[%s8164_s26 + $0x2d0] sm:$0xff] %vm4542_vm3, %v5291_v10  ;;  %v5293_v40 = vmul.f32 10.0, %v7539_v53  ;;  %7560 = vtanh.f32 %v5048_v33  ;;  %v5053_v26 = vadd.f32 %v9438_v63, %v4918_v17  ;;  %v4922_v55 = vmul.f32 %v9433_v18, %v4787_v15  ;;  %v4797_v33 = vld [vmem:[#allocation2 + $0x3d0] sm:$0xff] }
 0x3a3   : > { %v7543_v50 = vpop.eup %7542  ;;  %5420 = vst.msk [vmem:[%s8164_s26 + $0x2d8] sm:$0xff] %vm4542_vm3, %v5292_v21  ;;  %v5294_v46 = vmul.f32 10.0, %v7541_v23  ;;  %7562 = vtanh.f32 %v5049_v62  ;;  %v5054_v37 = vadd.f32 %v9438_v63, %v4919_v12  ;;  %v4923_v8 = vmul.f32 %v9433_v18, %v4788_v20  ;;  %v4798_v62 = vld [vmem:[#allocation2 + $0x3d8] sm:$0xff] }
 0x3a4   : > { %v7545_v31 = vpop.eup %7544  ;;  %5421 = vst.msk [vmem:[%s8164_s26 + $0x2e0] sm:$0xff] %vm4542_vm3, %v5293_v40  ;;  %v5295_v2 = vmul.f32 10.0, %v7543_v50  ;;  %7564 = vtanh.f32 %v5050_v22  ;;  %v5055_v14 = vadd.f32 %v9438_v63, %v4920_v7  ;;  %v4924_v52 = vmul.f32 %v9433_v18, %v4789_v43  ;;  %v4799_v22 = vld [vmem:[#allocation2 + $0x3e0] sm:$0xff] }
 0x3a5   : > { %v7547_v9 = vpop.eup %7546  ;;  %5422 = vst.msk [vmem:[%s8164_s26 + $0x2e8] sm:$0xff] %vm4542_vm3, %v5294_v46  ;;  %v5296_v11 = vmul.f32 10.0, %v7545_v31  ;;  %7566 = vtanh.f32 %v5051_v61  ;;  %v5056_v27 = vadd.f32 %v9438_v63, %v4921_v41  ;;  %v4925_v49 = vmul.f32 %v9433_v18, %v4790_v28  ;;  %v4800_v61 = vld [vmem:[#allocation2 + $0x3e8] sm:$0xff] }
 0x3a6   : > { %v7549_v25 = vpop.eup %7548  ;;  %5423 = vst.msk [vmem:[%s8164_s26 + $0x2f0] sm:$0xff] %vm4542_vm3, %v5295_v2  ;;  %v5297_v48 = vmul.f32 10.0, %v7547_v9  ;;  %7568 = vtanh.f32 %v5052_v36  ;;  %v5057_v44 = vadd.f32 %v9438_v63, %v4922_v55  ;;  %v4926_v54 = vmul.f32 %v9433_v18, %v4791_v39  ;;  %v4801_v36 = vld [vmem:[#allocation2 + $0x3f0] sm:$0xff] }
 0x3a7   : > { %v7551_v42 = vpop.eup %7550  ;;  %5424 = vst.msk [vmem:[%s8164_s26 + $0x2f8] sm:$0xff] %vm4542_vm3, %v5296_v11  ;;  %v5298_v30 = vmul.f32 10.0, %v7549_v25  ;;  %7570 = vtanh.f32 %v5053_v26  ;;  %v5058_v47 = vadd.f32 %v9438_v63, %v4923_v8  ;;  %v4927_v0 = vmul.f32 %v9433_v18, %v4792_v24  ;;  %v4802_v26 = vld [vmem:[#allocation2 + $0x3f8] sm:$0xff] }
 0x3a8   : > { %v7553_v13 = vpop.eup %7552  ;;  %5425 = vst.msk [vmem:[%s8164_s26 + $0x300] sm:$0xff] %vm4542_vm3, %v5297_v48  ;;  %v5299_v4 = vmul.f32 10.0, %v7551_v42  ;;  %7572 = vtanh.f32 %v5054_v37  ;;  %v5059_v6 = vadd.f32 %v9438_v63, %v4924_v52  ;;  %v4928_v56 = vmul.f32 %v9433_v18, %v4793_v51 }
 0x3a9   : > { %v7555_v1 = vpop.eup %7554  ;;  %5426 = vst.msk [vmem:[%s8164_s26 + $0x308] sm:$0xff] %vm4542_vm3, %v5298_v30  ;;  %v5300_v3 = vmul.f32 10.0, %v7553_v13  ;;  %7574 = vtanh.f32 %v5055_v14  ;;  %v5060_v5 = vadd.f32 %v9438_v63, %v4925_v49  ;;  %v4929_v32 = vmul.f32 %v9433_v18, %v4794_v45 }
 0x3aa   : > { %v7557_v29 = vpop.eup %7556  ;;  %5427 = vst.msk [vmem:[%s8164_s26 + $0x310] sm:$0xff] %vm4542_vm3, %v5299_v4  ;;  %v5301_v60 = vmul.f32 10.0, %v7555_v1  ;;  %7576 = vtanh.f32 %v5056_v27  ;;  %v5061_v38 = vadd.f32 %v9438_v63, %v4926_v54  ;;  %v4930_v16 = vmul.f32 %v9433_v18, %v4795_v34 }
 0x3ab   : > { %v7559_v35 = vpop.eup %7558  ;;  %5428 = vst.msk [vmem:[%s8164_s26 + $0x318] sm:$0xff] %vm4542_vm3, %v5300_v3  ;;  %v5302_v59 = vmul.f32 10.0, %v7557_v29  ;;  %7578 = vtanh.f32 %v5057_v44  ;;  %v5062_v19 = vadd.f32 %v9438_v63, %v4927_v0  ;;  %v4931_v10 = vmul.f32 %v9433_v18, %v4796_v58 }
 0x3ac   : > { %v7561_v17 = vpop.eup %7560  ;;  %5429 = vst.msk [vmem:[%s8164_s26 + $0x320] sm:$0xff] %vm4542_vm3, %v5301_v60  ;;  %v5303_v57 = vmul.f32 10.0, %v7559_v35  ;;  %7580 = vtanh.f32 %v5058_v47  ;;  %v5063_v53 = vadd.f32 %v9438_v63, %v4928_v56  ;;  %v4932_v21 = vmul.f32 %v9433_v18, %v4797_v33 }
 0x3ad   : > { %v7563_v12 = vpop.eup %7562  ;;  %5430 = vst.msk [vmem:[%s8164_s26 + $0x328] sm:$0xff] %vm4542_vm3, %v5302_v59  ;;  %v5304_v15 = vmul.f32 10.0, %v7561_v17  ;;  %7582 = vtanh.f32 %v5059_v6  ;;  %v5064_v23 = vadd.f32 %v9438_v63, %v4929_v32  ;;  %v4933_v40 = vmul.f32 %v9433_v18, %v4798_v62 }
 0x3ae   : > { %v7565_v7 = vpop.eup %7564  ;;  %5431 = vst.msk [vmem:[%s8164_s26 + $0x330] sm:$0xff] %vm4542_vm3, %v5303_v57  ;;  %v5305_v20 = vmul.f32 10.0, %v7563_v12  ;;  %7584 = vtanh.f32 %v5060_v5  ;;  %v5065_v50 = vadd.f32 %v9438_v63, %v4930_v16  ;;  %v4934_v46 = vmul.f32 %v9433_v18, %v4799_v22 }
 0x3af   : > { %v7567_v41 = vpop.eup %7566  ;;  %5432 = vst.msk [vmem:[%s8164_s26 + $0x338] sm:$0xff] %vm4542_vm3, %v5304_v15  ;;  %v5306_v43 = vmul.f32 10.0, %v7565_v7  ;;  %7586 = vtanh.f32 %v5061_v38  ;;  %v5066_v31 = vadd.f32 %v9438_v63, %v4931_v10  ;;  %v4935_v2 = vmul.f32 %v9433_v18, %v4800_v61 }
 0x3b0   : > { %v7569_v55 = vpop.eup %7568  ;;  %5433 = vst.msk [vmem:[%s8164_s26 + $0x340] sm:$0xff] %vm4542_vm3, %v5305_v20  ;;  %v5307_v28 = vmul.f32 10.0, %v7567_v41  ;;  %7588 = vtanh.f32 %v5062_v19  ;;  %v5067_v39 = vadd.f32 %v9438_v63, %v4932_v21  ;;  %v4936_v9 = vmul.f32 %v9433_v18, %v4801_v36 }
 0x3b1   : > { %v7571_v37 = vpop.eup %7570  ;;  %5434 = vst.msk [vmem:[%s8164_s26 + $0x348] sm:$0xff] %vm4542_vm3, %v5306_v43  ;;  %v5308_v8 = vmul.f32 10.0, %v7569_v55  ;;  %7590 = vtanh.f32 %v5063_v53  ;;  %v5068_v52 = vadd.f32 %v9438_v63, %v4933_v40  ;;  %v4937_v24 = vmul.f32 %v9433_v18, %v4802_v26 }
 0x3b2   : > { %v7573_v11 = vpop.eup %7572  ;;  %5435 = vst.msk [vmem:[%s8164_s26 + $0x350] sm:$0xff] %vm4542_vm3, %v5307_v28  ;;  %v5309_v14 = vmul.f32 10.0, %v7571_v37  ;;  %7592 = vtanh.f32 %v5064_v23  ;;  %v5069_v27 = vadd.f32 %v9438_v63, %v4934_v46  ;;  %v5070_v42 = vadd.f32 %v9438_v63, %v4935_v2 }
 0x3b3   : > { %v7575_v25 = vpop.eup %7574  ;;  %5436 = vst.msk [vmem:[%s8164_s26 + $0x358] sm:$0xff] %vm4542_vm3, %v5308_v8  ;;  %v5310_v48 = vmul.f32 10.0, %v7573_v11  ;;  %7594 = vtanh.f32 %v5065_v50  ;;  %v5071_v44 = vadd.f32 %v9438_v63, %v4936_v9  ;;  %v5072_v13 = vadd.f32 %v9438_v63, %v4937_v24 }
 0x3b4   : > { %v7577_v49 = vpop.eup %7576  ;;  %5437 = vst.msk [vmem:[%s8164_s26 + $0x360] sm:$0xff] %vm4542_vm3, %v5309_v14  ;;  %v5311_v51 = vmul.f32 10.0, %v7575_v25  ;;  %7596 = vtanh.f32 %v5066_v31 }
 0x3b5   : > { %v7579_v30 = vpop.eup %7578  ;;  %5438 = vst.msk [vmem:[%s8164_s26 + $0x368] sm:$0xff] %vm4542_vm3, %v5310_v48  ;;  %v5312_v18 = vmul.f32 10.0, %v7577_v49  ;;  %7598 = vtanh.f32 %v5067_v39 }
 0x3b6   : > { %v7581_v54 = vpop.eup %7580  ;;  %5439 = vst.msk [vmem:[%s8164_s26 + $0x370] sm:$0xff] %vm4542_vm3, %v5311_v51  ;;  %v5313_v45 = vmul.f32 10.0, %v7579_v30  ;;  %7600 = vtanh.f32 %v5068_v52 }
 0x3b7   : > { %v7583_v4 = vpop.eup %7582  ;;  %5440 = vst.msk [vmem:[%s8164_s26 + $0x378] sm:$0xff] %vm4542_vm3, %v5312_v18  ;;  %v5314_v47 = vmul.f32 10.0, %v7581_v54  ;;  %7602 = vtanh.f32 %v5069_v27 }
 0x3b8   : > { %v7585_v0 = vpop.eup %7584  ;;  %5441 = vst.msk [vmem:[%s8164_s26 + $0x380] sm:$0xff] %vm4542_vm3, %v5313_v45  ;;  %v5315_v34 = vmul.f32 10.0, %v7583_v4  ;;  %7604 = vtanh.f32 %v5070_v42 }
 0x3b9   : > { %v7587_v1 = vpop.eup %7586  ;;  %5442 = vst.msk [vmem:[%s8164_s26 + $0x388] sm:$0xff] %vm4542_vm3, %v5314_v47  ;;  %v5316_v3 = vmul.f32 10.0, %v7585_v0  ;;  %7606 = vtanh.f32 %v5071_v44 }
 0x3ba   : > { %v7589_v63 = vpop.eup %7588  ;;  %5443 = vst.msk [vmem:[%s8164_s26 + $0x390] sm:$0xff] %vm4542_vm3, %v5315_v34  ;;  %v5317_v6 = vmul.f32 10.0, %v7587_v1  ;;  %7608 = vtanh.f32 %v5072_v13 }
 0x3bb   : > { %v7591_v56 = vpop.eup %7590  ;;  %5444 = vst.msk [vmem:[%s8164_s26 + $0x398] sm:$0xff] %vm4542_vm3, %v5316_v3  ;;  %v5318_v58 = vmul.f32 10.0, %v7589_v63 }
 0x3bc   : > { %v7593_v29 = vpop.eup %7592  ;;  %5445 = vst.msk [vmem:[%s8164_s26 + $0x3a0] sm:$0xff] %vm4542_vm3, %v5317_v6  ;;  %v5319_v60 = vmul.f32 10.0, %v7591_v56 }
 0x3bd   : > { %v7595_v5 = vpop.eup %7594  ;;  %5446 = vst.msk [vmem:[%s8164_s26 + $0x3a8] sm:$0xff] %vm4542_vm3, %v5318_v58  ;;  %v5320_v32 = vmul.f32 10.0, %v7593_v29 }
 0x3be   : > { %v7597_v33 = vpop.eup %7596  ;;  %5447 = vst.msk [vmem:[%s8164_s26 + $0x3b0] sm:$0xff] %vm4542_vm3, %v5319_v60  ;;  %v5321_v35 = vmul.f32 10.0, %v7595_v5 }
 0x3bf   : > { %v7599_v59 = vpop.eup %7598  ;;  %5448 = vst.msk [vmem:[%s8164_s26 + $0x3b8] sm:$0xff] %vm4542_vm3, %v5320_v32  ;;  %v5322_v38 = vmul.f32 10.0, %v7597_v33 }
 0x3c0   : > { %v7601_v16 = vpop.eup %7600  ;;  %5449 = vst.msk [vmem:[%s8164_s26 + $0x3c0] sm:$0xff] %vm4542_vm3, %v5321_v35  ;;  %v5323_v62 = vmul.f32 10.0, %v7599_v59 }
 0x3c1   : > { %v7603_v17 = vpop.eup %7602  ;;  %5450 = vst.msk [vmem:[%s8164_s26 + $0x3c8] sm:$0xff] %vm4542_vm3, %v5322_v38  ;;  %v5324_v57 = vmul.f32 10.0, %v7601_v16 }
 0x3c2   : > { %v7605_v19 = vpop.eup %7604  ;;  %5451 = vst.msk [vmem:[%s8164_s26 + $0x3d0] sm:$0xff] %vm4542_vm3, %v5323_v62  ;;  %v5325_v10 = vmul.f32 10.0, %v7603_v17 }
 0x3c3   : > { %v7607_v22 = vpop.eup %7606  ;;  %5452 = vst.msk [vmem:[%s8164_s26 + $0x3d8] sm:$0xff] %vm4542_vm3, %v5324_v57  ;;  %v5326_v12 = vmul.f32 10.0, %v7605_v19 }
 0x3c4   : > { %v7609_v15 = vpop.eup %7608  ;;  %5453 = vst.msk [vmem:[%s8164_s26 + $0x3e0] sm:$0xff] %vm4542_vm3, %v5325_v10  ;;  %v5327_v53 = vmul.f32 10.0, %v7607_v22 }
 0x3c5   : > { %5454 = vst.msk [vmem:[%s8164_s26 + $0x3e8] sm:$0xff] %vm4542_vm3, %v5326_v12  ;;  %v5328_v21 = vmul.f32 10.0, %v7609_v15 }
 0x3c6   : > { %5455 = vst.msk [vmem:[%s8164_s26 + $0x3f0] sm:$0xff] %vm4542_vm3, %v5327_v53 }
 0x3c7   : > { %5456 = vst.msk [vmem:[%s8164_s26 + $0x3f8] sm:$0xff] %vm4542_vm3, %v5328_v21 }
 0x3c8 PF: > { %s9813_s21 = sld [smem:[#allocation17_spill]]  ;;  %s9814_s29 = sld [smem:[#allocation18_spill]] }
 0x3c9   : > { %s9815_s22 = sld [smem:[#allocation40_spill]]  ;;  %s5473_s27 = sshll.u32 %s8164_s26, 4  ;;  %s9671_s27 = int_to_ptr.vmem [resolvable:$true] %s5473_s27 }
 0x3ca   : > { %s9675_s2 = scalar_lea.sflag [#allocation5], %s281_s1  ;;  %s7726_s14 = scalar_lea.vmem %s9671_s27, 16384 }
 0x3cb   : > { %p7727_p9 = scmp.ne.s32.totalorder %s9671_s27, %s7726_s14  ;;  %s7865_s11 = smov [#allocation11]  }
 0x3cc   : > { %s7730_s9 = sshll.u32 %s7865_s11, 4  ;;  %s7731_s9 = int_to_ptr.vmem [resolvable:$false] %s7730_s9 }
 0x3cd   : > { %s7732_s7 = scalar_lea.vmem %s7731_s9, 32768  ;;  %p7733_p8 = scmp.lt.s32.totalorder %s9671_s27, %s7731_s9 }
 0x3ce   : > { %s6028_s18 = sshll.u32 %s9813_s21, 14  ;;  %p9817_p5 = scmp.ne.s32.totalorder %s9814_s29, 0 }
 0x3cf   : > { %s9816_s13 = smov %s9815_s22  ;;  %s9668_s10 = scalar_lea.hbm %s9815_s22, %s6028_s18 }
 0x3d0   : > { %p7728_p6 = pnand %p7727_p9, %p9817_p5  ;;  %p7734_p12 = scmp.lt.s32.totalorder %s7732_s7, %s7726_s14 }
 0x3d2   : > { %p7729_p13 = pneg %p7728_p6  ;;  %p7735_p4 = por %p7734_p12, %p7733_p8 }
 0x3d4   : > { %p7736_p7 = pnand %p7735_p4, %p7729_p13 }
 0x3d6   : > { %7739 = shalt.err (!%p7736_p7)
}
 0x3d7   : > { %s7740_s1 = scalar_lea.hbm %s9668_s10, 16384  ;;  %s7744_s30 = scalar_lea.hbm %s9816_s13, 262144 }
 0x3d8   : > { %p7741_p3 = scmp.ne.s32.totalorder %s9668_s10, %s7740_s1  ;;  %p7745_p11 = scmp.lt.u32.totalorder %s9668_s10, %s9816_s13 }
 0x3d9   : > { %p7746_p10 = scmp.lt.u32.totalorder %s7744_s30, %s7740_s1  ;;  %p7748_p9 = scmp.lt.u32.totalorder %s7740_s1, %s9668_s10 }
 0x3da   : > { %p7742_p0 = pnand %p7741_p3, %p9817_p5 }
 0x3db   : > { %p7747_p2 = por %p7746_p10, %p7745_p11 }
 0x3dc   : > { %p7743_p1 = pneg %p7742_p0 }
 0x3dd   : > { %p7749_p6 = por %p7748_p9, %p7747_p2 }
 0x3df   : > { %p7750_p13 = pnand %p7749_p6, %p7743_p1 }
 0x3e1   : > { %7753 = shalt.err (!%p7750_p13)
}
 0x3e2   : > { %s7866_s8 = smov 128   ;;  %s7867_s4 = smov 8  }
 0x3e3   : > { %7032 = dma.vmem_to_hbm [thread:$0]  (%p9817_p5), %s9671_s27, 16384, %s9668_s10, %s9675_s2, %s7866_s8, %s7866_s8, %s7867_s4  }
 0x3e4 PF: > { %s9818_s22 = sld [smem:[#allocation16_spill]]  ;;  %s9819_s14 = sld [smem:[#allocation19_spill]] }
 0x3e5   : > { %p7059_p8 = scmp.ge.s32.totalorder %s7856_s25, 2 }
 0x3ea   : > { %s5488_s11 = sand.u32 1, %s9818_s22   ;;  %p9820_p12 = scmp.ne.s32.totalorder %s9819_s14, 0 }
 0x3eb   : > { %s5489_s9 = scalar_lea.sflag [#allocation5], %s5488_s11 }
 0x3ec   : > { %p7049_p4 = pnand %p7059_p8, %p9820_p12 }
 0x3ee   : > { %7811 = dma.done.wait (!%p7049_p4), %s5489_s9, 16384  }
 0x3ef   : > { %7813 = vsyncadd (!%p7049_p4), %s5489_s9, 4294950912  ;;  %s22_s25 = sadd.s32 1, %s7856_s25   ;;  %s9821_s29 = smov %s8096_s15 }
 0x3f0   : > { %p19_p7 = scmp.ge.s32.totalorder %s22_s25, 50   ;;  %s9822_s15 = smov %s7820_s16 }
 0x3f1   : > { %s9823_s16 = smov %s7824_s17  ;;  %s9824_s17 = smov %s8093_s12 }
 0x3f2   : > { %s9825_s18 = smov %s7832_s19  ;;  %s9826_s19 = smov %s7836_s20 }
 0x3f3   : > { %s9827_s20 = smov %s9821_s29  ;;  %s9828_s21 = smov %s7848_s23 }
 0x3f4   : > { %s9829_s22 = smov %s7852_s24  ;;  %s9830_s23 = smov %s9833_s6 }
 0x3f5   : > { %s9831_s24 = smov %s9837_s5  ;;  %21 = sbr.rel (!%p19_p7) target bundleno = 15 (0xf), region = 104 }
 0x3fc   :  { %5494 = vsyncpa [#allocation4], 1 }
 0x3fd   :  { %5496 = vsyncpa [#allocation4 + $0x1], 1 }
 0x3fe   :  { %5497 = vsyncpa [#allocation7], 1 }
 0x3ff   :  { %5498 = vsyncpa [#allocation10], 1 }
 0x400   :  { %5499 = vsyncpa [#allocation5], 1 }
 0x401   :  { %5501 = vsyncpa [#allocation5 + $0x1], 1 }

</bundles_post_ra>
